<compile_context>
chip_gen: v7x
topology: tpu7x:2x2x1
jax: 0.10.0
libtpu: 0.0.40
codegen_flags: <defaults>
</compile_context>

<pallas_src>
from functools import partial

import numpy as np
import jax
import jax.numpy as jnp
from jax.experimental import pallas as pl
from jax.experimental.pallas import tpu as pltpu

EPS = 1e-5
NUM_GROUPS = 32
LANE = 128


def _round_up(x, m):
    return ((x + m - 1) // m) * m


# ---------------------------------------------------------------------------
# Kernel helpers
# ---------------------------------------------------------------------------
def _groupnorm_silu(xf, col, dist, gamma, beta):
    # xf: (M, Cp) f32.
    # col:  (Cp, G) f32 with 1/(cg*HW) at real channels of their group, 0 elsewhere
    #       (padded channels contribute nothing to group sums).
    # dist: (G, Cp) f32 0/1 group->channel broadcast map (0 columns for padded
    #       channels -> mean = var = 0 there; gamma/beta pads are 0 -> output 0).
    # All elementwise math stays f32 (v5e has no bf16 VPU/EUP path).
    # NOTE: var = E[x^2] - E[x]^2 in f32; adequate at activation scale.
    s = jnp.sum(xf, axis=0, keepdims=True)                            # (1, Cp)
    ss = jnp.sum(xf * xf, axis=0, keepdims=True)                      # (1, Cp)
    g = jnp.dot(jnp.concatenate([s, ss], axis=0), col,
                preferred_element_type=jnp.float32)                   # (2, G)
    stats = jnp.dot(g, dist, preferred_element_type=jnp.float32)      # (2, Cp)
    mean = stats[0:1, :]
    var = stats[1:2, :] - mean * mean
    inv = jax.lax.rsqrt(var + EPS)
    y = (xf - mean) * (inv * gamma) + beta
    return y * jax.nn.sigmoid(y)                                      # SiLU


def _store_padded(pad_ref, a, H, W):
    # Write activations into the (H+2, W+2, Cp) bf16 scratch.  Only the two border
    # rows are zeroed; the left/right 1-px border is produced by the width-concat so
    # every store is a contiguous leading-dim-sliced store (no full-buffer zeroing).
    # NOTE: borders are rewritten every grid step on purpose - under "parallel"
    # sharding each core has its own scratch, so a program_id==0-only init is wrong.
    Cp = pad_ref.shape[-1]
    dt = pad_ref.dtype
    zrow = jnp.zeros((1, W + 2, Cp), dt)
    zcol = jnp.zeros((H, 1, Cp), dt)
    pad_ref[0:1, :, :] = zrow                                         # top border
    pad_ref[H + 1:H + 2, :, :] = zrow                                 # bottom border
    pad_ref[1:H + 1, :, :] = jnp.concatenate([zcol, a.astype(dt), zcol], axis=1)


def _conv3x3(pad_ref, w_ref, acc0, H, W):
    # pad_ref: (H+2, W+2, Cp_in) bf16 zero-bordered activations.
    # w_ref:   (3, 3*Cp_in, Cp_out) bf16 (dy-major, row index = dx*Cp_in + c).
    # acc0:    f32 accumulator init, (1, Cp_out) bias or (HW, Cp_out) bias+residual.
    # kw-fused im2col: per dy build an (HW, 3*Cp_in) bf16 patch and do one MXU
    # matmul with K = 3*Cp_in, accumulating in f32.
    HW = H * W
    Cp_in = pad_ref.shape[-1]
    acc = acc0
    for dy in range(3):
        rows = pad_ref[dy:dy + H, :, :]                               # (H, W+2, Cp_in)
        patch = jnp.concatenate(
            [rows[:, 0:W, :], rows[:, 1:W + 1, :], rows[:, 2:W + 2, :]],
            axis=-1).reshape(HW, 3 * Cp_in)                           # (HW, 3*Cp_in) bf16
        acc = acc + jnp.dot(patch, w_ref[dy],
                            preferred_element_type=jnp.float32)
    return acc                                                        # (HW, Cp_out) f32


# ---------------------------------------------------------------------------
# Kernel
# ---------------------------------------------------------------------------
def resblock_kernel(x_ref,
                    col1_ref, dist1_ref, g1_ref, b1_ref, w1_ref, c1b_ref,
                    col2_ref, dist2_ref, g2_ref, b2_ref, w2_ref, c2b_ref,
                    *rest, H, W, Cin, Cp_in, Cp_out, use_res_matmul):
    if use_res_matmul:
        wr_ref, rb_ref, out_ref, pad1_ref, pad2_ref = rest
    else:
        out_ref, pad1_ref, pad2_ref = rest

    HW = H * W

    def load_x():
        # x block is DMA'd unpadded; lane-pad to Cp_in in-register so downstream
        # vreg work / MXU K dims stay 128-dense.  Called again at the residual so
        # the f32 value need not stay live across conv_1 / GN2 (the block itself is
        # resident in VMEM, so the re-read is cheap).
        x3 = x_ref[0].astype(jnp.float32)                             # (H, W, Cin)
        if Cin != Cp_in:
            x3 = jnp.concatenate(
                [x3, jnp.zeros((H, W, Cp_in - Cin), jnp.float32)], axis=-1)
        return x3.reshape(HW, Cp_in)                                  # (HW, Cp_in)

    # GroupNorm(32, Cin) + SiLU
    a1 = _groupnorm_silu(load_x(), col1_ref[...], dist1_ref[...],
                         g1_ref[...], b1_ref[...])

    # conv_1: 3x3, padding=1 (accumulator starts at the bias)
    _store_padded(pad1_ref, a1.reshape(H, W, Cp_in), H, W)
    h1 = _conv3x3(pad1_ref, w1_ref, c1b_ref[...].astype(jnp.float32), H, W)

    # GroupNorm(32, Cout) + SiLU
    a2 = _groupnorm_silu(h1, col2_ref[...], dist2_ref[...],
                         g2_ref[...], b2_ref[...])

    # residual: 1x1 conv when Cin != Cout, identity otherwise; folded into conv_2's
    # accumulator init so there is no separate (HW, Cp_out) f32 add pass afterwards.
    xr = load_x()
    if use_res_matmul:
        res = jnp.dot(xr.astype(jnp.bfloat16), wr_ref[...],
                      preferred_element_type=jnp.float32) + rb_ref[...]
    else:
        res = xr                                                      # Cp_in == Cp_out

    # conv_2: 3x3, padding=1 (accumulator starts at bias + residual)
    _store_padded(pad2_ref, a2.reshape(H, W, Cp_out), H, W)
    h2 = _conv3x3(pad2_ref, w2_ref, res + c2b_ref[...], H, W)

    out_ref[0] = h2.reshape(H, W, Cp_out).astype(out_ref.dtype)


# ---------------------------------------------------------------------------
# Wrapper
# ---------------------------------------------------------------------------
def _group_matrices(C, Cp, HW, groups=NUM_GROUPS):
    # Skinny GroupNorm factorization: collect (Cp, G) with 1/(cg*HW) per real
    # channel, distribute (G, Cp) 0/1 broadcast map.  Padded channels -> zero rows /
    # zero columns.
    cg = C // groups
    gid = np.arange(C) // cg
    collect = np.zeros((Cp, groups), np.float32)
    collect[np.arange(C), gid] = 1.0 / float(cg * HW)
    distribute = np.zeros((groups, Cp), np.float32)
    distribute[gid, np.arange(C)] = 1.0
    return jnp.asarray(collect), jnp.asarray(distribute)


def _pad_last(a, target):
    pad = target - a.shape[-1]
    if pad == 0:
        return a
    return jnp.pad(a, [(0, 0)] * (a.ndim - 1) + [(0, pad)])


def _prep_conv_w(w, Cp_in, Cp_out):
    # (3, 3, Cin, Cout) -> zero-pad channels -> (3, 3*Cp_in, Cp_out) bf16.
    kh, kw, ci, co = w.shape
    w = jnp.pad(w, ((0, 0), (0, 0), (0, Cp_in - ci), (0, Cp_out - co)))
    return w.reshape(kh, kw * Cp_in, Cp_out).astype(jnp.bfloat16)


def _const_spec(*shape):
    # Constant-index input: same block every grid step -> single-buffer it so the
    # pipeline does not allocate a second (dead) VMEM copy of each weight/matrix.
    nd = len(shape)
    idx = lambda n: (0,) * nd
    try:
        return pl.BlockSpec(shape, idx, pipeline_mode=pl.Buffered(1))
    except TypeError:                                                 # pragma: no cover
        return pl.BlockSpec(shape, idx)


def _vmem_limit_bytes(H, W, Cin, Cp_in, Cp_out, use_res):
    HW = H * W
    pads = (H + 2) * (W + 2) * (Cp_in + Cp_out) * 2                   # bf16 scratches
    consts = (9 * Cp_in * Cp_out + 9 * Cp_out * Cp_out) * 2           # bf16 weights (1-buf)
    consts += (Cp_in + Cp_out) * NUM_GROUPS * 2 * 4                   # collect/distribute
    consts += (2 * Cp_in + 6 * Cp_out) * 4                            # small param vectors
    if use_res:
        consts += Cp_in * Cp_out * 2 + Cp_out * 4
    io = 2 * HW * Cin * 4 + 2 * HW * Cp_out * 4                       # double-buffered x/out
    temps = 6 * HW * max(Cp_in, Cp_out) * 4 + 6 * HW * max(Cp_in, Cp_out) * 2
    est = int((pads + consts + io + temps) * 1.25) + (2 << 20)
    try:
        cap = int(pltpu.get_tpu_info().vmem_capacity_bytes * 0.75)
    except Exception:                                                 # pragma: no cover
        cap = 64 << 20                                                # safe on all gens
    return int(min(max(est, 32 << 20), cap))


def residual_block_forward(x_nchw, params):
    # x_nchw: (N, Cin, H, W) float32
    x = jnp.transpose(x_nchw, (0, 2, 3, 1)).astype(jnp.float32)       # NCHW -> NHWC
    N, H, W, Cin = x.shape
    Cout = params["conv1_w"].shape[-1]
    HW = H * W
    Cp_in = _round_up(Cin, LANE)
    Cp_out = _round_up(Cout, LANE)
    use_res = Cin != Cout                                             # Identity otherwise

    col1, dist1 = _group_matrices(Cin, Cp_in, HW)
    col2, dist2 = _group_matrices(Cout, Cp_out, HW)
    g1 = _pad_last(params["gn1_gamma"].reshape(1, Cin), Cp_in)
    b1 = _pad_last(params["gn1_beta"].reshape(1, Cin), Cp_in)
    g2 = _pad_last(params["gn2_gamma"].reshape(1, Cout), Cp_out)
    b2 = _pad_last(params["gn2_beta"].reshape(1, Cout), Cp_out)
    c1b = _pad_last(params["conv1_b"].reshape(1, Cout), Cp_out)
    c2b = _pad_last(params["conv2_b"].reshape(1, Cout), Cp_out)
    w1 = _prep_conv_w(params["conv1_w"], Cp_in, Cp_out)
    w2 = _prep_conv_w(params["conv2_w"], Cp_out, Cp_out)

    in_specs = [
        # x block is unpadded: last dims equal the full array dims, so legal, and the
        # DMA only moves the real channels.
        pl.BlockSpec((1, H, W, Cin), lambda n: (n, 0, 0, 0)),
        _const_spec(Cp_in, NUM_GROUPS), _const_spec(NUM_GROUPS, Cp_in),    # GN1 matrices
        _const_spec(1, Cp_in), _const_spec(1, Cp_in),                      # gn1 gamma/beta
        _const_spec(3, 3 * Cp_in, Cp_out), _const_spec(1, Cp_out),         # conv1 w/b
        _const_spec(Cp_out, NUM_GROUPS), _const_spec(NUM_GROUPS, Cp_out),  # GN2 matrices
        _const_spec(1, Cp_out), _const_spec(1, Cp_out),                    # gn2 gamma/beta
        _const_spec(3, 3 * Cp_out, Cp_out), _const_spec(1, Cp_out),        # conv2 w/b
    ]
    args = [x, col1, dist1, g1, b1, w1, c1b, col2, dist2, g2, b2, w2, c2b]
    if use_res:
        wr = jnp.pad(params["res_w"],
                     ((0, Cp_in - Cin), (0, Cp_out - Cout))).astype(jnp.bfloat16)
        rb = _pad_last(params["res_b"].reshape(1, Cout), Cp_out)
        in_specs += [_const_spec(Cp_in, Cp_out), _const_spec(1, Cp_out)]
        args += [wr, rb]

    # Advisory cost estimate (convs + residual matmul; SiLU sigmoids; x/out/weights).
    flops = N * HW * (18 * Cin * Cout + 18 * Cout * Cout
                      + (2 * Cin * Cout if use_res else 0) + 12 * (Cin + Cout))
    transc = N * HW * (Cin + Cout)
    bytes_acc = (N * HW * Cin * 4 + N * HW * Cp_out * 4
                 + (9 * Cp_in * Cp_out + 9 * Cp_out * Cp_out) * 2
                 + (Cp_in * Cp_out * 2 if use_res else 0))
    cost = pl.CostEstimate(flops=int(flops), transcendentals=int(transc),
                           bytes_accessed=int(bytes_acc))

    out = pl.pallas_call(
        partial(resblock_kernel, H=H, W=W, Cin=Cin, Cp_in=Cp_in, Cp_out=Cp_out,
                use_res_matmul=use_res),
        out_shape=jax.ShapeDtypeStruct((N, H, W, Cp_out), jnp.float32),
        grid_spec=pltpu.PrefetchScalarGridSpec(
            num_scalar_prefetch=0,
            grid=(N,),
            in_specs=in_specs,
            out_specs=pl.BlockSpec((1, H, W, Cp_out), lambda n: (n, 0, 0, 0)),
            scratch_shapes=[
                pltpu.VMEM((H + 2, W + 2, Cp_in), jnp.bfloat16),      # padded act 1
                pltpu.VMEM((H + 2, W + 2, Cp_out), jnp.bfloat16),     # padded act 2
            ],
        ),
        compiler_params=pltpu.CompilerParams(
            dimension_semantics=("parallel",),                        # batch axis
            vmem_limit_bytes=_vmem_limit_bytes(H, W, Cin, Cp_in, Cp_out, use_res),
        ),
        cost_estimate=cost,
    )(*args)

    if Cp_out != Cout:
        out = out[..., :Cout]                                         # drop channel pad
    return jnp.transpose(out, (0, 3, 1, 2))                           # NHWC -> NCHW


# ---------------------------------------------------------------------------
# Deterministic parameter construction + pure-JAX reference for verification
# ---------------------------------------------------------------------------
def make_params(key, Cin, Cout):
    ks = jax.random.split(key, 10)
    b1 = 1.0 / np.sqrt(Cin * 9)
    b2 = 1.0 / np.sqrt(Cout * 9)
    br = 1.0 / np.sqrt(Cin)
    p = {
        "gn1_gamma": jax.random.uniform(ks[0], (Cin,), jnp.float32, 0.5, 1.5),
        "gn1_beta": jax.random.uniform(ks[1], (Cin,), jnp.float32, -0.5, 0.5),
        "conv1_w": jax.random.uniform(ks[2], (3, 3, Cin, Cout), jnp.float32, -b1, b1),
        "conv1_b": jax.random.uniform(ks[3], (Cout,), jnp.float32, -b1, b1),
        "gn2_gamma": jax.random.uniform(ks[4], (Cout,), jnp.float32, 0.5, 1.5),
        "gn2_beta": jax.random.uniform(ks[5], (Cout,), jnp.float32, -0.5, 0.5),
        "conv2_w": jax.random.uniform(ks[6], (3, 3, Cout, Cout), jnp.float32, -b2, b2),
        "conv2_b": jax.random.uniform(ks[7], (Cout,), jnp.float32, -b2, b2),
    }
    if Cin == Cout:
        p["res_w"] = None
        p["res_b"] = None
    else:
        p["res_w"] = jax.random.uniform(ks[8], (Cin, Cout), jnp.float32, -br, br)
        p["res_b"] = jax.random.uniform(ks[9], (Cout,), jnp.float32, -br, br)
    return p


def reference_forward(x, p):
    # pure-JAX NCHW reference, mirrors the PyTorch module semantics exactly (f32)
    def gn(x, gamma, beta, G=NUM_GROUPS):
        N, C, H, W = x.shape
        xg = x.reshape(N, G, C // G, H, W)
        mean = xg.mean(axis=(2, 3, 4), keepdims=True)
        var = ((xg - mean) ** 2).mean(axis=(2, 3, 4), keepdims=True)
        xn = ((xg - mean) / jnp.sqrt(var + EPS)).reshape(N, C, H, W)
        return xn * gamma[None, :, None, None] + beta[None, :, None, None]

    silu = lambda v: v * jax.nn.sigmoid(v)

    def conv3(v, w, b):
        y = jax.lax.conv_general_dilated(
            v, w, (1, 1), [(1, 1), (1, 1)],
            dimension_numbers=("NCHW", "HWIO", "NCHW"))
        return y + b[None, :, None, None]

    h = conv3(silu(gn(x, p["gn1_gamma"], p["gn1_beta"])), p["conv1_w"], p["conv1_b"])
    h = conv3(silu(gn(h, p["gn2_gamma"], p["gn2_beta"])), p["conv2_w"], p["conv2_b"])
    if p["res_w"] is None:
        res = x
    else:
        res = jnp.einsum("nchw,cd->ndhw", x, p["res_w"]) + p["res_b"][None, :, None, None]
    return h + res


# ---------------------------------------------------------------------------
if __name__ == "__main__":
    key = jax.random.PRNGKey(0)
    kx1, kp1, kx2, kp2 = jax.random.split(key, 4)

    # case 1: in_channels != out_channels (1x1-conv residual)
    N, Cin, Cout, H, W = 2, 32, 64, 16, 16
    x1 = jax.random.normal(kx1, (N, Cin, H, W), jnp.float32)
    p1 = make_params(kp1, Cin, Cout)
    y1 = jax.block_until_ready(residual_block_forward(x1, p1))
    r1 = reference_forward(x1, p1)
    assert y1.shape == (N, Cout, H, W)
    err1 = float(np.max(np.abs(np.asarray(y1) - np.asarray(r1))))
    # bf16 matmuls vs f32 reference -> slightly looser tolerance than pure-f32.
    assert np.allclose(np.asarray(y1), np.asarray(r1), rtol=2e-2, atol=2e-2), \
        f"max err {err1}"

    # case 2: in_channels == out_channels (Identity residual)
    x2 = jax.random.normal(kx2, (N, Cin, H, W), jnp.float32)
    p2 = make_params(kp2, Cin, Cin)
    y2 = jax.block_until_ready(residual_block_forward(x2, p2))
    r2 = reference_forward(x2, p2)
    err2 = float(np.max(np.abs(np.asarray(y2) - np.asarray(r2))))
    assert np.allclose(np.asarray(y2), np.asarray(r2), rtol=2e-2, atol=2e-2), \
        f"max err {err2}"

    print("KERNEL_OK")
</pallas_src>

<mosaic_0001>
module attributes {stable_mosaic.version = 11 : i64} {
  func.func @resblock_kernel(%arg0: i32, %arg1: memref<1x16x16x32xf32, #tpu.memory_space<vmem>>, %arg2: memref<128x32xf32, #tpu.memory_space<vmem>>, %arg3: memref<32x128xf32, #tpu.memory_space<vmem>>, %arg4: memref<1x128xf32, #tpu.memory_space<vmem>>, %arg5: memref<1x128xf32, #tpu.memory_space<vmem>>, %arg6: memref<3x384x128xbf16, #tpu.memory_space<vmem>>, %arg7: memref<1x128xf32, #tpu.memory_space<vmem>>, %arg8: memref<128x32xf32, #tpu.memory_space<vmem>>, %arg9: memref<32x128xf32, #tpu.memory_space<vmem>>, %arg10: memref<1x128xf32, #tpu.memory_space<vmem>>, %arg11: memref<1x128xf32, #tpu.memory_space<vmem>>, %arg12: memref<3x384x128xbf16, #tpu.memory_space<vmem>>, %arg13: memref<1x128xf32, #tpu.memory_space<vmem>>, %arg14: memref<128x128xbf16, #tpu.memory_space<vmem>>, %arg15: memref<1x128xf32, #tpu.memory_space<vmem>>, %arg16: memref<1x16x16x128xf32, #tpu.memory_space<vmem>>, %arg17: memref<18x18x128xbf16, #tpu.memory_space<vmem>>, %arg18: memref<18x18x128xbf16, #tpu.memory_space<vmem>>) attributes {dimension_semantics = [#tpu.dimension_semantics<parallel>], iteration_bounds = array<i64: 2>, scalar_prefetch = 0 : i64, scratch_operands = 2 : i64, tpu.core_type = #tpu.core_type<tc>, window_params = [{transform_indices = @transform_0, window_bounds = array<i64: 1, 16, 16, 32>}, {pipeline_mode = #tpu.pipeline_mode<synchronous>, transform_indices = @transform_1, window_bounds = array<i64: 128, 32>}, {pipeline_mode = #tpu.pipeline_mode<synchronous>, transform_indices = @transform_2, window_bounds = array<i64: 32, 128>}, {pipeline_mode = #tpu.pipeline_mode<synchronous>, transform_indices = @transform_3, window_bounds = array<i64: 1, 128>}, {pipeline_mode = #tpu.pipeline_mode<synchronous>, transform_indices = @transform_4, window_bounds = array<i64: 1, 128>}, {pipeline_mode = #tpu.pipeline_mode<synchronous>, transform_indices = @transform_5, window_bounds = array<i64: 3, 384, 128>}, {pipeline_mode = #tpu.pipeline_mode<synchronous>, transform_indices = @transform_6, window_bounds = array<i64: 1, 128>}, {pipeline_mode = #tpu.pipeline_mode<synchronous>, transform_indices = @transform_7, window_bounds = array<i64: 128, 32>}, {pipeline_mode = #tpu.pipeline_mode<synchronous>, transform_indices = @transform_8, window_bounds = array<i64: 32, 128>}, {pipeline_mode = #tpu.pipeline_mode<synchronous>, transform_indices = @transform_9, window_bounds = array<i64: 1, 128>}, {pipeline_mode = #tpu.pipeline_mode<synchronous>, transform_indices = @transform_10, window_bounds = array<i64: 1, 128>}, {pipeline_mode = #tpu.pipeline_mode<synchronous>, transform_indices = @transform_11, window_bounds = array<i64: 3, 384, 128>}, {pipeline_mode = #tpu.pipeline_mode<synchronous>, transform_indices = @transform_12, window_bounds = array<i64: 1, 128>}, {pipeline_mode = #tpu.pipeline_mode<synchronous>, transform_indices = @transform_13, window_bounds = array<i64: 128, 128>}, {pipeline_mode = #tpu.pipeline_mode<synchronous>, transform_indices = @transform_14, window_bounds = array<i64: 1, 128>}, {transform_indices = @transform_15, window_bounds = array<i64: 1, 16, 16, 128>}]} {
    %c0 = arith.constant 0 : index
    %c0_0 = arith.constant 0 : index
    %c0_1 = arith.constant 0 : index
    %c0_2 = arith.constant 0 : index
    %0 = vector.load %arg1[%c0, %c0_0, %c0_1, %c0_2] : memref<1x16x16x32xf32, #tpu.memory_space<vmem>>, vector<1x16x16x32xf32>
    %1 = vector.shape_cast %0 : vector<1x16x16x32xf32> to vector<16x16x32xf32>
    %cst = arith.constant 0.000000e+00 : f32
    %2 = vector.broadcast %cst : f32 to vector<16x16x96xf32>
    %3 = tpu.concatenate %1, %2 in 2 : vector<16x16x32xf32>, vector<16x16x96xf32> -> vector<16x16x128xf32>
    %4 = vector.shape_cast %3 : vector<16x16x128xf32> to vector<256x128xf32>
    %c0_3 = arith.constant 0 : index
    %c0_4 = arith.constant 0 : index
    %5 = vector.load %arg2[%c0_3, %c0_4] : memref<128x32xf32, #tpu.memory_space<vmem>>, vector<128x32xf32>
    %c0_5 = arith.constant 0 : index
    %c0_6 = arith.constant 0 : index
    %6 = vector.load %arg3[%c0_5, %c0_6] : memref<32x128xf32, #tpu.memory_space<vmem>>, vector<32x128xf32>
    %c0_7 = arith.constant 0 : index
    %c0_8 = arith.constant 0 : index
    %7 = vector.load %arg4[%c0_7, %c0_8] : memref<1x128xf32, #tpu.memory_space<vmem>>, vector<1x128xf32>
    %c0_9 = arith.constant 0 : index
    %c0_10 = arith.constant 0 : index
    %8 = vector.load %arg5[%c0_9, %c0_10] : memref<1x128xf32, #tpu.memory_space<vmem>>, vector<1x128xf32>
    %cst_11 = arith.constant dense<0.000000e+00> : vector<128xf32>
    %9 = vector.multi_reduction <add>, %4, %cst_11 [0] : vector<256x128xf32> to vector<128xf32>
    %10 = vector.shape_cast %9 : vector<128xf32> to vector<1x128xf32>
    %11 = arith.mulf %4, %4 : vector<256x128xf32>
    %cst_12 = arith.constant dense<0.000000e+00> : vector<128xf32>
    %12 = vector.multi_reduction <add>, %11, %cst_12 [0] : vector<256x128xf32> to vector<128xf32>
    %13 = vector.shape_cast %12 : vector<128xf32> to vector<1x128xf32>
    %14 = tpu.concatenate %10, %13 in 0 : vector<1x128xf32>, vector<1x128xf32> -> vector<2x128xf32>
    %cst_13 = arith.constant dense<0.000000e+00> : vector<2x32xf32>
    %15 = tpu.matmul %14, %5, %cst_13 {dimension_numbers = #tpu.dot_dimension_numbers<[1], [0], [0], [1], [0, 0, 1, 1], [], []>} : vector<2x128xf32>, vector<128x32xf32>, vector<2x32xf32> -> vector<2x32xf32>
    %cst_14 = arith.constant dense<0.000000e+00> : vector<2x128xf32>
    %16 = tpu.matmul %15, %6, %cst_14 {dimension_numbers = #tpu.dot_dimension_numbers<[1], [0], [0], [1], [0, 0, 1, 1], [], []>} : vector<2x32xf32>, vector<32x128xf32>, vector<2x128xf32> -> vector<2x128xf32>
    %17 = vector.extract_strided_slice %16 {offsets = [0, 0], sizes = [1, 128], strides = [1, 1]} : vector<2x128xf32> to vector<1x128xf32>
    %18 = vector.extract_strided_slice %16 {offsets = [1, 0], sizes = [1, 128], strides = [1, 1]} : vector<2x128xf32> to vector<1x128xf32>
    %19 = arith.mulf %17, %17 : vector<1x128xf32>
    %20 = arith.subf %18, %19 : vector<1x128xf32>
    %cst_15 = arith.constant 9.99999974E-6 : f32
    %21 = vector.broadcast %cst_15 : f32 to vector<1x128xf32>
    %22 = arith.addf %20, %21 : vector<1x128xf32>
    %23 = math.rsqrt %22 : vector<1x128xf32>
    %24 = vector.broadcast %17 : vector<1x128xf32> to vector<256x128xf32>
    %25 = arith.subf %4, %24 : vector<256x128xf32>
    %26 = arith.mulf %23, %7 : vector<1x128xf32>
    %27 = vector.broadcast %26 : vector<1x128xf32> to vector<256x128xf32>
    %28 = arith.mulf %25, %27 : vector<256x128xf32>
    %29 = vector.broadcast %8 : vector<1x128xf32> to vector<256x128xf32>
    %30 = arith.addf %28, %29 : vector<256x128xf32>
    %31 = arith.negf %30 : vector<256x128xf32>
    %32 = math.exp %31 : vector<256x128xf32>
    %cst_16 = arith.constant 1.000000e+00 : f32
    %33 = vector.broadcast %cst_16 : f32 to vector<256x128xf32>
    %34 = arith.addf %33, %32 : vector<256x128xf32>
    %35 = arith.divf %33, %34 : vector<256x128xf32>
    %36 = arith.mulf %30, %35 : vector<256x128xf32>
    %37 = vector.shape_cast %36 : vector<256x128xf32> to vector<16x16x128xf32>
    %cst_17 = arith.constant 0.000000e+00 : bf16
    %38 = vector.broadcast %cst_17 : bf16 to vector<1x18x128xbf16>
    %cst_18 = arith.constant 0.000000e+00 : bf16
    %39 = vector.broadcast %cst_18 : bf16 to vector<16x1x128xbf16>
    %c0_19 = arith.constant 0 : index
    %c0_20 = arith.constant 0 : index
    %c0_21 = arith.constant 0 : index
    %40 = vector.load %arg17[%c0_19, %c0_20, %c0_21] : memref<18x18x128xbf16, #tpu.memory_space<vmem>>, vector<1x18x128xbf16>
    tpu.vector_store %arg17[%c0_19, %c0_20, %c0_21], %38 {strides = array<i32>} : memref<18x18x128xbf16, #tpu.memory_space<vmem>>, vector<1x18x128xbf16>,
    %c17 = arith.constant 17 : index
    %c0_22 = arith.constant 0 : index
    %c0_23 = arith.constant 0 : index
    %41 = vector.load %arg17[%c17, %c0_22, %c0_23] : memref<18x18x128xbf16, #tpu.memory_space<vmem>>, vector<1x18x128xbf16>
    tpu.vector_store %arg17[%c17, %c0_22, %c0_23], %38 {strides = array<i32>} : memref<18x18x128xbf16, #tpu.memory_space<vmem>>, vector<1x18x128xbf16>,
    %42 = arith.truncf %37 : vector<16x16x128xf32> to vector<16x16x128xbf16>
    %43 = tpu.concatenate %39, %42, %39 in 1 : vector<16x1x128xbf16>, vector<16x16x128xbf16>, vector<16x1x128xbf16> -> vector<16x18x128xbf16>
    %c1 = arith.constant 1 : index
    %c0_24 = arith.constant 0 : index
    %c0_25 = arith.constant 0 : index
    %44 = vector.load %arg17[%c1, %c0_24, %c0_25] : memref<18x18x128xbf16, #tpu.memory_space<vmem>>, vector<16x18x128xbf16>
    tpu.vector_store %arg17[%c1, %c0_24, %c0_25], %43 {strides = array<i32>} : memref<18x18x128xbf16, #tpu.memory_space<vmem>>, vector<16x18x128xbf16>,
    %c0_26 = arith.constant 0 : index
    %c0_27 = arith.constant 0 : index
    %45 = vector.load %arg7[%c0_26, %c0_27] : memref<1x128xf32, #tpu.memory_space<vmem>>, vector<1x128xf32>
    %c0_28 = arith.constant 0 : index
    %c0_29 = arith.constant 0 : index
    %c0_30 = arith.constant 0 : index
    %46 = vector.load %arg17[%c0_28, %c0_29, %c0_30] : memref<18x18x128xbf16, #tpu.memory_space<vmem>>, vector<16x18x128xbf16>
    %47 = vector.extract_strided_slice %46 {offsets = [0, 0, 0], sizes = [16, 16, 128], strides = [1, 1, 1]} : vector<16x18x128xbf16> to vector<16x16x128xbf16>
    %48 = vector.extract_strided_slice %46 {offsets = [0, 1, 0], sizes = [16, 16, 128], strides = [1, 1, 1]} : vector<16x18x128xbf16> to vector<16x16x128xbf16>
    %49 = vector.extract_strided_slice %46 {offsets = [0, 2, 0], sizes = [16, 16, 128], strides = [1, 1, 1]} : vector<16x18x128xbf16> to vector<16x16x128xbf16>
    %50 = tpu.concatenate %47, %48, %49 in 2 : vector<16x16x128xbf16>, vector<16x16x128xbf16>, vector<16x16x128xbf16> -> vector<16x16x384xbf16>
    %51 = vector.shape_cast %50 : vector<16x16x384xbf16> to vector<256x384xbf16>
    %c0_31 = arith.constant 0 : index
    %c0_32 = arith.constant 0 : index
    %c0_33 = arith.constant 0 : index
    %52 = vector.load %arg6[%c0_31, %c0_32, %c0_33] : memref<3x384x128xbf16, #tpu.memory_space<vmem>>, vector<1x384x128xbf16>
    %53 = vector.shape_cast %52 : vector<1x384x128xbf16> to vector<384x128xbf16>
    %cst_34 = arith.constant dense<0.000000e+00> : vector<256x128xf32>
    %54 = tpu.matmul %51, %53, %cst_34 {dimension_numbers = #tpu.dot_dimension_numbers<[1], [0], [0], [1], [0, 0, 1, 1], [], []>} : vector<256x384xbf16>, vector<384x128xbf16>, vector<256x128xf32> -> vector<256x128xf32>
    %55 = vector.broadcast %45 : vector<1x128xf32> to vector<256x128xf32>
    %56 = arith.addf %55, %54 : vector<256x128xf32>
    %c1_35 = arith.constant 1 : index
    %c0_36 = arith.constant 0 : index
    %c0_37 = arith.constant 0 : index
    %57 = vector.load %arg17[%c1_35, %c0_36, %c0_37] : memref<18x18x128xbf16, #tpu.memory_space<vmem>>, vector<16x18x128xbf16>
    %58 = vector.extract_strided_slice %57 {offsets = [0, 0, 0], sizes = [16, 16, 128], strides = [1, 1, 1]} : vector<16x18x128xbf16> to vector<16x16x128xbf16>
    %59 = vector.extract_strided_slice %57 {offsets = [0, 1, 0], sizes = [16, 16, 128], strides = [1, 1, 1]} : vector<16x18x128xbf16> to vector<16x16x128xbf16>
    %60 = vector.extract_strided_slice %57 {offsets = [0, 2, 0], sizes = [16, 16, 128], strides = [1, 1, 1]} : vector<16x18x128xbf16> to vector<16x16x128xbf16>
    %61 = tpu.concatenate %58, %59, %60 in 2 : vector<16x16x128xbf16>, vector<16x16x128xbf16>, vector<16x16x128xbf16> -> vector<16x16x384xbf16>
    %62 = vector.shape_cast %61 : vector<16x16x384xbf16> to vector<256x384xbf16>
    %c1_38 = arith.constant 1 : index
    %c0_39 = arith.constant 0 : index
    %c0_40 = arith.constant 0 : index
    %63 = vector.load %arg6[%c1_38, %c0_39, %c0_40] : memref<3x384x128xbf16, #tpu.memory_space<vmem>>, vector<1x384x128xbf16>
    %64 = vector.shape_cast %63 : vector<1x384x128xbf16> to vector<384x128xbf16>
    %cst_41 = arith.constant dense<0.000000e+00> : vector<256x128xf32>
    %65 = tpu.matmul %62, %64, %cst_41 {dimension_numbers = #tpu.dot_dimension_numbers<[1], [0], [0], [1], [0, 0, 1, 1], [], []>} : vector<256x384xbf16>, vector<384x128xbf16>, vector<256x128xf32> -> vector<256x128xf32>
    %66 = arith.addf %56, %65 : vector<256x128xf32>
    %c2 = arith.constant 2 : index
    %c0_42 = arith.constant 0 : index
    %c0_43 = arith.constant 0 : index
    %67 = vector.load %arg17[%c2, %c0_42, %c0_43] : memref<18x18x128xbf16, #tpu.memory_space<vmem>>, vector<16x18x128xbf16>
    %68 = vector.extract_strided_slice %67 {offsets = [0, 0, 0], sizes = [16, 16, 128], strides = [1, 1, 1]} : vector<16x18x128xbf16> to vector<16x16x128xbf16>
    %69 = vector.extract_strided_slice %67 {offsets = [0, 1, 0], sizes = [16, 16, 128], strides = [1, 1, 1]} : vector<16x18x128xbf16> to vector<16x16x128xbf16>
    %70 = vector.extract_strided_slice %67 {offsets = [0, 2, 0], sizes = [16, 16, 128], strides = [1, 1, 1]} : vector<16x18x128xbf16> to vector<16x16x128xbf16>
    %71 = tpu.concatenate %68, %69, %70 in 2 : vector<16x16x128xbf16>, vector<16x16x128xbf16>, vector<16x16x128xbf16> -> vector<16x16x384xbf16>
    %72 = vector.shape_cast %71 : vector<16x16x384xbf16> to vector<256x384xbf16>
    %c2_44 = arith.constant 2 : index
    %c0_45 = arith.constant 0 : index
    %c0_46 = arith.constant 0 : index
    %73 = vector.load %arg6[%c2_44, %c0_45, %c0_46] : memref<3x384x128xbf16, #tpu.memory_space<vmem>>, vector<1x384x128xbf16>
    %74 = vector.shape_cast %73 : vector<1x384x128xbf16> to vector<384x128xbf16>
    %cst_47 = arith.constant dense<0.000000e+00> : vector<256x128xf32>
    %75 = tpu.matmul %72, %74, %cst_47 {dimension_numbers = #tpu.dot_dimension_numbers<[1], [0], [0], [1], [0, 0, 1, 1], [], []>} : vector<256x384xbf16>, vector<384x128xbf16>, vector<256x128xf32> -> vector<256x128xf32>
    %76 = arith.addf %66, %75 : vector<256x128xf32>
    %c0_48 = arith.constant 0 : index
    %c0_49 = arith.constant 0 : index
    %77 = vector.load %arg8[%c0_48, %c0_49] : memref<128x32xf32, #tpu.memory_space<vmem>>, vector<128x32xf32>
    %c0_50 = arith.constant 0 : index
    %c0_51 = arith.constant 0 : index
    %78 = vector.load %arg9[%c0_50, %c0_51] : memref<32x128xf32, #tpu.memory_space<vmem>>, vector<32x128xf32>
    %c0_52 = arith.constant 0 : index
    %c0_53 = arith.constant 0 : index
    %79 = vector.load %arg10[%c0_52, %c0_53] : memref<1x128xf32, #tpu.memory_space<vmem>>, vector<1x128xf32>
    %c0_54 = arith.constant 0 : index
    %c0_55 = arith.constant 0 : index
    %80 = vector.load %arg11[%c0_54, %c0_55] : memref<1x128xf32, #tpu.memory_space<vmem>>, vector<1x128xf32>
    %cst_56 = arith.constant dense<0.000000e+00> : vector<128xf32>
    %81 = vector.multi_reduction <add>, %76, %cst_56 [0] : vector<256x128xf32> to vector<128xf32>
    %82 = vector.shape_cast %81 : vector<128xf32> to vector<1x128xf32>
    %83 = arith.mulf %76, %76 : vector<256x128xf32>
    %cst_57 = arith.constant dense<0.000000e+00> : vector<128xf32>
    %84 = vector.multi_reduction <add>, %83, %cst_57 [0] : vector<256x128xf32> to vector<128xf32>
    %85 = vector.shape_cast %84 : vector<128xf32> to vector<1x128xf32>
    %86 = tpu.concatenate %82, %85 in 0 : vector<1x128xf32>, vector<1x128xf32> -> vector<2x128xf32>
    %cst_58 = arith.constant dense<0.000000e+00> : vector<2x32xf32>
    %87 = tpu.matmul %86, %77, %cst_58 {dimension_numbers = #tpu.dot_dimension_numbers<[1], [0], [0], [1], [0, 0, 1, 1], [], []>} : vector<2x128xf32>, vector<128x32xf32>, vector<2x32xf32> -> vector<2x32xf32>
    %cst_59 = arith.constant dense<0.000000e+00> : vector<2x128xf32>
    %88 = tpu.matmul %87, %78, %cst_59 {dimension_numbers = #tpu.dot_dimension_numbers<[1], [0], [0], [1], [0, 0, 1, 1], [], []>} : vector<2x32xf32>, vector<32x128xf32>, vector<2x128xf32> -> vector<2x128xf32>
    %89 = vector.extract_strided_slice %88 {offsets = [0, 0], sizes = [1, 128], strides = [1, 1]} : vector<2x128xf32> to vector<1x128xf32>
    %90 = vector.extract_strided_slice %88 {offsets = [1, 0], sizes = [1, 128], strides = [1, 1]} : vector<2x128xf32> to vector<1x128xf32>
    %91 = arith.mulf %89, %89 : vector<1x128xf32>
    %92 = arith.subf %90, %91 : vector<1x128xf32>
    %cst_60 = arith.constant 9.99999974E-6 : f32
    %93 = vector.broadcast %cst_60 : f32 to vector<1x128xf32>
    %94 = arith.addf %92, %93 : vector<1x128xf32>
    %95 = math.rsqrt %94 : vector<1x128xf32>
    %96 = vector.broadcast %89 : vector<1x128xf32> to vector<256x128xf32>
    %97 = arith.subf %76, %96 : vector<256x128xf32>
    %98 = arith.mulf %95, %79 : vector<1x128xf32>
    %99 = vector.broadcast %98 : vector<1x128xf32> to vector<256x128xf32>
    %100 = arith.mulf %97, %99 : vector<256x128xf32>
    %101 = vector.broadcast %80 : vector<1x128xf32> to vector<256x128xf32>
    %102 = arith.addf %100, %101 : vector<256x128xf32>
    %103 = arith.negf %102 : vector<256x128xf32>
    %104 = math.exp %103 : vector<256x128xf32>
    %cst_61 = arith.constant 1.000000e+00 : f32
    %105 = vector.broadcast %cst_61 : f32 to vector<256x128xf32>
    %106 = arith.addf %105, %104 : vector<256x128xf32>
    %107 = arith.divf %105, %106 : vector<256x128xf32>
    %108 = arith.mulf %102, %107 : vector<256x128xf32>
    %c0_62 = arith.constant 0 : index
    %c0_63 = arith.constant 0 : index
    %c0_64 = arith.constant 0 : index
    %c0_65 = arith.constant 0 : index
    %109 = vector.load %arg1[%c0_62, %c0_63, %c0_64, %c0_65] : memref<1x16x16x32xf32, #tpu.memory_space<vmem>>, vector<1x16x16x32xf32>
    %110 = vector.shape_cast %109 : vector<1x16x16x32xf32> to vector<16x16x32xf32>
    %cst_66 = arith.constant 0.000000e+00 : f32
    %111 = vector.broadcast %cst_66 : f32 to vector<16x16x96xf32>
    %112 = tpu.concatenate %110, %111 in 2 : vector<16x16x32xf32>, vector<16x16x96xf32> -> vector<16x16x128xf32>
    %113 = vector.shape_cast %112 : vector<16x16x128xf32> to vector<256x128xf32>
    %114 = arith.truncf %113 : vector<256x128xf32> to vector<256x128xbf16>
    %c0_67 = arith.constant 0 : index
    %c0_68 = arith.constant 0 : index
    %115 = vector.load %arg14[%c0_67, %c0_68] : memref<128x128xbf16, #tpu.memory_space<vmem>>, vector<128x128xbf16>
    %cst_69 = arith.constant dense<0.000000e+00> : vector<256x128xf32>
    %116 = tpu.matmul %114, %115, %cst_69 {dimension_numbers = #tpu.dot_dimension_numbers<[1], [0], [0], [1], [0, 0, 1, 1], [], []>} : vector<256x128xbf16>, vector<128x128xbf16>, vector<256x128xf32> -> vector<256x128xf32>
    %c0_70 = arith.constant 0 : index
    %c0_71 = arith.constant 0 : index
    %117 = vector.load %arg15[%c0_70, %c0_71] : memref<1x128xf32, #tpu.memory_space<vmem>>, vector<1x128xf32>
    %118 = vector.broadcast %117 : vector<1x128xf32> to vector<256x128xf32>
    %119 = arith.addf %116, %118 : vector<256x128xf32>
    %120 = vector.shape_cast %108 : vector<256x128xf32> to vector<16x16x128xf32>
    %cst_72 = arith.constant 0.000000e+00 : bf16
    %121 = vector.broadcast %cst_72 : bf16 to vector<1x18x128xbf16>
    %cst_73 = arith.constant 0.000000e+00 : bf16
    %122 = vector.broadcast %cst_73 : bf16 to vector<16x1x128xbf16>
    %c0_74 = arith.constant 0 : index
    %c0_75 = arith.constant 0 : index
    %c0_76 = arith.constant 0 : index
    %123 = vector.load %arg18[%c0_74, %c0_75, %c0_76] : memref<18x18x128xbf16, #tpu.memory_space<vmem>>, vector<1x18x128xbf16>
    tpu.vector_store %arg18[%c0_74, %c0_75, %c0_76], %121 {strides = array<i32>} : memref<18x18x128xbf16, #tpu.memory_space<vmem>>, vector<1x18x128xbf16>,
    %c17_77 = arith.constant 17 : index
    %c0_78 = arith.constant 0 : index
    %c0_79 = arith.constant 0 : index
    %124 = vector.load %arg18[%c17_77, %c0_78, %c0_79] : memref<18x18x128xbf16, #tpu.memory_space<vmem>>, vector<1x18x128xbf16>
    tpu.vector_store %arg18[%c17_77, %c0_78, %c0_79], %121 {strides = array<i32>} : memref<18x18x128xbf16, #tpu.memory_space<vmem>>, vector<1x18x128xbf16>,
    %125 = arith.truncf %120 : vector<16x16x128xf32> to vector<16x16x128xbf16>
    %126 = tpu.concatenate %122, %125, %122 in 1 : vector<16x1x128xbf16>, vector<16x16x128xbf16>, vector<16x1x128xbf16> -> vector<16x18x128xbf16>
    %c1_80 = arith.constant 1 : index
    %c0_81 = arith.constant 0 : index
    %c0_82 = arith.constant 0 : index
    %127 = vector.load %arg18[%c1_80, %c0_81, %c0_82] : memref<18x18x128xbf16, #tpu.memory_space<vmem>>, vector<16x18x128xbf16>
    tpu.vector_store %arg18[%c1_80, %c0_81, %c0_82], %126 {strides = array<i32>} : memref<18x18x128xbf16, #tpu.memory_space<vmem>>, vector<16x18x128xbf16>,
    %c0_83 = arith.constant 0 : index
    %c0_84 = arith.constant 0 : index
    %128 = vector.load %arg13[%c0_83, %c0_84] : memref<1x128xf32, #tpu.memory_space<vmem>>, vector<1x128xf32>
    %129 = vector.broadcast %128 : vector<1x128xf32> to vector<256x128xf32>
    %130 = arith.addf %119, %129 : vector<256x128xf32>
    %c0_85 = arith.constant 0 : index
    %c0_86 = arith.constant 0 : index
    %c0_87 = arith.constant 0 : index
    %131 = vector.load %arg18[%c0_85, %c0_86, %c0_87] : memref<18x18x128xbf16, #tpu.memory_space<vmem>>, vector<16x18x128xbf16>
    %132 = vector.extract_strided_slice %131 {offsets = [0, 0, 0], sizes = [16, 16, 128], strides = [1, 1, 1]} : vector<16x18x128xbf16> to vector<16x16x128xbf16>
    %133 = vector.extract_strided_slice %131 {offsets = [0, 1, 0], sizes = [16, 16, 128], strides = [1, 1, 1]} : vector<16x18x128xbf16> to vector<16x16x128xbf16>
    %134 = vector.extract_strided_slice %131 {offsets = [0, 2, 0], sizes = [16, 16, 128], strides = [1, 1, 1]} : vector<16x18x128xbf16> to vector<16x16x128xbf16>
    %135 = tpu.concatenate %132, %133, %134 in 2 : vector<16x16x128xbf16>, vector<16x16x128xbf16>, vector<16x16x128xbf16> -> vector<16x16x384xbf16>
    %136 = vector.shape_cast %135 : vector<16x16x384xbf16> to vector<256x384xbf16>
    %c0_88 = arith.constant 0 : index
    %c0_89 = arith.constant 0 : index
    %c0_90 = arith.constant 0 : index
    %137 = vector.load %arg12[%c0_88, %c0_89, %c0_90] : memref<3x384x128xbf16, #tpu.memory_space<vmem>>, vector<1x384x128xbf16>
    %138 = vector.shape_cast %137 : vector<1x384x128xbf16> to vector<384x128xbf16>
    %cst_91 = arith.constant dense<0.000000e+00> : vector<256x128xf32>
    %139 = tpu.matmul %136, %138, %cst_91 {dimension_numbers = #tpu.dot_dimension_numbers<[1], [0], [0], [1], [0, 0, 1, 1], [], []>} : vector<256x384xbf16>, vector<384x128xbf16>, vector<256x128xf32> -> vector<256x128xf32>
    %140 = arith.addf %130, %139 : vector<256x128xf32>
    %c1_92 = arith.constant 1 : index
    %c0_93 = arith.constant 0 : index
    %c0_94 = arith.constant 0 : index
    %141 = vector.load %arg18[%c1_92, %c0_93, %c0_94] : memref<18x18x128xbf16, #tpu.memory_space<vmem>>, vector<16x18x128xbf16>
    %142 = vector.extract_strided_slice %141 {offsets = [0, 0, 0], sizes = [16, 16, 128], strides = [1, 1, 1]} : vector<16x18x128xbf16> to vector<16x16x128xbf16>
    %143 = vector.extract_strided_slice %141 {offsets = [0, 1, 0], sizes = [16, 16, 128], strides = [1, 1, 1]} : vector<16x18x128xbf16> to vector<16x16x128xbf16>
    %144 = vector.extract_strided_slice %141 {offsets = [0, 2, 0], sizes = [16, 16, 128], strides = [1, 1, 1]} : vector<16x18x128xbf16> to vector<16x16x128xbf16>
    %145 = tpu.concatenate %142, %143, %144 in 2 : vector<16x16x128xbf16>, vector<16x16x128xbf16>, vector<16x16x128xbf16> -> vector<16x16x384xbf16>
    %146 = vector.shape_cast %145 : vector<16x16x384xbf16> to vector<256x384xbf16>
    %c1_95 = arith.constant 1 : index
    %c0_96 = arith.constant 0 : index
    %c0_97 = arith.constant 0 : index
    %147 = vector.load %arg12[%c1_95, %c0_96, %c0_97] : memref<3x384x128xbf16, #tpu.memory_space<vmem>>, vector<1x384x128xbf16>
    %148 = vector.shape_cast %147 : vector<1x384x128xbf16> to vector<384x128xbf16>
    %cst_98 = arith.constant dense<0.000000e+00> : vector<256x128xf32>
    %149 = tpu.matmul %146, %148, %cst_98 {dimension_numbers = #tpu.dot_dimension_numbers<[1], [0], [0], [1], [0, 0, 1, 1], [], []>} : vector<256x384xbf16>, vector<384x128xbf16>, vector<256x128xf32> -> vector<256x128xf32>
    %150 = arith.addf %140, %149 : vector<256x128xf32>
    %c2_99 = arith.constant 2 : index
    %c0_100 = arith.constant 0 : index
    %c0_101 = arith.constant 0 : index
    %151 = vector.load %arg18[%c2_99, %c0_100, %c0_101] : memref<18x18x128xbf16, #tpu.memory_space<vmem>>, vector<16x18x128xbf16>
    %152 = vector.extract_strided_slice %151 {offsets = [0, 0, 0], sizes = [16, 16, 128], strides = [1, 1, 1]} : vector<16x18x128xbf16> to vector<16x16x128xbf16>
    %153 = vector.extract_strided_slice %151 {offsets = [0, 1, 0], sizes = [16, 16, 128], strides = [1, 1, 1]} : vector<16x18x128xbf16> to vector<16x16x128xbf16>
    %154 = vector.extract_strided_slice %151 {offsets = [0, 2, 0], sizes = [16, 16, 128], strides = [1, 1, 1]} : vector<16x18x128xbf16> to vector<16x16x128xbf16>
    %155 = tpu.concatenate %152, %153, %154 in 2 : vector<16x16x128xbf16>, vector<16x16x128xbf16>, vector<16x16x128xbf16> -> vector<16x16x384xbf16>
    %156 = vector.shape_cast %155 : vector<16x16x384xbf16> to vector<256x384xbf16>
    %c2_102 = arith.constant 2 : index
    %c0_103 = arith.constant 0 : index
    %c0_104 = arith.constant 0 : index
    %157 = vector.load %arg12[%c2_102, %c0_103, %c0_104] : memref<3x384x128xbf16, #tpu.memory_space<vmem>>, vector<1x384x128xbf16>
    %158 = vector.shape_cast %157 : vector<1x384x128xbf16> to vector<384x128xbf16>
    %cst_105 = arith.constant dense<0.000000e+00> : vector<256x128xf32>
    %159 = tpu.matmul %156, %158, %cst_105 {dimension_numbers = #tpu.dot_dimension_numbers<[1], [0], [0], [1], [0, 0, 1, 1], [], []>} : vector<256x384xbf16>, vector<384x128xbf16>, vector<256x128xf32> -> vector<256x128xf32>
    %160 = arith.addf %150, %159 : vector<256x128xf32>
    %161 = vector.shape_cast %160 : vector<256x128xf32> to vector<16x16x128xf32>
    %c0_106 = arith.constant 0 : index
    %c0_107 = arith.constant 0 : index
    %c0_108 = arith.constant 0 : index
    %c0_109 = arith.constant 0 : index
    %162 = vector.load %arg16[%c0_106, %c0_107, %c0_108, %c0_109] : memref<1x16x16x128xf32, #tpu.memory_space<vmem>>, vector<1x16x16x128xf32>
    %163 = vector.shape_cast %162 : vector<1x16x16x128xf32> to vector<16x16x128xf32>
    %164 = vector.shape_cast %161 : vector<16x16x128xf32> to vector<1x16x16x128xf32>
    tpu.vector_store %arg16[%c0_106, %c0_107, %c0_108, %c0_109], %164 {strides = array<i32>} : memref<1x16x16x128xf32, #tpu.memory_space<vmem>>, vector<1x16x16x128xf32>,
    return
  }
  func.func @transform_0(%arg0: i32) -> (i32, i32, i32, i32) {
    %c0_i32 = arith.constant 0 : i32
    %c0_i32_0 = arith.constant 0 : i32
    %c0_i32_1 = arith.constant 0 : i32
    %c0_i32_2 = arith.constant 0 : i32
    return %arg0, %c0_i32, %c0_i32_0, %c0_i32_1 : i32, i32, i32, i32
  }
  func.func @transform_1(%arg0: i32) -> (i32, i32) {
    %c0_i32 = arith.constant 0 : i32
    %c0_i32_0 = arith.constant 0 : i32
    %c0_i32_1 = arith.constant 0 : i32
    return %c0_i32, %c0_i32_0 : i32, i32
  }
  func.func @transform_2(%arg0: i32) -> (i32, i32) {
    %c0_i32 = arith.constant 0 : i32
    %c0_i32_0 = arith.constant 0 : i32
    %c0_i32_1 = arith.constant 0 : i32
    return %c0_i32, %c0_i32_0 : i32, i32
  }
  func.func @transform_3(%arg0: i32) -> (i32, i32) {
    %c0_i32 = arith.constant 0 : i32
    %c0_i32_0 = arith.constant 0 : i32
    %c0_i32_1 = arith.constant 0 : i32
    return %c0_i32, %c0_i32_0 : i32, i32
  }
  func.func @transform_4(%arg0: i32) -> (i32, i32) {
    %c0_i32 = arith.constant 0 : i32
    %c0_i32_0 = arith.constant 0 : i32
    %c0_i32_1 = arith.constant 0 : i32
    return %c0_i32, %c0_i32_0 : i32, i32
  }
  func.func @transform_5(%arg0: i32) -> (i32, i32, i32) {
    %c0_i32 = arith.constant 0 : i32
    %c0_i32_0 = arith.constant 0 : i32
    %c0_i32_1 = arith.constant 0 : i32
    %c0_i32_2 = arith.constant 0 : i32
    return %c0_i32, %c0_i32_0, %c0_i32_1 : i32, i32, i32
  }
  func.func @transform_6(%arg0: i32) -> (i32, i32) {
    %c0_i32 = arith.constant 0 : i32
    %c0_i32_0 = arith.constant 0 : i32
    %c0_i32_1 = arith.constant 0 : i32
    return %c0_i32, %c0_i32_0 : i32, i32
  }
  func.func @transform_7(%arg0: i32) -> (i32, i32) {
    %c0_i32 = arith.constant 0 : i32
    %c0_i32_0 = arith.constant 0 : i32
    %c0_i32_1 = arith.constant 0 : i32
    return %c0_i32, %c0_i32_0 : i32, i32
  }
  func.func @transform_8(%arg0: i32) -> (i32, i32) {
    %c0_i32 = arith.constant 0 : i32
    %c0_i32_0 = arith.constant 0 : i32
    %c0_i32_1 = arith.constant 0 : i32
    return %c0_i32, %c0_i32_0 : i32, i32
  }
  func.func @transform_9(%arg0: i32) -> (i32, i32) {
    %c0_i32 = arith.constant 0 : i32
    %c0_i32_0 = arith.constant 0 : i32
    %c0_i32_1 = arith.constant 0 : i32
    return %c0_i32, %c0_i32_0 : i32, i32
  }
  func.func @transform_10(%arg0: i32) -> (i32, i32) {
    %c0_i32 = arith.constant 0 : i32
    %c0_i32_0 = arith.constant 0 : i32
    %c0_i32_1 = arith.constant 0 : i32
    return %c0_i32, %c0_i32_0 : i32, i32
  }
  func.func @transform_11(%arg0: i32) -> (i32, i32, i32) {
    %c0_i32 = arith.constant 0 : i32
    %c0_i32_0 = arith.constant 0 : i32
    %c0_i32_1 = arith.constant 0 : i32
    %c0_i32_2 = arith.constant 0 : i32
    return %c0_i32, %c0_i32_0, %c0_i32_1 : i32, i32, i32
  }
  func.func @transform_12(%arg0: i32) -> (i32, i32) {
    %c0_i32 = arith.constant 0 : i32
    %c0_i32_0 = arith.constant 0 : i32
    %c0_i32_1 = arith.constant 0 : i32
    return %c0_i32, %c0_i32_0 : i32, i32
  }
  func.func @transform_13(%arg0: i32) -> (i32, i32) {
    %c0_i32 = arith.constant 0 : i32
    %c0_i32_0 = arith.constant 0 : i32
    %c0_i32_1 = arith.constant 0 : i32
    return %c0_i32, %c0_i32_0 : i32, i32
  }
  func.func @transform_14(%arg0: i32) -> (i32, i32) {
    %c0_i32 = arith.constant 0 : i32
    %c0_i32_0 = arith.constant 0 : i32
    %c0_i32_1 = arith.constant 0 : i32
    return %c0_i32, %c0_i32_0 : i32, i32
  }
  func.func @transform_15(%arg0: i32) -> (i32, i32, i32, i32) {
    %c0_i32 = arith.constant 0 : i32
    %c0_i32_0 = arith.constant 0 : i32
    %c0_i32_1 = arith.constant 0 : i32
    %c0_i32_2 = arith.constant 0 : i32
    return %arg0, %c0_i32, %c0_i32_0, %c0_i32_1 : i32, i32, i32, i32
  }
}

</mosaic_0001>

<bundles_post_ra>
// kernel: tpu_custom_call.1
= control target key start
LH: loop header
LB: loop body
LE: loop exit
PB: predicated region body
PF: predicated region fallthrough
CT: control target
= control target key end

     0   :  { %s16410_s0 = inlined_call_operand.hbm [shape: f32[2,16,16,32], index: 0, kind: input, shape index: {}]   ;;  %s16411_s1 = inlined_call_operand.vmem [shape: f32[128,32], index: 1, kind: input, shape index: {}]   ;;  %s16412_s2 = inlined_call_operand.vmem [shape: f32[32,128], index: 2, kind: input, shape index: {}]   ;;  %s16413_s3 = inlined_call_operand.vmem [shape: f32[1,128], index: 3, kind: input, shape index: {}]   ;;  %s16414_s4 = inlined_call_operand.vmem [shape: f32[1,128], index: 4, kind: input, shape index: {}]   ;;  %s16415_s5 = inlined_call_operand.hbm [shape: bf16[3,384,128], index: 5, kind: input, shape index: {}]   ;;  %s16416_s6 = inlined_call_operand.vmem [shape: f32[1,128], index: 6, kind: input, shape index: {}]   ;;  %s16417_s7 = inlined_call_operand.vmem [shape: f32[128,32], index: 7, kind: input, shape index: {}]   ;;  %s16418_s8 = inlined_call_operand.vmem [shape: f32[32,128], index: 8, kind: input, shape index: {}]   ;;  %s16419_s9 = inlined_call_operand.vmem [shape: f32[1,128], index: 9, kind: input, shape index: {}]   ;;  %s16420_s10 = inlined_call_operand.vmem [shape: f32[1,128], index: 10, kind: input, shape index: {}]   ;;  %s16421_s11 = inlined_call_operand.hbm [shape: bf16[3,384,128], index: 11, kind: input, shape index: {}]   ;;  %s16422_s12 = inlined_call_operand.vmem [shape: f32[1,128], index: 12, kind: input, shape index: {}]   ;;  %s16423_s13 = inlined_call_operand.vmem [shape: bf16[128,128], index: 13, kind: input, shape index: {}]   ;;  %s16424_s14 = inlined_call_operand.vmem [shape: f32[1,128], index: 14, kind: input, shape index: {}]   ;;  %s16425_s15 = inlined_call_operand.hbm [shape: f32[2,16,16,128], index: 15, kind: output, shape index: {}]  }
   0x1   :  { %16466 = sst [smem:[#allocation36_spill]] %s16419_s9 }
   0x2   :  { %16467 = sst [smem:[#allocation37_spill]] %s16420_s10 }
   0x3   :  { %16468 = sst [smem:[#allocation38_spill]] %s16422_s12 }
   0x4   :  { %16469 = sst [smem:[#allocation39_spill]] %s16424_s14 }
   0x5   :  { %16470 = sst [smem:[#allocation40_spill]] %s16425_s15 }
   0x6   :  { %20 = vsyncpa [#allocation5], 0 }
   0x7   :  { %22 = vsyncpa [#allocation5 + $0x1], 0 }
   0x8   :  { %23 = vsyncpa [#allocation8], 0 }
   0x9   :  { %24 = vsyncpa [#allocation6], 0 }
   0xa   :  { %26 = vsyncpa [#allocation6 + $0x1], 0  ;;  %s12621_s18 = smov 0   ;;  %s12623_s19 = smov 0  }
   0xb   :  { %s12625_s20 = smov 0   ;;  %s12627_s21 = smov 0  }
   0xc LB: > { %16471 = sst [smem:[#allocation14_spill]] %s12513_s18  ;;  %s12642_s22 = sadd.s32 4294967295, %s12525_s21   ;;  %s12525_s21 = sphi %s12627_s21, %s16582_s21   ;;  %s12521_s20 = sphi %s12625_s20, %s16581_s20   ;;  %s12517_s19 = sphi %s12623_s19, %s16580_s19   ;;  %s12513_s18 = sphi %s12621_s18, %s16579_s18  }
   0xd   : > { %s9264_s23 = sadd.s32 4294967294, %s12525_s21   ;;  %p52_p0 = scmp.ne.s32.totalorder %s12517_s19, %s12513_s18 }
   0xe   : > { %p16429_p1 = scmp.eq.s32.totalorder %s12642_s22, 0  ;;  %p376_p3 = scmp.eq.s32.totalorder %s9264_s23, 1 }
   0xf   : > { %p9265_p5 = scmp.ge.s32.totalorder %s12525_s21, 1  ;;  %p383_p7 = scmp.lt.s32.totalorder %s12525_s21, 3 }
  0x10   : > { %p12651_p4 = por %p16429_p1, %p52_p0  ;;  %p12656_p6 = por %p376_p3, %p52_p0 }
  0x11   : > { %p12661_p8 = pnand %p9265_p5, %p383_p7  ;;  %s12527_s27 = smov [#allocation7]  }
  0x12   : > { %s16472_s24 = scalar_select %p12651_p4, 1, 0 }
  0x13   : > { %s16473_s25 = scalar_select %p12656_p6, 1, 0 }
  0x14   : > { %s407_s28 = sshll.u32 %s12527_s27, 4  ;;  %p11693_p9 = pneg %p12661_p8  ;;  %s12665_s28 = int_to_ptr.vmem [resolvable:$true] %s407_s28 }
  0x15   : > { %16474 = sst [smem:[#allocation15_spill]] %s16473_s25  ;;  %s12528_s30 = smov [#allocation9]  }
  0x16   : > { %p12672_p11 = pnand %p11693_p9, %p16429_p1  ;;  %s435_s16 = sshll.u32 %s12528_s30, 4  ;;  %s12676_s16 = int_to_ptr.vmem [resolvable:$true] %s435_s16 }
  0x17   : > { %s12369_s27 = scalar_lea.hbm %s16415_s5, 9216 }
  0x18   : > { %p12370_p12 = scmp.ne.s32.totalorder %s16415_s5, %s12369_s27  ;;  %p12371_p13 = pneg %p12672_p11 }
  0x19   : > { %p12376_p5 = scmp.lt.u32.totalorder %s12369_s27, %s16415_s5 }
  0x1a   : > { %p12372_p0 = pnand %p12371_p13, %p12370_p12 }
  0x1c   : > { %p12373_p3 = pneg %p12372_p0 }
  0x1e   : > { %p12378_p7 = pnand %p12376_p5, %p12373_p3 }
  0x20   : > { %12381 = shalt.err (!%p12378_p7)
}
  0x21   : > { %s12382_s30 = scalar_lea.vmem %s12665_s28, 9216  ;;  %p12390_p2 = scmp.lt.s32.totalorder %s12665_s28, %s12665_s28 }
  0x22   : > { %p12383_p9 = scmp.ne.s32.totalorder %s12665_s28, %s12382_s30  ;;  %p12391_p12 = scmp.lt.s32.totalorder %s12382_s30, %s12382_s30 }
  0x24   : > { %p12385_p10 = pnand %p12383_p9, %p12371_p13  ;;  %p12392_p0 = por %p12391_p12, %p12390_p2 }
  0x26   : > { %p12386_p1 = pneg %p12385_p10 }
  0x28   : > { %p12393_p6 = pnand %p12392_p0, %p12386_p1 }
  0x2a   : > { %12396 = shalt.err (!%p12393_p6)
}
  0x2b   : > { %s12529_s12 = smov 64   ;;  %s12530_s15 = smov 4  }
  0x2c   : > { %11696 = dma.hbm_to_vmem [thread:$0]  (!%p12672_p11), %s16415_s5, 9216, %s12665_s28, [#allocation8], %s12529_s12, %s12529_s12, %s12530_s15  }
  0x2d   : > { %s12397_s27 = scalar_lea.hbm %s16421_s11, 9216 }
  0x2e   : > { %p12398_p2 = scmp.ne.s32.totalorder %s16421_s11, %s12397_s27  ;;  %p12404_p10 = scmp.lt.u32.totalorder %s12397_s27, %s16421_s11 }
  0x30   : > { %p12400_p1 = pnand %p12398_p2, %p12371_p13 }
  0x32   : > { %p12401_p6 = pneg %p12400_p1 }
  0x34   : > { %p12406_p3 = pnand %p12404_p10, %p12401_p6 }
  0x36   : > { %12409 = shalt.err (!%p12406_p3)
}
  0x37   : > { %s12410_s28 = scalar_lea.vmem %s12676_s16, 9216  ;;  %p12418_p12 = scmp.lt.s32.totalorder %s12676_s16, %s12676_s16 }
  0x38   : > { %p12411_p5 = scmp.ne.s32.totalorder %s12676_s16, %s12410_s28  ;;  %p12419_p0 = scmp.lt.s32.totalorder %s12410_s28, %s12410_s28 }
  0x3a   : > { %p12413_p7 = pnand %p12411_p5, %p12371_p13  ;;  %p12420_p2 = por %p12419_p0, %p12418_p12 }
  0x3c   : > { %p12414_p9 = pneg %p12413_p7 }
  0x3e   : > { %p12421_p1 = pnand %p12420_p2, %p12414_p9 }
  0x40   : > { %12424 = shalt.err (!%p12421_p1)
}
  0x41   : > { %11699 = dma.hbm_to_vmem [thread:$0]  (!%p12672_p11), %s16421_s11, 9216, %s12676_s16, [#allocation8], %s12529_s12, %s12529_s12, %s12530_s15  }
  0x42   : > { %s12731_s14 = sadd.s32 1, %s12525_s21   ;;  %s39_s29 = sadd.s32 1, %s12521_s20 }
  0x43   : > { %s36_s18 = ssub.s32 %s12525_s21, %s12731_s14  ;;  %p46_p13 = scmp.ne.s32.totalorder %s12521_s20, %s12517_s19 }
  0x44   : > { %p37_p6 = scmp.eq.s32.totalorder %s36_s18, 0  ;;  %p47_p10 = scmp.eq.s32.totalorder %s12525_s21, 0 }
  0x45   : > { %p16477_p3 = scmp.eq.s32.totalorder %s12642_s22, 1  ;;  %p11710_p7 = scmp.lt.s32.totalorder %s12525_s21, 2 }
  0x46   : > { %s12747_s17 = scalar_select %p37_p6, %s12521_s20, %s39_s29  }
  0x47   : > { %p12741_p5 = por %p16477_p3, %p46_p13  ;;  %p48_p9 = por %p47_p10, %p46_p13 }
  0x48   : > { %s458_s23 = sand.u32 1, %s12521_s20   ;;  %s9843_s16 = sshll.u32 %s12525_s21, 12 }
  0x49   : > { %s16478_s25 = scalar_select %p12741_p5, 1, 0 }
  0x4a   : > { %s9269_s27 = sshll.u32 %s458_s23, 8  ;;  %s12754_s30 = scalar_lea.hbm %s16410_s0, %s9843_s16 }
  0x4b   : > { %s462_s28 = scalar_lea.vmem [#allocation4], %s9269_s27  ;;  %p12758_p11 = pnand %p11710_p7, %p48_p9 }
  0x4c   : > { %s469_s9 = sshll.u32 %s462_s28, 4  ;;  %s12762_s29 = scalar_lea.sflag [#allocation5], %s458_s23  ;;  %s12756_s9 = int_to_ptr.vmem [resolvable:$true] %s469_s9 }
  0x4d   : > { %s12425_s18 = scalar_lea.hbm %s12754_s30, 4096  ;;  %p12427_p0 = pneg %p12758_p11 }
  0x4e   : > { %p12426_p12 = scmp.ne.s32.totalorder %s12754_s30, %s12425_s18  ;;  %s12430_s12 = scalar_lea.hbm %s16410_s0, 8192 }
  0x4f   : > { %p12431_p13 = scmp.lt.u32.totalorder %s12754_s30, %s16410_s0  ;;  %p12432_p6 = scmp.lt.u32.totalorder %s12430_s12, %s12425_s18 }
  0x50   : > { %p12428_p2 = pnand %p12427_p0, %p12426_p12  ;;  %p12434_p3 = scmp.lt.u32.totalorder %s12425_s18, %s12754_s30 }
  0x51   : > { %p12433_p10 = por %p12432_p6, %p12431_p13 }
  0x52   : > { %p12429_p1 = pneg %p12428_p2 }
  0x53   : > { %p12435_p7 = por %p12434_p3, %p12433_p10 }
  0x55   : > { %p12436_p9 = pnand %p12435_p7, %p12429_p1 }
  0x57   : > { %12439 = shalt.err (!%p12436_p9)
}
  0x58   : > { %s12440_s23 = scalar_lea.vmem %s12756_s9, 4096  ;;  %s12531_s27 = smov [#allocation4]  }
  0x59   : > { %p12441_p12 = scmp.ne.s32.totalorder %s12756_s9, %s12440_s23  ;;  %s12445_s16 = sshll.u32 %s12531_s27, 4  ;;  %s12446_s16 = int_to_ptr.vmem [resolvable:$false] %s12445_s16 }
  0x5a   : > { %s12447_s15 = scalar_lea.vmem %s12446_s16, 8192  ;;  %p12448_p4 = scmp.lt.s32.totalorder %s12756_s9, %s12446_s16 }
  0x5b   : > { %p12443_p2 = pnand %p12441_p12, %p12427_p0  ;;  %p12449_p13 = scmp.lt.s32.totalorder %s12447_s15, %s12440_s23 }
  0x5d   : > { %p12444_p5 = pneg %p12443_p2  ;;  %p12450_p6 = por %p12449_p13, %p12448_p4 }
  0x5f   : > { %p12451_p10 = pnand %p12450_p6, %p12444_p5 }
  0x61   : > { %12454 = shalt.err (!%p12451_p10)
}
  0x62   : > { %s12532_s18 = smov 128   ;;  %s12533_s12 = smov 8  }
  0x63   : > { %11703 = dma.hbm_to_vmem [thread:$0]  (!%p12758_p11), %s12754_s30, 4096, %s12756_s9, %s12762_s29, %s12532_s18, %s12532_s18, %s12533_s12  }
  0x64   : > { %481 = sbr.rel (%p12661_p8) target bundleno = 2456 (0x998), region = 80 }
  0x6b   : > { %s12793_s28 = sand.u32 1, %s12517_s19   ;;  %p16480_p4 = scmp.ne.s32.totalorder %s16472_s24, 0 }
  0x6c   : > { %s9273_s23 = sshll.u32 %s12793_s28, 8  ;;  %s484_s27 = scalar_lea.sflag [#allocation5], %s12793_s28 }
  0x6d   : > { %s12799_s16 = scalar_lea.vmem [#allocation4], %s9273_s23 }
  0x6e   : > { %12500 = dma.done.wait (%p16480_p4), %s484_s27, 4096  }
  0x6f   : > { %12502 = vsyncadd (%p16480_p4), %s484_s27, 4294963200  ;;  %p16481_p5 = scmp.eq.s32.totalorder %s12642_s22, 0 }
  0x71   : > { %12504 = dma.done.wait (%p16481_p5), [#allocation8], 18432   ;;  %p16482_p8 = pmov %p16481_p5 }
  0x72   : > { %v16434_v0 = vmov 0.0|0.0   ;;  %vm12535_vm0 = vmmov 0   ;;  %v16436_v1 = vmov 0.0   ;;  %v608_v2 = vld [vmem:[%s16411_s1] sm:$0xff]  ;;  %v609_v3 = vld [vmem:[%s16411_s1 + $0x8] sm:$0xff]  ;;  %v610_v4 = vld [vmem:[%s16411_s1 + $0x10] sm:$0xff] }
  0x73   : > { %12506 = vsyncadd (%p16482_p8), [#allocation8], 4294948864  ;;  %11157 = vmatprep.subr.bf16.mxu0 %v16434_v0  ;;  %10761 = vmatprep.mubr.msk.f32.mxu0 %vm12535_vm0, %v16436_v1  ;;  %v11158_v5 = vpack.c.bf16 %v609_v3, %v608_v2  ;;  %v611_v6 = vld [vmem:[%s16411_s1 + $0x18] sm:$0xff]  ;;  %vm575_vm1 = vcmask 261120   ;;  %v612_v8 = vld [vmem:[%s16411_s1 + $0x20] sm:$0xff]  ;;  %vm736_vm2 = vcmask 1040384  }
  0x74   : > { %11181 = vmatprep.subr.bf16.mxu1 %v16434_v0  ;;  %10772 = vmatprep.mubr.msk.f32.mxu1 %vm12535_vm0, %v16436_v1  ;;  %v11161_v7 = vpack.c.bf16 %v611_v6, %v610_v4  ;;  %v613_v9 = vld [vmem:[%s16411_s1 + $0x28] sm:$0xff]  ;;  %v12837_v10 = vld [vmem:[%s16411_s1 + $0x30] sm:$0xff]  ;;  %v12842_v11 = vld [vmem:[%s16411_s1 + $0x38] sm:$0xff]  ;;  %vm1849_vm3 = vsmask.f32 7424  ;;  %vm2058_vm6 = vcmask 1046528  }
  0x75   : > { %11159 = vmatpush3.bf16.msra.mxu0 %v11158_v5  ;;  %v543_v12 = vld [vmem:[%s12799_s16] sm:$0xff]  ;;  %v544_v13 = vld [vmem:[%s12799_s16 + $0x8] sm:$0xff]  ;;  %v545_v14 = vld [vmem:[%s12799_s16 + $0x10] sm:$0xff]  ;;  %v11164_v19 = vpack.c.bf16 %v613_v9, %v612_v8  ;;  %v11167_v38 = vpack.c.bf16 %v12842_v11, %v12837_v10  ;;  %vm1397_vm4 = vsmask.f32 256  ;;  %s16529_s10 = sld [smem:[#allocation36_spill]] }
  0x76   : > { %11160 = vmatprep.subr.bf16.mxu0 %v16434_v0  ;;  %v546_v15 = vld [vmem:[%s12799_s16 + $0x18] sm:$0xff]  ;;  %v547_v16 = vld [vmem:[%s12799_s16 + $0x20] sm:$0xff]  ;;  %v12850_v17 = vsel %vm575_vm1, %v543_v12, 0.0  ;;  %v12853_v18 = vsel %vm575_vm1, %v544_v13, 0.0  ;;  %v548_v20 = vld [vmem:[%s12799_s16 + $0x28] sm:$0xff]  ;;  %v12865_v27 = vsel %vm575_vm1, %v545_v14, 0.0 }
  0x77   : > { %v549_v21 = vld [vmem:[%s12799_s16 + $0x30] sm:$0xff]  ;;  %v550_v22 = vld [vmem:[%s12799_s16 + $0x38] sm:$0xff]  ;;  %v630_v23 = vadd.f32 %v12853_v18, %v12850_v17  ;;  %v551_v24 = vld [vmem:[%s12799_s16 + $0x40] sm:$0xff]  ;;  %v12868_v28 = vsel %vm575_vm1, %v546_v15, 0.0  ;;  %v12884_v34 = vsel %vm575_vm1, %v547_v16, 0.0  ;;  %v12887_v35 = vsel %vm575_vm1, %v548_v20, 0.0 }
  0x78   : > { %v552_v25 = vld [vmem:[%s12799_s16 + $0x48] sm:$0xff]  ;;  %v553_v26 = vld [vmem:[%s12799_s16 + $0x50] sm:$0xff]  ;;  %v12878_v30 = vld [vmem:[%s16411_s1 + $0x48] sm:$0xff]  ;;  %v12890_v36 = vsel %vm575_vm1, %v549_v21, 0.0  ;;  %v12899_v42 = vsel %vm575_vm1, %v550_v22, 0.0  ;;  %v12902_v43 = vsel %vm575_vm1, %v551_v24, 0.0 }
  0x79   : > { %11162 = vmatpush3.bf16.msra.mxu0 %v11161_v7  ;;  %v12873_v29 = vld [vmem:[%s16411_s1 + $0x40] sm:$0xff]  ;;  %v554_v31 = vld [vmem:[%s12799_s16 + $0x58] sm:$0xff]  ;;  %v555_v32 = vld [vmem:[%s12799_s16 + $0x60] sm:$0xff]  ;;  %v631_v37 = vadd.f32 %v630_v23, %v12865_v27  ;;  %v12905_v44 = vsel %vm575_vm1, %v552_v25, 0.0  ;;  %v12911_v48 = vsel %vm575_vm1, %v553_v26, 0.0  ;;  %s16531_s18 = sld [smem:[#allocation37_spill]] }
  0x7a   : > { %11163 = vmatprep.subr.bf16.mxu0 %v16434_v0  ;;  %v556_v33 = vld [vmem:[%s12799_s16 + $0x68] sm:$0xff]  ;;  %v557_v39 = vld [vmem:[%s12799_s16 + $0x70] sm:$0xff]  ;;  %v558_v40 = vld [vmem:[%s12799_s16 + $0x78] sm:$0xff]  ;;  %v12914_v49 = vsel %vm575_vm1, %v554_v31, 0.0  ;;  %v12917_v50 = vsel %vm575_vm1, %v555_v32, 0.0  ;;  %v11170_v3 = vpack.c.bf16 %v12878_v30, %v12873_v29  ;;  %s16568_s27 = sld [smem:[#allocation39_spill]] }
  0x7b   : > { %v559_v41 = vld [vmem:[%s12799_s16 + $0x80] sm:$0xff]  ;;  %v560_v45 = vld [vmem:[%s12799_s16 + $0x88] sm:$0xff]  ;;  %v561_v46 = vld [vmem:[%s12799_s16 + $0x90] sm:$0xff]  ;;  %v632_v51 = vadd.f32 %v631_v37, %v12868_v28  ;;  %v12925_v55 = vsel %vm575_vm1, %v556_v33, 0.0  ;;  %v12928_v56 = vsel %vm575_vm1, %v557_v39, 0.0  ;;  %v12931_v57 = vsel %vm575_vm1, %v558_v40, 0.0 }
  0x7c   : > { %v562_v47 = vld [vmem:[%s12799_s16 + $0x98] sm:$0xff]  ;;  %v563_v52 = vld [vmem:[%s12799_s16 + $0xa0] sm:$0xff]  ;;  %v564_v53 = vld [vmem:[%s12799_s16 + $0xa8] sm:$0xff]  ;;  %v12937_v61 = vsel %vm575_vm1, %v559_v41, 0.0  ;;  %v12940_v62 = vsel %vm575_vm1, %v560_v45, 0.0  ;;  %v12943_v63 = vsel %vm575_vm1, %v561_v46, 0.0  ;;  %v668_v39 = vmul.f32 %v12853_v18, %v12853_v18 }
  0x7d   : > { %11165 = vmatpush3.bf16.msra.mxu0 %v11164_v19  ;;  %v565_v54 = vld [vmem:[%s12799_s16 + $0xb0] sm:$0xff]  ;;  %v566_v58 = vld [vmem:[%s12799_s16 + $0xb8] sm:$0xff]  ;;  %v567_v59 = vld [vmem:[%s12799_s16 + $0xc0] sm:$0xff]  ;;  %v633_v2 = vadd.f32 %v632_v51, %v12884_v34  ;;  %v12952_v7 = vsel %vm575_vm1, %v562_v47, 0.0  ;;  %v12955_v8 = vsel %vm575_vm1, %v563_v52, 0.0  ;;  %v12958_v9 = vsel %vm575_vm1, %v564_v53, 0.0 }
  0x7e   : > { %11166 = vmatprep.subr.bf16.mxu0 %v16434_v0  ;;  %v568_v60 = vld [vmem:[%s12799_s16 + $0xc8] sm:$0xff]  ;;  %v569_v4 = vld [vmem:[%s12799_s16 + $0xd0] sm:$0xff]  ;;  %v570_v5 = vld [vmem:[%s12799_s16 + $0xd8] sm:$0xff]  ;;  %v12964_v13 = vsel %vm575_vm1, %v565_v54, 0.0  ;;  %v12967_v14 = vsel %vm575_vm1, %v566_v58, 0.0  ;;  %v12970_v15 = vsel %vm575_vm1, %v567_v59, 0.0  ;;  %v669_v51 = vmul.f32 %v12865_v27, %v12865_v27 }
  0x7f   : > { %v571_v6 = vld [vmem:[%s12799_s16 + $0xe0] sm:$0xff]  ;;  %v572_v10 = vld [vmem:[%s12799_s16 + $0xe8] sm:$0xff]  ;;  %v573_v11 = vld [vmem:[%s12799_s16 + $0xf0] sm:$0xff]  ;;  %v634_v16 = vadd.f32 %v633_v2, %v12887_v35  ;;  %v12981_v21 = vsel %vm575_vm1, %v568_v60, 0.0  ;;  %v12984_v22 = vsel %vm575_vm1, %v569_v4, 0.0  ;;  %v12987_v23 = vsel %vm575_vm1, %v570_v5, 0.0 }
  0x80   : > { %v574_v12 = vld [vmem:[%s12799_s16 + $0xf8] sm:$0xff]  ;;  %v618_v19 = vld [vmem:[%s16411_s1 + $0x50] sm:$0xff]  ;;  %v619_v20 = vld [vmem:[%s16411_s1 + $0x58] sm:$0xff]  ;;  %v12990_v24 = vsel %vm575_vm1, %v571_v6, 0.0  ;;  %v12993_v25 = vsel %vm575_vm1, %v572_v10, 0.0  ;;  %v12996_v26 = vsel %vm575_vm1, %v573_v11, 0.0  ;;  %v670_v59 = vmul.f32 %v12868_v28, %v12868_v28 }
  0x81   : > { %11168 = vmatpush3.bf16.msra.mxu0 %v11167_v38  ;;  %v12999_v29 = vsel %vm575_vm1, %v574_v12, 0.0  ;;  %v635_v30 = vadd.f32 %v634_v16, %v12890_v36  ;;  %v620_v31 = vld [vmem:[%s16411_s1 + $0x60] sm:$0xff]  ;;  %v621_v32 = vld [vmem:[%s16411_s1 + $0x68] sm:$0xff]  ;;  %v11173_v33 = vpack.c.bf16 %v619_v20, %v618_v19  ;;  %v667_v38 = vmul.f32 %v12850_v17, %v12850_v17  ;;  %v622_v46 = vld [vmem:[%s16411_s1 + $0x70] sm:$0xff]  ;;  %s16569_s30 = sld [smem:[#allocation38_spill]]  ;;  %s16295_s9 = scalar_lea.vmem [#allocation10], %s9273_s23 }
  0x82   : > { %11169 = vmatprep.subr.bf16.mxu0 %v16434_v0  ;;  %v624_v40 = vld [vmem:[%s16412_s2] sm:$0xff]  ;;  %v625_v41 = vld [vmem:[%s16412_s2 + $0x8] sm:$0xff]  ;;  %v623_v47 = vld [vmem:[%s16411_s1 + $0x78] sm:$0xff]  ;;  %v11176_v54 = vpack.c.bf16 %v621_v32, %v620_v31  ;;  %v671_v4 = vmul.f32 %v12884_v34, %v12884_v34  ;;  %v672_v12 = vmul.f32 %v12887_v35, %v12887_v35  ;;  %v673_v20 = vmul.f32 %v12890_v36, %v12890_v36  ;;  %s9844_s23 = sshll.u32 %s12642_s22, 12  ;;  %s9159_s22 = scalar_lea.sflag [#allocation6], %s12793_s28 }
  0x83   : > { %v636_v37 = vadd.f32 %v635_v30, %v12899_v42  ;;  %v626_v52 = vld [vmem:[%s16412_s2 + $0x10] sm:$0xff]  ;;  %v627_v53 = vld [vmem:[%s16412_s2 + $0x18] sm:$0xff]  ;;  %v699_v60 = vadd.f32 %v668_v39, %v667_v38  ;;  %v11179_v6 = vpack.c.bf16 %v623_v47, %v622_v46  ;;  %v674_v32 = vmul.f32 %v12899_v42, %v12899_v42  ;;  %vm13402_vm5 = vmand %vm736_vm2, %vm1397_vm4  ;;  %p16574_p0 = scmp.ne.s32.totalorder %s16478_s25, 0  ;;  %s12538_s24 = smov [#allocation10]  }
  0x84   : > { %v11185_v11 = vpack.c.bf16 %v627_v53, %v626_v52  ;;  %v675_v38 = vmul.f32 %v12902_v43, %v12902_v43  ;;  %v677_v47 = vmul.f32 %v12911_v48, %v12911_v48  ;;  %v678_v53 = vmul.f32 %v12914_v49, %v12914_v49  ;;  %vm14575_vm7 = vmpackc.low %vm575_vm1, %vm575_vm1  ;;  %s12459_s26 = sshll.u32 %s12538_s24, 4  ;;  %s12460_s26 = int_to_ptr.vmem [resolvable:$false] %s12459_s26 }
  0x85   : > { %11171 = vmatpush3.bf16.msra.mxu0 %v11170_v3  ;;  %v637_v45 = vadd.f32 %v636_v37, %v12902_v43  ;;  %v11182_v3 = vpack.c.bf16 %v625_v41, %v624_v40  ;;  %v700_v5 = vadd.f32 %v699_v60, %v669_v51  ;;  %v676_v41 = vmul.f32 %v12905_v44, %v12905_v44 }
  0x86   : > { %11172 = vmatprep.subr.bf16.mxu0 %v16434_v0 }
  0x87   : > { %v638_v58 = vadd.f32 %v637_v45, %v12905_v44  ;;  %11183 = vmatpush3.bf16.msra.mxu1 %v11182_v3  ;;  %v701_v16 = vadd.f32 %v700_v5, %v670_v59  ;;  %v679_v59 = vmul.f32 %v12917_v50, %v12917_v50  ;;  %v680_v3 = vmul.f32 %v12925_v55, %v12925_v55 }
  0x88   : > { %11184 = vmatprep.subr.bf16.mxu1 %v16434_v0 }
  0x89   : > { %11174 = vmatpush3.bf16.msra.mxu0 %v11173_v33  ;;  %v639_v2 = vadd.f32 %v638_v58, %v12911_v48  ;;  %v702_v30 = vadd.f32 %v701_v16, %v671_v4 }
  0x8a   : > { %11175 = vmatprep.subr.bf16.mxu0 %v16434_v0 }
  0x8b   : > { %v640_v10 = vadd.f32 %v639_v2, %v12914_v49  ;;  %11186 = vmatpush3.bf16.msra.mxu1 %v11185_v11  ;;  %v703_v33 = vadd.f32 %v702_v30, %v672_v12  ;;  %v682_v12 = vmul.f32 %v12931_v57, %v12931_v57 }
  0x8d   : > { %11177 = vmatpush3.bf16.msra.mxu0 %v11176_v54  ;;  %v641_v19 = vadd.f32 %v640_v10, %v12917_v50  ;;  %v704_v39 = vadd.f32 %v703_v33, %v673_v20  ;;  %v683_v20 = vmul.f32 %v12937_v61, %v12937_v61 }
  0x8e   : > { %11178 = vmatprep.subr.bf16.mxu0 %v16434_v0 }
  0x8f   : > { %v642_v31 = vadd.f32 %v641_v19, %v12925_v55  ;;  %v705_v45 = vadd.f32 %v704_v39, %v674_v32  ;;  %v684_v32 = vmul.f32 %v12940_v62, %v12940_v62 }
  0x91   : > { %11180 = vmatpush3.bf16.msra.mxu0 %v11179_v6  ;;  %v643_v37 = vadd.f32 %v642_v31, %v12928_v56  ;;  %v706_v51 = vadd.f32 %v705_v45, %v675_v38  ;;  %v681_v6 = vmul.f32 %v12928_v56, %v12928_v56  ;;  %v685_v38 = vmul.f32 %v12943_v63, %v12943_v63 }
  0x93   : > { %v644_v40 = vadd.f32 %v643_v37, %v12931_v57  ;;  %v707_v54 = vadd.f32 %v706_v51, %v676_v41  ;;  %v686_v41 = vmul.f32 %v12952_v7, %v12952_v7 }
  0x95   : > { %v645_v46 = vadd.f32 %v644_v40, %v12937_v61  ;;  %v708_v60 = vadd.f32 %v707_v54, %v677_v47  ;;  %v687_v47 = vmul.f32 %v12955_v8, %v12955_v8 }
  0x97   : > { %v646_v52 = vadd.f32 %v645_v46, %v12940_v62  ;;  %v709_v4 = vadd.f32 %v708_v60, %v678_v53  ;;  %v688_v53 = vmul.f32 %v12958_v9, %v12958_v9 }
  0x99   : > { %v647_v58 = vadd.f32 %v646_v52, %v12943_v63  ;;  %v710_v10 = vadd.f32 %v709_v4, %v679_v59  ;;  %v689_v59 = vmul.f32 %v12964_v13, %v12964_v13 }
  0x9b   : > { %v648_v2 = vadd.f32 %v647_v58, %v12952_v7  ;;  %v711_v16 = vadd.f32 %v710_v10, %v680_v3  ;;  %v690_v3 = vmul.f32 %v12967_v14, %v12967_v14 }
  0x9d   : > { %v649_v5 = vadd.f32 %v648_v2, %v12955_v8  ;;  %v712_v30 = vadd.f32 %v711_v16, %v681_v6  ;;  %v691_v6 = vmul.f32 %v12970_v15, %v12970_v15 }
  0x9f   : > { %v650_v11 = vadd.f32 %v649_v5, %v12958_v9  ;;  %v713_v33 = vadd.f32 %v712_v30, %v682_v12  ;;  %v692_v12 = vmul.f32 %v12981_v21, %v12981_v21 }
  0xa1   : > { %v651_v19 = vadd.f32 %v650_v11, %v12964_v13  ;;  %v714_v39 = vadd.f32 %v713_v33, %v683_v20  ;;  %v693_v20 = vmul.f32 %v12984_v22, %v12984_v22 }
  0xa3   : > { %v652_v31 = vadd.f32 %v651_v19, %v12967_v14  ;;  %v715_v45 = vadd.f32 %v714_v39, %v684_v32  ;;  %v696_v39 = vmul.f32 %v12993_v25, %v12993_v25 }
  0xa5   : > { %v653_v37 = vadd.f32 %v652_v31, %v12970_v15  ;;  %v716_v51 = vadd.f32 %v715_v45, %v685_v38  ;;  %v694_v31 = vmul.f32 %v12987_v23, %v12987_v23  ;;  %v697_v45 = vmul.f32 %v12996_v26, %v12996_v26 }
  0xa7   : > { %v654_v40 = vadd.f32 %v653_v37, %v12981_v21  ;;  %v717_v54 = vadd.f32 %v716_v51, %v686_v41  ;;  %v695_v37 = vmul.f32 %v12990_v24, %v12990_v24 }
  0xa9   : > { %v655_v46 = vadd.f32 %v654_v40, %v12984_v22  ;;  %v718_v60 = vadd.f32 %v717_v54, %v687_v47  ;;  %v698_v47 = vmul.f32 %v12999_v29, %v12999_v29 }
  0xab   : > { %v656_v52 = vadd.f32 %v655_v46, %v12987_v23  ;;  %v719_v4 = vadd.f32 %v718_v60, %v688_v53 }
  0xad   : > { %v657_v58 = vadd.f32 %v656_v52, %v12990_v24  ;;  %v720_v10 = vadd.f32 %v719_v4, %v689_v59 }
  0xaf   : > { %v658_v2 = vadd.f32 %v657_v58, %v12993_v25  ;;  %v721_v16 = vadd.f32 %v720_v10, %v690_v3 }
  0xb1   : > { %v659_v5 = vadd.f32 %v658_v2, %v12996_v26  ;;  %v722_v30 = vadd.f32 %v721_v16, %v691_v6  ;;  %v11758_v16 = vld [vmem:[#allocation7 + $0x40] sm:$0xff]  }
  0xb2   : > { %9867 = vmatprep.subr.bf16.mxu0 %v11758_v16  ;;  %11217 = vmatprep.subr.bf16.mxu1 %v11758_v16 }
  0xb3   : > { %v660_v11 = vadd.f32 %v659_v5, %v12999_v29  ;;  %v723_v32 = vadd.f32 %v722_v30, %v692_v12  ;;  %v11761_v30 = vld [vmem:[#allocation7 + $0x8] sm:$0xff]  }
  0xb5   : > { %v661_v19 = vrot.slane %v660_v11, 4  ;;  %v724_v38 = vadd.f32 %v723_v32, %v693_v20  ;;  %v11760_v20 = vld [vmem:[#allocation7 + $0x48] sm:$0xff]   ;;  %v11763_v32 = vld [vmem:[#allocation7 + $0x10] sm:$0xff]  }
  0xb7   : > { %v662_v33 = vadd.f32 %v661_v19, %v660_v11  ;;  %v725_v40 = vadd.f32 %v724_v38, %v694_v31  ;;  %v11759_v19 = vld [vmem:[#allocation7] sm:$0xff]   ;;  %v11762_v31 = vld [vmem:[#allocation7 + $0x50] sm:$0xff]  }
  0xb8   : > { %v11766_v38 = vld [vmem:[#allocation7 + $0x60] sm:$0xff]  }
  0xb9   : > { %v663_v41 = vrot.slane %v662_v33, 2  ;;  %v726_v46 = vadd.f32 %v725_v40, %v695_v37  ;;  %v11765_v37 = vld [vmem:[#allocation7 + $0x18] sm:$0xff]   ;;  %v12537_v40 = vmov 0  }
  0xba   : > { %1229 = vst [vmem:[#allocation2] sm:$0xf] %v12537_v40  ;;  %1230 = vst [vmem:[#allocation2 + $0x4] sm:$0xf] %v12537_v40 }
  0xbb   : > { %v727_v51 = vadd.f32 %v726_v46, %v696_v39  ;;  %v664_v54 = vadd.f32 %v663_v41, %v662_v33  ;;  %v11764_v33 = vld [vmem:[#allocation7 + $0x58] sm:$0xff]   ;;  %v11767_v39 = vld [vmem:[#allocation7 + $0x20] sm:$0xff]   ;;  %1231 = vst [vmem:[#allocation2 + $0x8] sm:$0x1] %v12537_v40  ;;  %1233 = vst [vmem:[#allocation2 + $0xcc] sm:$0xf] %v12537_v40 }
  0xbc   : > { %1234 = vst [vmem:[#allocation2 + $0xd0] sm:$0xf] %v12537_v40  ;;  %1235 = vst [vmem:[#allocation2 + $0xd4] sm:$0x1] %v12537_v40  ;;  %v11768_v41 = vld [vmem:[#allocation7 + $0x68] sm:$0xff]   ;;  %v11770_v46 = vld [vmem:[#allocation7 + $0x70] sm:$0xff]  }
  0xbd   : > { %v728_v52 = vadd.f32 %v727_v51, %v697_v45  ;;  %v665_v60 = vrot.slane %v664_v54, 1  ;;  %5630 = vst [vmem:[#allocation3] sm:$0xf] %v12537_v40  ;;  %5631 = vst [vmem:[#allocation3 + $0x4] sm:$0xf] %v12537_v40  ;;  %v11769_v45 = vld [vmem:[#allocation7 + $0x28] sm:$0xff]  }
  0xbe   : > { %5632 = vst [vmem:[#allocation3 + $0x8] sm:$0x1] %v12537_v40  ;;  %5634 = vst [vmem:[#allocation3 + $0xcc] sm:$0xf] %v12537_v40 }
  0xbf   : > { %v729_v53 = vadd.f32 %v728_v52, %v698_v47  ;;  %v666_v4 = vadd.f32 %v665_v60, %v664_v54  ;;  %5635 = vst [vmem:[#allocation3 + $0xd0] sm:$0xf] %v12537_v40  ;;  %5636 = vst [vmem:[#allocation3 + $0xd4] sm:$0x1] %v12537_v40  ;;  %v11771_v47 = vld [vmem:[#allocation7 + $0x30] sm:$0xff]   ;;  %v11773_v54 = vld [vmem:[#allocation7 + $0x38] sm:$0xff]  }
  0xc1   : > { %v730_v58 = vrot.slane %v729_v53, 4  ;;  %v11774_v51 = vld [vmem:[#allocation2] sm:$0xff]  }
  0xc2   : > { %v11775_v52 = vld [vmem:[#allocation2 + $0x8] ss:$0 sps:$4 sm:$0x11]  }
  0xc3   : > { %v731_v59 = vadd.f32 %v730_v58, %v729_v53  ;;  %v11772_v53 = vld [vmem:[#allocation7 + $0x78] sm:$0xff]   ;;  %v1851_v58 = vshrl.u32 %v11774_v51, 16  ;;  %v1858_v60 = vshll.u32 %v11775_v52, 16 }
  0xc5   : > { %v732_v2 = vrot.slane %v731_v59, 2 }
  0xc7   : > { %v733_v3 = vadd.f32 %v732_v2, %v731_v59  ;;  %v1853_v59 = vshll.u32 %v11774_v51, 16  ;;  %v11776_v2 = vld [vmem:[#allocation7 + $0x80] sm:$0xff]  }
  0xc9   : > { %v734_v5 = vrot.slane %v733_v3, 1 }
  0xcb   : > { %v735_v6 = vadd.f32 %v734_v5, %v733_v3  ;;  %v1855_v3 = vrot.slane %v1853_v59, 1 }
  0xcd   : > { %v737_v10 = vsel %vm736_vm2, %v666_v4, %v735_v6  ;;  %v1860_v4 = vrot.slane %v1858_v60, 1  ;;  %v1856_v5 = vor.u32 %v1855_v3, %v1851_v58 }
  0xce   : > { %10762 = vmatmul.mubr.f32.vlgmr.msra.gmra.mrb[0].mxu0 %v737_v10  ;;  %v11777_v10 = vld [vmem:[#allocation7 + $0x88] sm:$0xff]  }
  0xcf   : > { %9868 = vmatpush3.bf16.msra.mxu0 %v11759_v19  ;;  %v1861_v6 = vsel %vm1849_vm3, %v1856_v5, %v1860_v4 }
  0xd0   : > { %9869 = vmatprep.subr.bf16.mxu0 %v11760_v20  ;;  %2347 = vmatprep.mubr.bf16.mxu0 %v1861_v6 }
  0xd3   : > { %9870 = vmatpush3.bf16.msra.mxu0 %v11761_v30 }
  0xd4   : > { %9871 = vmatprep.subr.bf16.mxu0 %v11762_v31 }
  0xd7   : > { %9872 = vmatpush3.bf16.msra.mxu0 %v11763_v32 }
  0xd8   : > { %9873 = vmatprep.subr.bf16.mxu0 %v11764_v33 }
  0xdb   : > { %9874 = vmatpush3.bf16.msra.mxu0 %v11765_v37 }
  0xdc   : > { %9875 = vmatprep.subr.bf16.mxu0 %v11766_v38 }
  0xdf   : > { %9876 = vmatpush3.bf16.msra.mxu0 %v11767_v39 }
  0xe0   : > { %9877 = vmatprep.subr.bf16.mxu0 %v11768_v41 }
  0xe3   : > { %9878 = vmatpush3.bf16.msra.mxu0 %v11769_v45 }
  0xe4   : > { %9879 = vmatprep.subr.bf16.mxu0 %v11770_v46 }
  0xe7   : > { %9880 = vmatpush3.bf16.msra.mxu0 %v11771_v47 }
  0xe8   : > { %9881 = vmatprep.subr.bf16.mxu0 %v11772_v53 }
  0xeb   : > { %9882 = vmatpush3.bf16.msra.mxu0 %v11773_v54 }
  0xec   : > { %10775 = vmatprep.subr.bf16.mxu0 %v11776_v2 }
  0xee   : > { %2348 = vmatmul.mubr.bf16.vlgmr.msra.gmra.mrb[4].mxu0 %v11774_v51 }
  0xef   : > { %10776 = vmatpush3.bf16.msra.mxu0 %v11776_v2 }
  0xf0   : > { %10777 = vmatprep.subr.bf16.mxu0 %v11777_v10 }
  0xf3   : > { %10778 = vmatpush3.bf16.msra.mxu0 %v11777_v10 }
 0x1a1   : > { %v804_v11 = vpop.f32.mrb[0].mxu0 }
 0x1a2   : > { %v10763_v12 = vpop.f32.mrb[1].mxu0  ;;  %10773 = vmatmul.mubr.msk.f32.vlgmr.msra.gmra.mrb[0].mxu1 %vm575_vm1, %v804_v11 }
 0x1a3   : > { %11225 = vmatpush3.bf16.msra.mxu1 %v11759_v19 }
 0x1a4   : > { %11218 = vmatprep.subr.bf16.mxu1 %v11760_v20 }
 0x1a7   : > { %11226 = vmatpush3.bf16.msra.mxu1 %v11761_v30  ;;  %v888_v30 = vlaneseq }
 0x1a8   : > { %11219 = vmatprep.subr.bf16.mxu1 %v11762_v31  ;;  %v11786_v31 = vld [vmem:[#allocation7 + $0x90] sm:$0xff]  }
 0x1a9   : > { %10779 = vmatprep.subr.bf16.mxu0 %v11786_v31 }
 0x1aa   : > { %10780 = vmatpush3.bf16.msra.mxu0 %v11786_v31 }
 0x1ab   : > { %11227 = vmatpush3.bf16.msra.mxu1 %v11763_v32  ;;  %v11787_v32 = vld [vmem:[#allocation7 + $0x98] sm:$0xff]  }
 0x1ac   : > { %11220 = vmatprep.subr.bf16.mxu1 %v11764_v33  ;;  %10781 = vmatprep.subr.bf16.mxu0 %v11787_v32 }
 0x1ae   : > { %10782 = vmatpush3.bf16.msra.mxu0 %v11787_v32 }
 0x1af   : > { %11228 = vmatpush3.bf16.msra.mxu1 %v11765_v37  ;;  %v13122_v37 = vshrl.u32 %v888_v30, 7 }
 0x1b0   : > { %11221 = vmatprep.subr.bf16.mxu1 %v11766_v38 }
 0x1b1   : > { %16483 = vst [vmem:[#allocation16_spill] sm:$0xff] %v13122_v37  ;;  %v16433_v38 = vsub.s32 0, %v13122_v37 }
 0x1b3   : > { %11229 = vmatpush3.bf16.msra.mxu1 %v11767_v39  ;;  %v9278_v39 = vld [vmem:[%s16413_s3] ss:$0 sm:$0xff] }
 0x1b4   : > { %11222 = vmatprep.subr.bf16.mxu1 %v11768_v41  ;;  %v16432_v41 = vsub.s32 1, %v13122_v37 }
 0x1b7   : > { %11230 = vmatpush3.bf16.msra.mxu1 %v11769_v45 }
 0x1b8   : > { %11223 = vmatprep.subr.bf16.mxu1 %v11770_v46 }
 0x1bb   : > { %11231 = vmatpush3.bf16.msra.mxu1 %v11771_v47 }
 0x1bc   : > { %11224 = vmatprep.subr.bf16.mxu1 %v11772_v53 }
 0x1bf   : > { %11232 = vmatpush3.bf16.msra.mxu1 %v11773_v54 }
 0x275   : > { %v877_v11 = vpop.f32.mrb[0].mxu1 }
 0x276   : > { %v881_v12 = vmul.f32 %v877_v11, %v877_v11  ;;  %v10774_v16 = vpop.f32.mrb[1].mxu1  ;;  %v13130_v40 = vrot.slane %v877_v11, %v16433_v38 }
 0x278   : > { %v883_v19 = vrot.slane %v881_v12, 7  ;;  %v906_v47 = vsub.f32 %v12928_v56, %v13130_v40  ;;  %v907_v52 = vsub.f32 %v12931_v57, %v13130_v40  ;;  %v908_v53 = vsub.f32 %v12937_v61, %v13130_v40 }
 0x279   : > { %v909_v54 = vsub.f32 %v12940_v62, %v13130_v40  ;;  %v910_v58 = vsub.f32 %v12943_v63, %v13130_v40  ;;  %v911_v59 = vsub.f32 %v12952_v7, %v13130_v40  ;;  %v912_v56 = vsub.f32 %v12955_v8, %v13130_v40  ;;  %v13162_v62 = vld [vmem:[%s16414_s4] ss:$0 sm:$0xff] }
 0x27a   : > { %v885_v20 = vsub.f32 %v877_v11, %v883_v19  ;;  %v904_v63 = vsub.f32 %v12917_v50, %v13130_v40  ;;  %v913_v7 = vsub.f32 %v12958_v9, %v13130_v40  ;;  %v905_v4 = vsub.f32 %v12925_v55, %v13130_v40 }
 0x27b   : > { %v914_v5 = vsub.f32 %v12964_v13, %v13130_v40  ;;  %v915_v6 = vsub.f32 %v12967_v14, %v13130_v40  ;;  %v916_v11 = vsub.f32 %v12970_v15, %v13130_v40  ;;  %v917_v9 = vsub.f32 %v12981_v21, %v13130_v40 }
 0x27c   : > { %v886_v33 = vadd.f32 1e-05, %v885_v20  ;;  %v918_v12 = vsub.f32 %v12984_v22, %v13130_v40  ;;  %v919_v19 = vsub.f32 %v12987_v23, %v13130_v40  ;;  %v920_v15 = vsub.f32 %v12990_v24, %v13130_v40  ;;  %v11792_v24 = vld [vmem:[#allocation7 + $0xa0] sm:$0xff]  }
 0x27d   : > { %v921_v23 = vsub.f32 %v12993_v25, %v13130_v40  ;;  %v922_v31 = vsub.f32 %v12996_v26, %v13130_v40  ;;  %v892_v25 = vsub.f32 %v12850_v17, %v13130_v40  ;;  %10783 = vmatprep.subr.bf16.mxu0 %v11792_v24 }
 0x27e   : > { %12102 = vrsqrt.f32 %v886_v33  ;;  %10784 = vmatpush3.bf16.msra.mxu0 %v11792_v24 }
 0x288   : > { %v12103_v45 = vpop.eup %12102 }
 0x289   : > { %v930_v46 = vmul.f32 %v12103_v45, %v9278_v39  ;;  %v923_v39 = vsub.f32 %v12999_v29, %v13130_v40 }
 0x28b   : > { %v13137_v51 = vrot.slane %v930_v46, %v16432_v41 }
 0x28d   : > { %v13152_v60 = vmul.f32 %v13137_v51, %v906_v47  ;;  %v13155_v57 = vmul.f32 %v13137_v51, %v907_v52  ;;  %v951_v61 = vmul.f32 %v13137_v51, %v908_v53  ;;  %v952_v2 = vmul.f32 %v13137_v51, %v909_v54  ;;  %v11793_v47 = vld [vmem:[#allocation7 + $0xa8] sm:$0xff]  }
 0x28e   : > { %v953_v8 = vmul.f32 %v13137_v51, %v910_v58  ;;  %v954_v3 = vmul.f32 %v13137_v51, %v911_v59  ;;  %v955_v10 = vmul.f32 %v13137_v51, %v912_v56  ;;  %v956_v16 = vmul.f32 %v13137_v51, %v913_v7  ;;  %10785 = vmatprep.subr.bf16.mxu0 %v11793_v47 }
 0x28f   : > { %v957_v13 = vmul.f32 %v13137_v51, %v914_v5  ;;  %v13188_v14 = vadd.f32 %v13162_v62, %v951_v61  ;;  %v13191_v20 = vadd.f32 %v13162_v62, %v952_v2  ;;  %v958_v21 = vmul.f32 %v13137_v51, %v915_v6  ;;  %10786 = vmatpush3.bf16.msra.mxu0 %v11793_v47 }
 0x290   : > { %v13197_v22 = vadd.f32 %v13162_v62, %v953_v8  ;;  %v13200_v30 = vadd.f32 %v13162_v62, %v954_v3  ;;  %v959_v32 = vmul.f32 %v13137_v51, %v916_v11  ;;  %v13208_v33 = vadd.f32 %v13162_v62, %v955_v10 }
 0x291   : > { %v960_v45 = vmul.f32 %v13137_v51, %v917_v9  ;;  %v13214_v46 = vadd.f32 %v13162_v62, %v956_v16  ;;  %v961_v26 = vmul.f32 %v13137_v51, %v918_v12  ;;  %v13220_v52 = vadd.f32 %v13162_v62, %v957_v13  ;;  %v11798_v16 = vld [vmem:[#allocation7 + $0xb0] sm:$0xff]  }
 0x292   : > { %v9296_v53 = vmul.f32 -1.442695, %v13188_v14  ;;  %v9297_v54 = vmul.f32 -1.442695, %v13191_v20  ;;  %v962_v29 = vmul.f32 %v13137_v51, %v919_v19  ;;  %v13226_v58 = vadd.f32 %v13162_v62, %v958_v21  ;;  %10787 = vmatprep.subr.bf16.mxu0 %v11798_v16 }
 0x293   : > { %v9298_v59 = vmul.f32 -1.442695, %v13197_v22  ;;  %v9299_v17 = vmul.f32 -1.442695, %v13200_v30  ;;  %v963_v56 = vmul.f32 %v13137_v51, %v920_v15  ;;  %v13232_v61 = vadd.f32 %v13162_v62, %v959_v32  ;;  %10788 = vmatpush3.bf16.msra.mxu0 %v11798_v16 }
 0x294   : > { %12104 = vpow2.f32 %v9296_v53  ;;  %v9300_v2 = vmul.f32 -1.442695, %v13208_v33  ;;  %v964_v7 = vmul.f32 %v13137_v51, %v921_v23  ;;  %v13237_v8 = vadd.f32 %v13162_v62, %v960_v45 }
 0x295   : > { %12106 = vpow2.f32 %v9297_v54  ;;  %v9301_v3 = vmul.f32 -1.442695, %v13214_v46  ;;  %v965_v5 = vmul.f32 %v13137_v51, %v922_v31  ;;  %v13242_v6 = vadd.f32 %v13162_v62, %v961_v26  ;;  %v11802_v54 = vld [vmem:[#allocation7 + $0x100] sm:$0xff]  }
 0x296   : > { %12108 = vpow2.f32 %v9298_v59  ;;  %v9302_v10 = vmul.f32 -1.442695, %v13220_v52  ;;  %v966_v11 = vmul.f32 %v13137_v51, %v923_v39  ;;  %v13247_v9 = vadd.f32 %v13162_v62, %v962_v29 }
 0x297   : > { %12110 = vpow2.f32 %v9299_v17  ;;  %v9303_v12 = vmul.f32 -1.442695, %v13226_v58  ;;  %v13251_v19 = vadd.f32 %v13162_v62, %v963_v56  ;;  %v9304_v13 = vmul.f32 -1.442695, %v13232_v61 }
 0x298   : > { %12112 = vpow2.f32 %v9300_v2  ;;  %v893_v15 = vsub.f32 %v12853_v18, %v13130_v40  ;;  %v13257_v21 = vadd.f32 %v13162_v62, %v964_v7  ;;  %v9305_v23 = vmul.f32 -1.442695, %v13237_v8  ;;  %v11801_v18 = vld [vmem:[#allocation7 + $0xb8] sm:$0xff]  }
 0x299   : > { %12114 = vpow2.f32 %v9301_v3  ;;  %v900_v31 = vsub.f32 %v12902_v43, %v13130_v40  ;;  %v13263_v32 = vadd.f32 %v13162_v62, %v965_v5  ;;  %v9306_v24 = vmul.f32 -1.442695, %v13242_v6  ;;  %10789 = vmatprep.subr.bf16.mxu0 %v11801_v18 }
 0x29a   : > { %12116 = vpow2.f32 %v9302_v10  ;;  %v901_v39 = vsub.f32 %v12905_v44, %v13130_v40  ;;  %v13269_v45 = vadd.f32 %v13162_v62, %v966_v11  ;;  %v9307_v47 = vmul.f32 -1.442695, %v13247_v9  ;;  %10790 = vmatpush3.bf16.msra.mxu0 %v11801_v18 }
 0x29b   : > { %12118 = vpow2.f32 %v9303_v12  ;;  %v894_v43 = vsub.f32 %v12865_v27, %v13130_v40  ;;  %v9308_v26 = vmul.f32 -1.442695, %v13251_v19  ;;  %v895_v53 = vsub.f32 %v12868_v28, %v13130_v40  ;;  %10003 = vmatprep.subr.bf16.mxu0 %v11802_v54 }
 0x29c   : > { %12120 = vpow2.f32 %v9304_v13  ;;  %v902_v44 = vsub.f32 %v12911_v48, %v13130_v40  ;;  %v9309_v29 = vmul.f32 -1.442695, %v13257_v21  ;;  %v935_v59 = vmul.f32 %v13137_v51, %v892_v25 }
 0x29d   : > { %12122 = vpow2.f32 %v9305_v23  ;;  %v903_v27 = vsub.f32 %v12914_v49, %v13130_v40  ;;  %v9310_v56 = vmul.f32 -1.442695, %v13263_v32  ;;  %v896_v28 = vsub.f32 %v12884_v34, %v13130_v40 }
 0x29e   : > { %v12105_v17 = vpop.eup %12104  ;;  %12124 = vpow2.f32 %v9306_v24  ;;  %v897_v2 = vsub.f32 %v12887_v35, %v13130_v40  ;;  %v9311_v3 = vmul.f32 -1.442695, %v13269_v45  ;;  %v936_v5 = vmul.f32 %v13137_v51, %v893_v15 }
 0x29f   : > { %v12107_v7 = vpop.eup %12106  ;;  %12126 = vpow2.f32 %v9307_v47  ;;  %v947_v25 = vmul.f32 %v13137_v51, %v904_v63  ;;  %v1117_v11 = vadd.f32 1.0, %v12105_v17  ;;  %v898_v12 = vsub.f32 %v12890_v36, %v13130_v40 }
 0x2a0   : > { %v12109_v10 = vpop.eup %12108  ;;  %12128 = vpow2.f32 %v9308_v26  ;;  %v899_v16 = vsub.f32 %v12899_v42, %v13130_v40  ;;  %v1118_v23 = vadd.f32 1.0, %v12107_v7  ;;  %v13299_v15 = vadd.f32 %v13162_v62, %v935_v59 }
 0x2a1   : > { %v12111_v13 = vpop.eup %12110  ;;  %12130 = vpow2.f32 %v9309_v29  ;;  %v943_v50 = vmul.f32 %v13137_v51, %v900_v31  ;;  %v1119_v24 = vadd.f32 1.0, %v12109_v10  ;;  %v944_v18 = vmul.f32 %v13137_v51, %v901_v39 }
 0x2a2   : > { %v12113_v63 = vpop.eup %12112  ;;  %12132 = vpow2.f32 %v9310_v56  ;;  %v948_v36 = vmul.f32 %v13137_v51, %v905_v4  ;;  %v1120_v47 = vadd.f32 1.0, %v12111_v13  ;;  %v13308_v26 = vadd.f32 %v13162_v62, %v936_v5 }
 0x2a3   : > { %v12115_v42 = vpop.eup %12114  ;;  %12134 = vpow2.f32 %v9311_v3  ;;  %v13311_v54 = vadd.f32 %v13162_v62, %v947_v25  ;;  %v1121_v29 = vadd.f32 1.0, %v12113_v63  ;;  %v941_v39 = vmul.f32 %v13137_v51, %v898_v12 }
 0x2a4   : > { %v12117_v31 = vpop.eup %12116  ;;  %12136 = vrcp.f32 %v1117_v11  ;;  %v13314_v59 = vadd.f32 %v13162_v62, %v948_v36  ;;  %v1122_v17 = vadd.f32 1.0, %v12115_v42  ;;  %v937_v4 = vmul.f32 %v13137_v51, %v894_v43 }
 0x2a5   : > { %v12119_v55 = vpop.eup %12118  ;;  %12138 = vrcp.f32 %v1118_v23  ;;  %v942_v56 = vmul.f32 %v13137_v51, %v899_v16  ;;  %v1123_v3 = vadd.f32 1.0, %v12117_v31  ;;  %v938_v5 = vmul.f32 %v13137_v51, %v895_v53 }
 0x2a6   : > { %v12121_v7 = vpop.eup %12120  ;;  %12140 = vrcp.f32 %v1119_v24  ;;  %v13321_v25 = vadd.f32 %v13162_v62, %v941_v39  ;;  %v1124_v11 = vadd.f32 1.0, %v12119_v55  ;;  %v13328_v13 = vadd.f32 %v13162_v62, %v13152_v60 }
 0x2a7   : > { %v12123_v10 = vpop.eup %12122  ;;  %12142 = vrcp.f32 %v1120_v47  ;;  %v13324_v12 = vadd.f32 %v13162_v62, %v942_v56  ;;  %v1125_v16 = vadd.f32 1.0, %v12121_v7  ;;  %v9280_v23 = vmul.f32 -1.442695, %v13299_v15 }
 0x2a8   : > { %v12125_v43 = vpop.eup %12124  ;;  %12144 = vrcp.f32 %v1121_v29  ;;  %v13333_v53 = vadd.f32 %v13162_v62, %v13155_v57  ;;  %v1126_v24 = vadd.f32 1.0, %v12123_v10  ;;  %v13336_v36 = vadd.f32 %v13162_v62, %v943_v50 }
 0x2a9   : > { %v12127_v63 = vpop.eup %12126  ;;  %12146 = vrcp.f32 %v1122_v17  ;;  %v13339_v42 = vadd.f32 %v13162_v62, %v944_v18  ;;  %v1127_v47 = vadd.f32 1.0, %v12125_v43  ;;  %v945_v31 = vmul.f32 %v13137_v51, %v902_v44 }
 0x2aa   : > { %v12129_v60 = vpop.eup %12128  ;;  %12148 = vrcp.f32 %v1123_v3  ;;  %v946_v57 = vmul.f32 %v13137_v51, %v903_v27  ;;  %v1128_v50 = vadd.f32 1.0, %v12127_v63  ;;  %v9281_v18 = vmul.f32 -1.442695, %v13308_v26 }
 0x2ab   : > { %v12131_v29 = vpop.eup %12130  ;;  %12150 = vrcp.f32 %v1124_v11  ;;  %v939_v39 = vmul.f32 %v13137_v51, %v896_v28  ;;  %v1129_v48 = vadd.f32 1.0, %v12129_v60  ;;  %v13355_v44 = vadd.f32 %v13162_v62, %v937_v4 }
 0x2ac   : > { %v12133_v55 = vpop.eup %12132  ;;  %12152 = vrcp.f32 %v1125_v16  ;;  %v940_v49 = vmul.f32 %v13137_v51, %v897_v2  ;;  %v1130_v17 = vadd.f32 1.0, %v12131_v29  ;;  %v9288_v56 = vmul.f32 -1.442695, %v13336_v36 }
 0x2ad   : > { %v12135_v27 = vpop.eup %12134  ;;  %12154 = vrcp.f32 %v1126_v24  ;;  %v13363_v34 = vadd.f32 %v13162_v62, %v938_v5  ;;  %v1131_v7 = vadd.f32 1.0, %v12133_v55  ;;  %v13366_v3 = vadd.f32 %v13162_v62, %v945_v31 }
 0x2ae   : > { %v12137_v28 = vpop.eup %12136  ;;  %12156 = vrcp.f32 %v1127_v47  ;;  %v13369_v4 = vadd.f32 %v13162_v62, %v946_v57  ;;  %v1132_v40 = vadd.f32 1.0, %v12135_v27  ;;  %v13372_v51 = vadd.f32 %v13162_v62, %v939_v39 }
 0x2af   : > { %v12139_v35 = vpop.eup %12138  ;;  %12158 = vrcp.f32 %v1128_v50  ;;  %v1213_v2 = vmul.f32 %v12137_v28, %v13188_v14  ;;  %v9289_v5 = vmul.f32 -1.442695, %v13339_v42  ;;  %v13377_v11 = vadd.f32 %v13162_v62, %v940_v49 }
 0x2b0   : > { %v12141_v10 = vpop.eup %12140  ;;  %12160 = vrcp.f32 %v1129_v48  ;;  %v1214_v43 = vmul.f32 %v12139_v35, %v13191_v20  ;;  %v9282_v24 = vmul.f32 -1.442695, %v13355_v44  ;;  %v9283_v60 = vmul.f32 -1.442695, %v13363_v34 }
 0x2b1   : > { %v12143_v16 = vpop.eup %12142  ;;  %12162 = vrcp.f32 %v1130_v17  ;;  %v1215_v63 = vmul.f32 %v12141_v10, %v13197_v22  ;;  %v9290_v31 = vmul.f32 -1.442695, %v13366_v3  ;;  %v9291_v20 = vmul.f32 -1.442695, %v13369_v4 }
 0x2b2   : > { %v12145_v47 = vpop.eup %12144  ;;  %12164 = vrcp.f32 %v1131_v7  ;;  %v1216_v14 = vmul.f32 %v12143_v16, %v13200_v30  ;;  %v1244_v57 = vpack.c.bf16 %v1214_v43, %v1213_v2  ;;  %v13388_v50 = vmul.f32 -1.442695, %v13372_v51 }
 0x2b3   : > { %v12147_v29 = vpop.eup %12146  ;;  %12166 = vrcp.f32 %v1132_v40  ;;  %v1217_v62 = vmul.f32 %v12145_v47, %v13208_v33  ;;  %v13392_v55 = vmul.f32 -1.442695, %v13377_v11  ;;  %v13396_v27 = vmul.f32 -1.442695, %v13311_v54 }
 0x2b4   : > { %v12149_v22 = vpop.eup %12148  ;;  %v1218_v39 = vmul.f32 %v12147_v29, %v13214_v46  ;;  %12168 = vpow2.f32 %v9280_v23  ;;  %v1309_v30 = vshrl.u32 %v1244_v57, 16  ;;  %v13398_v33 = vpack.c.bf16 %v1216_v14, %v1215_v63 }
 0x2b5   : > { %v12151_v48 = vpop.eup %12150  ;;  %v1219_v49 = vmul.f32 %v12149_v22, %v13220_v52  ;;  %12170 = vpow2.f32 %v9281_v18  ;;  %v16484_v28 = vmov 0  ;;  %v13408_v23 = vmul.f32 -1.442695, %v13314_v59 }
 0x2b6   : > { %v12153_v17 = vpop.eup %12152  ;;  %v16485_v28 = vsel %vm13402_vm5, 4294967295, %v16484_v28  ;;  %v1220_v46 = vmul.f32 %v12151_v48, %v13226_v58  ;;  %12172 = vpow2.f32 %v9288_v56  ;;  %v1311_v52 = vrot.slane %v1309_v30, 7 }
 0x2b7   : > { %16486 = vst [vmem:[#allocation17_spill] sm:$0xff] %v16485_v28  ;;  %v12155_v18 = vpop.eup %12154  ;;  %v1221_v7 = vmul.f32 %v12153_v17, %v13232_v61  ;;  %v13411_v35 = vpack.c.bf16 %v1218_v39, %v1217_v62  ;;  %12174 = vpow2.f32 %v9289_v5  ;;  %v1312_v40 = vshll.u32 %v1244_v57, 16  ;;  %v11816_v61 = vld [vmem:[#allocation7 + $0x1c0] sm:$0xff]  }
 0x2b8   : > { %v12157_v2 = vpop.eup %12156  ;;  %v1222_v10 = vmul.f32 %v12155_v18, %v13237_v8  ;;  %v1247_v43 = vpack.c.bf16 %v1220_v46, %v1219_v49  ;;  %12176 = vpow2.f32 %v9282_v24  ;;  %v1316_v16 = vshrl.u32 %v13398_v33, 16  ;;  %10139 = vmatprep.subr.bf16.mxu1 %v11816_v61 }
 0x2b9   : > { %v12159_v58 = vpop.eup %12158  ;;  %v1223_v56 = vmul.f32 %v12157_v2, %v13242_v6  ;;  %12178 = vpow2.f32 %v9283_v60  ;;  %v1314_v63 = vor.u32 %v1312_v40, %v1311_v52  ;;  %v1423_v47 = vsel %vm13402_vm5, %v1311_v52, 0 }
 0x2ba   : > { %v12161_v14 = vpop.eup %12160  ;;  %v1224_v5 = vmul.f32 %v12159_v58, %v13247_v9  ;;  %v1248_v57 = vpack.c.bf16 %v1222_v10, %v1221_v7  ;;  %v1330_v29 = vshrl.u32 %v1247_v43, 16  ;;  %v1333_v62 = vshll.u32 %v1247_v43, 16 }
 0x2bb   : > { %v12163_v8 = vpop.eup %12162  ;;  %v1225_v24 = vmul.f32 %v12161_v14, %v13251_v19  ;;  %12180 = vpow2.f32 %v9290_v31  ;;  %v13422_v22 = vsel %vm13402_vm5, 0, %v1314_v63  ;;  %v9338_v6 = vcombine.low %v1423_v47, %v1423_v47 }
 0x2bc   : > { %v12165_v60 = vpop.eup %12164  ;;  %v1226_v39 = vmul.f32 %v12163_v8, %v13257_v21  ;;  %v1249_v30 = vpack.c.bf16 %v1224_v5, %v1223_v56  ;;  %v13425_v48 = vrot.slane %v1330_v29, 7  ;;  %v1337_v9 = vshrl.u32 %v1248_v57, 16 }
 0x2bd   : > { %v12167_v49 = vpop.eup %12166  ;;  %v1227_v17 = vmul.f32 %v12165_v60, %v13263_v32  ;;  %v1340_v46 = vshll.u32 %v1248_v57, 16  ;;  %12182 = vpow2.f32 %v9291_v20  ;;  %v9336_v19 = vcombine.low %v13422_v22, %v13422_v22  ;;  %1634 = vst [vmem:[#allocation2 + $0x74] sm:$0x1] %v9338_v6 }
 0x2be   : > { %v12169_v31 = vpop.eup %12168  ;;  %v1228_v52 = vmul.f32 %v12167_v49, %v13269_v45  ;;  %v1250_v18 = vpack.c.bf16 %v1226_v39, %v1225_v24  ;;  %v1335_v7 = vor.u32 %v1333_v62, %v13425_v48  ;;  %v1339_v21 = vrot.slane %v1337_v9, 7 }
 0x2bf   : > { %v12171_v40 = vpop.eup %12170  ;;  %v1344_v2 = vshrl.u32 %v1249_v30, 16  ;;  %v1347_v10 = vshll.u32 %v1249_v30, 16  ;;  %v1101_v43 = vadd.f32 1.0, %v12169_v31  ;;  %12184 = vpow2.f32 %v13388_v50  ;;  %1632 = vst [vmem:[#allocation2 + $0x6c] sm:$0xf] %v9336_v19 }
 0x2c0   : > { %v12173_v32 = vpop.eup %12172  ;;  %v1251_v20 = vpack.c.bf16 %v1228_v52, %v1227_v17  ;;  %v1342_v58 = vor.u32 %v1340_v46, %v1339_v21  ;;  %v1351_v56 = vshrl.u32 %v1250_v18, 16  ;;  %v1354_v63 = vshll.u32 %v1250_v18, 16 }
 0x2c1   : > { %v12175_v47 = vpop.eup %12174  ;;  %v1346_v61 = vrot.slane %v1344_v2, 7  ;;  %v1410_v45 = vsel %vm13402_vm5, 0, %v1335_v7  ;;  %v1427_v14 = vsel %vm13402_vm5, %v1339_v21, 0  ;;  %v1102_v5 = vadd.f32 1.0, %v12171_v40 }
 0x2c2   : > { %v12177_v57 = vpop.eup %12176  ;;  %v1353_v29 = vrot.slane %v1351_v56, 7  ;;  %v1358_v62 = vshrl.u32 %v1251_v20, 16  ;;  %v1361_v8 = vshll.u32 %v1251_v20, 16  ;;  %v1411_v50 = vsel %vm13402_vm5, 0, %v1342_v58 }
 0x2c3   : > { %v12179_v24 = vpop.eup %12178  ;;  %v1349_v6 = vor.u32 %v1347_v10, %v1346_v61  ;;  %v1428_v60 = vsel %vm13402_vm5, %v1346_v61, 0  ;;  %v9345_v39 = vcombine.low %v1410_v45, %v1410_v45  ;;  %v9346_v30 = vcombine.high %v1410_v45, %v1410_v45 }
 0x2c4   : > { %v1356_v9 = vor.u32 %v1354_v63, %v1353_v29  ;;  %v1360_v49 = vrot.slane %v1358_v62, 7  ;;  %v1429_v17 = vsel %vm13402_vm5, %v1353_v29, 0  ;;  %v9348_v46 = vcombine.low %v1411_v50, %v1411_v50 }
 0x2c5   : > { %v12181_v19 = vpop.eup %12180  ;;  %v1412_v31 = vsel %vm13402_vm5, 0, %v1349_v6  ;;  %v9349_v52 = vcombine.high %v1411_v50, %v1411_v50  ;;  %v9350_v18 = vcombine.low %v1427_v14, %v1427_v14  ;;  %v9353_v7 = vcombine.low %v1428_v60, %v1428_v60  ;;  %1641 = vst [vmem:[#allocation2 + $0x90] sm:$0xf] %v9345_v39  ;;  %1642 = vst [vmem:[#allocation2 + $0x94] sm:$0xf] %v9346_v30 }
 0x2c6   : > { %v1363_v21 = vor.u32 %v1361_v8, %v1360_v49  ;;  %v1413_v40 = vsel %vm13402_vm5, 0, %v1356_v9  ;;  %v1430_v2 = vsel %vm13402_vm5, %v1360_v49, 0  ;;  %v9351_v10 = vcombine.low %v1412_v31, %v1412_v31  ;;  %1644 = vst [vmem:[#allocation2 + $0x9c] sm:$0xf] %v9348_v46 }
 0x2c7   : > { %v12183_v20 = vpop.eup %12182  ;;  %v9352_v58 = vcombine.high %v1412_v31, %v1412_v31  ;;  %v9354_v56 = vcombine.low %v1413_v40, %v1413_v40  ;;  %v9355_v63 = vcombine.high %v1413_v40, %v1413_v40  ;;  %v9356_v61 = vcombine.low %v1429_v17, %v1429_v17  ;;  %1645 = vst [vmem:[#allocation2 + $0xa0] sm:$0xf] %v9349_v52 }
 0x2c8   : > { %1649 = vst [vmem:[#allocation2 + $0xb0] sm:$0x1] %v9353_v7  ;;  %1646 = vst [vmem:[#allocation2 + $0xa4] sm:$0x1] %v9350_v18  ;;  %v1414_v45 = vsel %vm13402_vm5, 0, %v1363_v21  ;;  %v9359_v14 = vcombine.low %v1430_v2, %v1430_v2  ;;  %12186 = vrcp.f32 %v1101_v43  ;;  %v1109_v29 = vadd.f32 1.0, %v12173_v32 }
 0x2c9   : > { %1647 = vst [vmem:[#allocation2 + $0xa8] sm:$0xf] %v9351_v10  ;;  %v13451_v62 = vpop.eup %12184  ;;  %v9357_v8 = vcombine.low %v1414_v45, %v1414_v45  ;;  %v9358_v50 = vcombine.high %v1414_v45, %v1414_v45  ;;  %1648 = vst [vmem:[#allocation2 + $0xac] sm:$0xf] %v9352_v58  ;;  %12188 = vrcp.f32 %v1102_v5  ;;  %v1110_v6 = vadd.f32 1.0, %v12175_v47 }
 0x2ca   : > { %1650 = vst [vmem:[#allocation2 + $0xb4] sm:$0xf] %v9354_v56  ;;  %1651 = vst [vmem:[#allocation2 + $0xb8] sm:$0xf] %v9355_v63  ;;  %12190 = vrcp.f32 %v1109_v29  ;;  %v1103_v60 = vadd.f32 1.0, %v12177_v57  ;;  %v1104_v39 = vadd.f32 1.0, %v12179_v24  ;;  %v9337_v9 = vcombine.high %v13422_v22, %v13422_v22 }
 0x2cb   : > { %1652 = vst [vmem:[#allocation2 + $0xbc] sm:$0x1] %v9356_v61  ;;  %1655 = vst [vmem:[#allocation2 + $0xc8] sm:$0x1] %v9359_v14  ;;  %v1111_v30 = vadd.f32 1.0, %v12181_v19  ;;  %12192 = vrcp.f32 %v1110_v6  ;;  %v1112_v43 = vadd.f32 1.0, %v12183_v20 }
 0x2cc   : > { %1653 = vst [vmem:[#allocation2 + $0xc0] sm:$0xf] %v9357_v8  ;;  %1654 = vst [vmem:[#allocation2 + $0xc4] sm:$0xf] %v9358_v50  ;;  %v9286_v32 = vmul.f32 -1.442695, %v13321_v25  ;;  %12194 = vrcp.f32 %v1103_v60 }
 0x2cd   : > { %v1318_v49 = vrot.slane %v1316_v16, 7  ;;  %v1319_v47 = vshll.u32 %v13398_v33, 16  ;;  %v1323_v5 = vshrl.u32 %v13411_v35, 16  ;;  %12196 = vrcp.f32 %v1104_v39  ;;  %1633 = vst [vmem:[#allocation2 + $0x70] sm:$0xf] %v9337_v9 }
 0x2ce   : > { %v1426_v57 = vsel %vm13402_vm5, %v13425_v48, 0  ;;  %v1326_v24 = vshll.u32 %v13411_v35, 16  ;;  %12198 = vrcp.f32 %v1111_v30  ;;  %v9287_v33 = vmul.f32 -1.442695, %v13324_v12 }
 0x2cf   : > { %v1321_v17 = vor.u32 %v1319_v47, %v1318_v49  ;;  %v1424_v22 = vsel %vm13402_vm5, %v1318_v49, 0  ;;  %12200 = vrcp.f32 %v1112_v43  ;;  %v1325_v16 = vrot.slane %v1323_v5, 7 }
 0x2d0   : > { %v9341_v46 = vcombine.low %v1424_v22, %v1424_v22  ;;  %v9347_v19 = vcombine.low %v1426_v57, %v1426_v57  ;;  %12202 = vpow2.f32 %v13392_v55  ;;  %v9294_v7 = vmul.f32 -1.442695, %v13328_v13  ;;  %v13911_v38 = vld [vmem:[#allocation2 + $0xa8] sm:$0xff]  }
 0x2d1   : > { %v1408_v31 = vsel %vm13402_vm5, 0, %v1321_v17  ;;  %v1328_v35 = vor.u32 %v1326_v24, %v1325_v16  ;;  %v9295_v21 = vmul.f32 -1.442695, %v13333_v53  ;;  %v1425_v40 = vsel %vm13402_vm5, %v1325_v16, 0  ;;  %16499 = vst [vmem:[#allocation30_spill] sm:$0xff] %v13911_v38  ;;  %v13929_v37 = vld [vmem:[#allocation2 + $0xb4] sm:$0xff]  }
 0x2d2   : > { %v9339_v52 = vcombine.low %v1408_v31, %v1408_v31  ;;  %v9340_v48 = vcombine.high %v1408_v31, %v1408_v31  ;;  %1637 = vst [vmem:[#allocation2 + $0x80] sm:$0x1] %v9341_v46  ;;  %1643 = vst [vmem:[#allocation2 + $0x98] sm:$0x1] %v9347_v19  ;;  %v12187_v18 = vpop.eup %12186  ;;  %12204 = vpow2.f32 %v13396_v27  ;;  %v9344_v20 = vcombine.low %v1425_v40, %v1425_v40 }
 0x2d3   : > { %v12189_v2 = vpop.eup %12188  ;;  %v1197_v55 = vmul.f32 %v12187_v18, %v13299_v15  ;;  %v1409_v10 = vsel %vm13402_vm5, 0, %v1328_v35  ;;  %12206 = vpow2.f32 %v13408_v23  ;;  %16501 = vst [vmem:[#allocation32_spill] sm:$0xff] %v13929_v37 }
 0x2d4   : > { %1635 = vst [vmem:[#allocation2 + $0x78] sm:$0xf] %v9339_v52  ;;  %1636 = vst [vmem:[#allocation2 + $0x7c] sm:$0xf] %v9340_v48  ;;  %v12191_v58 = vpop.eup %12190  ;;  %v1198_v56 = vmul.f32 %v12189_v2, %v13308_v26  ;;  %v9342_v63 = vcombine.low %v1409_v10, %v1409_v10  ;;  %v9343_v61 = vcombine.high %v1409_v10, %v1409_v10  ;;  %12208 = vpow2.f32 %v9286_v32 }
 0x2d5   : > { %v12193_v45 = vpop.eup %12192  ;;  %v1205_v14 = vmul.f32 %v12191_v58, %v13336_v36  ;;  %1640 = vst [vmem:[#allocation2 + $0x8c] sm:$0x1] %v9344_v20  ;;  %12210 = vpow2.f32 %v9287_v33  ;;  %v1105_v26 = vadd.f32 1.0, %v13451_v62 }
 0x2d6   : > { %v12195_v15 = vpop.eup %12194  ;;  %v1236_v27 = vpack.c.bf16 %v1198_v56, %v1197_v55  ;;  %v1206_v29 = vmul.f32 %v12193_v45, %v13339_v42  ;;  %1638 = vst [vmem:[#allocation2 + $0x84] sm:$0xf] %v9342_v63  ;;  %1639 = vst [vmem:[#allocation2 + $0x88] sm:$0xf] %v9343_v61  ;;  %12212 = vpow2.f32 %v9294_v7 }
 0x2d7   : > { %v12197_v8 = vpop.eup %12196  ;;  %v1199_v50 = vmul.f32 %v12195_v15, %v13355_v44  ;;  %12214 = vpow2.f32 %v9295_v21 }
 0x2d8   : > { %v12199_v23 = vpop.eup %12198  ;;  %v1253_v6 = vshrl.u32 %v1236_v27, 16  ;;  %v1240_v60 = vpack.c.bf16 %v1206_v29, %v1205_v14  ;;  %v1200_v36 = vmul.f32 %v12197_v8, %v13363_v34  ;;  %v1256_v32 = vshll.u32 %v1236_v27, 16 }
 0x2d9   : > { %v12201_v39 = vpop.eup %12200  ;;  %v1207_v30 = vmul.f32 %v12199_v23, %v13366_v3  ;;  %12216 = vrcp.f32 %v1105_v26 }
 0x2da   : > { %v12203_v43 = vpop.eup %12202  ;;  %v1255_v42 = vrot.slane %v1253_v6, 7  ;;  %v1281_v9 = vshrl.u32 %v1240_v60, 16  ;;  %v1237_v49 = vpack.c.bf16 %v1200_v36, %v1199_v50  ;;  %v1284_v47 = vshll.u32 %v1240_v60, 16 }
 0x2db   : > { %v1208_v44 = vmul.f32 %v12201_v39, %v13369_v4  ;;  %v1106_v5 = vadd.f32 1.0, %v12203_v43 }
 0x2dc   : > { %v1258_v62 = vor.u32 %v1256_v32, %v1255_v42  ;;  %v1415_v57 = vsel %vm13402_vm5, %v1255_v42, 0  ;;  %v1283_v24 = vrot.slane %v1281_v9, 7  ;;  %v1260_v34 = vshrl.u32 %v1237_v49, 16  ;;  %v12205_v17 = vpop.eup %12204 }
 0x2dd   : > { %v9314_v22 = vcombine.low %v1415_v57, %v1415_v57  ;;  %v1263_v46 = vshll.u32 %v1237_v49, 16  ;;  %v1241_v3 = vpack.c.bf16 %v1208_v44, %v1207_v30  ;;  %12218 = vrcp.f32 %v1106_v5  ;;  %v12207_v16 = vpop.eup %12206 }
 0x2de   : > { %v1399_v19 = vsel %vm13402_vm5, 0, %v1258_v62  ;;  %v1286_v33 = vor.u32 %v1284_v47, %v1283_v24  ;;  %v1419_v4 = vsel %vm13402_vm5, %v1283_v24, 0  ;;  %v1262_v31 = vrot.slane %v1260_v34, 7  ;;  %v12209_v52 = vpop.eup %12208 }
 0x2df   : > { %v9312_v48 = vcombine.low %v1399_v19, %v1399_v19  ;;  %v9313_v35 = vcombine.high %v1399_v19, %v1399_v19  ;;  %1610 = vst [vmem:[#allocation2 + $0x14] sm:$0x1] %v9314_v22  ;;  %v9326_v18 = vcombine.low %v1419_v4, %v1419_v4  ;;  %v1288_v7 = vshrl.u32 %v1241_v3, 16  ;;  %v12211_v21 = vpop.eup %12210 }
 0x2e0   : > { %v1403_v40 = vsel %vm13402_vm5, 0, %v1286_v33  ;;  %v1265_v2 = vor.u32 %v1263_v46, %v1262_v31  ;;  %v1416_v55 = vsel %vm13402_vm5, %v1262_v31, 0  ;;  %v1291_v10 = vshll.u32 %v1241_v3, 16  ;;  %v12213_v20 = vpop.eup %12212 }
 0x2e1   : > { %1608 = vst [vmem:[#allocation2 + $0xc] sm:$0xf] %v9312_v48  ;;  %1609 = vst [vmem:[#allocation2 + $0x10] sm:$0xf] %v9313_v35  ;;  %v9324_v58 = vcombine.low %v1403_v40, %v1403_v40  ;;  %v9325_v56 = vcombine.high %v1403_v40, %v1403_v40  ;;  %v9317_v63 = vcombine.low %v1416_v55, %v1416_v55  ;;  %v1290_v61 = vrot.slane %v1288_v7, 7  ;;  %v12215_v45 = vpop.eup %12214 }
 0x2e2   : > { %1622 = vst [vmem:[#allocation2 + $0x44] sm:$0x1] %v9326_v18  ;;  %v1400_v14 = vsel %vm13402_vm5, 0, %v1265_v2  ;;  %v1113_v15 = vadd.f32 1.0, %v12205_v17  ;;  %v1114_v27 = vadd.f32 1.0, %v12207_v16  ;;  %v1107_v6 = vadd.f32 1.0, %v12209_v52 }
 0x2e3   : > { %1620 = vst [vmem:[#allocation2 + $0x3c] sm:$0xf] %v9324_v58  ;;  %1621 = vst [vmem:[#allocation2 + $0x40] sm:$0xf] %v9325_v56  ;;  %v9315_v29 = vcombine.low %v1400_v14, %v1400_v14  ;;  %v9316_v8 = vcombine.high %v1400_v14, %v1400_v14  ;;  %v1293_v50 = vor.u32 %v1291_v10, %v1290_v61  ;;  %v1420_v26 = vsel %vm13402_vm5, %v1290_v61, 0  ;;  %v12217_v36 = vpop.eup %12216  ;;  %v11819_v61 = vld [vmem:[#allocation7 + $0x180] sm:$0xff]  }
 0x2e4   : > { %1613 = vst [vmem:[#allocation2 + $0x20] sm:$0x1] %v9317_v63  ;;  %v9329_v23 = vcombine.low %v1420_v26, %v1420_v26  ;;  %12220 = vrcp.f32 %v1113_v15  ;;  %v1108_v60 = vadd.f32 1.0, %v12211_v21  ;;  %v1115_v30 = vadd.f32 1.0, %v12213_v20 }
 0x2e5   : > { %1611 = vst [vmem:[#allocation2 + $0x18] sm:$0xf] %v9315_v29  ;;  %1612 = vst [vmem:[#allocation2 + $0x1c] sm:$0xf] %v9316_v8  ;;  %v1404_v39 = vsel %vm13402_vm5, 0, %v1293_v50  ;;  %12222 = vrcp.f32 %v1114_v27  ;;  %v1116_v43 = vadd.f32 1.0, %v12215_v45  ;;  %v1201_v5 = vmul.f32 %v12217_v36, %v13372_v51 }
 0x2e6   : > { %v13503_v42 = vld [vmem:[#allocation2 + $0x14] ss:$0 sps:$4 sm:$0x11]   ;;  %v9327_v32 = vcombine.low %v1404_v39, %v1404_v39  ;;  %v9328_v9 = vcombine.high %v1404_v39, %v1404_v39  ;;  %1625 = vst [vmem:[#allocation2 + $0x50] sm:$0x1] %v9329_v23  ;;  %12224 = vrcp.f32 %v1107_v6 }
 0x2e7   : > { %v12219_v49 = vpop.eup %12218  ;;  %12226 = vrcp.f32 %v1108_v60  ;;  %v1870_v44 = vshll.u32 %v13503_v42, 16 }
 0x2e8   : > { %v13505_v47 = vld [vmem:[#allocation2 + $0xc] sm:$0xff]   ;;  %1623 = vst [vmem:[#allocation2 + $0x48] sm:$0xf] %v9327_v32  ;;  %1624 = vst [vmem:[#allocation2 + $0x4c] sm:$0xf] %v9328_v9  ;;  %v1202_v62 = vmul.f32 %v12219_v49, %v13377_v11  ;;  %12228 = vrcp.f32 %v1115_v30 }
 0x2e9   : > { %v13510_v57 = vld [vmem:[#allocation2 + $0x44] ss:$0 sps:$4 sm:$0x11]   ;;  %12230 = vrcp.f32 %v1116_v43  ;;  %v1863_v24 = vshrl.u32 %v13505_v47, 16  ;;  %v1865_v34 = vshll.u32 %v13505_v47, 16  ;;  %v1872_v22 = vrot.slane %v1870_v44, 1 }
 0x2ea   : > { %v13514_v17 = vld [vmem:[#allocation2 + $0x3c] sm:$0xff]   ;;  %v1918_v46 = vshll.u32 %v13510_v57, 16  ;;  %v1238_v11 = vpack.c.bf16 %v1202_v62, %v1201_v5 }
 0x2eb   : > { %v1867_v3 = vrot.slane %v1865_v34, 1  ;;  %v1911_v16 = vshrl.u32 %v13514_v17, 16  ;;  %v1913_v51 = vshll.u32 %v13514_v17, 16  ;;  %v13521_v4 = vld [vmem:[#allocation2 + $0x20] ss:$0 sps:$4 sm:$0x11]  }
 0x2ec   : > { %v13519_v19 = vld [vmem:[#allocation2 + $0x18] sm:$0xff]   ;;  %v1920_v33 = vrot.slane %v1918_v46, 1  ;;  %v1882_v21 = vshll.u32 %v13521_v4, 16  ;;  %v1267_v63 = vshrl.u32 %v1238_v11, 16  ;;  %v1270_v29 = vshll.u32 %v1238_v11, 16  ;;  %v11824_v11 = vld [vmem:[#allocation7 + $0x1d0] sm:$0xff]  }
 0x2ed   : > { %v1868_v52 = vor.u32 %v1867_v3, %v1863_v24  ;;  %v1915_v48 = vrot.slane %v1913_v51, 1  ;;  %v1875_v35 = vshrl.u32 %v13519_v19, 16  ;;  %v1877_v18 = vshll.u32 %v13519_v19, 16  ;;  %v13530_v56 = vld [vmem:[#allocation2 + $0x50] ss:$0 sps:$4 sm:$0x11]  }
 0x2ee   : > { %v12221_v31 = vpop.eup %12220  ;;  %v1884_v14 = vrot.slane %v1882_v21, 1  ;;  %v1930_v26 = vshll.u32 %v13530_v56, 16  ;;  %v1269_v23 = vrot.slane %v1267_v63, 7  ;;  %v11820_v43 = vld [vmem:[#allocation7 + $0x1c8] sm:$0xff]  }
 0x2ef   : > { %v12223_v7 = vpop.eup %12222  ;;  %v13526_v40 = vld [vmem:[#allocation2 + $0x48] sm:$0xff]   ;;  %v1209_v2 = vmul.f32 %v12221_v31, %v13311_v54  ;;  %v1873_v10 = vsel %vm1849_vm3, %v1868_v52, %v1872_v22  ;;  %v1916_v20 = vor.u32 %v1915_v48, %v1911_v16  ;;  %v1879_v58 = vrot.slane %v1877_v18, 1  ;;  %v11821_v22 = vld [vmem:[#allocation7 + $0x188] sm:$0xff]   ;;  %v11827_v18 = vld [vmem:[#allocation7 + $0x190] sm:$0xff]  }
 0x2f0   : > { %v12225_v55 = vpop.eup %12224  ;;  %2355 = vmatprep.mubr.bf16.mxu0 %v1873_v10  ;;  %v1923_v15 = vshrl.u32 %v13526_v40, 16  ;;  %v1925_v27 = vshll.u32 %v13526_v40, 16  ;;  %v1210_v36 = vmul.f32 %v12223_v7, %v13314_v59  ;;  %v1932_v9 = vrot.slane %v1930_v26, 1  ;;  %v11828_v7 = vld [vmem:[#allocation7 + $0x1d8] sm:$0xff]  }
 0x2f1   : > { %v12227_v45 = vpop.eup %12226  ;;  %v1921_v54 = vsel %vm1849_vm3, %v1916_v20, %v1920_v33  ;;  %2356 = vmatmul.mubr.bf16.gmra.mrb[8].mxu0 %v13505_v47  ;;  %v1880_v50 = vor.u32 %v1879_v58, %v1875_v35  ;;  %v1203_v39 = vmul.f32 %v12225_v55, %v13321_v25  ;;  %v1272_v49 = vor.u32 %v1270_v29, %v1269_v23 }
 0x2f2   : > { %v12229_v8 = vpop.eup %12228  ;;  %2387 = vmatprep.mubr.bf16.mxu1 %v1921_v54  ;;  %v1927_v60 = vrot.slane %v1925_v27, 1  ;;  %v1204_v30 = vmul.f32 %v12227_v45, %v13324_v12  ;;  %v1417_v44 = vsel %vm13402_vm5, %v1269_v23, 0  ;;  %v1242_v24 = vpack.c.bf16 %v1210_v36, %v1209_v2 }
 0x2f3   : > { %v12231_v6 = vpop.eup %12230  ;;  %2388 = vmatmul.mubr.bf16.vlgmr.msra.gmra.mrb[4].mxu1 %v13514_v17  ;;  %v1885_v32 = vsel %vm1849_vm3, %v1880_v50, %v1884_v14  ;;  %v9320_v62 = vcombine.low %v1417_v44, %v1417_v44  ;;  %v1401_v59 = vsel %vm13402_vm5, 0, %v1272_v49  ;;  %v1211_v25 = vmul.f32 %v12229_v8, %v13328_v13  ;;  %v11829_v14 = vld [vmem:[#allocation7 + $0x198] sm:$0xff]   ;;  %v11836_v44 = vld [vmem:[#allocation7 + $0x1e8] sm:$0xff]  }
 0x2f4   : > { %2363 = vmatprep.mubr.bf16.mxu0 %v1885_v32  ;;  %v1928_v5 = vor.u32 %v1927_v60, %v1923_v15  ;;  %v1239_v34 = vpack.c.bf16 %v1204_v30, %v1203_v39  ;;  %v1212_v12 = vmul.f32 %v12231_v6, %v13333_v53  ;;  %10140 = vmatpush3.bf16.msra.mxu1 %v11819_v61  ;;  %v1295_v51 = vshrl.u32 %v1242_v24, 16  ;;  %v11832_v6 = vld [vmem:[#allocation7 + $0x1e0] sm:$0xff]  }
 0x2f5   : > { %v9318_v3 = vcombine.low %v1401_v59, %v1401_v59  ;;  %v9319_v16 = vcombine.high %v1401_v59, %v1401_v59  ;;  %1616 = vst [vmem:[#allocation2 + $0x2c] sm:$0x1] %v9320_v62  ;;  %10141 = vmatprep.subr.bf16.mxu1 %v11820_v43  ;;  %v1298_v48 = vshll.u32 %v1242_v24, 16  ;;  %v11837_v24 = vld [vmem:[#allocation7 + $0x1a8] sm:$0xff]   ;;  %v11840_v59 = vld [vmem:[#allocation7 + $0x1f0] sm:$0xff]  }
 0x2f6   : > { %v1933_v46 = vsel %vm1849_vm3, %v1928_v5, %v1932_v9  ;;  %v1274_v33 = vshrl.u32 %v1239_v34, 16  ;;  %v1243_v31 = vpack.c.bf16 %v1212_v12, %v1211_v25  ;;  %v1297_v52 = vrot.slane %v1295_v51, 7  ;;  %v11835_v9 = vld [vmem:[#allocation7 + $0x1a0] sm:$0xff]  }
 0x2f7   : > { %2395 = vmatprep.mubr.bf16.mxu1 %v1933_v46  ;;  %1614 = vst [vmem:[#allocation2 + $0x24] sm:$0xf] %v9318_v3  ;;  %1615 = vst [vmem:[#allocation2 + $0x28] sm:$0xf] %v9319_v16  ;;  %v1277_v53 = vshll.u32 %v1239_v34, 16 }
 0x2f8   : > { %v1276_v13 = vrot.slane %v1274_v33, 7  ;;  %v1302_v35 = vshrl.u32 %v1243_v31, 16  ;;  %10142 = vmatpush3.bf16.msra.mxu1 %v11821_v22  ;;  %v1300_v21 = vor.u32 %v1298_v48, %v1297_v52  ;;  %v1421_v2 = vsel %vm13402_vm5, %v1297_v52, 0  ;;  %v13581_v33 = vld [vmem:[#allocation2 + $0x6c] sm:$0xff]  }
 0x2f9   : > { %2364 = vmatmul.mubr.bf16.gmra.mrb[12].mxu0 %v13519_v19  ;;  %v1305_v55 = vshll.u32 %v1243_v31, 16  ;;  %10143 = vmatprep.subr.bf16.mxu1 %v11824_v11  ;;  %v9332_v10 = vcombine.low %v1421_v2, %v1421_v2 }
 0x2fa   : > { %v1279_v20 = vor.u32 %v1277_v53, %v1276_v13  ;;  %v1418_v58 = vsel %vm13402_vm5, %v1276_v13, 0  ;;  %v1304_v63 = vrot.slane %v1302_v35, 7  ;;  %v1405_v61 = vsel %vm13402_vm5, 0, %v1300_v21  ;;  %v11841_v13 = vld [vmem:[#allocation7 + $0x1b0] sm:$0xff]   ;;  %v11844_v21 = vld [vmem:[#allocation7 + $0x1f8] sm:$0xff]  }
 0x2fb   : > { %2396 = vmatmul.mubr.bf16.gmra.mrb[8].mxu1 %v13526_v40  ;;  %v9323_v45 = vcombine.low %v1418_v58, %v1418_v58  ;;  %v9330_v27 = vcombine.low %v1405_v61, %v1405_v61  ;;  %v9331_v29 = vcombine.high %v1405_v61, %v1405_v61  ;;  %1628 = vst [vmem:[#allocation2 + $0x5c] sm:$0x1] %v9332_v10 }
 0x2fc   : > { %v13557_v15 = vld [vmem:[#allocation2 + $0x2c] ss:$0 sps:$4 sm:$0x11]   ;;  %v1402_v8 = vsel %vm13402_vm5, 0, %v1279_v20  ;;  %v1307_v54 = vor.u32 %v1305_v55, %v1304_v63  ;;  %10144 = vmatpush3.bf16.msra.mxu1 %v11827_v18  ;;  %v1422_v23 = vsel %vm13402_vm5, %v1304_v63, 0  ;;  %v12362_v18 = vld [vmem:[#allocation2] sm:$0xff]  }
 0x2fd   : > { %v9321_v50 = vcombine.low %v1402_v8, %v1402_v8  ;;  %v9322_v26 = vcombine.high %v1402_v8, %v1402_v8  ;;  %1619 = vst [vmem:[#allocation2 + $0x38] sm:$0x1] %v9323_v45  ;;  %10145 = vmatprep.subr.bf16.mxu1 %v11828_v7  ;;  %1626 = vst [vmem:[#allocation2 + $0x54] sm:$0xf] %v9330_v27  ;;  %v9335_v36 = vcombine.low %v1422_v23, %v1422_v23 }
 0x2fe   : > { %v13563_v60 = vld [vmem:[#allocation2 + $0x24] sm:$0xff]   ;;  %1627 = vst [vmem:[#allocation2 + $0x58] sm:$0xf] %v9331_v29  ;;  %v1406_v39 = vsel %vm13402_vm5, 0, %v1307_v54  ;;  %v1894_v43 = vshll.u32 %v13557_v15, 16  ;;  %v2059_v7 = vrot.slane %v12362_v18, 1 }
 0x2ff   : > { %1617 = vst [vmem:[#allocation2 + $0x30] sm:$0xf] %v9321_v50  ;;  %1618 = vst [vmem:[#allocation2 + $0x34] sm:$0xf] %v9322_v26  ;;  %v1889_v30 = vshll.u32 %v13563_v60, 16  ;;  %v9333_v32 = vcombine.low %v1406_v39, %v1406_v39  ;;  %v9334_v49 = vcombine.high %v1406_v39, %v1406_v39  ;;  %v1887_v5 = vshrl.u32 %v13563_v60, 16 }
 0x300   : > { %1631 = vst [vmem:[#allocation2 + $0x68] sm:$0x1] %v9335_v36  ;;  %10146 = vmatpush3.bf16.msra.mxu1 %v11829_v14  ;;  %v1896_v12 = vrot.slane %v1894_v43, 1  ;;  %v12363_v20 = vld [vmem:[#allocation2 + $0x8] ss:$0 sps:$4 sm:$0x11]  }
 0x301   : > { %10147 = vmatprep.subr.bf16.mxu1 %v11832_v6  ;;  %v1891_v62 = vrot.slane %v1889_v30, 1  ;;  %1629 = vst [vmem:[#allocation2 + $0x60] sm:$0xf] %v9333_v32  ;;  %1630 = vst [vmem:[#allocation2 + $0x64] sm:$0xf] %v9334_v49  ;;  %v2060_v58 = vrot.slane %v12363_v20, 1 }
 0x302   : > { %v13570_v34 = vld [vmem:[#allocation2 + $0x5c] ss:$0 sps:$4 sm:$0x11]   ;;  %v1961_v45 = vshll.u32 %v13581_v33, 16  ;;  %v11845_v54 = vld [vmem:[#allocation7 + $0x1b8] sm:$0xff]   ;;  %v1959_v49 = vshrl.u32 %v13581_v33, 16 }
 0x303   : > { %v1892_v25 = vor.u32 %v1891_v62, %v1887_v5  ;;  %v1942_v11 = vshll.u32 %v13570_v34, 16  ;;  %v13596_v26 = vld [vmem:[#allocation2 + $0x74] ss:$0 sps:$4 sm:$0x11]   ;;  %v2061_v39 = vsel %vm2058_vm6, %v2059_v7, %v2060_v58  ;;  %v13602_v43 = vld [vmem:[#allocation2 + $0x78] sm:$0xff]   ;;  %v11810_v7 = vld [vmem:[#allocation7 + $0x110] sm:$0xff]  }
 0x304   : > { %v13572_v22 = vld [vmem:[#allocation2 + $0x38] ss:$0 sps:$4 sm:$0x11]   ;;  %10148 = vmatpush3.bf16.msra.mxu1 %v11835_v9  ;;  %v1963_v30 = vrot.slane %v1961_v45, 1  ;;  %v11811_v45 = vld [vmem:[#allocation7 + $0xd0] sm:$0xff]  }
 0x305   : > { %v13574_v46 = vld [vmem:[#allocation2 + $0x54] sm:$0xff]   ;;  %10149 = vmatprep.subr.bf16.mxu1 %v11836_v44  ;;  %v1897_v3 = vsel %vm1849_vm3, %v1892_v25, %v1896_v12  ;;  %v1906_v52 = vshll.u32 %v13572_v22, 16  ;;  %v1944_v61 = vrot.slane %v1942_v11, 1  ;;  %v1966_v44 = vshll.u32 %v13596_v26, 16 }
 0x306   : > { %v13577_v16 = vld [vmem:[#allocation2 + $0x30] sm:$0xff]   ;;  %2371 = vmatprep.mubr.bf16.mxu0 %v1897_v3  ;;  %v1937_v51 = vshll.u32 %v13574_v46, 16  ;;  %v1935_v53 = vshrl.u32 %v13574_v46, 16  ;;  %v1964_v62 = vor.u32 %v1963_v30, %v1959_v49  ;;  %v2065_v25 = vrot.slane %v13519_v19, 1 }
 0x307   : > { %2372 = vmatmul.mubr.bf16.gmra.mrb[16].mxu0 %v13563_v60  ;;  %v1901_v31 = vshll.u32 %v13577_v16, 16  ;;  %v13586_v48 = vld [vmem:[#allocation2 + $0x68] ss:$0 sps:$4 sm:$0x11]   ;;  %v1899_v2 = vshrl.u32 %v13577_v16, 16  ;;  %v1908_v27 = vrot.slane %v1906_v52, 1 }
 0x308   : > { %10150 = vmatpush3.bf16.msra.mxu1 %v11837_v24  ;;  %v1939_v35 = vrot.slane %v1937_v51, 1  ;;  %v13590_v10 = vld [vmem:[#allocation2 + $0x60] sm:$0xff]   ;;  %v1954_v8 = vshll.u32 %v13586_v48, 16  ;;  %v2062_v24 = vrot.slane %v13505_v47, 1  ;;  %v1968_v12 = vrot.slane %v1966_v44, 1  ;;  %v11803_v51 = vld [vmem:[#allocation7 + $0xc0] sm:$0xff]  }
 0x309   : > { %10151 = vmatprep.subr.bf16.mxu1 %v11840_v59  ;;  %v1903_v55 = vrot.slane %v1901_v31, 1  ;;  %v1949_v29 = vshll.u32 %v13590_v10, 16  ;;  %v1947_v6 = vshrl.u32 %v13590_v10, 16  ;;  %v1973_v59 = vshll.u32 %v13602_v43, 16  ;;  %v11806_v52 = vld [vmem:[#allocation7 + $0x108] sm:$0xff]   ;;  %v11823_v44 = vld [vmem:[#allocation7 + $0xe0] sm:$0xff]  }
 0x30a   : > { %v1940_v63 = vor.u32 %v1939_v35, %v1935_v53  ;;  %v1956_v9 = vrot.slane %v1954_v8, 1  ;;  %v2063_v3 = vrot.slane %v13503_v42, 1  ;;  %v13613_v11 = vld [vmem:[#allocation2 + $0x80] ss:$0 sps:$4 sm:$0x11]   ;;  %v2066_v31 = vrot.slane %v13521_v4, 1 }
 0x30b   : > { %v1904_v14 = vor.u32 %v1903_v55, %v1899_v2  ;;  %v1951_v36 = vrot.slane %v1949_v29, 1  ;;  %v1975_v47 = vrot.slane %v1973_v59, 1  ;;  %v13619_v35 = vld [vmem:[#allocation2 + $0x84] sm:$0xff]   ;;  %v1971_v42 = vshrl.u32 %v13602_v43, 16  ;;  %v11807_v4 = vld [vmem:[#allocation7 + $0xc8] sm:$0xff]  }
 0x30c   : > { %10152 = vmatpush3.bf16.msra.mxu1 %v11841_v13  ;;  %v1945_v50 = vsel %vm1849_vm3, %v1940_v63, %v1944_v61  ;;  %v1969_v13 = vsel %vm1849_vm3, %v1964_v62, %v1968_v12  ;;  %v2064_v53 = vsel %vm2058_vm6, %v2062_v24, %v2063_v3  ;;  %v2067_v19 = vsel %vm2058_vm6, %v2065_v25, %v2066_v31  ;;  %v13626_v20 = vld [vmem:[#allocation2 + $0x8c] ss:$0 sps:$4 sm:$0x11]   ;;  %v11830_v62 = vld [vmem:[#allocation7 + $0x128] sm:$0xff]   ;;  %v11838_v3 = vld [vmem:[#allocation7 + $0x130] sm:$0xff]  }
 0x30d   : > { %10153 = vmatprep.subr.bf16.mxu1 %v11844_v21  ;;  %2403 = vmatprep.mubr.bf16.mxu1 %v1945_v50  ;;  %v1909_v23 = vsel %vm1849_vm3, %v1904_v14, %v1908_v27  ;;  %v1952_v32 = vor.u32 %v1951_v36, %v1947_v6  ;;  %v1978_v18 = vshll.u32 %v13613_v11, 16  ;;  %v1976_v21 = vor.u32 %v1975_v47, %v1971_v42  ;;  %v11814_v27 = vld [vmem:[#allocation7 + $0x118] sm:$0xff]   ;;  %v13649_v25 = vld [vmem:[#allocation2 + $0x9c] sm:$0xff]  }
 0x30e   : > { %2404 = vmatmul.mubr.bf16.gmra.mrb[12].mxu1 %v13574_v46  ;;  %2379 = vmatprep.mubr.bf16.mxu0 %v1909_v23  ;;  %v2068_v2 = vrot.slane %v13563_v60, 1  ;;  %v1985_v55 = vshll.u32 %v13619_v35, 16  ;;  %v2071_v58 = vrot.slane %v13577_v16, 1  ;;  %v2069_v61 = vrot.slane %v13557_v15, 1  ;;  %v11822_v23 = vld [vmem:[#allocation7 + $0x120] sm:$0xff]   ;;  %v11839_v42 = vld [vmem:[#allocation7 + $0xf0] sm:$0xff]  }
 0x30f   : > { %2380 = vmatmul.mubr.bf16.gmra.mrb[20].mxu0 %v13577_v16  ;;  %v1957_v5 = vsel %vm1849_vm3, %v1952_v32, %v1956_v9  ;;  %v1980_v63 = vrot.slane %v1978_v18, 1  ;;  %v2072_v14 = vrot.slane %v13572_v22, 1  ;;  %v1983_v15 = vshrl.u32 %v13619_v35, 16  ;;  %v11815_v22 = vld [vmem:[#allocation7 + $0xd8] sm:$0xff]  }
 0x310   : > { %10154 = vmatpush3.bf16.msra.mxu1 %v11845_v54  ;;  %10791 = vmatprep.mubr.bf16.mxu0 %v2061_v39  ;;  %v2070_v60 = vsel %vm2058_vm6, %v2068_v2, %v2069_v61  ;;  %v1987_v8 = vrot.slane %v1985_v55, 1  ;;  %v13634_v54 = vld [vmem:[#allocation2 + $0x90] sm:$0xff]   ;;  %v1990_v50 = vshll.u32 %v13626_v20, 16  ;;  %v2074_v36 = vrot.slane %v13514_v17, 1  ;;  %v13664_v2 = vld [vmem:[#allocation2 + $0xa8] sm:$0xff]  }
 0x311   : > { %11187 = vmatprep.subr.bf16.mxu1 %v16434_v0  ;;  %2411 = vmatprep.mubr.bf16.mxu1 %v1957_v5  ;;  %v1981_v29 = vsel %vm1849_vm3, %v1976_v21, %v1980_v63  ;;  %v2073_v16 = vsel %vm2058_vm6, %v2071_v58, %v2072_v14  ;;  %v13640_v39 = vld [vmem:[#allocation2 + $0x98] ss:$0 sps:$4 sm:$0x11]   ;;  %v1997_v30 = vshll.u32 %v13634_v54, 16  ;;  %v2077_v32 = vrot.slane %v13526_v40, 1  ;;  %v13669_v58 = vld [vmem:[#allocation7 + $0x140] sm:$0xff]  }
 0x312   : > { %v1988_v6 = vor.u32 %v1987_v8, %v1983_v15  ;;  %v1992_v9 = vrot.slane %v1990_v50, 1  ;;  %v2075_v49 = vrot.slane %v13510_v57, 1  ;;  %v2078_v5 = vrot.slane %v13530_v56, 1  ;;  %v11831_v56 = vld [vmem:[#allocation7 + $0xe8] sm:$0xff]  }
 0x313   : > { %v1999_v59 = vrot.slane %v1997_v30, 1  ;;  %v1995_v57 = vshrl.u32 %v13634_v54, 16  ;;  %v2002_v12 = vshll.u32 %v13640_v39, 16  ;;  %v2080_v31 = vrot.slane %v13574_v46, 1  ;;  %v13680_v50 = vld [vmem:[#allocation2 + $0xb4] sm:$0xff]  }
 0x314   : > { %v1993_v24 = vsel %vm1849_vm3, %v1988_v6, %v1992_v9  ;;  %v2076_v17 = vsel %vm2058_vm6, %v2074_v36, %v2075_v49  ;;  %v2079_v40 = vsel %vm2058_vm6, %v2077_v32, %v2078_v5  ;;  %v2081_v47 = vrot.slane %v13570_v34, 1  ;;  %v11834_v9 = vld [vmem:[#allocation2 + $0xbc] ss:$0 sps:$4 sm:$0x11]  }
 0x315   : > { %v2084_v18 = vrot.slane %v13586_v48, 1  ;;  %v11847_v48 = vld [vmem:[#allocation7 + $0xf8] sm:$0xff]   ;;  %v2086_v61 = vrot.slane %v13581_v33, 1  ;;  %v2087_v14 = vrot.slane %v13596_v26, 1  ;;  %v2090_v8 = vrot.slane %v13613_v11, 1 }
 0x316   : > { %2412 = vmatmul.mubr.bf16.gmra.mrb[16].mxu1 %v13590_v10  ;;  %v2082_v46 = vsel %vm2058_vm6, %v2080_v31, %v2081_v47  ;;  %v2033_v6 = vshll.u32 %v13680_v50, 16  ;;  %v2095_v36 = vrot.slane %v13634_v54, 1  ;;  %v2093_v32 = vrot.slane %v13626_v20, 1 }
 0x317   : > { %2419 = vmatprep.mubr.bf16.mxu1 %v1969_v13  ;;  %10792 = vmatmul.mubr.bf16.vlgmr.msra.gmra.mrb[24].mxu0 %v2064_v53  ;;  %v2083_v13 = vrot.slane %v13590_v10, 1  ;;  %v2004_v53 = vrot.slane %v2002_v12, 1  ;;  %v2007_v10 = vshrl.u32 %v13649_v25, 16  ;;  %v2088_v15 = vsel %vm2058_vm6, %v2086_v61, %v2087_v14  ;;  %v11851_v61 = vld [vmem:[#allocation2 + $0x2c] ss:$0 sps:$4 sm:$0x11]  }
 0x318   : > { %10004 = vmatpush3.bf16.msra.mxu0 %v11803_v51  ;;  %10795 = vmatprep.mubr.bf16.mxu0 %v2067_v19  ;;  %v2000_v51 = vor.u32 %v1999_v59, %v1995_v57  ;;  %v13658_v19 = vld [vmem:[#allocation2 + $0xa4] ss:$0 sps:$4 sm:$0x11]   ;;  %v2096_v49 = vrot.slane %v13640_v39, 1  ;;  %v2031_v20 = vshrl.u32 %v13680_v50, 16  ;;  %v9883_v39 = vpop.f32.mrb[4].mxu0 }
 0x319   : > { %10005 = vmatprep.subr.bf16.mxu0 %v11806_v52  ;;  %v2009_v52 = vshll.u32 %v13649_v25, 16  ;;  %v2085_v34 = vsel %vm2058_vm6, %v2083_v13, %v2084_v18  ;;  %v2014_v55 = vshll.u32 %v13658_v19, 16  ;;  %v11843_v57 = vld [vmem:[#allocation2 + $0x20] ss:$0 sps:$4 sm:$0x11]   ;;  %v9884_v18 = vpop.f32.mrb[5].mxu0 }
 0x31b   : > { %v2011_v21 = vrot.slane %v2009_v52, 1  ;;  %v2099_v52 = vrot.slane %v13658_v19, 1 }
 0x31c   : > { %10006 = vmatpush3.bf16.msra.mxu0 %v11807_v4  ;;  %v11846_v4 = vld [vmem:[#allocation7 + $0x138] sm:$0xff]  }
 0x31d   : > { %10007 = vmatprep.subr.bf16.mxu0 %v11810_v7  ;;  %v2005_v7 = vsel %vm1849_vm3, %v2000_v51, %v2004_v53  ;;  %v2012_v63 = vor.u32 %v2011_v21, %v2007_v10  ;;  %v13711_v21 = vadd.f32 %v9884_v18, %v9883_v39  ;;  %v11870_v18 = vld [vmem:[#allocation7 + $0x150] sm:$0xff]  }
 0x31e   : > { %2420 = vmatmul.mubr.bf16.gmra.mrb[20].mxu1 %v13581_v33 }
 0x31f   : > { %2427 = vmatprep.mubr.bf16.mxu1 %v1981_v29  ;;  %10796 = vmatmul.mubr.bf16.gmra.mrb[28].mxu0 %v2070_v60  ;;  %v2016_v29 = vrot.slane %v2014_v55, 1  ;;  %v11826_v60 = vld [vmem:[#allocation2 + $0xb0] ss:$0 sps:$4 sm:$0x11]   ;;  %16487 = vst [vmem:[#allocation18_spill] sm:$0xff] %v13711_v21  ;;  %v9886_v55 = vpop.f32.mrb[6].mxu0 }
 0x320   : > { %10799 = vmatprep.mubr.bf16.mxu0 %v2073_v16  ;;  %10008 = vmatpush3.bf16.msra.mxu0 %v11811_v45  ;;  %v2021_v45 = vshll.u32 %v13664_v2, 16  ;;  %v2102_v13 = vrot.slane %v11826_v60, 1  ;;  %v9887_v14 = vpop.f32.mrb[7].mxu0 }
 0x321   : > { %10009 = vmatprep.subr.bf16.mxu0 %v11814_v27  ;;  %v2089_v27 = vrot.slane %v13602_v43, 1  ;;  %v2017_v16 = vsel %vm1849_vm3, %v2012_v63, %v2016_v29  ;;  %v2104_v63 = vrot.slane %v13680_v50, 1 }
 0x322   : > { %v2023_v33 = vrot.slane %v2021_v45, 1 }
 0x323   : > { %v2091_v26 = vsel %vm2058_vm6, %v2089_v27, %v2090_v8 }
 0x324   : > { %10010 = vmatpush3.bf16.msra.mxu0 %v11815_v22  ;;  %v2026_v22 = vshll.u32 %v11826_v60, 16  ;;  %v13718_v60 = vadd.f32 %v9887_v14, %v9886_v55  ;;  %v11879_v55 = vld [vmem:[#allocation7 + $0x158] sm:$0xff]  }
 0x325   : > { %10011 = vmatprep.subr.bf16.mxu0 %v11822_v23  ;;  %v2092_v23 = vrot.slane %v13619_v35, 1 }
 0x326   : > { %2428 = vmatmul.mubr.bf16.gmra.mrb[24].mxu1 %v13602_v43  ;;  %v2019_v43 = vshrl.u32 %v13664_v2, 16  ;;  %v2028_v30 = vrot.slane %v2026_v22, 1  ;;  %16488 = vst [vmem:[#allocation19_spill] sm:$0xff] %v13718_v60 }
 0x327   : > { %2435 = vmatprep.mubr.bf16.mxu1 %v1993_v24  ;;  %10800 = vmatmul.mubr.bf16.gmra.mrb[32].mxu0 %v2076_v17  ;;  %v2094_v5 = vsel %vm2058_vm6, %v2092_v23, %v2093_v32  ;;  %v13692_v24 = vld [vmem:[#allocation2 + $0x18] sm:$0xff]   ;;  %v2038_v17 = vshll.u32 %v11834_v9, 16 }
 0x328   : > { %10803 = vmatprep.mubr.bf16.mxu0 %v2079_v40  ;;  %10012 = vmatpush3.bf16.msra.mxu0 %v11823_v44  ;;  %v2024_v11 = vor.u32 %v2023_v33, %v2019_v43  ;;  %v2098_v40 = vrot.slane %v13649_v25, 1  ;;  %v3882_v12 = vshll.u32 %v13692_v24, 16  ;;  %v3880_v19 = vshrl.u32 %v13692_v24, 16  ;;  %v13721_v43 = vld [vmem:[#allocation2 + $0x20] ss:$0 sps:$4 sm:$0x11]  }
 0x329   : > { %10013 = vmatprep.subr.bf16.mxu0 %v11830_v62  ;;  %v2035_v62 = vrot.slane %v2033_v6, 1  ;;  %v2040_v31 = vrot.slane %v2038_v17, 1  ;;  %v13726_v6 = vld [vmem:[#allocation2 + $0x30] sm:$0xff]  }
 0x32a   : > { %v2029_v44 = vsel %vm1849_vm3, %v2024_v11, %v2028_v30  ;;  %v2100_v47 = vsel %vm2058_vm6, %v2098_v40, %v2099_v52 }
 0x32b   : > { %v2036_v59 = vor.u32 %v2035_v62, %v2031_v20 }
 0x32c   : > { %10014 = vmatpush3.bf16.msra.mxu0 %v11831_v56  ;;  %v2101_v56 = vrot.slane %v13664_v2, 1 }
 0x32d   : > { %10015 = vmatprep.subr.bf16.mxu0 %v11838_v3  ;;  %v11849_v3 = vld [vmem:[#allocation2 + $0x14] ss:$0 sps:$4 sm:$0x11]   ;;  %v2041_v53 = vsel %vm1849_vm3, %v2036_v59, %v2040_v31  ;;  %v13739_v59 = vld [vmem:[#allocation2 + $0x38] ss:$0 sps:$4 sm:$0x11]  }
 0x32e   : > { %2436 = vmatmul.mubr.bf16.gmra.mrb[28].mxu1 %v13619_v35  ;;  %v2097_v35 = vsel %vm2058_vm6, %v2095_v36, %v2096_v49  ;;  %v2875_v10 = vshll.u32 %v11849_v3, 16  ;;  %v3076_v33 = vrot.slane %v11849_v3, 1  ;;  %v3899_v49 = vshll.u32 %v11851_v61, 16  ;;  %v13764_v61 = vld [vmem:[#allocation2 + $0x48] sm:$0xff]  }
 0x32f   : > { %2443 = vmatprep.mubr.bf16.mxu1 %v2005_v7  ;;  %10804 = vmatmul.mubr.bf16.gmra.mrb[36].mxu0 %v2082_v46  ;;  %v13709_v46 = vld [vmem:[#allocation2 + $0x18] sm:$0xff]  }
 0x330   : > { %10807 = vmatprep.mubr.bf16.mxu0 %v2085_v34  ;;  %10016 = vmatpush3.bf16.msra.mxu0 %v11839_v42  ;;  %v3884_v42 = vrot.slane %v3882_v12, 1  ;;  %v2882_v29 = vshll.u32 %v13709_v46, 16  ;;  %v3901_v39 = vrot.slane %v3899_v49, 1  ;;  %v11861_v12 = vld [vmem:[#allocation7 + $0x148] sm:$0xff]  }
 0x331   : > { %10017 = vmatprep.subr.bf16.mxu0 %v11846_v4  ;;  %v2103_v4 = vsel %vm2058_vm6, %v2101_v56, %v2102_v13  ;;  %v13749_v13 = vld [vmem:[#allocation2 + $0x30] sm:$0xff]   ;;  %v11897_v49 = vld [vmem:[#allocation7 + $0x168] sm:$0xff]  }
 0x332   : > { %v2884_v32 = vrot.slane %v2882_v29, 1 }
 0x334   : > { %10018 = vmatpush3.bf16.msra.mxu0 %v11847_v48  ;;  %v3885_v48 = vor.u32 %v3884_v42, %v3880_v19  ;;  %v2906_v19 = vshll.u32 %v13749_v13, 16 }
 0x335   : > { %10823 = vmatprep.subr.bf16.mxu0 %v13669_v58 }
 0x336   : > { %2444 = vmatmul.mubr.bf16.gmra.mrb[32].mxu1 %v13634_v54  ;;  %v13695_v54 = vld [vmem:[#allocation2 + $0xc] sm:$0xff]   ;;  %v2908_v14 = vrot.slane %v2906_v19, 1  ;;  %v13800_v19 = vld [vmem:[#allocation2 + $0x60] sm:$0xff]  }
 0x337   : > { %2451 = vmatprep.mubr.bf16.mxu1 %v2017_v16  ;;  %10808 = vmatmul.mubr.bf16.gmra.mrb[40].mxu0 %v2088_v15  ;;  %v2870_v51 = vshll.u32 %v13695_v54, 16  ;;  %v2868_v34 = vshrl.u32 %v13695_v54, 16  ;;  %v2105_v16 = vrot.slane %v11834_v9, 1  ;;  %v3075_v15 = vrot.slane %v13695_v54, 1  ;;  %v13732_v9 = vld [vmem:[#allocation2 + $0x24] sm:$0xff]  }
 0x338   : > { %10811 = vmatprep.mubr.bf16.mxu0 %v2091_v26  ;;  %v2877_v26 = vrot.slane %v2875_v10, 1  ;;  %v2894_v17 = vshll.u32 %v13732_v9, 16  ;;  %v13760_v10 = vld [vmem:[#allocation2 + $0x38] ss:$0 sps:$4 sm:$0x11]  }
 0x339   : > { %v2872_v7 = vrot.slane %v2870_v51, 1  ;;  %v2106_v11 = vsel %vm2058_vm6, %v2104_v63, %v2105_v16  ;;  %v13729_v36 = vsel %vm2058_vm6, %v3075_v15, %v3076_v33  ;;  %v13745_v51 = vld [vmem:[#allocation2 + $0x3c] sm:$0xff]   ;;  %v2911_v16 = vshll.u32 %v13760_v10, 16  ;;  %v11888_v15 = vld [vmem:[#allocation7 + $0x160] sm:$0xff]  }
 0x33a   : > { %v2896_v52 = vrot.slane %v2894_v17, 1  ;;  %v3916_v29 = vshrl.u32 %v13745_v51, 16  ;;  %v13786_v17 = vld [vmem:[#allocation2 + $0x48] sm:$0xff]  }
 0x33b   : > { %v2873_v27 = vor.u32 %v2872_v7, %v2868_v34  ;;  %v13758_v34 = vld [vmem:[#allocation2 + $0x44] ss:$0 sps:$4 sm:$0x11]  }
 0x33d   : > { %v2878_v30 = vsel %vm1849_vm3, %v2873_v27, %v2877_v26  ;;  %v13768_v27 = vld [vmem:[#allocation2 + $0x3c] sm:$0xff]   ;;  %v3930_v26 = vshll.u32 %v13764_v61, 16 }
 0x33e   : > { %2452 = vmatmul.mubr.bf16.gmra.mrb[36].mxu1 %v13649_v25  ;;  %v13706_v25 = vld [vmem:[#allocation2 + $0x24] sm:$0xff]  }
 0x33f   : > { %2459 = vmatprep.mubr.bf16.mxu1 %v2029_v44  ;;  %10812 = vmatmul.mubr.bf16.gmra.mrb[44].mxu0 %v2094_v5  ;;  %v3894_v45 = vshll.u32 %v13706_v25, 16  ;;  %v2880_v44 = vshrl.u32 %v13709_v46, 16  ;;  %v2887_v5 = vshll.u32 %v13721_v43, 16 }
 0x340   : > { %10815 = vmatprep.mubr.bf16.mxu0 %v2097_v35  ;;  %v3906_v35 = vshll.u32 %v13726_v6, 16 }
 0x341   : > { %v3896_v23 = vrot.slane %v3894_v45, 1  ;;  %v2885_v20 = vor.u32 %v2884_v32, %v2880_v44  ;;  %v2889_v40 = vrot.slane %v2887_v5, 1  ;;  %v2913_v32 = vrot.slane %v2911_v16, 1 }
 0x342   : > { %v3908_v3 = vrot.slane %v3906_v35, 1  ;;  %v3932_v5 = vrot.slane %v3930_v26, 1  ;;  %v13814_v26 = vld [vmem:[#allocation2 + $0x68] ss:$0 sps:$4 sm:$0x11]  }
 0x343   : > { %v2890_v31 = vsel %vm1849_vm3, %v2885_v20, %v2889_v40 }
 0x346   : > { %2460 = vmatmul.mubr.bf16.gmra.mrb[40].mxu1 %v13664_v2  ;;  %v3887_v2 = vshll.u32 %v11843_v57, 16  ;;  %v13741_v57 = vld [vmem:[#allocation2 + $0x2c] ss:$0 sps:$4 sm:$0x11]  }
 0x347   : > { %2467 = vmatprep.mubr.bf16.mxu1 %v2041_v53  ;;  %10816 = vmatmul.mubr.bf16.gmra.mrb[48].mxu0 %v2100_v47  ;;  %v3904_v53 = vshrl.u32 %v13726_v6, 16  ;;  %v2892_v47 = vshrl.u32 %v13732_v9, 16  ;;  %v2899_v42 = vshll.u32 %v13741_v57, 16 }
 0x348   : > { %10819 = vmatprep.mubr.bf16.mxu0 %v2103_v4  ;;  %v3889_v8 = vrot.slane %v3887_v2, 1 }
 0x349   : > { %v3909_v4 = vor.u32 %v3908_v3, %v3904_v53  ;;  %v2897_v7 = vor.u32 %v2896_v52, %v2892_v47  ;;  %v2930_v53 = vshll.u32 %v13786_v17, 16  ;;  %v13794_v47 = vld [vmem:[#allocation2 + $0x5c] ss:$0 sps:$4 sm:$0x11]  }
 0x34a   : > { %v3890_v22 = vsel %vm1849_vm3, %v3885_v48, %v3889_v8  ;;  %v3923_v8 = vshll.u32 %v13758_v34, 16 }
 0x34e   : > { %2468 = vmatmul.mubr.bf16.gmra.mrb[44].mxu1 %v13680_v50  ;;  %v3892_v50 = vshrl.u32 %v13706_v25, 16 }
 0x34f   : > { %4376 = vmatprep.mubr.bf16.mxu1 %v3890_v22  ;;  %10820 = vmatmul.mubr.bf16.gmra.mrb[52].mxu0 %v2106_v11  ;;  %v2918_v11 = vshll.u32 %v13768_v27, 16 }
 0x350   : > { %3364 = vmatprep.mubr.bf16.mxu0 %v2878_v30  ;;  %v3897_v62 = vor.u32 %v3896_v23, %v3892_v50  ;;  %v3925_v23 = vrot.slane %v3923_v8, 1  ;;  %v13776_v30 = vld [vmem:[#allocation2 + $0x50] ss:$0 sps:$4 sm:$0x11]  }
 0x351   : > { %v13778_v50 = vld [vmem:[#allocation2 + $0x44] ss:$0 sps:$4 sm:$0x11]   ;;  %v2920_v20 = vrot.slane %v2918_v11, 1  ;;  %v3935_v40 = vshll.u32 %v13776_v30, 16 }
 0x352   : > { %v3902_v56 = vsel %vm1849_vm3, %v3897_v62, %v3901_v39  ;;  %v13782_v62 = vld [vmem:[#allocation2 + $0x54] sm:$0xff]   ;;  %v3928_v39 = vshrl.u32 %v13764_v61, 16  ;;  %v13816_v11 = vld [vmem:[#allocation2 + $0x5c] ss:$0 sps:$4 sm:$0x11]  }
 0x354   : > { %v3933_v3 = vor.u32 %v3932_v5, %v3928_v39  ;;  %v3959_v39 = vshll.u32 %v13814_v26, 16 }
 0x356   : > { %4377 = vmatmul.mubr.bf16.vlgmr.msra.gmra.mrb[48].mxu1 %v13692_v24  ;;  %v3911_v24 = vshll.u32 %v13739_v59, 16 }
 0x357   : > { %4384 = vmatprep.mubr.bf16.mxu1 %v3902_v56  ;;  %3365 = vmatmul.mubr.bf16.vlgmr.msra.gmra.mrb[56].mxu0 %v13695_v54  ;;  %v3918_v54 = vshll.u32 %v13745_v51, 16  ;;  %v11906_v56 = vld [vmem:[#allocation7 + $0x170] sm:$0xff]  }
 0x358   : > { %10824 = vmatpush3.bf16.msra.mxu0 %v13669_v58  ;;  %3372 = vmatprep.mubr.bf16.mxu0 %v2890_v31  ;;  %v3913_v2 = vrot.slane %v3911_v24, 1  ;;  %v2901_v58 = vrot.slane %v2899_v42, 1  ;;  %v3942_v31 = vshll.u32 %v13782_v62, 16  ;;  %v3937_v24 = vrot.slane %v3935_v40, 1 }
 0x359   : > { %10825 = vmatprep.subr.bf16.mxu0 %v11861_v12  ;;  %v3920_v63 = vrot.slane %v3918_v54, 1 }
 0x35a   : > { %v3914_v48 = vsel %vm1849_vm3, %v3909_v4, %v3913_v2  ;;  %v2902_v45 = vsel %vm1849_vm3, %v2897_v7, %v2901_v58  ;;  %v11913_v4 = vld [vmem:[#allocation7 + $0x178] sm:$0xff]   ;;  %v3938_v54 = vsel %vm1849_vm3, %v3933_v3, %v3937_v24  ;;  %v3944_v7 = vrot.slane %v3942_v31, 1 }
 0x35b   : > { %v3921_v33 = vor.u32 %v3920_v63, %v3916_v29  ;;  %v2932_v58 = vrot.slane %v2930_v53, 1  ;;  %v3947_v63 = vshll.u32 %v13794_v47, 16  ;;  %v13810_v29 = vld [vmem:[#allocation7 + $0x200] sm:$0xff]  }
 0x35c   : > { %10826 = vmatpush3.bf16.msra.mxu0 %v11861_v12  ;;  %v2923_v12 = vshll.u32 %v13778_v50, 16  ;;  %v13833_v53 = vld [vmem:[#allocation2 + $0x74] ss:$0 sps:$4 sm:$0x11]  }
 0x35d   : > { %10827 = vmatprep.subr.bf16.mxu0 %v11870_v18  ;;  %v3926_v44 = vsel %vm1849_vm3, %v3921_v33, %v3925_v23  ;;  %v3949_v33 = vrot.slane %v3947_v63, 1  ;;  %16490 = vst [vmem:[#allocation21_spill] sm:$0xff] %v13833_v53 }
 0x35e   : > { %4385 = vmatmul.mubr.bf16.gmra.mrb[52].mxu1 %v13706_v25  ;;  %v2904_v25 = vshrl.u32 %v13749_v13, 16  ;;  %v2925_v42 = vrot.slane %v2923_v12, 1 }
 0x35f   : > { %4392 = vmatprep.mubr.bf16.mxu1 %v3914_v48  ;;  %3373 = vmatmul.mubr.bf16.gmra.mrb[60].mxu0 %v13709_v46  ;;  %v3940_v48 = vshrl.u32 %v13782_v62, 16 }
 0x360   : > { %3380 = vmatprep.mubr.bf16.mxu0 %v2902_v45  ;;  %10828 = vmatpush3.bf16.msra.mxu0 %v11870_v18  ;;  %v2909_v22 = vor.u32 %v2908_v14, %v2904_v25  ;;  %v13796_v18 = vld [vmem:[#allocation2 + $0x50] ss:$0 sps:$4 sm:$0x11]   ;;  %v2928_v45 = vshrl.u32 %v13786_v17, 16  ;;  %v3954_v25 = vshll.u32 %v13800_v19, 16 }
 0x361   : > { %10829 = vmatprep.subr.bf16.mxu0 %v11879_v55  ;;  %v2935_v14 = vshll.u32 %v13796_v18, 16  ;;  %v3945_v8 = vor.u32 %v3944_v7, %v3940_v48  ;;  %v13839_v7 = vld [vmem:[#allocation2 + $0x78] sm:$0xff]   ;;  %v13843_v48 = vld [vmem:[#allocation2 + $0x6c] sm:$0xff]  }
 0x362   : > { %v2914_v35 = vsel %vm1849_vm3, %v2909_v22, %v2913_v32  ;;  %v2933_v16 = vor.u32 %v2932_v58, %v2928_v45  ;;  %v3956_v32 = vrot.slane %v3954_v25, 1  ;;  %16491 = vst [vmem:[#allocation22_spill] sm:$0xff] %v13839_v7  ;;  %v3971_v45 = vshll.u32 %v13833_v53, 16 }
 0x363   : > { %v2937_v22 = vrot.slane %v2935_v14, 1  ;;  %v3950_v23 = vsel %vm1849_vm3, %v3945_v8, %v3949_v33  ;;  %v2966_v33 = vshll.u32 %v13843_v48, 16 }
 0x364   : > { %10830 = vmatpush3.bf16.msra.mxu0 %v11879_v55  ;;  %v13804_v55 = vld [vmem:[#allocation2 + $0x54] sm:$0xff]  }
 0x365   : > { %10831 = vmatprep.subr.bf16.mxu0 %v11888_v15  ;;  %v2940_v40 = vshrl.u32 %v13804_v55, 16 }
 0x366   : > { %4393 = vmatmul.mubr.bf16.gmra.mrb[56].mxu1 %v13726_v6  ;;  %v2916_v6 = vshrl.u32 %v13768_v27, 16 }
 0x367   : > { %4400 = vmatprep.mubr.bf16.mxu1 %v3926_v44  ;;  %3381 = vmatmul.mubr.bf16.gmra.mrb[64].mxu0 %v13732_v9  ;;  %v2938_v44 = vsel %vm1849_vm3, %v2933_v16, %v2937_v22  ;;  %v3978_v16 = vshll.u32 %v13839_v7, 16  ;;  %v3973_v22 = vrot.slane %v3971_v45, 1 }
 0x368   : > { %3388 = vmatprep.mubr.bf16.mxu0 %v2914_v35  ;;  %10832 = vmatpush3.bf16.msra.mxu0 %v11888_v15  ;;  %v2921_v52 = vor.u32 %v2920_v20, %v2916_v6  ;;  %v2942_v15 = vshll.u32 %v13804_v55, 16  ;;  %v13825_v35 = vld [vmem:[#allocation2 + $0x60] sm:$0xff]   ;;  %v3952_v20 = vshrl.u32 %v13800_v19, 16  ;;  %v2947_v6 = vshll.u32 %v13816_v11, 16 }
 0x369   : > { %10833 = vmatprep.subr.bf16.mxu0 %v11897_v49  ;;  %v2954_v31 = vshll.u32 %v13825_v35, 16  ;;  %v2952_v14 = vshrl.u32 %v13825_v35, 16 }
 0x36a   : > { %v2926_v2 = vsel %vm1849_vm3, %v2921_v52, %v2925_v42  ;;  %v2944_v5 = vrot.slane %v2942_v15, 1  ;;  %v3957_v12 = vor.u32 %v3956_v32, %v3952_v20  ;;  %v3961_v52 = vrot.slane %v3959_v39, 1  ;;  %v13835_v42 = vld [vmem:[#allocation2 + $0x68] ss:$0 sps:$4 sm:$0x11]  }
 0x36b   : > { %v2949_v24 = vrot.slane %v2947_v6, 1  ;;  %v2956_v58 = vrot.slane %v2954_v31, 1  ;;  %v2959_v8 = vshll.u32 %v13835_v42, 16  ;;  %v3980_v20 = vrot.slane %v3978_v16, 1  ;;  %v13857_v39 = vld [vmem:[#allocation2 + $0x84] sm:$0xff]   ;;  %v13875_v16 = vld [vmem:[#allocation2 + $0x90] sm:$0xff]  }
 0x36c   : > { %10834 = vmatpush3.bf16.msra.mxu0 %v11897_v49  ;;  %v13821_v49 = vld [vmem:[#allocation2 + $0x6c] sm:$0xff]   ;;  %v2945_v3 = vor.u32 %v2944_v5, %v2940_v40  ;;  %16493 = vst [vmem:[#allocation24_spill] sm:$0xff] %v13857_v39  ;;  %v2968_v6 = vrot.slane %v2966_v33, 1  ;;  %v2964_v31 = vshrl.u32 %v13843_v48, 16  ;;  %16495 = vst [vmem:[#allocation26_spill] sm:$0xff] %v13875_v16 }
 0x36d   : > { %10835 = vmatprep.subr.bf16.mxu0 %v11906_v56  ;;  %16489 = vst [vmem:[#allocation20_spill] sm:$0xff] %v13821_v49  ;;  %v3964_v63 = vshrl.u32 %v13821_v49, 16  ;;  %v2957_v15 = vor.u32 %v2956_v58, %v2952_v14  ;;  %v2961_v32 = vrot.slane %v2959_v8, 1  ;;  %v13871_v14 = vld [vmem:[#allocation2 + $0x80] ss:$0 sps:$4 sm:$0x11]  }
 0x36e   : > { %4401 = vmatmul.mubr.bf16.gmra.mrb[60].mxu1 %v13745_v51 }
 0x36f   : > { %4408 = vmatprep.mubr.bf16.mxu1 %v3938_v54  ;;  %3389 = vmatmul.mubr.bf16.gmra.mrb[68].mxu0 %v13749_v13  ;;  %v2962_v40 = vsel %vm1849_vm3, %v2957_v15, %v2961_v32  ;;  %v3988_v32 = vshrl.u32 %v13857_v39, 16 }
 0x370   : > { %3396 = vmatprep.mubr.bf16.mxu0 %v2926_v2  ;;  %10836 = vmatpush3.bf16.msra.mxu0 %v11906_v56  ;;  %v3966_v56 = vshll.u32 %v13821_v49, 16  ;;  %v2950_v2 = vsel %vm1849_vm3, %v2945_v3, %v2949_v24 }
 0x371   : > { %10837 = vmatprep.subr.bf16.mxu0 %v11913_v4 }
 0x372   : > { %v3968_v54 = vrot.slane %v3966_v56, 1  ;;  %v3976_v56 = vshrl.u32 %v13839_v7, 16 }
 0x374   : > { %10838 = vmatpush3.bf16.msra.mxu0 %v11913_v4  ;;  %v3962_v4 = vsel %vm1849_vm3, %v3957_v12, %v3961_v52  ;;  %v3969_v25 = vor.u32 %v3968_v54, %v3964_v63  ;;  %v13861_v12 = vld [vmem:[#allocation2 + $0x78] sm:$0xff]   ;;  %v3981_v24 = vor.u32 %v3980_v20, %v3976_v56  ;;  %v2969_v54 = vor.u32 %v2968_v6, %v2964_v31  ;;  %v13869_v63 = vld [vmem:[#allocation2 + $0x8c] ss:$0 sps:$4 sm:$0x11]  }
 0x375   : > { %10871 = vmatprep.subr.bf16.mxu0 %v13810_v29  ;;  %16494 = vst [vmem:[#allocation25_spill] sm:$0xff] %v13869_v63  ;;  %v2976_v20 = vshrl.u32 %v13861_v12, 16  ;;  %v4002_v56 = vshll.u32 %v13875_v16, 16 }
 0x376   : > { %4409 = vmatmul.mubr.bf16.gmra.mrb[64].mxu1 %v13764_v61  ;;  %v3974_v5 = vsel %vm1849_vm3, %v3969_v25, %v3973_v22  ;;  %v13879_v22 = vld [vmem:[#allocation2 + $0x84] sm:$0xff]  }
 0x377   : > { %4416 = vmatprep.mubr.bf16.mxu1 %v3950_v23  ;;  %3397 = vmatmul.mubr.bf16.gmra.mrb[72].mxu0 %v13768_v27  ;;  %v13851_v23 = vld [vmem:[#allocation2 + $0x80] ss:$0 sps:$4 sm:$0x11]   ;;  %v2990_v31 = vshll.u32 %v13879_v22, 16 }
 0x378   : > { %3404 = vmatprep.mubr.bf16.mxu0 %v2938_v44  ;;  %16492 = vst [vmem:[#allocation23_spill] sm:$0xff] %v13851_v23  ;;  %v13853_v44 = vld [vmem:[#allocation2 + $0x74] ss:$0 sps:$4 sm:$0x11]   ;;  %v3983_v3 = vshll.u32 %v13851_v23, 16 }
 0x379   : > { %v2971_v52 = vshll.u32 %v13853_v44, 16 }
 0x37a   : > { %v3985_v58 = vrot.slane %v3983_v3, 1 }
 0x37b   : > { %v2973_v45 = vrot.slane %v2971_v52, 1 }
 0x37c   : > { %v3986_v8 = vsel %vm1849_vm3, %v3981_v24, %v3985_v58  ;;  %v13887_v24 = vld [vmem:[#allocation2 + $0x98] ss:$0 sps:$4 sm:$0x11]   ;;  %v4004_v58 = vrot.slane %v4002_v56, 1 }
 0x37d   : > { %v2974_v15 = vsel %vm1849_vm3, %v2969_v54, %v2973_v45  ;;  %16496 = vst [vmem:[#allocation27_spill] sm:$0xff] %v13887_v24  ;;  %v13889_v54 = vld [vmem:[#allocation2 + $0x8c] ss:$0 sps:$4 sm:$0x11]   ;;  %v13893_v45 = vld [vmem:[#allocation2 + $0x9c] sm:$0xff]  }
 0x37e   : > { %4417 = vmatmul.mubr.bf16.gmra.mrb[68].mxu1 %v13782_v62  ;;  %16497 = vst [vmem:[#allocation28_spill] sm:$0xff] %v13893_v45 }
 0x37f   : > { %4424 = vmatprep.mubr.bf16.mxu1 %v3962_v4  ;;  %3405 = vmatmul.mubr.bf16.gmra.mrb[76].mxu0 %v13786_v17  ;;  %v3990_v4 = vshll.u32 %v13857_v39, 16 }
 0x380   : > { %3412 = vmatprep.mubr.bf16.mxu0 %v2950_v2  ;;  %v2978_v2 = vshll.u32 %v13861_v12, 16 }
 0x381   : > { %v3992_v25 = vrot.slane %v3990_v4, 1 }
 0x382   : > { %v2980_v33 = vrot.slane %v2978_v2, 1 }
 0x383   : > { %v3993_v6 = vor.u32 %v3992_v25, %v3988_v32  ;;  %v2992_v25 = vrot.slane %v2990_v31, 1  ;;  %v4007_v32 = vshll.u32 %v13887_v24, 16 }
 0x384   : > { %v2981_v3 = vor.u32 %v2980_v33, %v2976_v20  ;;  %v4000_v33 = vshrl.u32 %v13875_v16, 16  ;;  %v2995_v20 = vshll.u32 %v13889_v54, 16 }
 0x386   : > { %4425 = vmatmul.mubr.bf16.gmra.mrb[72].mxu1 %v13800_v19  ;;  %v2997_v31 = vrot.slane %v2995_v20, 1 }
 0x387   : > { %4432 = vmatprep.mubr.bf16.mxu1 %v3974_v5  ;;  %3413 = vmatmul.mubr.bf16.gmra.mrb[80].mxu0 %v13804_v55  ;;  %v3995_v5 = vshll.u32 %v13869_v63, 16  ;;  %v13947_v63 = vld [vmem:[#allocation2 + $0xc0] sm:$0xff]  }
 0x388   : > { %3420 = vmatprep.mubr.bf16.mxu0 %v2962_v40  ;;  %v2983_v40 = vshll.u32 %v13871_v14, 16 }
 0x389   : > { %v3997_v52 = vrot.slane %v3995_v5, 1  ;;  %v2988_v5 = vshrl.u32 %v13879_v22, 16 }
 0x38a   : > { %v2985_v4 = vrot.slane %v2983_v40, 1  ;;  %v4005_v40 = vor.u32 %v4004_v58, %v4000_v33  ;;  %v13915_v33 = vld [vmem:[#allocation2 + $0x9c] sm:$0xff]  }
 0x38b   : > { %v3998_v2 = vsel %vm1849_vm3, %v3993_v6, %v3997_v52  ;;  %v4014_v6 = vshll.u32 %v13893_v45, 16  ;;  %v2993_v56 = vor.u32 %v2992_v25, %v2988_v5  ;;  %v3014_v0 = vshll.u32 %v13915_v33, 16 }
 0x38d   : > { %v4016_v41 = vrot.slane %v4014_v6, 1  ;;  %v2998_v58 = vsel %vm1849_vm3, %v2993_v56, %v2997_v31  ;;  %v13923_v56 = vld [vmem:[#allocation2 + $0xb0] ss:$0 sps:$4 sm:$0x11]  }
 0x38e   : > { %4433 = vmatmul.mubr.bf16.gmra.mrb[76].mxu1 %v13821_v49  ;;  %16500 = vst [vmem:[#allocation31_spill] sm:$0xff] %v13923_v56  ;;  %v13925_v31 = vld [vmem:[#allocation2 + $0xa4] ss:$0 sps:$4 sm:$0x11]  }
 0x38f   : > { %4440 = vmatprep.mubr.bf16.mxu1 %v3986_v8  ;;  %3421 = vmatmul.mubr.bf16.gmra.mrb[84].mxu0 %v13825_v35  ;;  %v2986_v8 = vsel %vm1849_vm3, %v2981_v3, %v2985_v4  ;;  %v13905_v3 = vld [vmem:[#allocation2 + $0xa4] ss:$0 sps:$4 sm:$0x11]   ;;  %v13907_v4 = vld [vmem:[#allocation2 + $0x98] ss:$0 sps:$4 sm:$0x11]  }
 0x390   : > { %3428 = vmatprep.mubr.bf16.mxu0 %v2974_v15  ;;  %v13897_v15 = vld [vmem:[#allocation2 + $0x90] sm:$0xff]   ;;  %16498 = vst [vmem:[#allocation29_spill] sm:$0xff] %v13905_v3  ;;  %v4019_v5 = vshll.u32 %v13905_v3, 16 }
 0x391   : > { %v3002_v52 = vshll.u32 %v13897_v15, 16  ;;  %v3000_v20 = vshrl.u32 %v13897_v15, 16 }
 0x392   : > { %v4021_v1 = vrot.slane %v4019_v5, 1  ;;  %v4024_v5 = vshrl.u32 %v13911_v38, 16 }
 0x393   : > { %v3004_v25 = vrot.slane %v3002_v52, 1 }
 0x396   : > { %4441 = vmatmul.mubr.bf16.gmra.mrb[80].mxu1 %v13839_v7 }
 0x397   : > { %4448 = vmatprep.mubr.bf16.mxu1 %v3998_v2  ;;  %3429 = vmatmul.mubr.bf16.gmra.mrb[88].mxu0 %v13843_v48  ;;  %v4009_v2 = vrot.slane %v4007_v32, 1  ;;  %v4012_v32 = vshrl.u32 %v13893_v45, 16 }
 0x398   : > { %3436 = vmatprep.mubr.bf16.mxu0 %v2986_v8 }
 0x399   : > { %v4010_v8 = vsel %vm1849_vm3, %v4005_v40, %v4009_v2  ;;  %v3007_v40 = vshll.u32 %v13907_v4, 16  ;;  %v4017_v6 = vor.u32 %v4016_v41, %v4012_v32  ;;  %v4026_v2 = vshll.u32 %v13911_v38, 16  ;;  %v13933_v32 = vld [vmem:[#allocation2 + $0xa8] sm:$0xff]  }
 0x39a   : > { %v3026_v3 = vshll.u32 %v13933_v32, 16 }
 0x39b   : > { %v3009_v52 = vrot.slane %v3007_v40, 1  ;;  %v4028_v28 = vrot.slane %v4026_v2, 1  ;;  %v3012_v40 = vshrl.u32 %v13915_v33, 16  ;;  %v4038_v2 = vshll.u32 %v13929_v37, 16 }
 0x39e   : > { %4449 = vmatmul.mubr.bf16.gmra.mrb[84].mxu1 %v13857_v39 }
 0x39f   : > { %4456 = vmatprep.mubr.bf16.mxu1 %v4010_v8  ;;  %3437 = vmatmul.mubr.bf16.gmra.mrb[92].mxu0 %v13861_v12  ;;  %v3005_v8 = vor.u32 %v3004_v25, %v3000_v20  ;;  %v3016_v25 = vrot.slane %v3014_v0, 1  ;;  %v4031_v20 = vshll.u32 %v13923_v56, 16  ;;  %v4040_v56 = vrot.slane %v4038_v2, 1 }
 0x3a0   : > { %3444 = vmatprep.mubr.bf16.mxu0 %v2998_v58  ;;  %v4022_v58 = vsel %vm1849_vm3, %v4017_v6, %v4021_v1  ;;  %v3019_v1 = vshll.u32 %v13925_v31, 16  ;;  %v4029_v6 = vor.u32 %v4028_v28, %v4024_v5  ;;  %v13951_v5 = vld [vmem:[#allocation2 + $0xb4] sm:$0xff]   ;;  %v4050_v2 = vshll.u32 %v13947_v63, 16 }
 0x3a1   : > { %v3010_v41 = vsel %vm1849_vm3, %v3005_v8, %v3009_v52  ;;  %v4033_v24 = vrot.slane %v4031_v20, 1  ;;  %v13941_v8 = vld [vmem:[#allocation2 + $0xbc] ss:$0 sps:$4 sm:$0x11]   ;;  %v4036_v20 = vshrl.u32 %v13929_v37, 16 }
 0x3a2   : > { %16502 = vst [vmem:[#allocation33_spill] sm:$0xff] %v13941_v8  ;;  %v3021_v0 = vrot.slane %v3019_v1, 1  ;;  %v13943_v52 = vld [vmem:[#allocation2 + $0xb0] ss:$0 sps:$4 sm:$0x11]   ;;  %v3024_v1 = vshrl.u32 %v13933_v32, 16 }
 0x3a3   : > { %v4052_v39 = vrot.slane %v4050_v2, 1 }
 0x3a6   : > { %4457 = vmatmul.mubr.bf16.gmra.mrb[88].mxu1 %v13875_v16 }
 0x3a7   : > { %4464 = vmatprep.mubr.bf16.mxu1 %v4022_v58  ;;  %3445 = vmatmul.mubr.bf16.gmra.mrb[96].mxu0 %v13879_v22  ;;  %v3017_v58 = vor.u32 %v3016_v25, %v3012_v40  ;;  %v3028_v25 = vrot.slane %v3026_v3, 1  ;;  %v4043_v40 = vshll.u32 %v13941_v8, 16  ;;  %v13961_v3 = vld [vmem:[#allocation2 + $0xcc] sm:$0xff]  }
 0x3a8   : > { %3452 = vmatprep.mubr.bf16.mxu0 %v3010_v41  ;;  %v4034_v41 = vsel %vm1849_vm3, %v4029_v6, %v4033_v24  ;;  %v3031_v24 = vshll.u32 %v13943_v52, 16  ;;  %v4041_v6 = vor.u32 %v4040_v56, %v4036_v20  ;;  %v13969_v20 = vld [vmem:[#allocation2 + $0xc0] sm:$0xff]  }
 0x3a9   : > { %v3022_v28 = vsel %vm1849_vm3, %v3017_v58, %v3021_v0  ;;  %v4045_v16 = vrot.slane %v4043_v40, 1  ;;  %v13959_v58 = vld [vmem:[#allocation2 + $0xc8] ss:$0 sps:$4 sm:$0x11]   ;;  %v4048_v40 = vshrl.u32 %v13947_v63, 16 }
 0x3aa   : > { %16503 = vst [vmem:[#allocation34_spill] sm:$0xff] %v13959_v58  ;;  %v3033_v0 = vrot.slane %v3031_v24, 1  ;;  %v13973_v24 = vld [vmem:[#allocation2 + $0xd4] ss:$0 sps:$4 sm:$0x11]  }
 0x3ab   : > { %v4046_v8 = vsel %vm1849_vm3, %v4041_v6, %v4045_v16  ;;  %16504 = vst [vmem:[#allocation35_spill] sm:$0xff] %v13973_v24  ;;  %v3036_v16 = vshrl.u32 %v13951_v5, 16  ;;  %v4053_v6 = vor.u32 %v4052_v39, %v4048_v40  ;;  %v4067_v60 = vshll.u32 %v13973_v24, 16 }
 0x3ae   : > { %4465 = vmatmul.mubr.bf16.gmra.mrb[92].mxu1 %v13893_v45  ;;  %v3038_v45 = vshll.u32 %v13951_v5, 16 }
 0x3af   : > { %4472 = vmatprep.mubr.bf16.mxu1 %v4034_v41  ;;  %3453 = vmatmul.mubr.bf16.gmra.mrb[100].mxu0 %v13897_v15  ;;  %v3029_v41 = vor.u32 %v3028_v25, %v3024_v1  ;;  %v4055_v1 = vshll.u32 %v13959_v58, 16  ;;  %v13981_v58 = vld [vmem:[#allocation2 + $0xc8] ss:$0 sps:$4 sm:$0x11]  }
 0x3b0   : > { %3460 = vmatprep.mubr.bf16.mxu0 %v3022_v28  ;;  %v13963_v28 = vld [vmem:[#allocation2 + $0xbc] ss:$0 sps:$4 sm:$0x11]   ;;  %v3040_v25 = vrot.slane %v3038_v45, 1 }
 0x3b1   : > { %v3034_v56 = vsel %vm1849_vm3, %v3029_v41, %v3033_v0  ;;  %v3050_v41 = vshll.u32 %v13969_v20, 16  ;;  %v4057_v45 = vrot.slane %v4055_v1, 1  ;;  %v4060_v0 = vshrl.u32 %v13961_v3, 16 }
 0x3b2   : > { %v3041_v2 = vor.u32 %v3040_v25, %v3036_v16  ;;  %v4069_v1 = vrot.slane %v4067_v60, 1  ;;  %v3055_v16 = vshll.u32 %v13981_v58, 16 }
 0x3b3   : > { %v4058_v53 = vsel %vm1849_vm3, %v4053_v6, %v4057_v45  ;;  %v3052_v25 = vrot.slane %v3050_v41, 1 }
 0x3b4   : > { %v3057_v45 = vrot.slane %v3055_v16, 1 }
 0x3b6   : > { %4473 = vmatmul.mubr.bf16.gmra.mrb[96].mxu1 %v13911_v38  ;;  %v4062_v38 = vshll.u32 %v13961_v3, 16 }
 0x3b7   : > { %4480 = vmatprep.mubr.bf16.mxu1 %v4046_v8  ;;  %3461 = vmatmul.mubr.bf16.gmra.mrb[104].mxu0 %v13915_v33  ;;  %v3043_v8 = vshll.u32 %v13963_v28, 16 }
 0x3b8   : > { %3468 = vmatprep.mubr.bf16.mxu0 %v3034_v56  ;;  %v4064_v56 = vrot.slane %v4062_v38, 1  ;;  %v3048_v38 = vshrl.u32 %v13969_v20, 16 }
 0x3b9   : > { %v3045_v23 = vrot.slane %v3043_v8, 1 }
 0x3ba   : > { %v4065_v40 = vor.u32 %v4064_v56, %v4060_v0  ;;  %v3053_v24 = vor.u32 %v3052_v25, %v3048_v38 }
 0x3bb   : > { %v3046_v39 = vsel %vm1849_vm3, %v3041_v2, %v3045_v23 }
 0x3bc   : > { %v3058_v0 = vsel %vm1849_vm3, %v3053_v24, %v3057_v45 }
 0x3be   : > { %4481 = vmatmul.mubr.bf16.gmra.mrb[100].mxu1 %v13929_v37 }
 0x3bf   : > { %4488 = vmatprep.mubr.bf16.mxu1 %v4058_v53  ;;  %3469 = vmatmul.mubr.bf16.gmra.mrb[108].mxu0 %v13933_v32  ;;  %v4070_v53 = vsel %vm1849_vm3, %v4065_v40, %v4069_v1 }
 0x3c0   : > { %3476 = vmatprep.mubr.bf16.mxu0 %v3046_v39 }
 0x3c4   : > { %v9889_v8 = vpop.f32.mrb[8].mxu0 }
 0x3c5   : > { %v9890_v21 = vpop.f32.mrb[9].mxu0 }
 0x3c6   : > { %v9913_v7 = vpop.f32.mrb[4].mxu1  ;;  %v13989_v37 = vadd.f32 %v9890_v21, %v9889_v8  ;;  %v9892_v6 = vpop.f32.mrb[10].mxu0  ;;  %4489 = vmatmul.mubr.bf16.gmra.mrb[104].mxu1 %v13947_v63 }
 0x3c7   : > { %v9914_v49 = vpop.f32.mrb[5].mxu1  ;;  %v9893_v23 = vpop.f32.mrb[11].mxu0  ;;  %3477 = vmatmul.mubr.bf16.gmra.mrb[112].mxu0 %v13951_v5  ;;  %4496 = vmatprep.mubr.bf16.mxu1 %v4070_v53  ;;  %v16505_v53 = vmov 0.0  }
 0x3c8   : > { %v13993_v2 = vadd.f32 %v9914_v49, %v9913_v7  ;;  %v9916_v60 = vpop.f32.mrb[6].mxu1  ;;  %v13995_v41 = vadd.f32 %v9893_v23, %v9892_v6  ;;  %3484 = vmatprep.mubr.bf16.mxu0 %v3058_v0  ;;  %v3078_v23 = vrot.slane %v13709_v46, 1  ;;  %v3079_v0 = vrot.slane %v13721_v43, 1 }
 0x3c9   : > { %v9917_v56 = vpop.f32.mrb[7].mxu1  ;;  %v3084_v46 = vrot.slane %v13749_v13, 1 }
 0x3ca   : > { %v13999_v21 = vadd.f32 %v9917_v56, %v9916_v60  ;;  %v3081_v60 = vrot.slane %v13732_v9, 1  ;;  %v3082_v56 = vrot.slane %v13741_v57, 1  ;;  %v3087_v9 = vrot.slane %v13768_v27, 1 }
 0x3cc   : > { %v9895_v39 = vpop.f32.mrb[12].mxu0 }
 0x3cd   : > { %v9896_v25 = vpop.f32.mrb[13].mxu0 }
 0x3ce   : > { %v9919_v40 = vpop.f32.mrb[8].mxu1  ;;  %v14001_v1 = vadd.f32 %v9896_v25, %v9895_v39  ;;  %v9898_v38 = vpop.f32.mrb[14].mxu0  ;;  %4497 = vmatmul.mubr.bf16.gmra.mrb[108].mxu1 %v13961_v3  ;;  %v11919_v39 = vld [vmem:[#allocation7 + $0x208] sm:$0xff]   ;;  %v3080_v25 = vsel %vm2058_vm6, %v3078_v23, %v3079_v0  ;;  %v11922_v0 = vld [vmem:[#allocation7 + $0x220] sm:$0xff]  }
 0x3cf   : > { %v9920_v49 = vpop.f32.mrb[9].mxu1  ;;  %v9899_v7 = vpop.f32.mrb[15].mxu0  ;;  %3485 = vmatmul.mubr.bf16.gmra.mrb[116].mxu0 %v13969_v20  ;;  %10951 = vmatprep.mubr.msk.f32.mxu1 %vm12535_vm0, %v16505_v53 }
 0x3d0   : > { %v14004_v16 = vadd.f32 %v9920_v49, %v9919_v40  ;;  %v9922_v8 = vpop.f32.mrb[10].mxu1  ;;  %v14006_v6 = vadd.f32 %v9899_v7, %v9898_v38  ;;  %10839 = vmatprep.mubr.bf16.mxu0 %v13729_v36  ;;  %v3083_v40 = vsel %vm2058_vm6, %v3081_v60, %v3082_v56  ;;  %v11920_v36 = vld [vmem:[#allocation7 + $0x210] sm:$0xff]   ;;  %v3085_v7 = vrot.slane %v13760_v10, 1 }
 0x3d1   : > { %v9923_v24 = vpop.f32.mrb[11].mxu1 }
 0x3d2   : > { %v14012_v45 = vadd.f32 %v9923_v24, %v9922_v8  ;;  %v3088_v24 = vrot.slane %v13778_v50, 1  ;;  %v3086_v60 = vsel %vm2058_vm6, %v3084_v46, %v3085_v7 }
 0x3d4   : > { %v3089_v13 = vsel %vm2058_vm6, %v3087_v9, %v3088_v24  ;;  %v3091_v9 = vrot.slane %v13796_v18, 1  ;;  %v11924_v18 = vld [vmem:[#allocation7 + $0x230] sm:$0xff]  }
 0x3d7   : > { %10840 = vmatmul.mubr.bf16.vlgmr.msra.gmra.mrb[24].mxu0 %v3080_v25 }
 0x3d8   : > { %10872 = vmatpush3.bf16.msra.mxu0 %v13810_v29  ;;  %10843 = vmatprep.mubr.bf16.mxu0 %v3083_v40  ;;  %v11921_v29 = vld [vmem:[#allocation7 + $0x218] sm:$0xff]  }
 0x3d9   : > { %10873 = vmatprep.subr.bf16.mxu0 %v11919_v39 }
 0x3da   : > { %v9901_v38 = vpop.f32.mrb[16].mxu0 }
 0x3db   : > { %v9902_v49 = vpop.f32.mrb[17].mxu0 }
 0x3dc   : > { %v14023_v43 = vadd.f32 %v9902_v49, %v9901_v38  ;;  %v9904_v57 = vpop.f32.mrb[18].mxu0  ;;  %10874 = vmatpush3.bf16.msra.mxu0 %v11919_v39  ;;  %v3090_v39 = vrot.slane %v13786_v17, 1  ;;  %v3093_v38 = vrot.slane %v13804_v55, 1  ;;  %v11923_v17 = vld [vmem:[#allocation7 + $0x228] sm:$0xff]  }
 0x3dd   : > { %v9905_v8 = vpop.f32.mrb[19].mxu0  ;;  %10875 = vmatprep.subr.bf16.mxu0 %v11920_v36 }
 0x3de   : > { %v14027_v23 = vadd.f32 %v9905_v8, %v9904_v57  ;;  %v3094_v8 = vrot.slane %v13816_v11, 1 }
 0x3df   : > { %10844 = vmatmul.mubr.bf16.gmra.mrb[28].mxu0 %v3086_v60  ;;  %v3092_v60 = vsel %vm2058_vm6, %v3090_v39, %v3091_v9  ;;  %v3102_v9 = vrot.slane %v13861_v12, 1 }
 0x3e0   : > { %10847 = vmatprep.mubr.bf16.mxu0 %v3089_v13  ;;  %10876 = vmatpush3.bf16.msra.mxu0 %v11920_v36  ;;  %v3095_v55 = vsel %vm2058_vm6, %v3093_v38, %v3094_v8  ;;  %v3100_v38 = vrot.slane %v13853_v44, 1  ;;  %v3105_v8 = vrot.slane %v13879_v22, 1 }
 0x3e1   : > { %v9925_v27 = vpop.f32.mrb[12].mxu1  ;;  %10877 = vmatprep.subr.bf16.mxu0 %v11921_v29 }
 0x3e2   : > { %v9926_v56 = vpop.f32.mrb[13].mxu1  ;;  %v9907_v10 = vpop.f32.mrb[20].mxu0 }
 0x3e3   : > { %v14032_v25 = vadd.f32 %v9926_v56, %v9925_v27  ;;  %v9928_v50 = vpop.f32.mrb[14].mxu1  ;;  %v9908_v40 = vpop.f32.mrb[21].mxu0  ;;  %v3096_v27 = vrot.slane %v13825_v35, 1 }
 0x3e4   : > { %v9929_v49 = vpop.f32.mrb[15].mxu1  ;;  %v14035_v46 = vadd.f32 %v9908_v40, %v9907_v10  ;;  %v9910_v57 = vpop.f32.mrb[22].mxu0  ;;  %10878 = vmatpush3.bf16.msra.mxu0 %v11921_v29  ;;  %v3099_v10 = vrot.slane %v13843_v48, 1  ;;  %v3097_v40 = vrot.slane %v13835_v42, 1 }
 0x3e5   : > { %v14038_v36 = vadd.f32 %v9929_v49, %v9928_v50  ;;  %v9911_v7 = vpop.f32.mrb[23].mxu0  ;;  %10879 = vmatprep.subr.bf16.mxu0 %v11922_v0 }
 0x3e6   : > { %v14041_v24 = vadd.f32 %v9911_v7, %v9910_v57  ;;  %v3098_v49 = vsel %vm2058_vm6, %v3096_v27, %v3097_v40  ;;  %v3101_v35 = vsel %vm2058_vm6, %v3099_v10, %v3100_v38  ;;  %v3108_v27 = vrot.slane %v13897_v15, 1 }
 0x3e7   : > { %10848 = vmatmul.mubr.bf16.gmra.mrb[32].mxu0 %v3092_v60 }
 0x3e8   : > { %10851 = vmatprep.mubr.bf16.mxu0 %v3095_v55  ;;  %10880 = vmatpush3.bf16.msra.mxu0 %v11922_v0  ;;  %v11925_v0 = vld [vmem:[#allocation7 + $0x238] sm:$0xff]   ;;  %v3106_v55 = vrot.slane %v13889_v54, 1  ;;  %v3112_v54 = vrot.slane %v13925_v31, 1  ;;  %v3118_v31 = vrot.slane %v13963_v28, 1 }
 0x3e9   : > { %v9931_v13 = vpop.f32.mrb[16].mxu1  ;;  %10881 = vmatprep.subr.bf16.mxu0 %v11923_v17  ;;  %v12365_v28 = vld [vmem:[#allocation2 + $0x20] ss:$0 sps:$4 sm:$0x11]  }
 0x3ea   : > { %v9932_v29 = vpop.f32.mrb[17].mxu1 }
 0x3eb   : > { %v14046_v56 = vadd.f32 %v9932_v29, %v9931_v13  ;;  %v9934_v11 = vpop.f32.mrb[18].mxu1 }
 0x3ec   : > { %v9935_v50 = vpop.f32.mrb[19].mxu1  ;;  %10882 = vmatpush3.bf16.msra.mxu0 %v11923_v17  ;;  %v3103_v17 = vrot.slane %v13871_v14, 1  ;;  %v3111_v14 = vrot.slane %v13915_v33, 1 }
 0x3ed   : > { %v14050_v39 = vadd.f32 %v9935_v50, %v9934_v11  ;;  %10883 = vmatprep.subr.bf16.mxu0 %v11924_v18  ;;  %v3109_v50 = vrot.slane %v13907_v4, 1 }
 0x3ee   : > { %v3104_v13 = vsel %vm2058_vm6, %v3102_v9, %v3103_v17  ;;  %v3115_v9 = vrot.slane %v13943_v52, 1 }
 0x3ef   : > { %10852 = vmatmul.mubr.bf16.gmra.mrb[36].mxu0 %v3098_v49  ;;  %v3110_v38 = vsel %vm2058_vm6, %v3108_v27, %v3109_v50 }
 0x3f0   : > { %10855 = vmatprep.mubr.bf16.mxu0 %v3101_v35  ;;  %10884 = vmatpush3.bf16.msra.mxu0 %v11924_v18  ;;  %v3107_v18 = vsel %vm2058_vm6, %v3105_v8, %v3106_v55  ;;  %v3114_v35 = vrot.slane %v13933_v32, 1  ;;  %v3120_v55 = vrot.slane %v13969_v20, 1 }
 0x3f1   : > { %v9937_v57 = vpop.f32.mrb[20].mxu1  ;;  %10885 = vmatprep.subr.bf16.mxu0 %v11925_v0 }
 0x3f2   : > { %v9938_v48 = vpop.f32.mrb[21].mxu1  ;;  %v3116_v8 = vsel %vm2058_vm6, %v3114_v35, %v3115_v9  ;;  %v4094_v9 = vrot.slane %v13739_v59, 1  ;;  %v4100_v59 = vrot.slane %v13776_v30, 1  ;;  %v4106_v30 = vrot.slane %v13814_v26, 1  ;;  %v14132_v26 = vld [vmem:[%s16416_s6] ss:$0 sm:$0xff] }
 0x3f3   : > { %v14056_v42 = vadd.f32 %v9938_v48, %v9937_v57  ;;  %v9940_v7 = vpop.f32.mrb[22].mxu1  ;;  %v3117_v48 = vrot.slane %v13951_v5, 1 }
 0x3f4   : > { %v9941_v44 = vpop.f32.mrb[23].mxu1  ;;  %10886 = vmatpush3.bf16.msra.mxu0 %v11925_v0  ;;  %v3113_v0 = vsel %vm2058_vm6, %v3111_v14, %v3112_v54  ;;  %v12366_v54 = vld [vmem:[#allocation2 + $0x24] sm:$0xff]  }
 0x3f5   : > { %v14060_v60 = vadd.f32 %v9941_v44, %v9940_v7  ;;  %v3119_v44 = vsel %vm2058_vm6, %v3117_v48, %v3118_v31 }
 0x3f7   : > { %10856 = vmatmul.mubr.bf16.gmra.mrb[40].mxu0 %v3104_v13 }
 0x3f8   : > { %10859 = vmatprep.mubr.bf16.mxu0 %v3107_v18  ;;  %v12364_v18 = vld [vmem:[#allocation2 + $0x18] sm:$0xff]  }
 0x3f9   : > { %v9943_v12 = vpop.f32.mrb[24].mxu1 }
 0x3fa   : > { %v9944_v29 = vpop.f32.mrb[25].mxu1 }
 0x3fb   : > { %v14066_v11 = vadd.f32 %v9944_v29, %v9943_v12  ;;  %v9946_v22 = vpop.f32.mrb[26].mxu1  ;;  %v4087_v12 = vrot.slane %v12364_v18, 1  ;;  %v3121_v29 = vrot.slane %v13981_v58, 1  ;;  %v4099_v18 = vrot.slane %v13764_v61, 1 }
 0x3fc   : > { %v9947_v10 = vpop.f32.mrb[27].mxu1 }
 0x3fd   : > { %v14070_v40 = vadd.f32 %v9947_v10, %v9946_v22  ;;  %v4088_v22 = vrot.slane %v12365_v28, 1  ;;  %v3122_v14 = vsel %vm2058_vm6, %v3120_v55, %v3121_v29 }
 0x3ff   : > { %10860 = vmatmul.mubr.bf16.gmra.mrb[44].mxu0 %v3110_v38  ;;  %v4089_v10 = vsel %vm2058_vm6, %v4087_v12, %v4088_v22  ;;  %v4090_v38 = vrot.slane %v12366_v54, 1  ;;  %v4101_v22 = vsel %vm2058_vm6, %v4099_v18, %v4100_v59  ;;  %v4103_v54 = vrot.slane %v13794_v47, 1  ;;  %v4700_v47 = vld [vmem:[%s16417_s7 + $0x10] sm:$0xff] }
 0x400   : > { %10863 = vmatprep.mubr.bf16.mxu0 %v3113_v0 }
 0x401   : > { %v9949_v49 = vpop.f32.mrb[28].mxu1 }
 0x402   : > { %v9950_v15 = vpop.f32.mrb[29].mxu1 }
 0x403   : > { %v14076_v57 = vadd.f32 %v9950_v15, %v9949_v49  ;;  %v9952_v33 = vpop.f32.mrb[30].mxu1  ;;  %v12367_v15 = vld [vmem:[#allocation2 + $0x30] sm:$0xff]  }
 0x404   : > { %v9953_v4 = vpop.f32.mrb[31].mxu1  ;;  %v4093_v35 = vrot.slane %v12367_v15, 1 }
 0x405   : > { %v14080_v7 = vadd.f32 %v9953_v4, %v9952_v33  ;;  %v12368_v33 = vld [vmem:[#allocation2 + $0x2c] ss:$0 sps:$4 sm:$0x11]  }
 0x406   : > { %v4091_v48 = vrot.slane %v12368_v33, 1  ;;  %v4701_v33 = vld [vmem:[%s16417_s7 + $0x18] sm:$0xff] }
 0x407   : > { %10864 = vmatmul.mubr.bf16.gmra.mrb[48].mxu0 %v3116_v8  ;;  %v4095_v8 = vsel %vm2058_vm6, %v4093_v35, %v4094_v9 }
 0x408   : > { %10867 = vmatprep.mubr.bf16.mxu0 %v3119_v44  ;;  %v4092_v31 = vsel %vm2058_vm6, %v4090_v38, %v4091_v48 }
 0x409   : > { %v9955_v17 = vpop.f32.mrb[32].mxu1 }
 0x40a   : > { %v9956_v32 = vpop.f32.mrb[33].mxu1 }
 0x40b   : > { %v14086_v13 = vadd.f32 %v9956_v32, %v9955_v17  ;;  %v9958_v5 = vpop.f32.mrb[34].mxu1  ;;  %v4096_v32 = vrot.slane %v13745_v51, 1 }
 0x40c   : > { %v9959_v52 = vpop.f32.mrb[35].mxu1 }
 0x40d   : > { %v14089_v27 = vadd.f32 %v9959_v52, %v9958_v5  ;;  %v4097_v52 = vrot.slane %v13758_v34, 1 }
 0x40f   : > { %10868 = vmatmul.mubr.bf16.gmra.mrb[52].mxu0 %v3122_v14  ;;  %v4098_v28 = vsel %vm2058_vm6, %v4096_v32, %v4097_v52  ;;  %v16508_v52 = vld [vmem:[#allocation18_spill] sm:$0xff] }
 0x410   : > { %10887 = vmatprep.mubr.bf16.mxu0 %v4089_v10  ;;  %v4102_v10 = vrot.slane %v13782_v62, 1  ;;  %v4698_v62 = vld [vmem:[%s16417_s7] sm:$0xff]  ;;  %v11237_v59 = vadd.f32 %v16508_v52, %v14132_v26  ;;  %v16513_v52 = vld [vmem:[#allocation24_spill] sm:$0xff] }
 0x411   : > { %v9961_v50 = vpop.f32.mrb[36].mxu1 }
 0x412   : > { %v9962_v20 = vpop.f32.mrb[37].mxu1 }
 0x413   : > { %v14093_v0 = vadd.f32 %v9962_v20, %v9961_v50  ;;  %v9964_v49 = vpop.f32.mrb[38].mxu1  ;;  %v4105_v20 = vrot.slane %v13800_v19, 1  ;;  %v4699_v19 = vld [vmem:[%s16417_s7 + $0x8] sm:$0xff] }
 0x414   : > { %v9965_v58 = vpop.f32.mrb[39].mxu1 }
 0x415   : > { %v14095_v4 = vadd.f32 %v9965_v58, %v9964_v49  ;;  %v4104_v49 = vsel %vm2058_vm6, %v4102_v10, %v4103_v54  ;;  %v4107_v15 = vsel %vm2058_vm6, %v4105_v20, %v4106_v30  ;;  %v11188_v58 = vpack.c.bf16 %v4699_v19, %v4698_v62  ;;  %v4702_v20 = vld [vmem:[%s16417_s7 + $0x20] sm:$0xff]  ;;  %v16512_v62 = vld [vmem:[#allocation19_spill] sm:$0xff] }
 0x416   : > { %v11245_v19 = vadd.f32 %v16512_v62, %v14132_v26 }
 0x417   : > { %10888 = vmatmul.mubr.bf16.vlgmr.msra.gmra.mrb[24].mxu0 %v4092_v31  ;;  %v16506_v31 = vld [vmem:[#allocation20_spill] sm:$0xff]  ;;  %11189 = vmatpush3.bf16.msra.mxu1 %v11188_v58 }
 0x418   : > { %10891 = vmatprep.mubr.bf16.mxu0 %v4095_v8  ;;  %v4108_v8 = vrot.slane %v16506_v31, 1 }
 0x419   : > { %v9967_v44 = vpop.f32.mrb[40].mxu1 }
 0x41a   : > { %v9968_v17 = vpop.f32.mrb[41].mxu1 }
 0x41b   : > { %v14101_v55 = vadd.f32 %v9968_v17, %v9967_v44  ;;  %v9970_v5 = vpop.f32.mrb[42].mxu1 }
 0x41c   : > { %v9971_v12 = vpop.f32.mrb[43].mxu1 }
 0x41d   : > { %v14105_v29 = vadd.f32 %v9971_v12, %v9970_v5  ;;  %v16507_v5 = vld [vmem:[#allocation22_spill] sm:$0xff]  ;;  %v11191_v12 = vpack.c.bf16 %v4701_v33, %v4700_v47 }
 0x41e   : > { %v4111_v18 = vrot.slane %v16507_v5, 1 }
 0x41f   : > { %10892 = vmatmul.mubr.bf16.gmra.mrb[28].mxu0 %v4098_v28 }
 0x420   : > { %10895 = vmatprep.mubr.bf16.mxu0 %v4101_v22 }
 0x421   : > { %v9973_v14 = vpop.f32.mrb[44].mxu1 }
 0x422   : > { %v9974_v51 = vpop.f32.mrb[45].mxu1 }
 0x423   : > { %v14111_v50 = vadd.f32 %v9974_v51, %v9973_v14  ;;  %v9976_v61 = vpop.f32.mrb[46].mxu1  ;;  %v16509_v51 = vld [vmem:[#allocation21_spill] sm:$0xff] }
 0x424   : > { %v9977_v34 = vpop.f32.mrb[47].mxu1  ;;  %v4109_v10 = vrot.slane %v16509_v51, 1  ;;  %v16514_v51 = vld [vmem:[#allocation26_spill] sm:$0xff] }
 0x425   : > { %v14115_v38 = vadd.f32 %v9977_v34, %v9976_v61  ;;  %v16510_v61 = vmov 0.0|0.0   ;;  %v4703_v34 = vld [vmem:[%s16417_s7 + $0x28] sm:$0xff] }
 0x426   : > { %11190 = vmatprep.subr.bf16.mxu1 %v16510_v61  ;;  %v4110_v58 = vsel %vm2058_vm6, %v4108_v8, %v4109_v10 }
 0x427   : > { %10896 = vmatmul.mubr.bf16.gmra.mrb[32].mxu0 %v4104_v49  ;;  %v16511_v49 = vld [vmem:[#allocation23_spill] sm:$0xff]  ;;  %11192 = vmatpush3.bf16.msra.mxu1 %v11191_v12  ;;  %v11233_v12 = vadd.f32 %v13989_v37, %v14132_v26 }
 0x428   : > { %10899 = vmatprep.mubr.bf16.mxu0 %v4107_v15  ;;  %v4112_v15 = vrot.slane %v16511_v49, 1  ;;  %11193 = vmatprep.subr.bf16.mxu1 %v16510_v61 }
 0x429   : > { %v10155_v35 = vpop.f32.mrb[48].mxu1 }
 0x42a   : > { %v10156_v48 = vpop.f32.mrb[49].mxu1  ;;  %v10019_v9 = vpop.f32.mrb[56].mxu0  ;;  %v4113_v33 = vsel %vm2058_vm6, %v4111_v18, %v4112_v15  ;;  %v4117_v18 = vrot.slane %v16514_v51, 1 }
 0x42b   : > { %v10157_v44 = vadd.f32 %v10156_v48, %v10155_v35  ;;  %v10158_v17 = vpop.f32.mrb[50].mxu1  ;;  %v10020_v32 = vpop.f32.mrb[57].mxu0  ;;  %v11194_v48 = vpack.c.bf16 %v4703_v34, %v4702_v20  ;;  %v16515_v34 = vld [vmem:[#allocation25_spill] sm:$0xff] }
 0x42c   : > { %v10159_v28 = vpop.f32.mrb[51].mxu1  ;;  %v10021_v22 = vadd.f32 %v10020_v32, %v10019_v9  ;;  %v10022_v14 = vpop.f32.mrb[58].mxu0 }
 0x42d   : > { %v10160_v54 = vadd.f32 %v10159_v28, %v10158_v17  ;;  %v10023_v30 = vpop.f32.mrb[59].mxu0  ;;  %v4114_v28 = vrot.slane %v16513_v52, 1  ;;  %11195 = vmatpush3.bf16.msra.mxu1 %v11194_v48 }
 0x42e   : > { %v11238_v47 = vadd.f32 %v11237_v59, %v10021_v22  ;;  %v10024_v35 = vadd.f32 %v10023_v30, %v10022_v14  ;;  %v4115_v30 = vrot.slane %v16515_v34, 1  ;;  %11196 = vmatprep.subr.bf16.mxu1 %v16510_v61 }
 0x42f   : > { %10900 = vmatmul.mubr.bf16.gmra.mrb[36].mxu0 %v4110_v58 }
 0x430   : > { %v11246_v9 = vadd.f32 %v11245_v19, %v10024_v35  ;;  %10903 = vmatprep.mubr.bf16.mxu0 %v4113_v33  ;;  %v14155_v31 = vadd.f32 %v11238_v47, %v10157_v44  ;;  %v11241_v19 = vadd.f32 %v13995_v41, %v14132_v26  ;;  %v4116_v58 = vsel %vm2058_vm6, %v4114_v28, %v4115_v30 }
 0x431   : > { %v10161_v17 = vpop.f32.mrb[52].mxu1  ;;  %v11253_v28 = vadd.f32 %v14001_v1, %v14132_v26 }
 0x432   : > { %v10162_v32 = vpop.f32.mrb[53].mxu1  ;;  %v10025_v5 = vpop.f32.mrb[60].mxu0  ;;  %v14158_v59 = vadd.f32 %v11246_v9, %v10160_v54  ;;  %v16516_v54 = vld [vmem:[#allocation27_spill] sm:$0xff] }
 0x433   : > { %v10163_v22 = vadd.f32 %v10162_v32, %v10161_v17  ;;  %v10164_v8 = vpop.f32.mrb[54].mxu1  ;;  %v10026_v14 = vpop.f32.mrb[61].mxu0  ;;  %v4118_v62 = vrot.slane %v16516_v54, 1  ;;  %v16520_v54 = vld [vmem:[#allocation31_spill] sm:$0xff] }
 0x434   : > { %v10165_v10 = vpop.f32.mrb[55].mxu1  ;;  %v10027_v20 = vadd.f32 %v10026_v14, %v10025_v5  ;;  %v10028_v44 = vpop.f32.mrb[62].mxu0  ;;  %v16517_v5 = vld [vmem:[#allocation28_spill] sm:$0xff] }
 0x435   : > { %v10166_v49 = vadd.f32 %v10165_v10, %v10164_v8  ;;  %v10029_v15 = vpop.f32.mrb[63].mxu0  ;;  %v4119_v37 = vsel %vm2058_vm6, %v4117_v18, %v4118_v62  ;;  %v4120_v52 = vrot.slane %v16517_v5, 1  ;;  %v4124_v62 = vrot.slane %v16520_v54, 1 }
 0x436   : > { %v11234_v47 = vadd.f32 %v11233_v12, %v10027_v20  ;;  %v10030_v35 = vadd.f32 %v10029_v15, %v10028_v44  ;;  %v16518_v12 = vld [vmem:[#allocation30_spill] sm:$0xff] }
 0x437   : > { %10904 = vmatmul.mubr.bf16.gmra.mrb[40].mxu0 %v4116_v58  ;;  %v4123_v10 = vrot.slane %v16518_v12, 1 }
 0x438   : > { %v11242_v33 = vadd.f32 %v11241_v19, %v10030_v35  ;;  %10907 = vmatprep.mubr.bf16.mxu0 %v4119_v37  ;;  %v14170_v48 = vadd.f32 %v11234_v47, %v10163_v22  ;;  %v16519_v22 = vld [vmem:[#allocation29_spill] sm:$0xff] }
 0x439   : > { %v10167_v9 = vpop.f32.mrb[56].mxu1  ;;  %v4121_v34 = vrot.slane %v16519_v22, 1  ;;  %v4125_v58 = vsel %vm2058_vm6, %v4123_v10, %v4124_v62 }
 0x43a   : > { %v10168_v17 = vpop.f32.mrb[57].mxu1  ;;  %v10031_v32 = vpop.f32.mrb[64].mxu0  ;;  %v14173_v8 = vadd.f32 %v11242_v33, %v10166_v49  ;;  %v11261_v49 = vadd.f32 %v14006_v6, %v14132_v26 }
 0x43b   : > { %v10169_v14 = vadd.f32 %v10168_v17, %v10167_v9  ;;  %v10170_v41 = vpop.f32.mrb[58].mxu1  ;;  %v10032_v51 = vpop.f32.mrb[65].mxu0  ;;  %v4122_v35 = vsel %vm2058_vm6, %v4120_v52, %v4121_v34  ;;  %v11249_v52 = vadd.f32 %v14023_v43, %v14132_v26 }
 0x43c   : > { %v10171_v18 = vpop.f32.mrb[59].mxu1  ;;  %v10033_v20 = vadd.f32 %v10032_v51, %v10031_v32  ;;  %v10034_v44 = vpop.f32.mrb[66].mxu0  ;;  %v16521_v32 = vld [vmem:[#allocation32_spill] sm:$0xff] }
 0x43d   : > { %v10172_v30 = vadd.f32 %v10171_v18, %v10170_v41  ;;  %v10035_v15 = vpop.f32.mrb[67].mxu0  ;;  %v4126_v5 = vrot.slane %v16521_v32, 1 }
 0x43e   : > { %v11254_v19 = vadd.f32 %v11253_v28, %v10033_v20  ;;  %v10036_v47 = vadd.f32 %v10035_v15, %v10034_v44  ;;  %v4129_v28 = vrot.slane %v13947_v63, 1  ;;  %v16523_v15 = vld [vmem:[#allocation34_spill] sm:$0xff] }
 0x43f   : > { %10908 = vmatmul.mubr.bf16.gmra.mrb[44].mxu0 %v4122_v35  ;;  %v4130_v54 = vrot.slane %v16523_v15, 1  ;;  %v16524_v35 = vld [vmem:[#allocation35_spill] sm:$0xff] }
 0x440   : > { %v11262_v1 = vadd.f32 %v11261_v49, %v10036_v47  ;;  %10911 = vmatprep.mubr.bf16.mxu0 %v4125_v58  ;;  %v14184_v37 = vadd.f32 %v11254_v19, %v10169_v14  ;;  %v16522_v14 = vld [vmem:[#allocation33_spill] sm:$0xff]  ;;  %v4132_v47 = vrot.slane %v13961_v3, 1  ;;  %v4133_v58 = vrot.slane %v16524_v35, 1 }
 0x441   : > { %v10173_v33 = vpop.f32.mrb[60].mxu1  ;;  %v4127_v44 = vrot.slane %v16522_v14, 1  ;;  %v4131_v63 = vsel %vm2058_vm6, %v4129_v28, %v4130_v54 }
 0x442   : > { %v10174_v9 = vpop.f32.mrb[61].mxu1  ;;  %v10037_v17 = vpop.f32.mrb[68].mxu0  ;;  %v14187_v41 = vadd.f32 %v11262_v1, %v10172_v30  ;;  %v11257_v30 = vadd.f32 %v14027_v23, %v14132_v26  ;;  %v4134_v3 = vsel %vm2058_vm6, %v4132_v47, %v4133_v58 }
 0x443   : > { %v10175_v51 = vadd.f32 %v10174_v9, %v10173_v33  ;;  %v10176_v6 = vpop.f32.mrb[62].mxu1  ;;  %v10038_v12 = vpop.f32.mrb[69].mxu0  ;;  %v4128_v19 = vsel %vm2058_vm6, %v4126_v5, %v4127_v44  ;;  %v11269_v5 = vadd.f32 %v14035_v46, %v14132_v26 }
 0x444   : > { %v10177_v10 = vpop.f32.mrb[63].mxu1  ;;  %v10039_v18 = vadd.f32 %v10038_v12, %v10037_v17  ;;  %v10040_v20 = vpop.f32.mrb[70].mxu0 }
 0x445   : > { %v10178_v22 = vadd.f32 %v10177_v10, %v10176_v6  ;;  %v10041_v34 = vpop.f32.mrb[71].mxu0 }
 0x446   : > { %v11250_v62 = vadd.f32 %v11249_v52, %v10039_v18  ;;  %v10042_v49 = vadd.f32 %v10041_v34, %v10040_v20 }
 0x447   : > { %10912 = vmatmul.mubr.bf16.gmra.mrb[48].mxu0 %v4128_v19 }
 0x448   : > { %v11258_v43 = vadd.f32 %v11257_v30, %v10042_v49  ;;  %10915 = vmatprep.mubr.bf16.mxu0 %v4131_v63  ;;  %v14200_v1 = vadd.f32 %v11250_v62, %v10175_v51  ;;  %v11277_v51 = vadd.f32 %v14041_v24, %v14132_v26  ;;  %v11265_v63 = vadd.f32 %v13993_v2, %v14132_v26 }
 0x449   : > { %v10179_v33 = vpop.f32.mrb[64].mxu1 }
 0x44a   : > { %v10180_v9 = vpop.f32.mrb[65].mxu1  ;;  %v10043_v17 = vpop.f32.mrb[72].mxu0  ;;  %v14202_v32 = vadd.f32 %v11258_v43, %v10178_v22 }
 0x44b   : > { %v10181_v23 = vadd.f32 %v10180_v9, %v10179_v33  ;;  %v10182_v6 = vpop.f32.mrb[66].mxu1  ;;  %v10044_v12 = vpop.f32.mrb[73].mxu0  ;;  %v11273_v33 = vadd.f32 %v13999_v21, %v14132_v26 }
 0x44c   : > { %v10183_v28 = vpop.f32.mrb[67].mxu1  ;;  %v10045_v52 = vadd.f32 %v10044_v12, %v10043_v17  ;;  %v10046_v10 = vpop.f32.mrb[74].mxu0 }
 0x44d   : > { %v10184_v18 = vadd.f32 %v10183_v28, %v10182_v6  ;;  %v10047_v20 = vpop.f32.mrb[75].mxu0 }
 0x44e   : > { %v11270_v14 = vadd.f32 %v11269_v5, %v10045_v52  ;;  %v10048_v44 = vadd.f32 %v10047_v20, %v10046_v10 }
 0x44f   : > { %10916 = vmatmul.mubr.bf16.gmra.mrb[52].mxu0 %v4134_v3 }
 0x450   : > { %v11278_v22 = vadd.f32 %v11277_v51, %v10048_v44  ;;  %v14209_v34 = vadd.f32 %v11270_v14, %v10181_v23 }
 0x451   : > { %v10185_v15 = vpop.f32.mrb[68].mxu1 }
 0x452   : > { %v10186_v54 = vpop.f32.mrb[69].mxu1  ;;  %v10049_v30 = vpop.f32.mrb[76].mxu0  ;;  %v14211_v46 = vadd.f32 %v11278_v22, %v10184_v18  ;;  %v11285_v18 = vadd.f32 %v14004_v16, %v14132_v26  ;;  %v11293_v22 = vadd.f32 %v14012_v45, %v14132_v26 }
 0x453   : > { %v10187_v62 = vadd.f32 %v10186_v54, %v10185_v15  ;;  %v10188_v49 = vpop.f32.mrb[70].mxu1  ;;  %v10050_v19 = vpop.f32.mrb[77].mxu0 }
 0x454   : > { %v10189_v43 = vpop.f32.mrb[71].mxu1  ;;  %v10051_v47 = vadd.f32 %v10050_v19, %v10049_v30  ;;  %v10052_v24 = vpop.f32.mrb[78].mxu0 }
 0x455   : > { %v10190_v35 = vadd.f32 %v10189_v43, %v10188_v49  ;;  %v10053_v58 = vpop.f32.mrb[79].mxu0 }
 0x456   : > { %v11266_v9 = vadd.f32 %v11265_v63, %v10051_v47  ;;  %v10054_v17 = vadd.f32 %v10053_v58, %v10052_v24 }
 0x458   : > { %v11274_v23 = vadd.f32 %v11273_v33, %v10054_v17  ;;  %v14217_v6 = vadd.f32 %v11266_v9, %v10187_v62 }
 0x459   : > { %v10191_v12 = vpop.f32.mrb[72].mxu1 }
 0x45a   : > { %v10192_v5 = vpop.f32.mrb[73].mxu1  ;;  %v10055_v28 = vpop.f32.mrb[80].mxu0  ;;  %v14219_v52 = vadd.f32 %v11274_v23, %v10190_v35  ;;  %v11281_v35 = vadd.f32 %v14032_v25, %v14132_v26  ;;  %v11289_v23 = vadd.f32 %v14038_v36, %v14132_v26 }
 0x45b   : > { %v10193_v10 = vadd.f32 %v10192_v5, %v10191_v12  ;;  %v10194_v2 = vpop.f32.mrb[74].mxu1  ;;  %v10056_v3 = vpop.f32.mrb[81].mxu0 }
 0x45c   : > { %v10195_v20 = vpop.f32.mrb[75].mxu1  ;;  %v10057_v51 = vadd.f32 %v10056_v3, %v10055_v28  ;;  %v10058_v14 = vpop.f32.mrb[82].mxu0 }
 0x45d   : > { %v10196_v21 = vadd.f32 %v10195_v20, %v10194_v2  ;;  %v10059_v44 = vpop.f32.mrb[83].mxu0 }
 0x45e   : > { %v11286_v15 = vadd.f32 %v11285_v18, %v10057_v51  ;;  %v10060_v54 = vadd.f32 %v10059_v44, %v10058_v14 }
 0x460   : > { %v11294_v30 = vadd.f32 %v11293_v22, %v10060_v54  ;;  %v14225_v62 = vadd.f32 %v11286_v15, %v10193_v10 }
 0x461   : > { %v10197_v49 = vpop.f32.mrb[76].mxu1 }
 0x462   : > { %v10198_v19 = vpop.f32.mrb[77].mxu1  ;;  %v10061_v63 = vpop.f32.mrb[84].mxu0  ;;  %v14227_v43 = vadd.f32 %v11294_v30, %v10196_v21  ;;  %v11301_v21 = vadd.f32 %v14046_v56, %v14132_v26  ;;  %v11309_v30 = vadd.f32 %v14050_v39, %v14132_v26  ;;  %v4704_v39 = vld [vmem:[%s16417_s7 + $0x30] sm:$0xff] }
 0x463   : > { %v10199_v47 = vadd.f32 %v10198_v19, %v10197_v49  ;;  %v10200_v16 = vpop.f32.mrb[78].mxu1  ;;  %v10062_v24 = vpop.f32.mrb[85].mxu0 }
 0x464   : > { %v10201_v58 = vpop.f32.mrb[79].mxu1  ;;  %v10063_v33 = vadd.f32 %v10062_v24, %v10061_v63  ;;  %v10064_v9 = vpop.f32.mrb[86].mxu0 }
 0x465   : > { %v10202_v45 = vadd.f32 %v10201_v58, %v10200_v16  ;;  %v10065_v17 = vpop.f32.mrb[87].mxu0 }
 0x466   : > { %v11282_v12 = vadd.f32 %v11281_v35, %v10063_v33  ;;  %v10066_v5 = vadd.f32 %v10065_v17, %v10064_v9 }
 0x468   : > { %v11290_v28 = vadd.f32 %v11289_v23, %v10066_v5  ;;  %v14233_v10 = vadd.f32 %v11282_v12, %v10199_v47  ;;  %v4705_v5 = vld [vmem:[%s16417_s7 + $0x38] sm:$0xff] }
 0x469   : > { %v10203_v2 = vpop.f32.mrb[80].mxu1 }
 0x46a   : > { %v10204_v3 = vpop.f32.mrb[81].mxu1  ;;  %v10067_v18 = vpop.f32.mrb[88].mxu0  ;;  %v14235_v20 = vadd.f32 %v11290_v28, %v10202_v45  ;;  %v11297_v45 = vadd.f32 %v14056_v42, %v14132_v26 }
 0x46b   : > { %v10205_v51 = vadd.f32 %v10204_v3, %v10203_v2  ;;  %v10206_v25 = vpop.f32.mrb[82].mxu1  ;;  %v10068_v14 = vpop.f32.mrb[89].mxu0  ;;  %v11197_v3 = vpack.c.bf16 %v4705_v5, %v4704_v39 }
 0x46c   : > { %v10207_v44 = vpop.f32.mrb[83].mxu1  ;;  %v10069_v22 = vadd.f32 %v10068_v14, %v10067_v18  ;;  %v10070_v15 = vpop.f32.mrb[90].mxu0  ;;  %v11305_v18 = vadd.f32 %v14060_v60, %v14132_v26 }
 0x46d   : > { %v10208_v36 = vadd.f32 %v10207_v44, %v10206_v25  ;;  %v10071_v54 = vpop.f32.mrb[91].mxu0  ;;  %11198 = vmatpush3.bf16.msra.mxu1 %v11197_v3 }
 0x46e   : > { %v11302_v49 = vadd.f32 %v11301_v21, %v10069_v22  ;;  %v10072_v19 = vadd.f32 %v10071_v54, %v10070_v15  ;;  %11199 = vmatprep.subr.bf16.mxu1 %v16510_v61 }
 0x470   : > { %v11310_v63 = vadd.f32 %v11309_v30, %v10072_v19  ;;  %v14241_v47 = vadd.f32 %v11302_v49, %v10205_v51  ;;  %v11317_v49 = vadd.f32 %v14066_v11, %v14132_v26 }
 0x471   : > { %v10209_v16 = vpop.f32.mrb[84].mxu1 }
 0x472   : > { %v10210_v24 = vpop.f32.mrb[85].mxu1  ;;  %v10073_v35 = vpop.f32.mrb[92].mxu0  ;;  %v14243_v58 = vadd.f32 %v11310_v63, %v10208_v36 }
 0x473   : > { %v10211_v33 = vadd.f32 %v10210_v24, %v10209_v16  ;;  %v10212_v56 = vpop.f32.mrb[86].mxu1  ;;  %v10074_v9 = vpop.f32.mrb[93].mxu0 }
 0x474   : > { %v10213_v17 = vpop.f32.mrb[87].mxu1  ;;  %v10075_v23 = vadd.f32 %v10074_v9, %v10073_v35  ;;  %v10076_v12 = vpop.f32.mrb[94].mxu0  ;;  %v11325_v35 = vadd.f32 %v14070_v40, %v14132_v26  ;;  %v4706_v40 = vld [vmem:[%s16417_s7 + $0x40] sm:$0xff] }
 0x475   : > { %v10214_v28 = vadd.f32 %v10213_v17, %v10212_v56  ;;  %v10077_v2 = vpop.f32.mrb[95].mxu0 }
 0x476   : > { %v11298_v51 = vadd.f32 %v11297_v45, %v10075_v23  ;;  %v10078_v25 = vadd.f32 %v10077_v2, %v10076_v12  ;;  %v11313_v2 = vadd.f32 %v14076_v57, %v14132_v26 }
 0x478   : > { %v11306_v42 = vadd.f32 %v11305_v18, %v10078_v25  ;;  %v14256_v14 = vadd.f32 %v11298_v51, %v10211_v33  ;;  %v4707_v25 = vld [vmem:[%s16417_s7 + $0x48] sm:$0xff] }
 0x479   : > { %v10215_v21 = vpop.f32.mrb[88].mxu1 }
 0x47a   : > { %v10216_v44 = vpop.f32.mrb[89].mxu1  ;;  %v10079_v22 = vpop.f32.mrb[96].mxu0  ;;  %v14258_v15 = vadd.f32 %v11306_v42, %v10214_v28 }
 0x47b   : > { %v10217_v36 = vadd.f32 %v10216_v44, %v10215_v21  ;;  %v10218_v54 = vpop.f32.mrb[90].mxu1  ;;  %v10080_v30 = vpop.f32.mrb[97].mxu0  ;;  %v11200_v44 = vpack.c.bf16 %v4707_v25, %v4706_v40 }
 0x47c   : > { %v10219_v60 = vpop.f32.mrb[91].mxu1  ;;  %v10081_v19 = vadd.f32 %v10080_v30, %v10079_v22  ;;  %v10082_v63 = vpop.f32.mrb[98].mxu0  ;;  %v11321_v22 = vadd.f32 %v14080_v7, %v14132_v26 }
 0x47d   : > { %v10220_v16 = vadd.f32 %v10219_v60, %v10218_v54  ;;  %v10083_v24 = vpop.f32.mrb[99].mxu0  ;;  %11201 = vmatpush3.bf16.msra.mxu1 %v11200_v44 }
 0x47e   : > { %v11318_v33 = vadd.f32 %v11317_v49, %v10081_v19  ;;  %v10084_v56 = vadd.f32 %v10083_v24, %v10082_v63  ;;  %11202 = vmatprep.subr.bf16.mxu1 %v16510_v61 }
 0x480   : > { %v11326_v9 = vadd.f32 %v11325_v35, %v10084_v56  ;;  %v14264_v45 = vadd.f32 %v11318_v33, %v10217_v36  ;;  %v11333_v33 = vadd.f32 %v14086_v13, %v14132_v26 }
 0x481   : > { %v10221_v17 = vpop.f32.mrb[92].mxu1 }
 0x482   : > { %v10222_v23 = vpop.f32.mrb[93].mxu1  ;;  %v10085_v12 = vpop.f32.mrb[100].mxu0  ;;  %v14266_v39 = vadd.f32 %v11326_v9, %v10220_v16 }
 0x483   : > { %v10223_v5 = vadd.f32 %v10222_v23, %v10221_v17  ;;  %v10224_v11 = vpop.f32.mrb[94].mxu1  ;;  %v10086_v28 = vpop.f32.mrb[101].mxu0 }
 0x484   : > { %v10225_v3 = vpop.f32.mrb[95].mxu1  ;;  %v10087_v18 = vadd.f32 %v10086_v28, %v10085_v12  ;;  %v10088_v51 = vpop.f32.mrb[102].mxu0  ;;  %v11341_v12 = vadd.f32 %v14089_v27, %v14132_v26  ;;  %v4708_v27 = vld [vmem:[%s16417_s7 + $0x50] sm:$0xff] }
 0x485   : > { %v10226_v42 = vadd.f32 %v10225_v3, %v10224_v11  ;;  %v10089_v21 = vpop.f32.mrb[103].mxu0 }
 0x486   : > { %v11314_v36 = vadd.f32 %v11313_v2, %v10087_v18  ;;  %v10090_v54 = vadd.f32 %v10089_v21, %v10088_v51  ;;  %v11329_v21 = vadd.f32 %v14093_v0, %v14132_v26 }
 0x488   : > { %v11322_v57 = vadd.f32 %v11321_v22, %v10090_v54  ;;  %v14279_v30 = vadd.f32 %v11314_v36, %v10223_v5  ;;  %v4709_v54 = vld [vmem:[%s16417_s7 + $0x58] sm:$0xff] }
 0x489   : > { %v10227_v49 = vpop.f32.mrb[96].mxu1 }
 0x48a   : > { %v10228_v60 = vpop.f32.mrb[97].mxu1  ;;  %v10091_v19 = vpop.f32.mrb[104].mxu0  ;;  %v14281_v63 = vadd.f32 %v11322_v57, %v10226_v42 }
 0x48b   : > { %v10229_v16 = vadd.f32 %v10228_v60, %v10227_v49  ;;  %v10230_v24 = vpop.f32.mrb[98].mxu1  ;;  %v10092_v35 = vpop.f32.mrb[105].mxu0  ;;  %v11203_v60 = vpack.c.bf16 %v4709_v54, %v4708_v27 }
 0x48c   : > { %v10231_v7 = vpop.f32.mrb[99].mxu1  ;;  %v10093_v56 = vadd.f32 %v10092_v35, %v10091_v19  ;;  %v10094_v9 = vpop.f32.mrb[106].mxu0  ;;  %v11337_v19 = vadd.f32 %v14095_v4, %v14132_v26 }
 0x48d   : > { %v10232_v17 = vadd.f32 %v10231_v7, %v10230_v24  ;;  %v10095_v23 = vpop.f32.mrb[107].mxu0  ;;  %11204 = vmatpush3.bf16.msra.mxu1 %v11203_v60 }
 0x48e   : > { %v11334_v5 = vadd.f32 %v11333_v33, %v10093_v56  ;;  %v10096_v11 = vadd.f32 %v10095_v23, %v10094_v9  ;;  %11205 = vmatprep.subr.bf16.mxu1 %v16510_v61 }
 0x490   : > { %v11342_v28 = vadd.f32 %v11341_v12, %v10096_v11  ;;  %v14287_v2 = vadd.f32 %v11334_v5, %v10229_v16  ;;  %v11349_v5 = vadd.f32 %v14101_v55, %v14132_v26 }
 0x491   : > { %v10233_v3 = vpop.f32.mrb[100].mxu1 }
 0x492   : > { %v10234_v18 = vpop.f32.mrb[101].mxu1  ;;  %v10097_v51 = vpop.f32.mrb[108].mxu0  ;;  %v14289_v40 = vadd.f32 %v11342_v28, %v10232_v17 }
 0x493   : > { %v10235_v25 = vadd.f32 %v10234_v18, %v10233_v3  ;;  %v10236_v13 = vpop.f32.mrb[102].mxu1  ;;  %v10098_v42 = vpop.f32.mrb[109].mxu0 }
 0x494   : > { %v10237_v44 = vpop.f32.mrb[103].mxu1  ;;  %v10099_v22 = vadd.f32 %v10098_v42, %v10097_v51  ;;  %v10100_v36 = vpop.f32.mrb[110].mxu0  ;;  %v11357_v51 = vadd.f32 %v14105_v29, %v14132_v26  ;;  %v4710_v29 = vld [vmem:[%s16417_s7 + $0x60] sm:$0xff] }
 0x495   : > { %v10238_v57 = vadd.f32 %v10237_v44, %v10236_v13  ;;  %v10101_v49 = vpop.f32.mrb[111].mxu0 }
 0x496   : > { %v11330_v16 = vadd.f32 %v11329_v21, %v10099_v22  ;;  %v10102_v24 = vadd.f32 %v10101_v49, %v10100_v36  ;;  %v11345_v49 = vadd.f32 %v14111_v50, %v14132_v26 }
 0x498   : > { %v11338_v0 = vadd.f32 %v11337_v19, %v10102_v24  ;;  %v14301_v35 = vadd.f32 %v11330_v16, %v10235_v25  ;;  %v4711_v24 = vld [vmem:[%s16417_s7 + $0x68] sm:$0xff] }
 0x499   : > { %v10239_v33 = vpop.f32.mrb[104].mxu1 }
 0x49a   : > { %v10240_v7 = vpop.f32.mrb[105].mxu1  ;;  %v10103_v56 = vpop.f32.mrb[112].mxu0  ;;  %v14304_v9 = vadd.f32 %v11338_v0, %v10238_v57 }
 0x49b   : > { %v10241_v17 = vadd.f32 %v10240_v7, %v10239_v33  ;;  %v10242_v23 = vpop.f32.mrb[106].mxu1  ;;  %v10104_v12 = vpop.f32.mrb[113].mxu0  ;;  %v11206_v7 = vpack.c.bf16 %v4711_v24, %v4710_v29 }
 0x49c   : > { %v10243_v4 = vpop.f32.mrb[107].mxu1  ;;  %v10105_v11 = vadd.f32 %v10104_v12, %v10103_v56  ;;  %v10106_v28 = vpop.f32.mrb[114].mxu0  ;;  %v11353_v56 = vadd.f32 %v14115_v38, %v14132_v26 }
 0x49d   : > { %v10244_v3 = vadd.f32 %v10243_v4, %v10242_v23  ;;  %v10107_v18 = vpop.f32.mrb[115].mxu0  ;;  %11207 = vmatpush3.bf16.msra.mxu1 %v11206_v7  ;;  %v4712_v4 = vld [vmem:[%s16417_s7 + $0x70] sm:$0xff] }
 0x49e   : > { %v11350_v25 = vadd.f32 %v11349_v5, %v10105_v11  ;;  %v10108_v13 = vadd.f32 %v10107_v18, %v10106_v28  ;;  %11208 = vmatprep.subr.bf16.mxu1 %v16510_v61  ;;  %v4713_v11 = vld [vmem:[%s16417_s7 + $0x78] sm:$0xff] }
 0x49f   : > { %v11209_v28 = vpack.c.bf16 %v4713_v11, %v4712_v4 }
 0x4a0   : > { %v11358_v42 = vadd.f32 %v11357_v51, %v10108_v13  ;;  %v14310_v21 = vadd.f32 %v11350_v25, %v10241_v17 }
 0x4a1   : > { %v10245_v44 = vpop.f32.mrb[108].mxu1  ;;  %11210 = vmatpush3.bf16.msra.mxu1 %v11209_v28 }
 0x4a2   : > { %v10109_v22 = vpop.f32.mrb[116].mxu0  ;;  %v10246_v36 = vpop.f32.mrb[109].mxu1  ;;  %v14312_v27 = vadd.f32 %v11358_v42, %v10244_v3  ;;  %11211 = vmatprep.subr.bf16.mxu1 %v16510_v61 }
 0x4a3   : > { %v10110_v54 = vpop.f32.mrb[117].mxu0  ;;  %v10247_v55 = vadd.f32 %v10246_v36, %v10245_v44  ;;  %v10248_v57 = vpop.f32.mrb[110].mxu1 }
 0x4a4   : > { %v10111_v60 = vadd.f32 %v10110_v54, %v10109_v22  ;;  %v10112_v19 = vpop.f32.mrb[118].mxu0  ;;  %v10249_v16 = vpop.f32.mrb[111].mxu1 }
 0x4a5   : > { %v10113_v0 = vpop.f32.mrb[119].mxu0  ;;  %v10250_v33 = vadd.f32 %v10249_v16, %v10248_v57 }
 0x4a6   : > { %v11346_v17 = vadd.f32 %v11345_v49, %v10111_v60  ;;  %v10114_v23 = vadd.f32 %v10113_v0, %v10112_v19 }
 0x4a8   : > { %v11354_v50 = vadd.f32 %v11353_v56, %v10114_v23  ;;  %v14324_v12 = vadd.f32 %v11346_v17, %v10247_v55 }
 0x4aa   : > { %v14327_v5 = vadd.f32 %v11354_v50, %v10250_v33 }
 0x4ea   : > { %v10889_v38 = vpop.f32.mrb[24].mxu0 }
 0x4eb   : > { %v14337_v26 = vadd.f32 %v14170_v48, %v10889_v38  ;;  %v4539_v3 = vpop.f32.mrb[25].mxu0 }
 0x4ec   : > { %v14340_v18 = vadd.f32 %v14155_v31, %v4539_v3  ;;  %v10890_v51 = vpop.f32.mrb[26].mxu0 }
 0x4ed   : > { %v14343_v25 = vadd.f32 %v14173_v8, %v10890_v51  ;;  %v4542_v13 = vpop.f32.mrb[27].mxu0  ;;  %v4759_v31 = vmul.f32 %v14337_v26, %v14337_v26 }
 0x4ee   : > { %v14346_v42 = vadd.f32 %v14158_v59, %v4542_v13  ;;  %v4757_v44 = vmul.f32 %v14340_v18, %v14340_v18 }
 0x4ef   : > { %v4760_v57 = vmul.f32 %v14343_v25, %v14343_v25 }
 0x4f0   : > { %v4720_v22 = vadd.f32 %v14346_v42, %v14340_v18  ;;  %v4758_v48 = vmul.f32 %v14346_v42, %v14346_v42 }
 0x4f2   : > { %v4721_v36 = vadd.f32 %v14337_v26, %v4720_v22  ;;  %v4789_v8 = vadd.f32 %v4758_v48, %v4757_v44  ;;  %v10893_v54 = vpop.f32.mrb[28].mxu0 }
 0x4f3   : > { %v14358_v55 = vadd.f32 %v14200_v1, %v10893_v54  ;;  %v4555_v59 = vpop.f32.mrb[29].mxu0 }
 0x4f4   : > { %v4790_v49 = vadd.f32 %v4789_v8, %v4759_v31  ;;  %v14363_v60 = vadd.f32 %v14184_v37, %v4555_v59  ;;  %v4722_v19 = vadd.f32 %v14343_v25, %v4721_v36  ;;  %v10894_v16 = vpop.f32.mrb[30].mxu0 }
 0x4f5   : > { %v14367_v29 = vadd.f32 %v14202_v32, %v10894_v16  ;;  %v4558_v24 = vpop.f32.mrb[31].mxu0  ;;  %v4763_v32 = vmul.f32 %v14358_v55, %v14358_v55 }
 0x4f6   : > { %v4723_v0 = vadd.f32 %v14363_v60, %v4722_v19  ;;  %v4761_v1 = vmul.f32 %v14363_v60, %v14363_v60  ;;  %v4791_v33 = vadd.f32 %v4790_v49, %v4760_v57  ;;  %v14373_v7 = vadd.f32 %v14187_v41, %v4558_v24 }
 0x4f7   : > { %v4764_v41 = vmul.f32 %v14367_v29, %v14367_v29 }
 0x4f8   : > { %v4792_v56 = vadd.f32 %v4791_v33, %v4761_v1  ;;  %v4724_v37 = vadd.f32 %v14373_v7, %v4723_v0  ;;  %v4762_v17 = vmul.f32 %v14373_v7, %v14373_v7 }
 0x4fa   : > { %v4725_v23 = vadd.f32 %v14358_v55, %v4724_v37  ;;  %v4793_v50 = vadd.f32 %v4792_v56, %v4762_v17  ;;  %v10897_v4 = vpop.f32.mrb[32].mxu0 }
 0x4fb   : > { %v14382_v11 = vadd.f32 %v14217_v6, %v10897_v4  ;;  %v4571_v28 = vpop.f32.mrb[33].mxu0 }
 0x4fc   : > { %v4794_v38 = vadd.f32 %v4793_v50, %v4763_v32  ;;  %v14387_v3 = vadd.f32 %v14209_v34, %v4571_v28  ;;  %v4726_v51 = vadd.f32 %v14367_v29, %v4725_v23  ;;  %v10898_v13 = vpop.f32.mrb[34].mxu0 }
 0x4fd   : > { %v14391_v44 = vadd.f32 %v14219_v52, %v10898_v13  ;;  %v4574_v22 = vpop.f32.mrb[35].mxu0  ;;  %v4767_v52 = vmul.f32 %v14382_v11, %v14382_v11 }
 0x4fe   : > { %v4727_v48 = vadd.f32 %v14387_v3, %v4726_v51  ;;  %v4765_v6 = vmul.f32 %v14387_v3, %v14387_v3  ;;  %v4795_v31 = vadd.f32 %v4794_v38, %v4764_v41  ;;  %v14397_v36 = vadd.f32 %v14211_v46, %v4574_v22 }
 0x4ff   : > { %v4768_v46 = vmul.f32 %v14391_v44, %v14391_v44 }
 0x500   : > { %v4796_v8 = vadd.f32 %v4795_v31, %v4765_v6  ;;  %v4728_v34 = vadd.f32 %v14397_v36, %v4727_v48  ;;  %v4766_v54 = vmul.f32 %v14397_v36, %v14397_v36 }
 0x502   : > { %v4729_v59 = vadd.f32 %v14382_v11, %v4728_v34  ;;  %v4797_v57 = vadd.f32 %v4796_v8, %v4766_v54  ;;  %v10901_v49 = vpop.f32.mrb[36].mxu0 }
 0x503   : > { %v14406_v19 = vadd.f32 %v14233_v10, %v10901_v49  ;;  %v4587_v16 = vpop.f32.mrb[37].mxu0 }
 0x504   : > { %v4798_v24 = vadd.f32 %v4797_v57, %v4767_v52  ;;  %v14411_v0 = vadd.f32 %v14225_v62, %v4587_v16  ;;  %v4730_v1 = vadd.f32 %v14391_v44, %v4729_v59  ;;  %v10902_v33 = vpop.f32.mrb[38].mxu0 }
 0x505   : > { %v14415_v56 = vadd.f32 %v14235_v20, %v10902_v33  ;;  %v4590_v37 = vpop.f32.mrb[39].mxu0  ;;  %v4771_v20 = vmul.f32 %v14406_v19, %v14406_v19 }
 0x506   : > { %v4731_v17 = vadd.f32 %v14411_v0, %v4730_v1  ;;  %v4769_v10 = vmul.f32 %v14411_v0, %v14411_v0  ;;  %v4799_v32 = vadd.f32 %v4798_v24, %v4768_v46  ;;  %v14421_v23 = vadd.f32 %v14227_v43, %v4590_v37 }
 0x507   : > { %v4772_v43 = vmul.f32 %v14415_v56, %v14415_v56 }
 0x508   : > { %v4800_v50 = vadd.f32 %v4799_v32, %v4769_v10  ;;  %v4732_v62 = vadd.f32 %v14421_v23, %v4731_v17  ;;  %v4770_v4 = vmul.f32 %v14421_v23, %v14421_v23 }
 0x50a   : > { %v4733_v28 = vadd.f32 %v14406_v19, %v4732_v62  ;;  %v4801_v41 = vadd.f32 %v4800_v50, %v4770_v4  ;;  %v10905_v38 = vpop.f32.mrb[40].mxu0 }
 0x50b   : > { %v14430_v51 = vadd.f32 %v14256_v14, %v10905_v38  ;;  %v4603_v13 = vpop.f32.mrb[41].mxu0 }
 0x50c   : > { %v4802_v22 = vadd.f32 %v4801_v41, %v4771_v20  ;;  %v14435_v48 = vadd.f32 %v14241_v47, %v4603_v13  ;;  %v4734_v6 = vadd.f32 %v14415_v56, %v4733_v28  ;;  %v10906_v31 = vpop.f32.mrb[42].mxu0 }
 0x50d   : > { %v14439_v8 = vadd.f32 %v14258_v15, %v10906_v31  ;;  %v4606_v34 = vpop.f32.mrb[43].mxu0  ;;  %v4775_v15 = vmul.f32 %v14430_v51, %v14430_v51 }
 0x50e   : > { %v4735_v54 = vadd.f32 %v14435_v48, %v4734_v6  ;;  %v4773_v14 = vmul.f32 %v14435_v48, %v14435_v48  ;;  %v4803_v52 = vadd.f32 %v4802_v22, %v4772_v43  ;;  %v14445_v59 = vadd.f32 %v14243_v58, %v4606_v34 }
 0x50f   : > { %v4776_v58 = vmul.f32 %v14439_v8, %v14439_v8 }
 0x510   : > { %v4804_v57 = vadd.f32 %v4803_v52, %v4773_v14  ;;  %v4736_v47 = vadd.f32 %v14445_v59, %v4735_v54  ;;  %v4774_v49 = vmul.f32 %v14445_v59, %v14445_v59 }
 0x512   : > { %v4737_v16 = vadd.f32 %v14430_v51, %v4736_v47  ;;  %v4805_v46 = vadd.f32 %v4804_v57, %v4774_v49  ;;  %v10909_v24 = vpop.f32.mrb[44].mxu0 }
 0x513   : > { %v14454_v1 = vadd.f32 %v14279_v30, %v10909_v24  ;;  %v4619_v33 = vpop.f32.mrb[45].mxu0 }
 0x514   : > { %v4806_v37 = vadd.f32 %v4805_v46, %v4775_v15  ;;  %v14459_v17 = vadd.f32 %v14264_v45, %v4619_v33  ;;  %v4738_v10 = vadd.f32 %v14439_v8, %v4737_v16  ;;  %v10910_v32 = vpop.f32.mrb[46].mxu0 }
 0x515   : > { %v14463_v50 = vadd.f32 %v14281_v63, %v10910_v32  ;;  %v4622_v62 = vpop.f32.mrb[47].mxu0  ;;  %v4779_v63 = vmul.f32 %v14454_v1, %v14454_v1 }
 0x516   : > { %v4739_v4 = vadd.f32 %v14459_v17, %v4738_v10  ;;  %v4777_v30 = vmul.f32 %v14459_v17, %v14459_v17  ;;  %v4807_v20 = vadd.f32 %v4806_v37, %v4776_v58  ;;  %v14469_v28 = vadd.f32 %v14266_v39, %v4622_v62 }
 0x517   : > { %v4780_v39 = vmul.f32 %v14463_v50, %v14463_v50 }
 0x518   : > { %v4808_v41 = vadd.f32 %v4807_v20, %v4777_v30  ;;  %v4740_v45 = vadd.f32 %v14469_v28, %v4739_v4  ;;  %v4778_v38 = vmul.f32 %v14469_v28, %v14469_v28 }
 0x51a   : > { %v4741_v13 = vadd.f32 %v14454_v1, %v4740_v45  ;;  %v4809_v43 = vadd.f32 %v4808_v41, %v4778_v38  ;;  %v10913_v22 = vpop.f32.mrb[48].mxu0 }
 0x51b   : > { %v14478_v6 = vadd.f32 %v14301_v35, %v10913_v22  ;;  %v4635_v31 = vpop.f32.mrb[49].mxu0 }
 0x51c   : > { %v4810_v34 = vadd.f32 %v4809_v43, %v4779_v63  ;;  %v14483_v54 = vadd.f32 %v14287_v2, %v4635_v31  ;;  %v4742_v14 = vadd.f32 %v14463_v50, %v4741_v13  ;;  %v10914_v52 = vpop.f32.mrb[50].mxu0 }
 0x51d   : > { %v14487_v57 = vadd.f32 %v14304_v9, %v10914_v52  ;;  %v4638_v47 = vpop.f32.mrb[51].mxu0  ;;  %v4783_v9 = vmul.f32 %v14478_v6, %v14478_v6 }
 0x51e   : > { %v4743_v49 = vadd.f32 %v14483_v54, %v4742_v14  ;;  %v4781_v35 = vmul.f32 %v14483_v54, %v14483_v54  ;;  %v4811_v15 = vadd.f32 %v4810_v34, %v4780_v39  ;;  %v14493_v16 = vadd.f32 %v14289_v40, %v4638_v47 }
 0x51f   : > { %v4784_v40 = vmul.f32 %v14487_v57, %v14487_v57 }
 0x520   : > { %v4812_v46 = vadd.f32 %v4811_v15, %v4781_v35  ;;  %v4744_v2 = vadd.f32 %v14493_v16, %v4743_v49  ;;  %v4782_v24 = vmul.f32 %v14493_v16, %v14493_v16 }
 0x522   : > { %v4745_v33 = vadd.f32 %v14478_v6, %v4744_v2  ;;  %v4813_v58 = vadd.f32 %v4812_v46, %v4782_v24  ;;  %v10917_v37 = vpop.f32.mrb[52].mxu0 }
 0x523   : > { %v14502_v10 = vadd.f32 %v14324_v12, %v10917_v37  ;;  %v4651_v32 = vpop.f32.mrb[53].mxu0  ;;  %v4715_v37 = vld [vmem:[%s16418_s8 + $0x8] sm:$0xff] }
 0x524   : > { %v4814_v62 = vadd.f32 %v4813_v58, %v4783_v9  ;;  %v14507_v4 = vadd.f32 %v14310_v21, %v4651_v32  ;;  %v4746_v30 = vadd.f32 %v14487_v57, %v4745_v33  ;;  %v10918_v20 = vpop.f32.mrb[54].mxu0  ;;  %v4714_v58 = vld [vmem:[%s16418_s8] sm:$0xff] }
 0x525   : > { %v14511_v41 = vadd.f32 %v14327_v5, %v10918_v20  ;;  %v4654_v45 = vpop.f32.mrb[55].mxu0  ;;  %v4787_v5 = vmul.f32 %v14502_v10, %v14502_v10  ;;  %v4716_v20 = vld [vmem:[%s16418_s8 + $0x10] sm:$0xff] }
 0x526   : > { %v4747_v38 = vadd.f32 %v14507_v4, %v4746_v30  ;;  %v4785_v12 = vmul.f32 %v14507_v4, %v14507_v4  ;;  %v4815_v63 = vadd.f32 %v4814_v62, %v4784_v40  ;;  %v14517_v13 = vadd.f32 %v14312_v27, %v4654_v45  ;;  %v4717_v45 = vld [vmem:[%s16418_s8 + $0x18] sm:$0xff] }
 0x527   : > { %v4788_v34 = vmul.f32 %v14511_v41, %v14511_v41  ;;  %v11212_v30 = vpack.c.bf16 %v4715_v37, %v4714_v58  ;;  %v5322_v37 = vld [vmem:[%s12799_s16 + $0x20] sm:$0xff] }
 0x528   : > { %v4816_v43 = vadd.f32 %v4815_v63, %v4785_v12  ;;  %v4748_v21 = vadd.f32 %v14517_v13, %v4747_v38  ;;  %v4786_v22 = vmul.f32 %v14517_v13, %v14517_v13  ;;  %v11215_v12 = vpack.c.bf16 %v4717_v45, %v4716_v20  ;;  %v11926_v63 = vld [vmem:[%s16423_s13] sm:$0xff]   ;;  %v5325_v45 = vld [vmem:[%s12799_s16 + $0x38] sm:$0xff] }
 0x529   : > { %v5324_v20 = vld [vmem:[%s12799_s16 + $0x30] sm:$0xff] }
 0x52a   : > { %v4749_v31 = vadd.f32 %v14502_v10, %v4748_v21  ;;  %v4817_v39 = vadd.f32 %v4816_v43, %v4786_v22  ;;  %v11927_v43 = vld [vmem:[%s16423_s13 + $0x8] sm:$0xff]  }
 0x52c   : > { %v4750_v14 = vadd.f32 %v14511_v41, %v4749_v31  ;;  %v4818_v52 = vadd.f32 %v4817_v39, %v4787_v5  ;;  %v11930_v5 = vld [vmem:[%s16423_s13 + $0x20] sm:$0xff]   ;;  %v11931_v31 = vld [vmem:[%s16423_s13 + $0x28] sm:$0xff]   ;;  %v11932_v39 = vld [vmem:[%s16423_s13 + $0x30] sm:$0xff]  }
 0x52e   : > { %v4751_v27 = vrot.slane %v4750_v14, 4  ;;  %v4819_v47 = vadd.f32 %v4818_v52, %v4788_v34 }
 0x530   : > { %v4752_v49 = vadd.f32 %v4751_v27, %v4750_v14  ;;  %v4820_v35 = vrot.slane %v4819_v47, 4 }
 0x532   : > { %v4753_v15 = vrot.slane %v4752_v49, 2  ;;  %v4821_v46 = vadd.f32 %v4820_v35, %v4819_v47  ;;  %v11933_v47 = vld [vmem:[%s16423_s13 + $0x38] sm:$0xff]  }
 0x534   : > { %v4754_v2 = vadd.f32 %v4753_v15, %v4752_v49  ;;  %v4822_v24 = vrot.slane %v4821_v46, 2  ;;  %v5318_v15 = vld [vmem:[%s12799_s16] sm:$0xff] }
 0x536   : > { %v4755_v9 = vrot.slane %v4754_v2, 1  ;;  %v4823_v33 = vadd.f32 %v4822_v24, %v4821_v46  ;;  %v5319_v46 = vld [vmem:[%s12799_s16 + $0x8] sm:$0xff]  ;;  %v5321_v24 = vld [vmem:[%s12799_s16 + $0x18] sm:$0xff] }
 0x538   : > { %v4824_v32 = vrot.slane %v4823_v33, 1  ;;  %v4756_v40 = vadd.f32 %v4755_v9, %v4754_v2  ;;  %v5320_v2 = vld [vmem:[%s12799_s16 + $0x10] sm:$0xff] }
 0x539   : > { %v9577_v58 = vpack.c.bf16 %v5321_v24, %v5320_v2 }
 0x53a   : > { %v4825_v62 = vadd.f32 %v4824_v32, %v4823_v33  ;;  %v9574_v33 = vpack.c.bf16 %v5319_v46, %v5318_v15  ;;  %v5323_v32 = vld [vmem:[%s12799_s16 + $0x28] sm:$0xff] }
 0x53b   : > { %v11942_v15 = vld [vmem:[#allocation9 + $0x8] sm:$0xff]  }
 0x53c   : > { %v4826_v38 = vsel %vm736_vm2, %v4756_v40, %v4825_v62  ;;  %v11934_v40 = vld [vmem:[#allocation9 + $0x80] sm:$0xff]   ;;  %v9580_v62 = vpack.c.bf16 %v5323_v32, %v5322_v37  ;;  %v5329_v37 = vld [vmem:[%s12799_s16 + $0x58] sm:$0xff]  ;;  %v11943_v32 = vld [vmem:[#allocation9 + $0x50] sm:$0xff]  }
 0x53d   : > { %10952 = vmatmul.mubr.f32.vlgmr.msra.gmra.mrb[2].mxu1 %v4826_v38  ;;  %v5326_v38 = vld [vmem:[%s12799_s16 + $0x40] sm:$0xff] }
 0x53e   : > { %11213 = vmatpush3.bf16.msra.mxu1 %v11212_v30  ;;  %10962 = vmatprep.mubr.msk.f32.mxu1 %vm12535_vm0, %v16505_v53  ;;  %v11928_v53 = vld [vmem:[%s16423_s13 + $0x10] sm:$0xff]   ;;  %v11935_v30 = vld [vmem:[#allocation9 + $0x88] sm:$0xff]  }
 0x53f   : > { %11214 = vmatprep.subr.bf16.mxu1 %v16510_v61  ;;  %v11929_v61 = vld [vmem:[%s16423_s13 + $0x18] sm:$0xff]  }
 0x542   : > { %11216 = vmatpush3.bf16.msra.mxu1 %v11215_v12  ;;  %v5327_v12 = vld [vmem:[%s12799_s16 + $0x48] sm:$0xff] }
 0x543   : > { %10965 = vmatprep.subr.bf16.mxu1 %v11926_v63 }
 0x610   : > { %v4893_v21 = vpop.f32.mrb[2].mxu1 }
 0x611   : > { %v10953_v22 = vpop.f32.mrb[3].mxu1  ;;  %10963 = vmatmul.mubr.msk.f32.vlgmr.msra.gmra.mrb[112].mxu1 %vm575_vm1, %v4893_v21 }
 0x612   : > { %10966 = vmatpush3.bf16.msra.mxu1 %v11926_v63  ;;  %10981 = vmatprep.mubr.msk.bf16.mxu1 %vm14575_vm7, %v9574_v33  ;;  %v16527_v63 = vld [vmem:[#allocation16_spill] sm:$0xff]  ;;  %v11936_v22 = vld [vmem:[#allocation9 + $0x90] sm:$0xff]  }
 0x613   : > { %10967 = vmatprep.subr.bf16.mxu1 %v11927_v43 }
 0x616   : > { %10968 = vmatpush3.bf16.msra.mxu1 %v11927_v43  ;;  %v16528_v43 = vsub.s32 0, %v16527_v63 }
 0x617   : > { %10969 = vmatprep.subr.bf16.mxu1 %v11928_v53 }
 0x61a   : > { %10970 = vmatpush3.bf16.msra.mxu1 %v11928_v53  ;;  %v11938_v53 = vld [vmem:[#allocation9 + $0x40] sm:$0xff]  }
 0x61b   : > { %10971 = vmatprep.subr.bf16.mxu1 %v11929_v61  ;;  %10321 = vmatprep.subr.bf16.mxu0 %v11938_v53 }
 0x61e   : > { %10972 = vmatpush3.bf16.msra.mxu1 %v11929_v61  ;;  %v9583_v61 = vpack.c.bf16 %v5325_v45, %v5324_v20  ;;  %v5330_v45 = vld [vmem:[%s12799_s16 + $0x60] sm:$0xff] }
 0x61f   : > { %10973 = vmatprep.subr.bf16.mxu1 %v11930_v5 }
 0x622   : > { %10974 = vmatpush3.bf16.msra.mxu1 %v11930_v5  ;;  %v11939_v5 = vld [vmem:[#allocation9] sm:$0xff]  }
 0x623   : > { %10975 = vmatprep.subr.bf16.mxu1 %v11931_v31  ;;  %10322 = vmatpush3.bf16.msra.mxu0 %v11939_v5  ;;  %v11940_v5 = vld [vmem:[#allocation9 + $0xa0] sm:$0xff]  }
 0x626   : > { %10976 = vmatpush3.bf16.msra.mxu1 %v11931_v31  ;;  %v9586_v31 = vpack.c.bf16 %v5327_v12, %v5326_v38  ;;  %v5331_v38 = vld [vmem:[%s12799_s16 + $0x68] sm:$0xff] }
 0x627   : > { %10977 = vmatprep.subr.bf16.mxu1 %v11932_v39  ;;  %v9592_v53 = vpack.c.bf16 %v5331_v38, %v5330_v45  ;;  %v14671_v45 = vld [vmem:[%s12799_s16 + $0x90] sm:$0xff]  ;;  %v14674_v38 = vld [vmem:[%s12799_s16 + $0x98] sm:$0xff] }
 0x62a   : > { %10978 = vmatpush3.bf16.msra.mxu1 %v11932_v39 }
 0x62b   : > { %10979 = vmatprep.subr.bf16.mxu1 %v11933_v47 }
 0x62e   : > { %10980 = vmatpush3.bf16.msra.mxu1 %v11933_v47 }
 0x62f   : > { %11013 = vmatprep.subr.bf16.mxu1 %v11934_v40 }
 0x631   : > { %10982 = vmatmul.mubr.msk.bf16.vlgmr.msra.gmra.mrb[116].mxu1 %vm14575_vm7, %v9577_v58  ;;  %v5328_v58 = vld [vmem:[%s12799_s16 + $0x50] sm:$0xff] }
 0x632   : > { %10985 = vmatprep.mubr.msk.bf16.mxu1 %vm14575_vm7, %v9580_v62  ;;  %11014 = vmatpush3.bf16.msra.mxu1 %v11934_v40 }
 0x633   : > { %11015 = vmatprep.subr.bf16.mxu1 %v11935_v30 }
 0x636   : > { %11016 = vmatpush3.bf16.msra.mxu1 %v11935_v30 }
 0x637   : > { %11017 = vmatprep.subr.bf16.mxu1 %v11936_v22 }
 0x639   : > { %10986 = vmatmul.mubr.msk.bf16.gmra.mrb[120].mxu1 %vm14575_vm7, %v9583_v61 }
 0x63a   : > { %10989 = vmatprep.mubr.msk.bf16.mxu1 %vm14575_vm7, %v9586_v31  ;;  %11018 = vmatpush3.bf16.msra.mxu1 %v11936_v22  ;;  %v14651_v31 = vld [vmem:[%s12799_s16 + $0x70] sm:$0xff] }
 0x6e4   : > { %v4966_v34 = vpop.f32.mrb[112].mxu1 }
 0x6e5   : > { %v4970_v14 = vmul.f32 %v4966_v34, %v4966_v34  ;;  %v10964_v52 = vpop.f32.mrb[113].mxu1  ;;  %v14593_v21 = vrot.slane %v4966_v34, %v16528_v43  ;;  %v14654_v43 = vld [vmem:[%s12799_s16 + $0x78] sm:$0xff] }
 0x6e6   : > { %v11941_v52 = vld [vmem:[#allocation9 + $0x48] sm:$0xff]  }
 0x6e7   : > { %v4972_v27 = vrot.slane %v4970_v14, 7  ;;  %v9530_v14 = vld [vmem:[%s16529_s10] ss:$0 sm:$0xff]  ;;  %v4982_v47 = vsub.f32 %v14346_v42, %v14593_v21  ;;  %10323 = vmatprep.subr.bf16.mxu0 %v11941_v52  ;;  %v4985_v2 = vsub.f32 %v14363_v60, %v14593_v21  ;;  %v4986_v24 = vsub.f32 %v14373_v7, %v14593_v21  ;;  %s9172_s10 = sshll.u32 %s16295_s9, 4  ;;  %s16362_s10 = int_to_ptr.vmem [resolvable:$true] %s9172_s10 }
 0x6e8   : > { %v4987_v33 = vsub.f32 %v14358_v55, %v14593_v21  ;;  %v4988_v40 = vsub.f32 %v14367_v29, %v14593_v21  ;;  %v4989_v62 = vsub.f32 %v14387_v3, %v14593_v21  ;;  %v4990_v30 = vsub.f32 %v14397_v36, %v14593_v21  ;;  %10324 = vmatpush3.bf16.msra.mxu0 %v11942_v15  ;;  %v11946_v15 = vld [vmem:[#allocation9 + $0x58] sm:$0xff]   ;;  %p12462_p7 = scmp.lt.s32.totalorder %s16362_s10, %s12460_s26 }
 0x6e9   : > { %v4974_v49 = vsub.f32 %v4966_v34, %v4972_v27  ;;  %v4981_v34 = vsub.f32 %v14340_v18, %v14593_v21  ;;  %v11937_v27 = vld [vmem:[#allocation9 + $0x98] sm:$0xff]   ;;  %v4991_v20 = vsub.f32 %v14382_v11, %v14593_v21  ;;  %v4992_v12 = vsub.f32 %v14391_v44, %v14593_v21  ;;  %v14657_v44 = vld [vmem:[%s12799_s16 + $0x80] sm:$0xff]  ;;  %10325 = vmatprep.subr.bf16.mxu0 %v11943_v32  ;;  %v14719_v18 = vld [vmem:[%s16531_s18] ss:$0 sm:$0xff]  ;;  %s16572_s18 = sld [smem:[#allocation40_spill]] }
 0x6ea   : > { %11019 = vmatprep.subr.bf16.mxu1 %v11937_v27  ;;  %v5009_v22 = vsub.f32 %v14507_v4, %v14593_v21  ;;  %v11948_v11 = vld [vmem:[#allocation9 + $0x60] sm:$0xff]  }
 0x6eb   : > { %v4975_v35 = vadd.f32 1e-05, %v4974_v49  ;;  %v4983_v49 = vsub.f32 %v14337_v26, %v14593_v21  ;;  %11020 = vmatpush3.bf16.msra.mxu1 %v11937_v27  ;;  %v11944_v27 = vld [vmem:[#allocation9 + $0x10] sm:$0xff]  }
 0x6ec   : > { %11021 = vmatprep.subr.bf16.mxu1 %v11940_v5  ;;  %10326 = vmatpush3.bf16.msra.mxu0 %v11944_v27 }
 0x6ed   : > { %12232 = vrsqrt.f32 %v4975_v35  ;;  %v4984_v35 = vsub.f32 %v14343_v25, %v14593_v21  ;;  %10327 = vmatprep.subr.bf16.mxu0 %v11946_v15 }
 0x6ef   : > { %11022 = vmatpush3.bf16.msra.mxu1 %v11940_v5  ;;  %v11950_v5 = vld [vmem:[#allocation9 + $0xb0] sm:$0xff]   ;;  %s16360_s12 = scalar_lea.hbm %s16572_s18, %s9844_s23 }
 0x6f7   : > { %v12233_v39 = vpop.eup %12232 }
 0x6f8   : > { %v5019_v46 = vmul.f32 %v12233_v39, %v9530_v14  ;;  %v9589_v39 = vpack.c.bf16 %v5329_v37, %v5328_v58  ;;  %v16530_v14 = vsub.s32 1, %v16527_v63  ;;  %v14668_v37 = vld [vmem:[%s12799_s16 + $0x88] sm:$0xff]  ;;  %v14685_v58 = vld [vmem:[%s12799_s16 + $0xa0] sm:$0xff] }
 0x6f9   : > { %v14688_v63 = vld [vmem:[%s12799_s16 + $0xa8] sm:$0xff]  ;;  %v9598_v26 = vpack.c.bf16 %v14668_v37, %v14657_v44  ;;  %v16539_v37 = vsub.f32 %v14439_v8, %v14593_v21 }
 0x6fa   : > { %v14644_v52 = vrot.slane %v5019_v46, %v16530_v14  ;;  %10990 = vmatmul.mubr.msk.bf16.gmra.mrb[124].mxu1 %vm14575_vm7, %v9589_v39  ;;  %v11945_v46 = vld [vmem:[#allocation9 + $0xa8] sm:$0xff]   ;;  %v9595_v39 = vpack.c.bf16 %v14654_v43, %v14651_v31 }
 0x6fb   : > { %10993 = vmatprep.mubr.msk.bf16.mxu1 %vm14575_vm7, %v9592_v53  ;;  %v11947_v53 = vld [vmem:[#allocation9 + $0x18] sm:$0xff]   ;;  %11023 = vmatprep.subr.bf16.mxu1 %v11945_v46  ;;  %v11951_v8 = vld [vmem:[#allocation9 + $0x68] sm:$0xff]  }
 0x6fc   : > { %v5024_v61 = vmul.f32 %v14644_v52, %v4981_v34  ;;  %v5025_v32 = vmul.f32 %v14644_v52, %v4982_v47  ;;  %v5026_v14 = vmul.f32 %v14644_v52, %v4983_v49  ;;  %v5027_v42 = vmul.f32 %v14644_v52, %v4984_v35  ;;  %11024 = vmatpush3.bf16.msra.mxu1 %v11945_v46 }
 0x6fd   : > { %v9601_v34 = vpack.c.bf16 %v14674_v38, %v14671_v45  ;;  %v9604_v47 = vpack.c.bf16 %v14688_v63, %v14685_v58  ;;  %v5028_v49 = vmul.f32 %v14644_v52, %v4985_v2  ;;  %v5029_v25 = vmul.f32 %v14644_v52, %v4986_v24  ;;  %10328 = vmatpush3.bf16.msra.mxu0 %v11947_v53  ;;  %v14940_v38 = vld [vmem:[#allocation3] sm:$0xff]  }
 0x6fe   : > { %v5030_v35 = vmul.f32 %v14644_v52, %v4987_v33  ;;  %v5031_v43 = vmul.f32 %v14644_v52, %v4988_v40  ;;  %v5032_v60 = vmul.f32 %v14644_v52, %v4989_v62  ;;  %v5033_v7 = vmul.f32 %v14644_v52, %v4990_v30  ;;  %10329 = vmatprep.subr.bf16.mxu0 %v11948_v11 }
 0x6ff   : > { %v5034_v55 = vmul.f32 %v14644_v52, %v4991_v20  ;;  %v5035_v29 = vmul.f32 %v14644_v52, %v4992_v12  ;;  %v16532_v2 = vsub.f32 %v14411_v0, %v14593_v21  ;;  %v14765_v24 = vadd.f32 %v14719_v18, %v5024_v61  ;;  %11025 = vmatprep.subr.bf16.mxu1 %v11950_v5 }
 0x700   : > { %v14768_v36 = vadd.f32 %v14719_v18, %v5025_v32  ;;  %v14771_v33 = vadd.f32 %v14719_v18, %v5026_v14  ;;  %v16533_v40 = vsub.f32 %v14421_v23, %v14593_v21  ;;  %v16534_v0 = vsub.f32 %v14406_v19, %v14593_v21  ;;  %11026 = vmatpush3.bf16.msra.mxu1 %v11950_v5 }
 0x701   : > { %v5036_v3 = vmul.f32 %v14644_v52, %v16532_v2  ;;  %v16535_v20 = vsub.f32 %v14415_v56, %v14593_v21  ;;  %v14788_v61 = vadd.f32 %v14719_v18, %v5027_v42  ;;  %v16536_v23 = vsub.f32 %v14435_v48, %v14593_v21  ;;  %v11949_v48 = vld [vmem:[#allocation9 + $0x20] sm:$0xff]  }
 0x702   : > { %v5037_v62 = vmul.f32 %v14644_v52, %v16533_v40  ;;  %v5038_v30 = vmul.f32 %v14644_v52, %v16534_v0  ;;  %v16537_v19 = vsub.f32 %v14445_v59, %v14593_v21  ;;  %v16538_v56 = vsub.f32 %v14430_v51, %v14593_v21  ;;  %10994 = vmatmul.mubr.msk.bf16.gmra.mrb[128].mxu1 %vm14575_vm7, %v9595_v39 }
 0x703   : > { %v14785_v12 = vmul.f32 %v14644_v52, %v16535_v20  ;;  %v14794_v31 = vmul.f32 %v14644_v52, %v16536_v23  ;;  %v14809_v46 = vadd.f32 %v14719_v18, %v5028_v49  ;;  %v14815_v32 = vmul.f32 %v14644_v52, %v16539_v37  ;;  %v11955_v49 = vld [vmem:[#allocation9 + $0xb8] sm:$0xff]   ;;  %10997 = vmatprep.mubr.msk.bf16.mxu1 %vm14575_vm7, %v9598_v26  ;;  %v11952_v23 = vld [vmem:[#allocation9 + $0x28] sm:$0xff]   ;;  %v11960_v37 = vld [vmem:[#allocation9 + $0x100] sm:$0xff]  }
 0x704   : > { %v14800_v44 = vmul.f32 %v14644_v52, %v16537_v19  ;;  %v14806_v15 = vmul.f32 %v14644_v52, %v16538_v56  ;;  %v16540_v59 = vsub.f32 %v14459_v17, %v14593_v21  ;;  %v16541_v51 = vsub.f32 %v14469_v28, %v14593_v21  ;;  %10330 = vmatpush3.bf16.msra.mxu0 %v11949_v48 }
 0x705   : > { %v14830_v42 = vadd.f32 %v14719_v18, %v5029_v25  ;;  %v14835_v53 = vadd.f32 %v14719_v18, %v5030_v35  ;;  %v9532_v17 = vmul.f32 -1.442695, %v14765_v24  ;;  %v9533_v2 = vmul.f32 -1.442695, %v14768_v36  ;;  %10331 = vmatprep.subr.bf16.mxu0 %v11951_v8  ;;  %11027 = vmatprep.subr.bf16.mxu1 %v11955_v49 }
 0x706   : > { %v14821_v14 = vmul.f32 %v14644_v52, %v16540_v59  ;;  %v14827_v27 = vmul.f32 %v14644_v52, %v16541_v51  ;;  %v9534_v28 = vmul.f32 -1.442695, %v14771_v33  ;;  %v16542_v25 = vsub.f32 %v14454_v1, %v14593_v21  ;;  %11028 = vmatpush3.bf16.msra.mxu1 %v11955_v49 }
 0x707   : > { %v16543_v35 = vsub.f32 %v14463_v50, %v14593_v21  ;;  %v14855_v0 = vadd.f32 %v14719_v18, %v5031_v43  ;;  %v9535_v20 = vmul.f32 -1.442695, %v14788_v61  ;;  %v16544_v26 = vsub.f32 %v14483_v54, %v14593_v21  ;;  %10457 = vmatprep.subr.bf16.mxu1 %v11960_v37 }
 0x708   : > { %v14846_v39 = vmul.f32 %v14644_v52, %v16542_v25  ;;  %v14865_v11 = vadd.f32 %v14719_v18, %v5032_v60  ;;  %12234 = vpow2.f32 %v9532_v17  ;;  %v9536_v50 = vmul.f32 -1.442695, %v14809_v46  ;;  %v11953_v60 = vld [vmem:[#allocation9 + $0x70] sm:$0xff]   ;;  %10332 = vmatpush3.bf16.msra.mxu0 %v11952_v23 }
 0x709   : > { %v14852_v40 = vmul.f32 %v14644_v52, %v16543_v35  ;;  %v14862_v1 = vmul.f32 %v14644_v52, %v16544_v26  ;;  %v16545_v43 = vsub.f32 %v14493_v16, %v14593_v21  ;;  %v14875_v54 = vadd.f32 %v14719_v18, %v5033_v7  ;;  %v5343_v35 = vld [vmem:[%s12799_s16 + $0xc8] sm:$0xff]  ;;  %10333 = vmatprep.subr.bf16.mxu0 %v11953_v60 }
 0x70a   : > { %12236 = vpow2.f32 %v9533_v2  ;;  %v9537_v56 = vmul.f32 -1.442695, %v14830_v42  ;;  %v16546_v5 = vsub.f32 %v14478_v6, %v14593_v21  ;;  %v14885_v16 = vadd.f32 %v14719_v18, %v5034_v55  ;;  %v5340_v2 = vld [vmem:[%s12799_s16 + $0xb0] sm:$0xff]  ;;  %10998 = vmatmul.mubr.msk.bf16.gmra.mrb[132].mxu1 %vm14575_vm7, %v9601_v34 }
 0x70b   : > { %v14872_v19 = vmul.f32 %v14644_v52, %v16545_v43  ;;  %12238 = vpow2.f32 %v9534_v28  ;;  %v9538_v7 = vmul.f32 -1.442695, %v14835_v53  ;;  %v16547_v59 = vsub.f32 %v14487_v57, %v14593_v21  ;;  %v11954_v28 = vld [vmem:[#allocation9 + $0x30] sm:$0xff]   ;;  %11001 = vmatprep.mubr.msk.bf16.mxu1 %vm14575_vm7, %v9604_v47 }
 0x70c   : > { %v14882_v48 = vmul.f32 %v14644_v52, %v16546_v5  ;;  %v14895_v8 = vadd.f32 %v14719_v18, %v5035_v29  ;;  %12240 = vpow2.f32 %v9535_v20  ;;  %v9539_v6 = vmul.f32 -1.442695, %v14855_v0  ;;  %v5341_v29 = vld [vmem:[%s12799_s16 + $0xb8] sm:$0xff]  ;;  %v14942_v34 = vld [vmem:[#allocation3 + $0x8] ss:$0 sps:$4 sm:$0x11]   ;;  %10334 = vmatpush3.bf16.msra.mxu0 %v11954_v28 }
 0x70d   : > { %v14892_v51 = vmul.f32 %v14644_v52, %v16547_v59  ;;  %v14902_v55 = vmul.f32 %v14644_v52, %v5009_v22  ;;  %v14905_v17 = vadd.f32 %v14719_v18, %v5036_v3  ;;  %12242 = vpow2.f32 %v9536_v50  ;;  %v5342_v3 = vld [vmem:[%s12799_s16 + $0xc0] sm:$0xff]  ;;  %v11956_v20 = vld [vmem:[#allocation9 + $0x78] sm:$0xff]  }
 0x70e   : > { %v9540_v57 = vmul.f32 -1.442695, %v14865_v11  ;;  %v14911_v25 = vadd.f32 %v14719_v18, %v5037_v62  ;;  %v14914_v4 = vadd.f32 %v14719_v18, %v5038_v30  ;;  %12244 = vpow2.f32 %v9537_v56  ;;  %v11957_v50 = vld [vmem:[#allocation9 + $0x38] sm:$0xff]   ;;  %10335 = vmatprep.subr.bf16.mxu0 %v11956_v20 }
 0x70f   : > { %v9541_v22 = vmul.f32 -1.442695, %v14875_v54  ;;  %v16548_v62 = vsub.f32 %v14517_v13, %v14593_v21  ;;  %v14932_v30 = vadd.f32 %v14719_v18, %v14785_v12  ;;  %12246 = vpow2.f32 %v9538_v7 }
 0x710   : > { %v9542_v45 = vmul.f32 -1.442695, %v14885_v16  ;;  %v14946_v13 = vadd.f32 %v14719_v18, %v14794_v31  ;;  %v14950_v12 = vadd.f32 %v14719_v18, %v14800_v44  ;;  %12248 = vpow2.f32 %v9539_v6  ;;  %10336 = vmatpush3.bf16.msra.mxu0 %v11957_v50 }
 0x711   : > { %v14928_v49 = vmul.f32 %v14644_v52, %v16548_v62  ;;  %v9543_v26 = vmul.f32 -1.442695, %v14895_v8  ;;  %v14955_v63 = vadd.f32 %v14719_v18, %v14806_v15  ;;  %12250 = vpow2.f32 %v9540_v57  ;;  %v5345_v62 = vld [vmem:[%s12799_s16 + $0xd8] sm:$0xff] }
 0x712   : > { %v9544_v58 = vmul.f32 -1.442695, %v14905_v17  ;;  %v9607_v47 = vpack.c.bf16 %v5341_v29, %v5340_v2  ;;  %12252 = vpow2.f32 %v9541_v22  ;;  %v9545_v31 = vmul.f32 -1.442695, %v14911_v25  ;;  %v14960_v43 = vpop.eup %12234 }
 0x713   : > { %v9546_v23 = vmul.f32 -1.442695, %v14914_v4  ;;  %v9610_v44 = vpack.c.bf16 %v5343_v35, %v5342_v3  ;;  %12254 = vpow2.f32 %v9542_v45  ;;  %v6286_v56 = vshrl.u32 %v14940_v38, 16 }
 0x714   : > { %v6288_v15 = vshll.u32 %v14940_v38, 16  ;;  %v6293_v60 = vshll.u32 %v14942_v34, 16  ;;  %v14965_v5 = vpop.eup %12236  ;;  %v14969_v7 = vadd.f32 %v14719_v18, %v14815_v32  ;;  %v14973_v37 = vadd.f32 %v14719_v18, %v14821_v14  ;;  %11002 = vmatmul.mubr.msk.bf16.gmra.mrb[136].mxu1 %vm14575_vm7, %v9607_v47 }
 0x715   : > { %12256 = vpow2.f32 %v9543_v26  ;;  %v9547_v59 = vmul.f32 -1.442695, %v14932_v30  ;;  %v14976_v6 = vpop.eup %12238  ;;  %v9548_v57 = vmul.f32 -1.442695, %v14946_v13  ;;  %v16549_v32 = vsub.f32 %v14502_v10, %v14593_v21  ;;  %11005 = vmatprep.mubr.msk.bf16.mxu1 %vm14575_vm7, %v9610_v44 }
 0x716   : > { %12258 = vpow2.f32 %v9544_v58  ;;  %v6290_v2 = vrot.slane %v6288_v15, 1  ;;  %v6295_v29 = vrot.slane %v6293_v60, 1  ;;  %v14979_v28 = vpop.eup %12240  ;;  %v14987_v22 = vadd.f32 %v14719_v18, %v14827_v27  ;;  %v5344_v27 = vld [vmem:[%s12799_s16 + $0xd0] sm:$0xff] }
 0x717   : > { %v5054_v14 = vmul.f32 %v14644_v52, %v16549_v32  ;;  %12260 = vpow2.f32 %v9545_v31  ;;  %v9549_v3 = vmul.f32 -1.442695, %v14950_v12  ;;  %v14992_v35 = vpop.eup %12242  ;;  %v14996_v20 = vadd.f32 %v14719_v18, %v14846_v39  ;;  %v5346_v31 = vld [vmem:[%s12799_s16 + $0xe0] sm:$0xff] }
 0x718   : > { %12262 = vpow2.f32 %v9546_v23  ;;  %v9550_v10 = vmul.f32 -1.442695, %v14955_v63  ;;  %v6291_v45 = vor.u32 %v6290_v2, %v6286_v56  ;;  %v15003_v26 = vpop.eup %12244  ;;  %v16550_v58 = vsub.f32 %v14511_v41, %v14593_v21  ;;  %v5347_v23 = vld [vmem:[%s12799_s16 + $0xe8] sm:$0xff] }
 0x719   : > { %v15011_v39 = vadd.f32 %v14719_v18, %v14852_v40  ;;  %12264 = vpow2.f32 %v9547_v59  ;;  %v9551_v50 = vmul.f32 -1.442695, %v14969_v7  ;;  %v15016_v44 = vpop.eup %12246  ;;  %v15020_v56 = vadd.f32 %v14719_v18, %v14862_v1 }
 0x71a   : > { %v5055_v47 = vmul.f32 %v14644_v52, %v16550_v58  ;;  %12266 = vpow2.f32 %v9548_v57  ;;  %v9552_v41 = vmul.f32 -1.442695, %v14973_v37  ;;  %v6296_v21 = vsel %vm1849_vm3, %v6291_v45, %v6295_v29  ;;  %v15024_v52 = vpop.eup %12248 }
 0x71b   : > { %v15028_v40 = vadd.f32 %v14719_v18, %v14872_v19  ;;  %12268 = vpow2.f32 %v9549_v3  ;;  %v9553_v15 = vmul.f32 -1.442695, %v14987_v22  ;;  %v9613_v60 = vpack.c.bf16 %v5345_v62, %v5344_v27  ;;  %6781 = vmatprep.mubr.bf16.mxu0 %v6296_v21  ;;  %v15031_v59 = vpop.eup %12250 }
 0x71c   : > { %v15035_v1 = vadd.f32 %v14719_v18, %v14882_v48  ;;  %12270 = vpow2.f32 %v9550_v10  ;;  %v9554_v57 = vmul.f32 -1.442695, %v14996_v20  ;;  %v9616_v2 = vpack.c.bf16 %v5347_v23, %v5346_v31  ;;  %6782 = vmatmul.mubr.bf16.vlgmr.msra.gmra.mrb[120].mxu0 %v14940_v38  ;;  %v15039_v29 = vpop.eup %12252  ;;  %v5349_v31 = vld [vmem:[%s12799_s16 + $0xf8] sm:$0xff] }
 0x71d   : > { %16551 = vst [vmem:[#allocation20_spill] sm:$0xff] %v15028_v40  ;;  %v15043_v19 = vadd.f32 %v14719_v18, %v14892_v51  ;;  %12272 = vpow2.f32 %v9551_v50  ;;  %v9555_v32 = vmul.f32 -1.442695, %v15011_v39  ;;  %v15046_v3 = vpop.eup %12254  ;;  %v15050_v48 = vadd.f32 %v14719_v18, %v14902_v55  ;;  %11006 = vmatmul.mubr.msk.bf16.gmra.mrb[140].mxu1 %vm14575_vm7, %v9613_v60 }
 0x71e   : > { %16552 = vst [vmem:[#allocation22_spill] sm:$0xff] %v15035_v1  ;;  %12274 = vpow2.f32 %v9552_v41  ;;  %v9556_v10 = vmul.f32 -1.442695, %v15020_v56  ;;  %v15057_v51 = vadd.f32 %v14719_v18, %v14928_v49  ;;  %v9557_v62 = vmul.f32 -1.442695, %v15028_v40  ;;  %11009 = vmatprep.mubr.msk.bf16.mxu1 %vm14575_vm7, %v9616_v2  ;;  %v5348_v49 = vld [vmem:[%s12799_s16 + $0xf0] sm:$0xff]  ;;  %s16573_s16 = smov %s16572_s18 }
 0x71f   : > { %16553 = vst [vmem:[#allocation18_spill] sm:$0xff] %v15043_v19  ;;  %16554 = vst [vmem:[#allocation21_spill] sm:$0xff] %v15050_v48  ;;  %v15053_v27 = vpop.eup %12256  ;;  %12276 = vpow2.f32 %v9553_v15  ;;  %v15065_v55 = vadd.f32 %v14719_v18, %v5054_v14  ;;  %v15068_v58 = vadd.f32 %v14719_v18, %v5055_v47  ;;  %v9558_v50 = vmul.f32 -1.442695, %v15035_v1 }
 0x720   : > { %16555 = vst [vmem:[#allocation23_spill] sm:$0xff] %v15057_v51  ;;  %v15062_v45 = vpop.eup %12258  ;;  %12278 = vpow2.f32 %v9554_v57  ;;  %v9559_v41 = vmul.f32 -1.442695, %v15043_v19  ;;  %v6493_v21 = vrot.slane %v14940_v38, 1  ;;  %v6494_v14 = vrot.slane %v14942_v34, 1 }
 0x721   : > { %16556 = vst [vmem:[#allocation19_spill] sm:$0xff] %v15065_v55  ;;  %16557 = vst [vmem:[#allocation24_spill] sm:$0xff] %v15068_v58  ;;  %v12261_v23 = vpop.eup %12260  ;;  %12280 = vpow2.f32 %v9555_v32  ;;  %v9560_v18 = vmul.f32 -1.442695, %v15050_v48  ;;  %v9561_v60 = vmul.f32 -1.442695, %v15057_v51  ;;  %v9619_v57 = vpack.c.bf16 %v5349_v31, %v5348_v49 }
 0x722   : > { %v12263_v15 = vpop.eup %12262  ;;  %12282 = vpow2.f32 %v9556_v10  ;;  %v9562_v1 = vmul.f32 -1.442695, %v15065_v55  ;;  %v9563_v19 = vmul.f32 -1.442695, %v15068_v58  ;;  %v6495_v38 = vsel %vm2058_vm6, %v6493_v21, %v6494_v14 }
 0x723   : > { %v12265_v47 = vpop.eup %12264  ;;  %12284 = vpow2.f32 %v9557_v62  ;;  %v5190_v10 = vadd.f32 1.0, %v14960_v43  ;;  %v5191_v62 = vadd.f32 1.0, %v14965_v5  ;;  %v5192_v49 = vadd.f32 1.0, %v14976_v6 }
 0x724   : > { %v12267_v2 = vpop.eup %12266  ;;  %12286 = vpow2.f32 %v9558_v50  ;;  %v5194_v14 = vadd.f32 1.0, %v14992_v35  ;;  %v5196_v9 = vadd.f32 1.0, %v15016_v44  ;;  %v5200_v44 = vadd.f32 1.0, %v15046_v3 }
 0x725   : > { %v12269_v32 = vpop.eup %12268  ;;  %12288 = vpow2.f32 %v9559_v41  ;;  %11010 = vmatmul.mubr.msk.bf16.gmra.mrb[144].mxu1 %vm14575_vm7, %v9619_v57  ;;  %v5193_v41 = vadd.f32 1.0, %v14979_v28  ;;  %v5197_v57 = vadd.f32 1.0, %v15024_v52  ;;  %v5198_v28 = vadd.f32 1.0, %v15031_v59 }
 0x726   : > { %v12271_v34 = vpop.eup %12270  ;;  %12290 = vpow2.f32 %v9560_v18  ;;  %11029 = vmatprep.mubr.bf16.mxu1 %v6495_v38  ;;  %v5195_v18 = vadd.f32 1.0, %v15003_v26  ;;  %v5199_v38 = vadd.f32 1.0, %v15039_v29  ;;  %v5202_v52 = vadd.f32 1.0, %v15062_v45 }
 0x727   : > { %v12273_v48 = vpop.eup %12272  ;;  %12292 = vpow2.f32 %v9561_v60  ;;  %v12009_v60 = vld [vmem:[#allocation9 + $0x180] sm:$0xff]   ;;  %v5204_v59 = vadd.f32 1.0, %v12263_v15  ;;  %v5206_v58 = vadd.f32 1.0, %v12267_v2  ;;  %v5207_v29 = vadd.f32 1.0, %v12269_v32 }
 0x728   : > { %v12275_v50 = vpop.eup %12274  ;;  %12294 = vpow2.f32 %v9562_v1  ;;  %v12008_v1 = vld [vmem:[#allocation9 + $0x1c0] sm:$0xff]   ;;  %v5209_v55 = vadd.f32 1.0, %v12273_v48 }
 0x729   : > { %v12277_v31 = vpop.eup %12276  ;;  %12296 = vpow2.f32 %v9563_v19  ;;  %10593 = vmatprep.subr.bf16.mxu0 %v12008_v1  ;;  %v5210_v3 = vadd.f32 1.0, %v12275_v50 }
 0x72a   : > { %v12279_v21 = vpop.eup %12278  ;;  %12298 = vrcp.f32 %v5190_v10  ;;  %10594 = vmatpush3.bf16.msra.mxu0 %v12009_v60 }
 0x72b   : > { %v12281_v43 = vpop.eup %12280  ;;  %12300 = vrcp.f32 %v5191_v62  ;;  %v5201_v62 = vadd.f32 1.0, %v15053_v27  ;;  %v5212_v27 = vadd.f32 1.0, %v12279_v21 }
 0x72c   : > { %v12283_v5 = vpop.eup %12282  ;;  %12302 = vrcp.f32 %v5192_v49  ;;  %v5213_v40 = vadd.f32 1.0, %v12281_v43 }
 0x72d   : > { %v12285_v6 = vpop.eup %12284  ;;  %12304 = vrcp.f32 %v5193_v41  ;;  %v5203_v41 = vadd.f32 1.0, %v12261_v23  ;;  %v15099_v15 = vadd.f32 1.0, %v12283_v5 }
 0x72e   : > { %v12287_v19 = vpop.eup %12286  ;;  %12306 = vrcp.f32 %v5194_v14  ;;  %v5205_v14 = vadd.f32 1.0, %v12265_v47  ;;  %v15101_v47 = vadd.f32 1.0, %v12285_v6 }
 0x72f   : > { %v12289_v35 = vpop.eup %12288  ;;  %12308 = vrcp.f32 %v5195_v18  ;;  %v5208_v18 = vadd.f32 1.0, %v12271_v34  ;;  %v15104_v34 = vadd.f32 1.0, %v12287_v19 }
 0x730   : > { %v12291_v26 = vpop.eup %12290  ;;  %12310 = vrcp.f32 %v5196_v9  ;;  %v5211_v9 = vadd.f32 1.0, %v12277_v31  ;;  %v15106_v48 = vadd.f32 1.0, %v12289_v35 }
 0x731   : > { %v12293_v10 = vpop.eup %12292  ;;  %12312 = vrcp.f32 %v5197_v57  ;;  %v15109_v21 = vadd.f32 1.0, %v12291_v26 }
 0x732   : > { %v12295_v49 = vpop.eup %12294  ;;  %12314 = vrcp.f32 %v5198_v28  ;;  %v15114_v6 = vadd.f32 1.0, %v12293_v10 }
 0x733   : > { %v12297_v1 = vpop.eup %12296  ;;  %12316 = vrcp.f32 %v5199_v38 }
 0x734   : > { %v12299_v60 = vpop.eup %12298  ;;  %12318 = vrcp.f32 %v5200_v44 }
 0x735   : > { %v12301_v51 = vpop.eup %12300  ;;  %12320 = vrcp.f32 %v5201_v62  ;;  %v5286_v45 = vmul.f32 %v12299_v60, %v14765_v24  ;;  %v12016_v62 = vld [vmem:[#allocation9 + $0x188] sm:$0xff]  }
 0x736   : > { %v12303_v23 = vpop.eup %12302  ;;  %12322 = vrcp.f32 %v5202_v52  ;;  %v5287_v2 = vmul.f32 %v12301_v51, %v14768_v36  ;;  %v15116_v36 = vadd.f32 1.0, %v12295_v49 }
 0x737   : > { %v12305_v32 = vpop.eup %12304  ;;  %12324 = vrcp.f32 %v5203_v41  ;;  %v5288_v50 = vmul.f32 %v12303_v23, %v14771_v33 }
 0x738   : > { %v12307_v31 = vpop.eup %12306  ;;  %12326 = vrcp.f32 %v5204_v59  ;;  %v5289_v24 = vmul.f32 %v12305_v32, %v14788_v61  ;;  %v15112_v43 = vpack.c.bf16 %v5287_v2, %v5286_v45  ;;  %v15123_v61 = vadd.f32 1.0, %v12297_v1 }
 0x739   : > { %v12309_v5 = vpop.eup %12308  ;;  %12328 = vrcp.f32 %v5205_v14  ;;  %v5290_v51 = vmul.f32 %v12307_v31, %v14809_v46 }
 0x73a   : > { %v12311_v57 = vpop.eup %12310  ;;  %12330 = vrcp.f32 %v5206_v58  ;;  %v5291_v33 = vmul.f32 %v12309_v5, %v14830_v42  ;;  %v15120_v19 = vpack.c.bf16 %v5289_v24, %v5288_v50  ;;  %v5654_v28 = vshrl.u32 %v15112_v43, 16  ;;  %v12015_v58 = vld [vmem:[#allocation9 + $0x1c8] sm:$0xff]  }
 0x73b   : > { %v12313_v35 = vpop.eup %12312  ;;  %12332 = vrcp.f32 %v5207_v29  ;;  %v5292_v38 = vmul.f32 %v12311_v57, %v14835_v53  ;;  %v5657_v26 = vshll.u32 %v15112_v43, 16  ;;  %10595 = vmatprep.subr.bf16.mxu0 %v12015_v58 }
 0x73c   : > { %v12315_v44 = vpop.eup %12314  ;;  %12334 = vrcp.f32 %v5208_v18  ;;  %v5293_v46 = vmul.f32 %v12313_v35, %v14855_v0  ;;  %v15128_v10 = vpack.c.bf16 %v5291_v33, %v5290_v51  ;;  %v5661_v42 = vshrl.u32 %v15120_v19, 16  ;;  %10596 = vmatpush3.bf16.msra.mxu0 %v12016_v62 }
 0x73d   : > { %v12317_v52 = vpop.eup %12316  ;;  %12336 = vrcp.f32 %v5209_v55  ;;  %v5294_v49 = vmul.f32 %v12315_v44, %v14865_v11  ;;  %v5664_v41 = vshll.u32 %v15120_v19, 16  ;;  %v15133_v59 = vrot.slane %v5654_v28, 7 }
 0x73e   : > { %v12319_v53 = vpop.eup %12318  ;;  %12338 = vrcp.f32 %v5210_v3  ;;  %v5295_v14 = vmul.f32 %v12317_v52, %v14875_v54  ;;  %v15136_v1 = vpack.c.bf16 %v5293_v46, %v5292_v38  ;;  %v5668_v0 = vshrl.u32 %v15128_v10, 16 }
 0x73f   : > { %v12321_v29 = vpop.eup %12320  ;;  %12340 = vrcp.f32 %v5211_v9  ;;  %v5296_v18 = vmul.f32 %v12319_v53, %v14885_v16  ;;  %v5671_v55 = vshll.u32 %v15128_v10, 16  ;;  %v15141_v11 = vrot.slane %v5661_v42, 7 }
 0x740   : > { %v12323_v60 = vpop.eup %12322  ;;  %12342 = vrcp.f32 %v5212_v27  ;;  %v5297_v3 = vmul.f32 %v12321_v29, %v14895_v8  ;;  %v15144_v45 = vpack.c.bf16 %v5295_v14, %v5294_v49  ;;  %v5675_v54 = vshrl.u32 %v15136_v1, 16 }
 0x741   : > { %v12325_v23 = vpop.eup %12324  ;;  %12344 = vrcp.f32 %v5213_v40  ;;  %v5298_v2 = vmul.f32 %v12323_v60, %v14905_v17  ;;  %v5678_v9 = vshll.u32 %v15136_v1, 16  ;;  %v15149_v16 = vrot.slane %v5668_v0, 7 }
 0x742   : > { %v12327_v32 = vpop.eup %12326  ;;  %12346 = vrcp.f32 %v15099_v15  ;;  %v5299_v50 = vmul.f32 %v12325_v23, %v14911_v25  ;;  %v15153_v27 = vpack.c.bf16 %v5297_v3, %v5296_v18  ;;  %v5682_v8 = vshrl.u32 %v15144_v45, 16  ;;  %v12022_v23 = vld [vmem:[#allocation9 + $0x1d0] sm:$0xff]  }
 0x743   : > { %v12329_v31 = vpop.eup %12328  ;;  %12348 = vrcp.f32 %v15101_v47  ;;  %v5300_v40 = vmul.f32 %v12327_v32, %v14914_v4  ;;  %v5685_v17 = vshll.u32 %v15144_v45, 16  ;;  %v15159_v24 = vrot.slane %v5675_v54, 7  ;;  %10597 = vmatprep.subr.bf16.mxu0 %v12022_v23 }
 0x744   : > { %v12331_v5 = vpop.eup %12330  ;;  %12350 = vrcp.f32 %v15104_v34  ;;  %v5301_v15 = vmul.f32 %v12329_v31, %v14932_v30  ;;  %v15163_v51 = vpack.c.bf16 %v5299_v50, %v5298_v2  ;;  %v5689_v25 = vshrl.u32 %v15153_v27, 16 }
 0x745   : > { %v12333_v57 = vpop.eup %12332  ;;  %12352 = vrcp.f32 %v15106_v48  ;;  %v5302_v47 = vmul.f32 %v12331_v5, %v14946_v13  ;;  %v5692_v4 = vshll.u32 %v15153_v27, 16  ;;  %v15169_v33 = vrot.slane %v5682_v8, 7 }
 0x746   : > { %v12335_v28 = vpop.eup %12334  ;;  %12354 = vrcp.f32 %v15109_v21  ;;  %v5303_v34 = vmul.f32 %v12333_v57, %v14950_v12  ;;  %v5644_v35 = vpack.c.bf16 %v5301_v15, %v5300_v40  ;;  %v5696_v30 = vshrl.u32 %v15163_v51, 16 }
 0x747   : > { %v12337_v38 = vpop.eup %12336  ;;  %12356 = vrcp.f32 %v15114_v6  ;;  %v5304_v44 = vmul.f32 %v12335_v28, %v14955_v63  ;;  %v5699_v48 = vshll.u32 %v15163_v51, 16  ;;  %v15177_v13 = vrot.slane %v5689_v25, 7 }
 0x748   : > { %v12339_v46 = vpop.eup %12338  ;;  %12358 = vrcp.f32 %v15116_v36  ;;  %v5305_v42 = vmul.f32 %v12337_v38, %v14969_v7  ;;  %v5645_v21 = vpack.c.bf16 %v5303_v34, %v5302_v47  ;;  %v5703_v58 = vshrl.u32 %v5644_v35, 16  ;;  %v16561_v34 = vld [vmem:[#allocation21_spill] sm:$0xff] }
 0x749   : > { %v12341_v12 = vpop.eup %12340  ;;  %12360 = vrcp.f32 %v15123_v61  ;;  %v5306_v62 = vmul.f32 %v12339_v46, %v14973_v37  ;;  %v5706_v52 = vshll.u32 %v5644_v35, 16  ;;  %v15183_v6 = vrot.slane %v5696_v30, 7 }
 0x74a   : > { %v12343_v63 = vpop.eup %12342  ;;  %v5307_v49 = vmul.f32 %v12341_v12, %v14987_v22  ;;  %v5646_v53 = vpack.c.bf16 %v5305_v42, %v5304_v44  ;;  %v5710_v14 = vshrl.u32 %v5645_v21, 16  ;;  %v5713_v0 = vshll.u32 %v5645_v21, 16  ;;  %v16562_v44 = vld [vmem:[#allocation23_spill] sm:$0xff] }
 0x74b   : > { %v12345_v29 = vpop.eup %12344  ;;  %v5308_v36 = vmul.f32 %v12343_v63, %v14996_v20  ;;  %v15187_v7 = vrot.slane %v5703_v58, 7  ;;  %v15192_v61 = vor.u32 %v5657_v26, %v15133_v59  ;;  %v15197_v37 = vor.u32 %v5664_v41, %v15141_v11  ;;  %v12023_v20 = vld [vmem:[#allocation9 + $0x190] sm:$0xff]   ;;  %v16558_v26 = vld [vmem:[#allocation20_spill] sm:$0xff]  ;;  %v16563_v12 = vld [vmem:[#allocation19_spill] sm:$0xff] }
 0x74c   : > { %v12347_v18 = vpop.eup %12346  ;;  %v5309_v22 = vmul.f32 %v12345_v29, %v15011_v39  ;;  %v5647_v60 = vpack.c.bf16 %v5307_v49, %v5306_v62  ;;  %v5717_v3 = vshrl.u32 %v5646_v53, 16  ;;  %v5720_v54 = vshll.u32 %v5646_v53, 16  ;;  %10598 = vmatpush3.bf16.msra.mxu0 %v12023_v20 }
 0x74d   : > { %v12349_v2 = vpop.eup %12348  ;;  %v5310_v32 = vmul.f32 %v12347_v18, %v15020_v56  ;;  %v5712_v50 = vrot.slane %v5710_v14, 7  ;;  %v15204_v43 = vor.u32 %v5671_v55, %v15149_v16  ;;  %v15209_v19 = vor.u32 %v5678_v9, %v15159_v24  ;;  %v16559_v56 = vld [vmem:[#allocation22_spill] sm:$0xff]  ;;  %v16564_v14 = vld [vmem:[#allocation24_spill] sm:$0xff] }
 0x74e   : > { %v12351_v39 = vpop.eup %12350  ;;  %v5311_v41 = vmul.f32 %v12349_v2, %v16558_v26  ;;  %v5648_v27 = vpack.c.bf16 %v5309_v22, %v5308_v36  ;;  %v5724_v8 = vshrl.u32 %v5647_v60, 16  ;;  %v5727_v31 = vshll.u32 %v5647_v60, 16  ;;  %v16560_v9 = vld [vmem:[#allocation18_spill] sm:$0xff] }
 0x74f   : > { %v12353_v40 = vpop.eup %12352  ;;  %v5312_v5 = vmul.f32 %v12351_v39, %v16559_v56  ;;  %v5719_v15 = vrot.slane %v5717_v3, 7  ;;  %v15216_v10 = vor.u32 %v5685_v17, %v15169_v33  ;;  %v15219_v1 = vor.u32 %v5692_v4, %v15177_v13 }
 0x750   : > { %v12355_v55 = vpop.eup %12354  ;;  %v5313_v51 = vmul.f32 %v12353_v40, %v16560_v9  ;;  %v5649_v25 = vpack.c.bf16 %v5311_v41, %v5310_v32  ;;  %v5731_v57 = vshrl.u32 %v5648_v27, 16  ;;  %v5734_v47 = vshll.u32 %v5648_v27, 16 }
 0x751   : > { %v12357_v28 = vpop.eup %12356  ;;  %v5314_v35 = vmul.f32 %v12355_v55, %v16561_v34  ;;  %v5726_v30 = vrot.slane %v5724_v8, 7  ;;  %v5701_v38 = vor.u32 %v5699_v48, %v15183_v6  ;;  %v5708_v45 = vor.u32 %v5706_v52, %v15187_v7 }
 0x752   : > { %v12359_v17 = vpop.eup %12358  ;;  %v5315_v46 = vmul.f32 %v12357_v28, %v16562_v44  ;;  %v5650_v4 = vpack.c.bf16 %v5313_v51, %v5312_v5  ;;  %v5738_v42 = vshrl.u32 %v5649_v25, 16  ;;  %v5741_v21 = vshll.u32 %v5649_v25, 16 }
 0x753   : > { %v12361_v58 = vpop.eup %12360  ;;  %v5316_v62 = vmul.f32 %v12359_v17, %v16563_v12  ;;  %v5733_v63 = vrot.slane %v5731_v57, 7  ;;  %v5715_v49 = vor.u32 %v5713_v0, %v5712_v50  ;;  %v5722_v53 = vor.u32 %v5720_v54, %v5719_v15  ;;  %v12029_v57 = vld [vmem:[#allocation9 + $0x1d8] sm:$0xff]  }
 0x754   : > { %v5317_v29 = vmul.f32 %v12361_v58, %v16564_v14  ;;  %v5651_v36 = vpack.c.bf16 %v5315_v46, %v5314_v35  ;;  %v5745_v18 = vshrl.u32 %v5650_v4, 16  ;;  %v5748_v22 = vshll.u32 %v5650_v4, 16  ;;  %10599 = vmatprep.subr.bf16.mxu0 %v12029_v57 }
 0x755   : > { %v5740_v48 = vrot.slane %v5738_v42, 7  ;;  %v5729_v60 = vor.u32 %v5727_v31, %v5726_v30  ;;  %v5736_v52 = vor.u32 %v5734_v47, %v5733_v63  ;;  %v5813_v23 = vsel %vm13402_vm5, %v15133_v59, 0  ;;  %v12030_v47 = vld [vmem:[#allocation9 + $0x198] sm:$0xff]   ;;  %v12031_v42 = vld [vmem:[#allocation9 + $0x1e0] sm:$0xff]  }
 0x756   : > { %v5652_v20 = vpack.c.bf16 %v5317_v29, %v5316_v62  ;;  %v5752_v2 = vshrl.u32 %v5651_v36, 16  ;;  %v5755_v32 = vshll.u32 %v5651_v36, 16  ;;  %v5747_v39 = vrot.slane %v5745_v18, 7  ;;  %10600 = vmatpush3.bf16.msra.mxu0 %v12030_v47 }
 0x757   : > { %v5743_v26 = vor.u32 %v5741_v21, %v5740_v48  ;;  %v5814_v0 = vsel %vm13402_vm5, %v15141_v11, 0  ;;  %v5815_v54 = vsel %vm13402_vm5, %v15149_v16, 0  ;;  %v5816_v41 = vsel %vm13402_vm5, %v15159_v24, 0  ;;  %10601 = vmatprep.subr.bf16.mxu0 %v12031_v42 }
 0x758   : > { %v5759_v27 = vshrl.u32 %v5652_v20, 16  ;;  %v5762_v8 = vshll.u32 %v5652_v20, 16  ;;  %v5754_v59 = vrot.slane %v5752_v2, 7  ;;  %v5750_v31 = vor.u32 %v5748_v22, %v5747_v39  ;;  %v12036_v20 = vld [vmem:[#allocation9 + $0x1e8] sm:$0xff]  }
 0x759   : > { %v5817_v40 = vsel %vm13402_vm5, %v15169_v33, 0  ;;  %v5818_v11 = vsel %vm13402_vm5, %v15177_v13, 0  ;;  %v5819_v16 = vsel %vm13402_vm5, %v15183_v6, 0  ;;  %v5820_v24 = vsel %vm13402_vm5, %v15187_v7, 0  ;;  %v12037_v2 = vld [vmem:[#allocation9 + $0x1a8] sm:$0xff]  }
 0x75a   : > { %v5761_v56 = vrot.slane %v5759_v27, 7  ;;  %v5757_v5 = vor.u32 %v5755_v32, %v5754_v59  ;;  %v5821_v55 = vsel %vm13402_vm5, %v5712_v50, 0  ;;  %v15256_v33 = vsel %vm13402_vm5, %v5719_v15, 0 }
 0x75b   : > { %v15260_v13 = vsel %vm13402_vm5, %v5726_v30, 0  ;;  %v15264_v6 = vsel %vm13402_vm5, %v5733_v63, 0  ;;  %v15268_v7 = vsel %vm13402_vm5, %v5740_v48, 0  ;;  %v15272_v9 = vsel %vm13402_vm5, %v5747_v39, 0  ;;  %v12032_v63 = vld [vmem:[#allocation9 + $0x1a0] sm:$0xff]  }
 0x75c   : > { %v5764_v50 = vor.u32 %v5762_v8, %v5761_v56  ;;  %v15276_v15 = vsel %vm13402_vm5, %v5754_v59, 0  ;;  %v15280_v51 = vsel %vm13402_vm5, %v5761_v56, 0  ;;  %v15285_v25 = vsel %vm13402_vm5, 0, %v15192_v61  ;;  %10602 = vmatpush3.bf16.msra.mxu0 %v12032_v63 }
 0x75d   : > { %v15290_v28 = vsel %vm13402_vm5, 0, %v15197_v37  ;;  %v15295_v34 = vsel %vm13402_vm5, 0, %v15204_v43  ;;  %v15300_v35 = vsel %vm13402_vm5, 0, %v15209_v19  ;;  %v15305_v61 = vsel %vm13402_vm5, 0, %v15216_v10  ;;  %10603 = vmatprep.subr.bf16.mxu0 %v12036_v20  ;;  %v11972_v20 = vld [vmem:[#allocation9 + $0x110] sm:$0xff]  }
 0x75e   : > { %v15310_v37 = vsel %vm13402_vm5, 0, %v15219_v1  ;;  %v15314_v30 = vsel %vm13402_vm5, 0, %v5701_v38  ;;  %v15318_v43 = vsel %vm13402_vm5, 0, %v5708_v45  ;;  %v15322_v19 = vsel %vm13402_vm5, 0, %v5715_v49 }
 0x75f   : > { %v15326_v10 = vsel %vm13402_vm5, 0, %v5722_v53  ;;  %v15330_v1 = vsel %vm13402_vm5, 0, %v5729_v60  ;;  %v15334_v38 = vsel %vm13402_vm5, 0, %v5736_v52  ;;  %v15338_v45 = vsel %vm13402_vm5, 0, %v5743_v26 }
 0x760   : > { %v15342_v17 = vsel %vm13402_vm5, 0, %v5750_v31  ;;  %v15346_v44 = vsel %vm13402_vm5, 0, %v5757_v5  ;;  %v15350_v46 = vsel %vm13402_vm5, 0, %v5764_v50  ;;  %v9623_v4 = vcombine.low %v5813_v23, %v5813_v23  ;;  %10604 = vmatpush3.bf16.msra.mxu0 %v12037_v2 }
 0x761   : > { %v9626_v21 = vcombine.low %v5814_v0, %v5814_v0  ;;  %v9629_v58 = vcombine.low %v5815_v54, %v5815_v54  ;;  %v9632_v12 = vcombine.low %v5816_v41, %v5816_v41  ;;  %v9635_v62 = vcombine.low %v5817_v40, %v5817_v40 }
 0x762   : > { %v9638_v49 = vcombine.low %v5818_v11, %v5818_v11  ;;  %v9641_v53 = vcombine.low %v5819_v16, %v5819_v16  ;;  %v9644_v14 = vcombine.low %v5820_v24, %v5820_v24  ;;  %v9647_v29 = vcombine.low %v5821_v55, %v5821_v55  ;;  %6008 = vst [vmem:[#allocation3 + $0x14] sm:$0x1] %v9623_v4  ;;  %v12038_v55 = vld [vmem:[#allocation9 + $0x1f0] sm:$0xff]  }
 0x763   : > { %v9650_v36 = vcombine.low %v15256_v33, %v15256_v33  ;;  %v9653_v18 = vcombine.low %v15260_v13, %v15260_v13  ;;  %v9656_v22 = vcombine.low %v15264_v6, %v15264_v6  ;;  %v9659_v48 = vcombine.low %v15268_v7, %v15268_v7  ;;  %6011 = vst [vmem:[#allocation3 + $0x20] sm:$0x1] %v9626_v21  ;;  %v12039_v33 = vld [vmem:[#allocation9 + $0x1b0] sm:$0xff]  }
 0x764   : > { %6014 = vst [vmem:[#allocation3 + $0x2c] sm:$0x1] %v9629_v58  ;;  %6017 = vst [vmem:[#allocation3 + $0x38] sm:$0x1] %v9632_v12  ;;  %v9662_v60 = vcombine.low %v15272_v9, %v15272_v9  ;;  %v9665_v52 = vcombine.low %v15276_v15, %v15276_v15  ;;  %v9668_v3 = vcombine.low %v15280_v51, %v15280_v51  ;;  %10605 = vmatprep.subr.bf16.mxu0 %v12038_v55 }
 0x765   : > { %6020 = vst [vmem:[#allocation3 + $0x44] sm:$0x1] %v9635_v62  ;;  %v9621_v23 = vcombine.low %v15285_v25, %v15285_v25  ;;  %6023 = vst [vmem:[#allocation3 + $0x50] sm:$0x1] %v9638_v49  ;;  %v9622_v32 = vcombine.high %v15285_v25, %v15285_v25  ;;  %v9624_v39 = vcombine.low %v15290_v28, %v15290_v28  ;;  %10606 = vmatpush3.bf16.msra.mxu0 %v12039_v33 }
 0x766   : > { %6026 = vst [vmem:[#allocation3 + $0x5c] sm:$0x1] %v9641_v53  ;;  %6029 = vst [vmem:[#allocation3 + $0x68] sm:$0x1] %v9644_v14  ;;  %v9625_v26 = vcombine.high %v15290_v28, %v15290_v28  ;;  %v9627_v0 = vcombine.low %v15295_v34, %v15295_v34  ;;  %v9628_v54 = vcombine.high %v15295_v34, %v15295_v34 }
 0x767   : > { %6032 = vst [vmem:[#allocation3 + $0x74] sm:$0x1] %v9647_v29  ;;  %6035 = vst [vmem:[#allocation3 + $0x80] sm:$0x1] %v9650_v36  ;;  %v9630_v41 = vcombine.low %v15300_v35, %v15300_v35  ;;  %v9631_v27 = vcombine.high %v15300_v35, %v15300_v35  ;;  %v9633_v8 = vcombine.low %v15305_v61, %v15305_v61 }
 0x768   : > { %6038 = vst [vmem:[#allocation3 + $0x8c] sm:$0x1] %v9653_v18  ;;  %6041 = vst [vmem:[#allocation3 + $0x98] sm:$0x1] %v9656_v22  ;;  %v9634_v59 = vcombine.high %v15305_v61, %v15305_v61  ;;  %v9636_v31 = vcombine.low %v15310_v37, %v15310_v37  ;;  %v9637_v40 = vcombine.high %v15310_v37, %v15310_v37 }
 0x769   : > { %6044 = vst [vmem:[#allocation3 + $0xa4] sm:$0x1] %v9659_v48  ;;  %6047 = vst [vmem:[#allocation3 + $0xb0] sm:$0x1] %v9662_v60  ;;  %v9639_v11 = vcombine.low %v15314_v30, %v15314_v30  ;;  %v9640_v16 = vcombine.high %v15314_v30, %v15314_v30  ;;  %v9642_v24 = vcombine.low %v15318_v43, %v15318_v43  ;;  %v11969_v60 = vld [vmem:[#allocation9 + $0xc8] sm:$0xff]  }
 0x76a   : > { %6050 = vst [vmem:[#allocation3 + $0xbc] sm:$0x1] %v9665_v52  ;;  %6053 = vst [vmem:[#allocation3 + $0xc8] sm:$0x1] %v9668_v3  ;;  %v9643_v56 = vcombine.high %v15318_v43, %v15318_v43  ;;  %v9645_v5 = vcombine.low %v15322_v19, %v15322_v19  ;;  %v9646_v13 = vcombine.high %v15322_v19, %v15322_v19 }
 0x76b   : > { %6006 = vst [vmem:[#allocation3 + $0xc] sm:$0xf] %v9621_v23  ;;  %6007 = vst [vmem:[#allocation3 + $0x10] sm:$0xf] %v9622_v32  ;;  %v9648_v6 = vcombine.low %v15326_v10, %v15326_v10  ;;  %v9649_v7 = vcombine.high %v15326_v10, %v15326_v10  ;;  %v9651_v9 = vcombine.low %v15330_v1, %v15330_v1  ;;  %v11963_v10 = vld [vmem:[#allocation9 + $0xc0] sm:$0xff]  }
 0x76c   : > { %6009 = vst [vmem:[#allocation3 + $0x18] sm:$0xf] %v9624_v39  ;;  %6010 = vst [vmem:[#allocation3 + $0x1c] sm:$0xf] %v9625_v26  ;;  %v9652_v50 = vcombine.high %v15330_v1, %v15330_v1  ;;  %v9654_v15 = vcombine.low %v15334_v38, %v15334_v38  ;;  %v9655_v51 = vcombine.high %v15334_v38, %v15334_v38 }
 0x76d   : > { %6012 = vst [vmem:[#allocation3 + $0x24] sm:$0xf] %v9627_v0  ;;  %6013 = vst [vmem:[#allocation3 + $0x28] sm:$0xf] %v9628_v54  ;;  %v9657_v25 = vcombine.low %v15338_v45, %v15338_v45  ;;  %v9658_v47 = vcombine.high %v15338_v45, %v15338_v45  ;;  %v9660_v28 = vcombine.low %v15342_v17, %v15342_v17 }
 0x76e   : > { %6015 = vst [vmem:[#allocation3 + $0x30] sm:$0xf] %v9630_v41  ;;  %6016 = vst [vmem:[#allocation3 + $0x34] sm:$0xf] %v9631_v27  ;;  %v9661_v34 = vcombine.high %v15342_v17, %v15342_v17  ;;  %v9663_v35 = vcombine.low %v15346_v44, %v15346_v44  ;;  %v9664_v37 = vcombine.high %v15346_v44, %v15346_v44  ;;  %v11966_v17 = vld [vmem:[#allocation9 + $0x108] sm:$0xff]   ;;  %v11975_v27 = vld [vmem:[#allocation9 + $0xd0] sm:$0xff]  }
 0x76f   : > { %6018 = vst [vmem:[#allocation3 + $0x3c] sm:$0xf] %v9633_v8  ;;  %6019 = vst [vmem:[#allocation3 + $0x40] sm:$0xf] %v9634_v59  ;;  %v9666_v30 = vcombine.low %v15350_v46, %v15350_v46  ;;  %v9667_v43 = vcombine.high %v15350_v46, %v15350_v46  ;;  %v11978_v8 = vld [vmem:[#allocation9 + $0x118] sm:$0xff]  }
 0x770   : > { %6021 = vst [vmem:[#allocation3 + $0x48] sm:$0xf] %v9636_v31  ;;  %6022 = vst [vmem:[#allocation3 + $0x4c] sm:$0xf] %v9637_v40 }
 0x771   : > { %6024 = vst [vmem:[#allocation3 + $0x54] sm:$0xf] %v9639_v11  ;;  %6025 = vst [vmem:[#allocation3 + $0x58] sm:$0xf] %v9640_v16 }
 0x772   : > { %6027 = vst [vmem:[#allocation3 + $0x60] sm:$0xf] %v9642_v24  ;;  %6028 = vst [vmem:[#allocation3 + $0x64] sm:$0xf] %v9643_v56  ;;  %v11961_v19 = vld [vmem:[#allocation3 + $0xc] sm:$0xff]  }
 0x773   : > { %6030 = vst [vmem:[#allocation3 + $0x6c] sm:$0xf] %v9645_v5  ;;  %v11962_v57 = vld [vmem:[#allocation3 + $0x14] ss:$0 sps:$4 sm:$0x11]   ;;  %v15430_v38 = vld [vmem:[#allocation3 + $0x18] sm:$0xff]  }
 0x774   : > { %6031 = vst [vmem:[#allocation3 + $0x70] sm:$0xf] %v9646_v13  ;;  %6033 = vst [vmem:[#allocation3 + $0x78] sm:$0xf] %v9648_v6  ;;  %v6497_v1 = vrot.slane %v11962_v57, 1  ;;  %v6496_v44 = vrot.slane %v11961_v19, 1 }
 0x775   : > { %6034 = vst [vmem:[#allocation3 + $0x7c] sm:$0xf] %v9649_v7  ;;  %6036 = vst [vmem:[#allocation3 + $0x84] sm:$0xf] %v9651_v9  ;;  %v6300_v46 = vshll.u32 %v11961_v19, 16  ;;  %v6305_v4 = vshll.u32 %v11962_v57, 16 }
 0x776   : > { %v11965_v61 = vld [vmem:[#allocation3 + $0x20] ss:$0 sps:$4 sm:$0x11]   ;;  %6037 = vst [vmem:[#allocation3 + $0x88] sm:$0xf] %v9652_v50  ;;  %v15432_v42 = vld [vmem:[#allocation3 + $0x24] sm:$0xff]   ;;  %v6498_v63 = vsel %vm2058_vm6, %v6496_v44, %v6497_v1 }
 0x777   : > { %6039 = vst [vmem:[#allocation3 + $0x90] sm:$0xf] %v9654_v15  ;;  %6040 = vst [vmem:[#allocation3 + $0x94] sm:$0xf] %v9655_v51  ;;  %v6500_v45 = vrot.slane %v11965_v61, 1  ;;  %v6499_v21 = vrot.slane %v15430_v38, 1  ;;  %11030 = vmatmul.mubr.bf16.vlgmr.msra.gmra.mrb[116].mxu1 %v6498_v63 }
 0x778   : > { %6042 = vst [vmem:[#allocation3 + $0x9c] sm:$0xf] %v9657_v25  ;;  %6043 = vst [vmem:[#allocation3 + $0xa0] sm:$0xf] %v9658_v47  ;;  %v6298_v58 = vshrl.u32 %v11961_v19, 16  ;;  %v6312_v12 = vshll.u32 %v15430_v38, 16  ;;  %10458 = vmatpush3.bf16.msra.mxu1 %v11963_v10 }
 0x779   : > { %6045 = vst [vmem:[#allocation3 + $0xa8] sm:$0xf] %v9660_v28  ;;  %6046 = vst [vmem:[#allocation3 + $0xac] sm:$0xf] %v9661_v34  ;;  %v6317_v62 = vshll.u32 %v11965_v61, 16  ;;  %v6302_v49 = vrot.slane %v6300_v46, 1  ;;  %v6501_v29 = vsel %vm2058_vm6, %v6499_v21, %v6500_v45  ;;  %10459 = vmatprep.subr.bf16.mxu1 %v11966_v17 }
 0x77a   : > { %6048 = vst [vmem:[#allocation3 + $0xb4] sm:$0xf] %v9663_v35  ;;  %6049 = vst [vmem:[#allocation3 + $0xb8] sm:$0xf] %v9664_v37  ;;  %v15437_v14 = vld [vmem:[#allocation3 + $0x30] sm:$0xff]   ;;  %v6310_v36 = vshrl.u32 %v15430_v38, 16  ;;  %11033 = vmatprep.mubr.bf16.mxu1 %v6501_v29 }
 0x77b   : > { %6051 = vst [vmem:[#allocation3 + $0xc0] sm:$0xf] %v9666_v30  ;;  %6052 = vst [vmem:[#allocation3 + $0xc4] sm:$0xf] %v9667_v43  ;;  %v6314_v18 = vrot.slane %v6312_v12, 1  ;;  %v6303_v22 = vor.u32 %v6302_v49, %v6298_v58  ;;  %v6307_v48 = vrot.slane %v6305_v4, 1 }
 0x77c   : > { %v11968_v53 = vld [vmem:[#allocation3 + $0x2c] ss:$0 sps:$4 sm:$0x11]   ;;  %v6324_v52 = vshll.u32 %v15432_v42, 16  ;;  %v6319_v32 = vrot.slane %v6317_v62, 1  ;;  %v6502_v39 = vrot.slane %v15432_v42, 1  ;;  %10460 = vmatpush3.bf16.msra.mxu1 %v11969_v60 }
 0x77d   : > { %v6315_v3 = vor.u32 %v6314_v18, %v6310_v36  ;;  %v11971_v23 = vld [vmem:[#allocation3 + $0x38] ss:$0 sps:$4 sm:$0x11]   ;;  %v6308_v2 = vsel %vm1849_vm3, %v6303_v22, %v6307_v48  ;;  %v6505_v26 = vrot.slane %v15437_v14, 1  ;;  %v6503_v54 = vrot.slane %v11968_v53, 1  ;;  %10461 = vmatprep.subr.bf16.mxu1 %v11972_v20  ;;  %v15448_v16 = vld [vmem:[#allocation3 + $0x3c] sm:$0xff]  }
 0x77e   : > { %6789 = vmatprep.mubr.bf16.mxu0 %v6308_v2  ;;  %v6326_v41 = vrot.slane %v6324_v52, 1  ;;  %v6506_v59 = vrot.slane %v11971_v23, 1  ;;  %v6322_v31 = vshrl.u32 %v15432_v42, 16  ;;  %v6329_v11 = vshll.u32 %v11968_v53, 16  ;;  %v15452_v56 = vld [vmem:[#allocation3 + $0x48] sm:$0xff]   ;;  %v11981_v6 = vld [vmem:[#allocation9 + $0xd8] sm:$0xff]  }
 0x77f   : > { %6790 = vmatmul.mubr.bf16.gmra.mrb[124].mxu0 %v11961_v19  ;;  %v6320_v0 = vsel %vm1849_vm3, %v6315_v3, %v6319_v32  ;;  %v6504_v40 = vsel %vm2058_vm6, %v6502_v39, %v6503_v54  ;;  %v15450_v24 = vld [vmem:[#allocation3 + $0x44] ss:$0 sps:$4 sm:$0x11]   ;;  %v15455_v33 = vld [vmem:[#allocation3 + $0x50] ss:$0 sps:$4 sm:$0x11]  }
 0x780   : > { %6797 = vmatprep.mubr.bf16.mxu0 %v6320_v0  ;;  %11034 = vmatmul.mubr.bf16.gmra.mrb[120].mxu1 %v6504_v40  ;;  %v6507_v5 = vsel %vm2058_vm6, %v6505_v26, %v6506_v59  ;;  %v6327_v55 = vor.u32 %v6326_v41, %v6322_v31  ;;  %v6336_v13 = vshll.u32 %v15437_v14, 16  ;;  %v11984_v7 = vld [vmem:[#allocation9 + $0x120] sm:$0xff]   ;;  %v6331_v9 = vrot.slane %v6329_v11, 1  ;;  %v11990_v35 = vld [vmem:[#allocation9 + $0x128] sm:$0xff]   ;;  %v11996_v44 = vld [vmem:[#allocation9 + $0x130] sm:$0xff]  }
 0x781   : > { %11037 = vmatprep.mubr.bf16.mxu1 %v6507_v5  ;;  %10462 = vmatpush3.bf16.msra.mxu1 %v11975_v27  ;;  %v6508_v50 = vrot.slane %v15448_v16, 1  ;;  %v6511_v15 = vrot.slane %v15452_v56, 1  ;;  %v11987_v51 = vld [vmem:[#allocation9 + $0xe0] sm:$0xff]   ;;  %v6509_v57 = vrot.slane %v15450_v24, 1  ;;  %v6512_v28 = vrot.slane %v15455_v33, 1  ;;  %v11993_v43 = vld [vmem:[#allocation9 + $0xe8] sm:$0xff]  }
 0x782   : > { %10463 = vmatprep.subr.bf16.mxu1 %v11978_v8  ;;  %v6332_v25 = vsel %vm1849_vm3, %v6327_v55, %v6331_v9  ;;  %v6338_v47 = vrot.slane %v6336_v13, 1  ;;  %v6334_v34 = vshrl.u32 %v15437_v14, 16  ;;  %v6341_v37 = vshll.u32 %v11971_v23, 16  ;;  %v15466_v30 = vld [vmem:[#allocation3 + $0x54] sm:$0xff]   ;;  %v15469_v10 = vld [vmem:[#allocation3 + $0x60] sm:$0xff]   ;;  %v11999_v63 = vld [vmem:[#allocation9 + $0xf0] sm:$0xff]  }
 0x783   : > { %v6510_v61 = vsel %vm2058_vm6, %v6508_v50, %v6509_v57  ;;  %v6513_v19 = vsel %vm2058_vm6, %v6511_v15, %v6512_v28  ;;  %v6348_v45 = vshll.u32 %v15448_v16, 16  ;;  %v15474_v17 = vld [vmem:[#allocation3 + $0x68] ss:$0 sps:$4 sm:$0x11]   ;;  %v6514_v4 = vrot.slane %v15466_v30, 1  ;;  %v12002_v53 = vld [vmem:[#allocation9 + $0x138] sm:$0xff]  }
 0x784   : > { %v6339_v1 = vor.u32 %v6338_v47, %v6334_v34  ;;  %v6343_v46 = vrot.slane %v6341_v37, 1  ;;  %v6517_v21 = vrot.slane %v15469_v10, 1  ;;  %v6518_v49 = vrot.slane %v15474_v17, 1  ;;  %v15485_v22 = vld [vmem:[#allocation3 + $0x6c] sm:$0xff]   ;;  %v15490_v60 = vld [vmem:[#allocation3 + $0x78] sm:$0xff]   ;;  %v15507_v40 = vld [vmem:[#allocation3 + $0x84] sm:$0xff]  }
 0x785   : > { %10464 = vmatpush3.bf16.msra.mxu1 %v11981_v6  ;;  %v6350_v62 = vrot.slane %v6348_v45, 1  ;;  %v6346_v36 = vshrl.u32 %v15448_v16, 16  ;;  %v6353_v18 = vshll.u32 %v15450_v24, 16  ;;  %v15488_v48 = vld [vmem:[#allocation3 + $0x74] ss:$0 sps:$4 sm:$0x11]  }
 0x786   : > { %10465 = vmatprep.subr.bf16.mxu1 %v11984_v7  ;;  %v6344_v58 = vsel %vm1849_vm3, %v6339_v1, %v6343_v46  ;;  %v6360_v3 = vshll.u32 %v15452_v56, 16  ;;  %v12005_v23 = vld [vmem:[#allocation9 + $0xf8] sm:$0xff]   ;;  %v15493_v20 = vld [vmem:[#allocation3 + $0x80] ss:$0 sps:$4 sm:$0x11]   ;;  %v15495_v2 = vld [vmem:[#allocation9 + $0x140] sm:$0xff]  }
 0x787   : > { %6798 = vmatmul.mubr.bf16.gmra.mrb[128].mxu0 %v15430_v38  ;;  %v15471_v38 = vld [vmem:[#allocation3 + $0x5c] ss:$0 sps:$4 sm:$0x11]   ;;  %v6351_v52 = vor.u32 %v6350_v62, %v6346_v36  ;;  %v6355_v32 = vrot.slane %v6353_v18, 1  ;;  %v6520_v39 = vrot.slane %v15485_v22, 1  ;;  %v6523_v26 = vrot.slane %v15490_v60, 1 }
 0x788   : > { %6805 = vmatprep.mubr.bf16.mxu0 %v6332_v25  ;;  %11038 = vmatmul.mubr.bf16.gmra.mrb[124].mxu1 %v6510_v61  ;;  %v6515_v12 = vrot.slane %v15471_v38, 1  ;;  %v6521_v54 = vrot.slane %v15488_v48, 1  ;;  %v6362_v41 = vrot.slane %v6360_v3, 1  ;;  %v6524_v27 = vrot.slane %v15493_v20, 1  ;;  %v15512_v24 = vld [vmem:[#allocation3 + $0x90] sm:$0xff]   ;;  %v15526_v28 = vld [vmem:[#allocation3 + $0x9c] sm:$0xff]  }
 0x789   : > { %11041 = vmatprep.mubr.bf16.mxu1 %v6513_v19  ;;  %10466 = vmatpush3.bf16.msra.mxu1 %v11987_v51  ;;  %v6356_v0 = vsel %vm1849_vm3, %v6351_v52, %v6355_v32  ;;  %v6358_v59 = vshrl.u32 %v15452_v56, 16  ;;  %v6365_v31 = vshll.u32 %v15455_v33, 16  ;;  %v15510_v11 = vld [vmem:[#allocation3 + $0x8c] ss:$0 sps:$4 sm:$0x11]   ;;  %v6372_v55 = vshll.u32 %v15466_v30, 16 }
 0x78a   : > { %10467 = vmatprep.subr.bf16.mxu1 %v11990_v35  ;;  %v6516_v29 = vsel %vm2058_vm6, %v6514_v4, %v6515_v12  ;;  %v6522_v8 = vsel %vm2058_vm6, %v6520_v39, %v6521_v54  ;;  %v15515_v13 = vld [vmem:[#allocation3 + $0x98] ss:$0 sps:$4 sm:$0x11]   ;;  %v6526_v7 = vrot.slane %v15507_v40, 1  ;;  %v6529_v33 = vrot.slane %v15512_v24, 1  ;;  %v15531_v35 = vld [vmem:[#allocation3 + $0xc] sm:$0xff]  }
 0x78b   : > { %v6363_v5 = vor.u32 %v6362_v41, %v6358_v59  ;;  %v6367_v6 = vrot.slane %v6365_v31, 1  ;;  %v6527_v50 = vrot.slane %v15510_v11, 1  ;;  %v6374_v15 = vrot.slane %v6372_v55, 1  ;;  %v15533_v37 = vld [vmem:[#allocation3 + $0xa4] ss:$0 sps:$4 sm:$0x11]  }
 0x78c   : > { %v6530_v51 = vrot.slane %v15515_v13, 1  ;;  %v6370_v57 = vshrl.u32 %v15466_v30, 16  ;;  %v6377_v47 = vshll.u32 %v15471_v38, 16  ;;  %v15536_v19 = vld [vmem:[#allocation3 + $0xb0] ss:$0 sps:$4 sm:$0x11]  }
 0x78d   : > { %10468 = vmatpush3.bf16.msra.mxu1 %v11993_v43  ;;  %v6368_v9 = vsel %vm1849_vm3, %v6363_v5, %v6367_v6  ;;  %v6528_v25 = vsel %vm2058_vm6, %v6526_v7, %v6527_v50  ;;  %v6384_v43 = vshll.u32 %v15469_v10, 16  ;;  %v6532_v38 = vrot.slane %v15526_v28, 1  ;;  %v15545_v12 = vld [vmem:[#allocation3 + $0x14] ss:$0 sps:$4 sm:$0x11]   ;;  %v15553_v18 = vld [vmem:[#allocation3 + $0x18] sm:$0xff]  }
 0x78e   : > { %10469 = vmatprep.subr.bf16.mxu1 %v11996_v44  ;;  %v6531_v34 = vsel %vm2058_vm6, %v6529_v33, %v6530_v51  ;;  %v6375_v61 = vor.u32 %v6374_v15, %v6370_v57  ;;  %v6379_v1 = vrot.slane %v6377_v47, 1  ;;  %v7298_v44 = vshll.u32 %v15531_v35, 16  ;;  %v15555_v3 = vld [vmem:[#allocation3 + $0xbc] ss:$0 sps:$4 sm:$0x11]  }
 0x78f   : > { %6806 = vmatmul.mubr.bf16.gmra.mrb[132].mxu0 %v15432_v42  ;;  %v6519_v42 = vsel %vm2058_vm6, %v6517_v21, %v6518_v49  ;;  %v6533_v4 = vrot.slane %v15533_v37, 1  ;;  %v6386_v21 = vrot.slane %v6384_v43, 1  ;;  %v6389_v49 = vshll.u32 %v15474_v17, 16  ;;  %v15565_v31 = vld [vmem:[#allocation3 + $0x20] ss:$0 sps:$4 sm:$0x11]  }
 0x790   : > { %6813 = vmatprep.mubr.bf16.mxu0 %v6344_v58  ;;  %11042 = vmatmul.mubr.bf16.gmra.mrb[128].mxu1 %v6516_v29  ;;  %v6380_v46 = vsel %vm1849_vm3, %v6375_v61, %v6379_v1  ;;  %v6536_v58 = vrot.slane %v15536_v19, 1  ;;  %v12044_v29 = vld [vmem:[#allocation9 + $0x1f8] sm:$0xff]   ;;  %v7300_v36 = vrot.slane %v7298_v44, 1  ;;  %v7296_v32 = vshrl.u32 %v15531_v35, 16  ;;  %v12017_v43 = vld [vmem:[#allocation9 + $0x148] sm:$0xff]  }
 0x791   : > { %11045 = vmatprep.mubr.bf16.mxu1 %v6519_v42  ;;  %10470 = vmatpush3.bf16.msra.mxu1 %v11999_v63  ;;  %v6534_v62 = vsel %vm2058_vm6, %v6532_v38, %v6533_v4  ;;  %v6382_v63 = vshrl.u32 %v15469_v10, 16  ;;  %v12045_v42 = vld [vmem:[#allocation9 + $0x1b8] sm:$0xff]   ;;  %v7303_v17 = vshll.u32 %v15545_v12, 16  ;;  %v6391_v39 = vrot.slane %v6389_v49, 1 }
 0x792   : > { %10471 = vmatprep.subr.bf16.mxu1 %v12002_v53  ;;  %v15550_v53 = vld [vmem:[#allocation3 + $0xb4] sm:$0xff]   ;;  %10607 = vmatprep.subr.bf16.mxu0 %v12044_v29  ;;  %v7310_v54 = vshll.u32 %v15553_v18, 16  ;;  %v6394_v5 = vshrl.u32 %v15485_v22, 16  ;;  %v6401_v55 = vshll.u32 %v15488_v48, 16  ;;  %v7308_v50 = vshrl.u32 %v15553_v18, 16 }
 0x793   : > { %v6387_v52 = vor.u32 %v6386_v21, %v6382_v63  ;;  %10608 = vmatpush3.bf16.msra.mxu0 %v12045_v42  ;;  %v7305_v59 = vrot.slane %v7303_v17, 1  ;;  %v7315_v15 = vshll.u32 %v15565_v31, 16  ;;  %v15579_v61 = vld [vmem:[#allocation3 + $0x2c] ss:$0 sps:$4 sm:$0x11]   ;;  %v6406_v1 = vshrl.u32 %v15490_v60, 16 }
 0x794   : > { %v7312_v7 = vrot.slane %v7310_v54, 1  ;;  %v6403_v51 = vrot.slane %v6401_v55, 1  ;;  %v6413_v38 = vshll.u32 %v15493_v20, 16  ;;  %v6420_v4 = vshll.u32 %v15507_v40, 16  ;;  %v12024_v21 = vld [vmem:[#allocation9 + $0x150] sm:$0xff]  }
 0x795   : > { %10472 = vmatpush3.bf16.msra.mxu1 %v12005_v23  ;;  %v6396_v23 = vshll.u32 %v15485_v22, 16  ;;  %v6392_v41 = vsel %vm1849_vm3, %v6387_v52, %v6391_v39  ;;  %v15594_v42 = vld [vmem:[#allocation3 + $0x38] ss:$0 sps:$4 sm:$0x11]   ;;  %v6418_v52 = vshrl.u32 %v15507_v40, 16 }
 0x796   : > { %11061 = vmatprep.subr.bf16.mxu1 %v15495_v2  ;;  %v6415_v20 = vrot.slane %v6413_v38, 1  ;;  %v7339_v54 = vshll.u32 %v15594_v42, 16  ;;  %v15609_v55 = vld [vmem:[#allocation3 + $0x44] ss:$0 sps:$4 sm:$0x11]  }
 0x797   : > { %6814 = vmatmul.mubr.bf16.gmra.mrb[136].mxu0 %v15437_v14  ;;  %v6525_v14 = vsel %vm2058_vm6, %v6523_v26, %v6524_v27  ;;  %v6538_v26 = vrot.slane %v15550_v53, 1  ;;  %v6539_v27 = vrot.slane %v15555_v3, 1  ;;  %v15622_v38 = vld [vmem:[#allocation3 + $0x50] ss:$0 sps:$4 sm:$0x11]  }
 0x798   : > { %6821 = vmatprep.mubr.bf16.mxu0 %v6356_v0  ;;  %11046 = vmatmul.mubr.bf16.gmra.mrb[132].mxu1 %v6522_v8  ;;  %v7301_v0 = vor.u32 %v7300_v36, %v7296_v32  ;;  %v6398_v8 = vrot.slane %v6396_v23, 1  ;;  %v6425_v23 = vshll.u32 %v15510_v11, 16 }
 0x799   : > { %11049 = vmatprep.mubr.bf16.mxu1 %v6525_v14  ;;  %v6540_v14 = vsel %vm2058_vm6, %v6538_v26, %v6539_v27 }
 0x79a   : > { %v7306_v6 = vsel %vm1849_vm3, %v7301_v0, %v7305_v59  ;;  %v6399_v33 = vor.u32 %v6398_v8, %v6394_v5  ;;  %v6432_v0 = vshll.u32 %v15512_v24, 16  ;;  %v6427_v27 = vrot.slane %v6425_v23, 1 }
 0x79b   : > { %v6437_v5 = vshll.u32 %v15515_v13, 16  ;;  %v6444_v13 = vshll.u32 %v15526_v28, 16 }
 0x79c   : > { %v6404_v48 = vsel %vm1849_vm3, %v6399_v33, %v6403_v51  ;;  %v6430_v33 = vshrl.u32 %v15512_v24, 16 }
 0x79d   : > { %v6439_v51 = vrot.slane %v6437_v5, 1  ;;  %v15652_v5 = vld [vmem:[#allocation3 + $0x18] sm:$0xff]  }
 0x79f   : > { %6822 = vmatmul.mubr.bf16.gmra.mrb[140].mxu0 %v15448_v16  ;;  %v15529_v16 = vld [vmem:[#allocation3 + $0xa8] sm:$0xff]  }
 0x7a0   : > { %6829 = vmatprep.mubr.bf16.mxu0 %v6368_v9  ;;  %11050 = vmatmul.mubr.bf16.gmra.mrb[136].mxu1 %v6528_v25  ;;  %v6535_v45 = vrot.slane %v15529_v16, 1  ;;  %v6408_v9 = vshll.u32 %v15490_v60, 16  ;;  %v7313_v25 = vor.u32 %v7312_v7, %v7308_v50  ;;  %v12057_v7 = vld [vmem:[#allocation9 + $0x168] sm:$0xff]  }
 0x7a1   : > { %11053 = vmatprep.mubr.bf16.mxu1 %v6531_v34  ;;  %v7317_v34 = vrot.slane %v7315_v15, 1 }
 0x7a2   : > { %v6410_v47 = vrot.slane %v6408_v9, 1 }
 0x7a7   : > { %6830 = vmatmul.mubr.bf16.gmra.mrb[144].mxu0 %v15452_v56  ;;  %v6537_v56 = vsel %vm2058_vm6, %v6535_v45, %v6536_v58  ;;  %v7318_v45 = vsel %vm1849_vm3, %v7313_v25, %v7317_v34 }
 0x7a8   : > { %6837 = vmatprep.mubr.bf16.mxu0 %v6380_v46  ;;  %11054 = vmatmul.mubr.bf16.gmra.mrb[140].mxu1 %v6534_v62  ;;  %v15585_v46 = vld [vmem:[#allocation3 + $0x30] sm:$0xff]   ;;  %v7327_v62 = vshll.u32 %v15579_v61, 16 }
 0x7a9   : > { %11057 = vmatprep.mubr.bf16.mxu1 %v6537_v56  ;;  %v7334_v49 = vshll.u32 %v15585_v46, 16  ;;  %v6422_v56 = vrot.slane %v6420_v4, 1  ;;  %v7332_v26 = vshrl.u32 %v15585_v46, 16 }
 0x7aa   : > { %v7329_v36 = vrot.slane %v7327_v62, 1  ;;  %v6456_v62 = vshll.u32 %v15529_v16, 16 }
 0x7ab   : > { %v7336_v17 = vrot.slane %v7334_v49, 1  ;;  %v6423_v39 = vor.u32 %v6422_v56, %v6418_v52  ;;  %v7363_v49 = vshll.u32 %v15622_v38, 16  ;;  %v15636_v52 = vld [vmem:[#allocation3 + $0x5c] ss:$0 sps:$4 sm:$0x11]  }
 0x7ad   : > { %v7337_v11 = vor.u32 %v7336_v17, %v7332_v26  ;;  %v6428_v59 = vsel %vm1849_vm3, %v6423_v39, %v6427_v27  ;;  %v7365_v23 = vrot.slane %v7363_v49, 1  ;;  %v6461_v17 = vshll.u32 %v15536_v19, 16 }
 0x7af   : > { %6838 = vmatmul.mubr.bf16.gmra.mrb[148].mxu0 %v15466_v30  ;;  %v15571_v30 = vld [vmem:[#allocation3 + $0x24] sm:$0xff]   ;;  %v6463_v19 = vrot.slane %v6461_v17, 1 }
 0x7b0   : > { %6845 = vmatprep.mubr.bf16.mxu0 %v6392_v41  ;;  %11058 = vmatmul.mubr.bf16.gmra.mrb[144].mxu1 %v6540_v14  ;;  %v7322_v57 = vshll.u32 %v15571_v30, 16  ;;  %v7320_v58 = vshrl.u32 %v15571_v30, 16  ;;  %v12048_v41 = vld [vmem:[#allocation9 + $0x160] sm:$0xff]   ;;  %v6434_v14 = vrot.slane %v6432_v0, 1  ;;  %v15642_v0 = vld [vmem:[#allocation3 + $0x60] sm:$0xff]  }
 0x7b1   : > { %7792 = vmatprep.mubr.bf16.mxu1 %v7306_v6  ;;  %v7341_v6 = vrot.slane %v7339_v54, 1  ;;  %v6468_v54 = vshll.u32 %v15550_v53, 16 }
 0x7b2   : > { %v7324_v44 = vrot.slane %v7322_v57, 1  ;;  %v6435_v15 = vor.u32 %v6434_v14, %v6430_v33  ;;  %v7351_v57 = vshll.u32 %v15609_v55, 16  ;;  %v7382_v14 = vshll.u32 %v15642_v0, 16 }
 0x7b3   : > { %v7342_v9 = vsel %vm1849_vm3, %v7337_v11, %v7341_v6  ;;  %v7375_v11 = vshll.u32 %v15636_v52, 16  ;;  %v7510_v6 = vrot.slane %v15579_v61, 1  ;;  %v6470_v33 = vrot.slane %v6468_v54, 1 }
 0x7b4   : > { %v7325_v63 = vor.u32 %v7324_v44, %v7320_v58  ;;  %v6442_v44 = vshrl.u32 %v15526_v28, 16  ;;  %v15628_v58 = vld [vmem:[#allocation3 + $0x54] sm:$0xff]   ;;  %v6473_v61 = vshll.u32 %v15555_v3, 16 }
 0x7b5   : > { %v7370_v56 = vshll.u32 %v15628_v58, 16  ;;  %v7368_v27 = vshrl.u32 %v15628_v58, 16 }
 0x7b6   : > { %v7330_v32 = vsel %vm1849_vm3, %v7325_v63, %v7329_v36  ;;  %v6458_v36 = vrot.slane %v6456_v62, 1 }
 0x7b7   : > { %6846 = vmatmul.mubr.bf16.gmra.mrb[152].mxu0 %v15469_v10  ;;  %v6411_v10 = vor.u32 %v6410_v47, %v6406_v1  ;;  %v6446_v1 = vrot.slane %v6444_v13, 1  ;;  %v7372_v26 = vrot.slane %v7370_v56, 1 }
 0x7b8   : > { %6853 = vmatprep.mubr.bf16.mxu0 %v6404_v48  ;;  %7793 = vmatmul.mubr.bf16.vlgmr.msra.gmra.mrb[148].mxu1 %v15531_v35  ;;  %v12066_v48 = vld [vmem:[#allocation9 + $0x170] sm:$0xff]  }
 0x7b9   : > { %11062 = vmatpush3.bf16.msra.mxu1 %v15495_v2  ;;  %7800 = vmatprep.mubr.bf16.mxu1 %v7318_v45  ;;  %v6416_v29 = vsel %vm1849_vm3, %v6411_v10, %v6415_v20  ;;  %v12033_v2 = vld [vmem:[#allocation9 + $0x158] sm:$0xff]   ;;  %v7353_v45 = vrot.slane %v7351_v57, 1  ;;  %v6449_v10 = vshll.u32 %v15533_v37, 16  ;;  %v7384_v57 = vrot.slane %v7382_v14, 1 }
 0x7ba   : > { %11063 = vmatprep.subr.bf16.mxu1 %v12017_v43  ;;  %v12075_v20 = vld [vmem:[#allocation9 + $0x178] sm:$0xff]  }
 0x7bd   : > { %11064 = vmatpush3.bf16.msra.mxu1 %v12017_v43  ;;  %v6440_v43 = vsel %vm1849_vm3, %v6435_v15, %v6439_v51  ;;  %v7377_v15 = vrot.slane %v7375_v11, 1  ;;  %v6466_v51 = vshrl.u32 %v15550_v53, 16  ;;  %v15714_v11 = vld [vmem:[#allocation3 + $0x30] sm:$0xff]  }
 0x7be   : > { %11065 = vmatprep.subr.bf16.mxu1 %v12024_v21 }
 0x7bf   : > { %6854 = vmatmul.mubr.bf16.gmra.mrb[156].mxu0 %v15485_v22  ;;  %v15600_v22 = vld [vmem:[#allocation3 + $0x3c] sm:$0xff]  }
 0x7c0   : > { %6861 = vmatprep.mubr.bf16.mxu0 %v6416_v29  ;;  %7801 = vmatmul.mubr.bf16.gmra.mrb[152].mxu1 %v15553_v18  ;;  %v7346_v8 = vshll.u32 %v15600_v22, 16  ;;  %v7344_v25 = vshrl.u32 %v15600_v22, 16  ;;  %v6451_v29 = vrot.slane %v6449_v10, 1  ;;  %v7519_v10 = vrot.slane %v15622_v38, 1 }
 0x7c1   : > { %7808 = vmatprep.mubr.bf16.mxu1 %v7330_v32  ;;  %11066 = vmatpush3.bf16.msra.mxu1 %v12024_v21  ;;  %v6454_v32 = vshrl.u32 %v15529_v16, 16  ;;  %v15695_v38 = vld [vmem:[#allocation3 + $0x74] ss:$0 sps:$4 sm:$0x11]  }
 0x7c2   : > { %11067 = vmatprep.subr.bf16.mxu1 %v12033_v2  ;;  %v7348_v50 = vrot.slane %v7346_v8, 1  ;;  %v7509_v8 = vrot.slane %v15571_v30, 1  ;;  %v7399_v17 = vshll.u32 %v15695_v38, 16 }
 0x7c4   : > { %v7349_v47 = vor.u32 %v7348_v50, %v7344_v25  ;;  %v7512_v50 = vrot.slane %v15585_v46, 1  ;;  %v15662_v13 = vsel %vm2058_vm6, %v7509_v8, %v7510_v6  ;;  %v7515_v25 = vrot.slane %v15600_v22, 1 }
 0x7c5   : > { %11068 = vmatpush3.bf16.msra.mxu1 %v12033_v2  ;;  %v7401_v8 = vrot.slane %v7399_v17, 1 }
 0x7c6   : > { %11069 = vmatprep.subr.bf16.mxu1 %v12048_v41  ;;  %v7354_v4 = vsel %vm1849_vm3, %v7349_v47, %v7353_v45  ;;  %v6471_v47 = vor.u32 %v6470_v33, %v6466_v51  ;;  %v15722_v33 = vld [vmem:[#allocation3 + $0x84] sm:$0xff]  }
 0x7c7   : > { %6862 = vmatmul.mubr.bf16.gmra.mrb[160].mxu0 %v15490_v60  ;;  %v15614_v60 = vld [vmem:[#allocation3 + $0x48] sm:$0xff]  }
 0x7c8   : > { %6869 = vmatprep.mubr.bf16.mxu0 %v6428_v59  ;;  %7809 = vmatmul.mubr.bf16.gmra.mrb[156].mxu1 %v15571_v30  ;;  %v7358_v34 = vshll.u32 %v15614_v60, 16  ;;  %v7356_v63 = vshrl.u32 %v15614_v60, 16  ;;  %v7373_v59 = vor.u32 %v7372_v26, %v7368_v27  ;;  %v7513_v30 = vrot.slane %v15594_v42, 1  ;;  %v15672_v42 = vld [vmem:[#allocation3 + $0x6c] sm:$0xff]  }
 0x7c9   : > { %7816 = vmatprep.mubr.bf16.mxu1 %v7342_v9  ;;  %11070 = vmatpush3.bf16.msra.mxu1 %v12048_v41  ;;  %v15645_v41 = vld [vmem:[#allocation9 + $0x200] sm:$0xff]   ;;  %v15657_v9 = vld [vmem:[#allocation3 + $0x68] ss:$0 sps:$4 sm:$0x11]   ;;  %v7518_v45 = vrot.slane %v15614_v60, 1 }
 0x7ca   : > { %11071 = vmatprep.subr.bf16.mxu1 %v12057_v7  ;;  %v7360_v21 = vrot.slane %v7358_v34, 1  ;;  %v7380_v34 = vshrl.u32 %v15642_v0, 16  ;;  %v7387_v3 = vshll.u32 %v15657_v9, 16  ;;  %v15709_v26 = vld [vmem:[#allocation3 + $0x2c] ss:$0 sps:$4 sm:$0x11]  }
 0x7cb   : > { %v15693_v49 = vsel %vm2058_vm6, %v7518_v45, %v7519_v10  ;;  %v8327_v14 = vshll.u32 %v15709_v26, 16  ;;  %v15734_v45 = vld [vmem:[#allocation3 + $0x8c] ss:$0 sps:$4 sm:$0x11]  }
 0x7cc   : > { %v7361_v37 = vor.u32 %v7360_v21, %v7356_v63  ;;  %v7394_v21 = vshll.u32 %v15672_v42, 16  ;;  %v15690_v63 = vld [vmem:[#allocation3 + $0x24] sm:$0xff]  }
 0x7cd   : > { %11072 = vmatpush3.bf16.msra.mxu1 %v12057_v7  ;;  %v8329_v51 = vrot.slane %v8327_v14, 1 }
 0x7ce   : > { %11073 = vmatprep.subr.bf16.mxu1 %v12066_v48  ;;  %v7366_v39 = vsel %vm1849_vm3, %v7361_v37, %v7365_v23  ;;  %v8308_v37 = vshrl.u32 %v15652_v5, 16  ;;  %v8322_v23 = vshll.u32 %v15690_v63, 16 }
 0x7cf   : > { %6870 = vmatmul.mubr.bf16.gmra.mrb[164].mxu0 %v15507_v40  ;;  %v6447_v40 = vor.u32 %v6446_v1, %v6442_v44  ;;  %v15678_v1 = vld [vmem:[#allocation3 + $0x20] ss:$0 sps:$4 sm:$0x11]   ;;  %v6475_v44 = vrot.slane %v6473_v61, 1 }
 0x7d0   : > { %6877 = vmatprep.mubr.bf16.mxu0 %v6440_v43  ;;  %7817 = vmatmul.mubr.bf16.gmra.mrb[160].mxu1 %v15585_v46  ;;  %v7378_v46 = vsel %vm1849_vm3, %v7373_v59, %v7377_v15  ;;  %v8310_v43 = vshll.u32 %v15652_v5, 16  ;;  %v8315_v56 = vshll.u32 %v15678_v1, 16  ;;  %v8324_v27 = vrot.slane %v8322_v23, 1  ;;  %v15727_v61 = vld [vmem:[#allocation3 + $0x38] ss:$0 sps:$4 sm:$0x11]  }
 0x7d1   : > { %7824 = vmatprep.mubr.bf16.mxu1 %v7354_v4  ;;  %11074 = vmatpush3.bf16.msra.mxu1 %v12066_v48  ;;  %v6452_v2 = vsel %vm1849_vm3, %v6447_v40, %v6451_v29  ;;  %v7516_v48 = vrot.slane %v15609_v55, 1  ;;  %v7521_v55 = vrot.slane %v15628_v58, 1  ;;  %v7385_v4 = vor.u32 %v7384_v57, %v7380_v34  ;;  %v15732_v34 = vld [vmem:[#allocation3 + $0x3c] sm:$0xff]   ;;  %v15749_v23 = vld [vmem:[#allocation3 + $0x44] ss:$0 sps:$4 sm:$0x11]  }
 0x7d2   : > { %11075 = vmatprep.subr.bf16.mxu1 %v12075_v20  ;;  %v7522_v40 = vrot.slane %v15636_v52, 1  ;;  %v6476_v62 = vsel %vm1849_vm3, %v6471_v47, %v6475_v44  ;;  %v8320_v59 = vshrl.u32 %v15690_v63, 16 }
 0x7d4   : > { %v15698_v29 = vsel %vm2058_vm6, %v7521_v55, %v7522_v40  ;;  %v8332_v55 = vshrl.u32 %v15714_v11, 16 }
 0x7d5   : > { %11076 = vmatpush3.bf16.msra.mxu1 %v12075_v20  ;;  %v8312_v20 = vrot.slane %v8310_v43, 1 }
 0x7d6   : > { %11109 = vmatprep.subr.bf16.mxu1 %v15645_v41 }
 0x7d7   : > { %6878 = vmatmul.mubr.bf16.gmra.mrb[168].mxu0 %v15512_v24  ;;  %v6459_v24 = vor.u32 %v6458_v36, %v6454_v32  ;;  %v15704_v36 = vld [vmem:[#allocation3 + $0x78] sm:$0xff]   ;;  %v8313_v52 = vor.u32 %v8312_v20, %v8308_v37  ;;  %v7392_v32 = vshrl.u32 %v15672_v42, 16  ;;  %v15742_v20 = vld [vmem:[#allocation3 + $0x90] sm:$0xff]  }
 0x7d8   : > { %6885 = vmatprep.mubr.bf16.mxu0 %v6452_v2  ;;  %7825 = vmatmul.mubr.bf16.gmra.mrb[164].mxu1 %v15600_v22  ;;  %v15681_v22 = vsel %vm2058_vm6, %v7515_v25, %v7516_v48  ;;  %v7396_v2 = vrot.slane %v7394_v21, 1  ;;  %v7406_v54 = vshll.u32 %v15704_v36, 16  ;;  %v7430_v17 = vshll.u32 %v15742_v20, 16 }
 0x7d9   : > { %7832 = vmatprep.mubr.bf16.mxu1 %v7366_v39  ;;  %v6464_v7 = vsel %vm1849_vm3, %v6459_v24, %v6463_v19  ;;  %v8317_v39 = vrot.slane %v8315_v56, 1  ;;  %v15716_v19 = vld [vmem:[#allocation3 + $0x80] ss:$0 sps:$4 sm:$0x11]   ;;  %v8346_v56 = vshll.u32 %v15732_v34, 16 }
 0x7da   : > { %v7397_v24 = vor.u32 %v7396_v2, %v7392_v32  ;;  %v7411_v15 = vshll.u32 %v15716_v19, 16  ;;  %v7423_v2 = vshll.u32 %v15734_v45, 16 }
 0x7dc   : > { %v7402_v6 = vsel %vm1849_vm3, %v7397_v24, %v7401_v8  ;;  %v7413_v43 = vrot.slane %v7411_v15, 1  ;;  %v8348_v24 = vrot.slane %v8346_v56, 1  ;;  %v8344_v8 = vshrl.u32 %v15732_v34, 16 }
 0x7df   : > { %6886 = vmatmul.mubr.bf16.gmra.mrb[172].mxu0 %v15526_v28  ;;  %v15667_v28 = vsel %vm2058_vm6, %v7512_v50, %v7513_v30  ;;  %v8334_v50 = vshll.u32 %v15714_v11, 16  ;;  %v7404_v30 = vshrl.u32 %v15704_v36, 16 }
 0x7e0   : > { %6893 = vmatprep.mubr.bf16.mxu0 %v6464_v7  ;;  %7833 = vmatmul.mubr.bf16.gmra.mrb[168].mxu1 %v15614_v60  ;;  %v7389_v60 = vrot.slane %v7387_v3, 1  ;;  %v7408_v7 = vrot.slane %v7406_v54, 1  ;;  %v15754_v54 = vld [vmem:[#allocation3 + $0x48] sm:$0xff]  }
 0x7e1   : > { %7840 = vmatprep.mubr.bf16.mxu1 %v7378_v46  ;;  %v7418_v46 = vshll.u32 %v15722_v33, 16  ;;  %v8336_v47 = vrot.slane %v8334_v50, 1  ;;  %v8358_v50 = vshll.u32 %v15754_v54, 16 }
 0x7e2   : > { %v7409_v25 = vor.u32 %v7408_v7, %v7404_v30  ;;  %v15762_v7 = vld [vmem:[#allocation3 + $0x9c] sm:$0xff]   ;;  %v7428_v30 = vshrl.u32 %v15742_v20, 16 }
 0x7e3   : > { %v8337_v37 = vor.u32 %v8336_v47, %v8332_v55  ;;  %v8360_v47 = vrot.slane %v8358_v50, 1  ;;  %v8356_v55 = vshrl.u32 %v15754_v54, 16 }
 0x7e4   : > { %v7414_v40 = vsel %vm1849_vm3, %v7409_v25, %v7413_v43  ;;  %v15767_v25 = vld [vmem:[#allocation3 + $0x50] ss:$0 sps:$4 sm:$0x11]  }
 0x7e7   : > { %6894 = vmatmul.mubr.bf16.gmra.mrb[176].mxu0 %v15529_v16  ;;  %v7390_v16 = vsel %vm1849_vm3, %v7385_v4, %v7389_v60  ;;  %v8339_v4 = vshll.u32 %v15727_v61, 16 }
 0x7e8   : > { %6901 = vmatprep.mubr.bf16.mxu0 %v6476_v62  ;;  %7841 = vmatmul.mubr.bf16.gmra.mrb[172].mxu1 %v15628_v58  ;;  %v8318_v58 = vsel %vm1849_vm3, %v8313_v52, %v8317_v39  ;;  %v7420_v62 = vrot.slane %v7418_v46, 1 }
 0x7e9   : > { %7848 = vmatprep.mubr.bf16.mxu1 %v7390_v16  ;;  %v7416_v16 = vshrl.u32 %v15722_v33, 16  ;;  %v8341_v52 = vrot.slane %v8339_v4, 1  ;;  %v8363_v4 = vshll.u32 %v15767_v25, 16 }
 0x7eb   : > { %v7421_v32 = vor.u32 %v7420_v62, %v7416_v16  ;;  %v8342_v39 = vsel %vm1849_vm3, %v8337_v37, %v8341_v52  ;;  %v15780_v62 = vld [vmem:[#allocation3 + $0xa8] sm:$0xff]   ;;  %v8361_v37 = vor.u32 %v8360_v47, %v8356_v55  ;;  %v7440_v16 = vshrl.u32 %v15762_v7, 16 }
 0x7ec   : > { %v8365_v52 = vrot.slane %v8363_v4, 1 }
 0x7ef   : > { %6902 = vmatmul.mubr.bf16.gmra.mrb[180].mxu0 %v15550_v53  ;;  %v8325_v53 = vor.u32 %v8324_v27, %v8320_v59  ;;  %v10337_v57 = vpop.f32.mrb[120].mxu0  ;;  %v15756_v27 = vld [vmem:[#allocation3 + $0x98] ss:$0 sps:$4 sm:$0x11]   ;;  %v8351_v59 = vshll.u32 %v15749_v23, 16 }
 0x7f0   : > { %8804 = vmatprep.mubr.bf16.mxu0 %v8318_v58  ;;  %7849 = vmatmul.mubr.bf16.gmra.mrb[176].mxu1 %v15642_v0  ;;  %v10338_v3 = vpop.f32.mrb[121].mxu0  ;;  %v7425_v58 = vrot.slane %v7423_v2, 1  ;;  %v7435_v15 = vshll.u32 %v15756_v27, 16 }
 0x7f1   : > { %7856 = vmatprep.mubr.bf16.mxu1 %v7402_v6  ;;  %v8330_v48 = vsel %vm1849_vm3, %v8325_v53, %v8329_v51  ;;  %v15736_v44 = vadd.f32 %v10338_v3, %v10337_v57  ;;  %v10340_v10 = vpop.f32.mrb[122].mxu0  ;;  %v7432_v6 = vrot.slane %v7430_v17, 1  ;;  %v8349_v53 = vor.u32 %v8348_v24, %v8344_v8  ;;  %v15772_v3 = vld [vmem:[#allocation3 + $0x54] sm:$0xff]   ;;  %v15790_v8 = vld [vmem:[#allocation3 + $0x60] sm:$0xff]  }
 0x7f2   : > { %v10341_v21 = vpop.f32.mrb[123].mxu0  ;;  %v7426_v14 = vsel %vm1849_vm3, %v7421_v32, %v7425_v58  ;;  %v8353_v51 = vrot.slane %v8351_v59, 1  ;;  %v7442_v57 = vshll.u32 %v15762_v7, 16  ;;  %v7437_v43 = vrot.slane %v7435_v15, 1  ;;  %v15798_v15 = vld [vmem:[#allocation3 + $0xb4] sm:$0xff]  }
 0x7f3   : > { %v15744_v60 = vadd.f32 %v10341_v21, %v10340_v10  ;;  %v7433_v46 = vor.u32 %v7432_v6, %v7428_v30  ;;  %v15774_v10 = vld [vmem:[#allocation3 + $0xa4] ss:$0 sps:$4 sm:$0x11]   ;;  %v8370_v56 = vshll.u32 %v15772_v3, 16  ;;  %v8366_v24 = vsel %vm1849_vm3, %v8361_v37, %v8365_v52  ;;  %v15808_v37 = vld [vmem:[#allocation3 + $0x6c] sm:$0xff]  }
 0x7f4   : > { %v7447_v2 = vshll.u32 %v15774_v10, 16  ;;  %v15785_v32 = vld [vmem:[#allocation3 + $0x5c] ss:$0 sps:$4 sm:$0x11]   ;;  %v8368_v6 = vshrl.u32 %v15772_v3, 16  ;;  %v7466_v4 = vshll.u32 %v15798_v15, 16 }
 0x7f5   : > { %16566 = vst [vmem:[#allocation26_spill] sm:$0xff] %v15744_v60  ;;  %v7438_v21 = vsel %vm1849_vm3, %v7433_v46, %v7437_v43  ;;  %v8372_v58 = vrot.slane %v8370_v56, 1  ;;  %v8382_v46 = vshll.u32 %v15790_v8, 16  ;;  %v15803_v43 = vld [vmem:[#allocation3 + $0x68] ss:$0 sps:$4 sm:$0x11]  }
 0x7f6   : > { %v7449_v59 = vrot.slane %v7447_v2, 1  ;;  %v8380_v2 = vshrl.u32 %v15790_v8, 16  ;;  %v8387_v52 = vshll.u32 %v15803_v43, 16  ;;  %v15841_v60 = vld [vmem:[#allocation3 + $0x84] sm:$0xff]  }
 0x7f7   : > { %8805 = vmatmul.mubr.bf16.vlgmr.msra.gmra.mrb[184].mxu0 %v15652_v5 }
 0x7f8   : > { %8812 = vmatprep.mubr.bf16.mxu0 %v8330_v48  ;;  %7857 = vmatmul.mubr.bf16.gmra.mrb[180].mxu1 %v15672_v42  ;;  %v8354_v48 = vsel %vm1849_vm3, %v8349_v53, %v8353_v51  ;;  %v8375_v53 = vshll.u32 %v15785_v32, 16  ;;  %v8373_v51 = vor.u32 %v8372_v58, %v8368_v6  ;;  %v7464_v6 = vshrl.u32 %v15798_v15, 16 }
 0x7f9   : > { %7864 = vmatprep.mubr.bf16.mxu1 %v7414_v40  ;;  %v7444_v40 = vrot.slane %v7442_v57, 1  ;;  %v7452_v57 = vshrl.u32 %v15780_v62, 16 }
 0x7fa   : > { %v8377_v47 = vrot.slane %v8375_v53, 1 }
 0x7fb   : > { %v7445_v17 = vor.u32 %v7444_v40, %v7440_v16  ;;  %v8384_v40 = vrot.slane %v8382_v46, 1  ;;  %v15810_v16 = vld [vmem:[#allocation3 + $0xbc] ss:$0 sps:$4 sm:$0x11]  }
 0x7fc   : > { %v7471_v53 = vshll.u32 %v15810_v16, 16 }
 0x7fd   : > { %v7450_v50 = vsel %vm1849_vm3, %v7445_v17, %v7449_v59  ;;  %v8385_v58 = vor.u32 %v8384_v40, %v8380_v2  ;;  %v8394_v59 = vshll.u32 %v15808_v37, 16 }
 0x7ff   : > { %8813 = vmatmul.mubr.bf16.gmra.mrb[188].mxu0 %v15690_v63 }
 0x800   : > { %8820 = vmatprep.mubr.bf16.mxu0 %v8342_v39  ;;  %7865 = vmatmul.mubr.bf16.gmra.mrb[184].mxu1 %v15704_v36  ;;  %v7454_v39 = vshll.u32 %v15780_v62, 16 }
 0x801   : > { %7872 = vmatprep.mubr.bf16.mxu1 %v7426_v14  ;;  %v15792_v14 = vld [vmem:[#allocation3 + $0xb0] ss:$0 sps:$4 sm:$0x11]  }
 0x802   : > { %v7456_v30 = vrot.slane %v7454_v39, 1  ;;  %v7468_v39 = vrot.slane %v7466_v4, 1  ;;  %v15828_v4 = vld [vmem:[#allocation3 + $0xc8] ss:$0 sps:$4 sm:$0x11]  }
 0x804   : > { %v7457_v55 = vor.u32 %v7456_v30, %v7452_v57  ;;  %v15821_v30 = vld [vmem:[#allocation3 + $0x74] ss:$0 sps:$4 sm:$0x11]  }
 0x805   : > { %v8399_v40 = vshll.u32 %v15821_v30, 16 }
 0x807   : > { %8821 = vmatmul.mubr.bf16.gmra.mrb[192].mxu0 %v15714_v11 }
 0x808   : > { %8828 = vmatprep.mubr.bf16.mxu0 %v8354_v48  ;;  %7873 = vmatmul.mubr.bf16.gmra.mrb[188].mxu1 %v15722_v33  ;;  %v7459_v48 = vshll.u32 %v15792_v14, 16 }
 0x809   : > { %7880 = vmatprep.mubr.bf16.mxu1 %v7438_v21  ;;  %v8378_v21 = vsel %vm1849_vm3, %v8373_v51, %v8377_v47  ;;  %v7469_v51 = vor.u32 %v7468_v39, %v7464_v6  ;;  %v15826_v47 = vld [vmem:[#allocation3 + $0x78] sm:$0xff]   ;;  %v15837_v6 = vld [vmem:[#allocation3 + $0x80] ss:$0 sps:$4 sm:$0x11]  }
 0x80a   : > { %v7461_v56 = vrot.slane %v7459_v48, 1  ;;  %v8396_v48 = vrot.slane %v8394_v59, 1  ;;  %v8401_v59 = vrot.slane %v8399_v40, 1  ;;  %v8418_v40 = vshll.u32 %v15841_v60, 16 }
 0x80c   : > { %v7462_v17 = vsel %vm1849_vm3, %v7457_v55, %v7461_v56  ;;  %v7473_v55 = vrot.slane %v7471_v53, 1 }
 0x80e   : > { %v7474_v56 = vsel %vm1849_vm3, %v7469_v51, %v7473_v55 }
 0x80f   : > { %8829 = vmatmul.mubr.bf16.gmra.mrb[196].mxu0 %v15732_v34 }
 0x810   : > { %8836 = vmatprep.mubr.bf16.mxu0 %v8366_v24  ;;  %7881 = vmatmul.mubr.bf16.gmra.mrb[192].mxu1 %v15742_v20  ;;  %v15816_v24 = vld [vmem:[#allocation3 + $0xc0] sm:$0xff]  }
 0x811   : > { %7888 = vmatprep.mubr.bf16.mxu1 %v7450_v50  ;;  %v8389_v50 = vrot.slane %v8387_v52, 1  ;;  %v7478_v46 = vshll.u32 %v15816_v24, 16  ;;  %v7476_v39 = vshrl.u32 %v15816_v24, 16 }
 0x813   : > { %v8390_v57 = vsel %vm1849_vm3, %v8385_v58, %v8389_v50  ;;  %v7480_v2 = vrot.slane %v7478_v46, 1  ;;  %v7483_v58 = vshll.u32 %v15828_v4, 16  ;;  %v8404_v46 = vshrl.u32 %v15826_v47, 16 }
 0x815   : > { %v7481_v53 = vor.u32 %v7480_v2, %v7476_v39  ;;  %v7485_v51 = vrot.slane %v7483_v58, 1  ;;  %v15848_v2 = vld [vmem:[#allocation3 + $0x8c] ss:$0 sps:$4 sm:$0x11]   ;;  %v8420_v39 = vrot.slane %v8418_v40, 1  ;;  %v15853_v58 = vld [vmem:[#allocation3 + $0x90] sm:$0xff]  }
 0x817   : > { %8837 = vmatmul.mubr.bf16.gmra.mrb[200].mxu0 %v15754_v54  ;;  %v7486_v55 = vsel %vm1849_vm3, %v7481_v53, %v7485_v51  ;;  %v8416_v53 = vshrl.u32 %v15841_v60, 16  ;;  %v8430_v51 = vshll.u32 %v15853_v58, 16 }
 0x818   : > { %8844 = vmatprep.mubr.bf16.mxu0 %v8378_v21  ;;  %7889 = vmatmul.mubr.bf16.gmra.mrb[196].mxu1 %v15762_v7  ;;  %v8392_v21 = vshrl.u32 %v15808_v37, 16 }
 0x819   : > { %7896 = vmatprep.mubr.bf16.mxu1 %v7462_v17  ;;  %v8406_v17 = vshll.u32 %v15826_v47, 16  ;;  %v8432_v40 = vrot.slane %v8430_v51, 1 }
 0x81a   : > { %v8397_v52 = vor.u32 %v8396_v48, %v8392_v21  ;;  %v8411_v48 = vshll.u32 %v15837_v6, 16 }
 0x81c   : > { %v8402_v50 = vsel %vm1849_vm3, %v8397_v52, %v8401_v59  ;;  %v7503_v52 = vrot.slane %v15531_v35, 1  ;;  %v7504_v59 = vrot.slane %v15545_v12, 1  ;;  %v8421_v35 = vor.u32 %v8420_v39, %v8416_v53 }
 0x81d   : > { %v8428_v39 = vshrl.u32 %v15853_v58, 16 }
 0x81f   : > { %8845 = vmatmul.mubr.bf16.gmra.mrb[204].mxu0 %v15772_v3 }
 0x820   : > { %8852 = vmatprep.mubr.bf16.mxu0 %v8390_v57  ;;  %7897 = vmatmul.mubr.bf16.gmra.mrb[200].mxu1 %v15780_v62  ;;  %v8408_v57 = vrot.slane %v8406_v17, 1 }
 0x821   : > { %7904 = vmatprep.mubr.bf16.mxu1 %v7474_v56  ;;  %v8413_v56 = vrot.slane %v8411_v48, 1  ;;  %v7506_v48 = vrot.slane %v15553_v18, 1  ;;  %v8433_v18 = vor.u32 %v8432_v40, %v8428_v39  ;;  %v12094_v40 = vld [vmem:[#allocation9 + $0x220] sm:$0xff]  }
 0x822   : > { %v8409_v21 = vor.u32 %v8408_v57, %v8404_v46  ;;  %v7505_v57 = vsel %vm2058_vm6, %v7503_v52, %v7504_v59  ;;  %v12085_v52 = vld [vmem:[#allocation9 + $0x208] sm:$0xff]  }
 0x824   : > { %v8414_v17 = vsel %vm1849_vm3, %v8409_v21, %v8413_v56  ;;  %v7507_v21 = vrot.slane %v15565_v31, 1  ;;  %v15867_v56 = vld [vmem:[#allocation3 + $0x9c] sm:$0xff]   ;;  %v12088_v31 = vld [vmem:[#allocation9 + $0x210] sm:$0xff]  }
 0x825   : > { %v8442_v53 = vshll.u32 %v15867_v56, 16 }
 0x827   : > { %8853 = vmatmul.mubr.bf16.gmra.mrb[208].mxu0 %v15790_v8  ;;  %v8444_v51 = vrot.slane %v8442_v53, 1 }
 0x828   : > { %8860 = vmatprep.mubr.bf16.mxu0 %v8402_v50  ;;  %7905 = vmatmul.mubr.bf16.gmra.mrb[204].mxu1 %v15798_v15  ;;  %v8423_v50 = vshll.u32 %v15848_v2, 16 }
 0x829   : > { %7912 = vmatprep.mubr.bf16.mxu1 %v7486_v55  ;;  %v15862_v55 = vld [vmem:[#allocation3 + $0x98] ss:$0 sps:$4 sm:$0x11]  }
 0x82a   : > { %v8425_v46 = vrot.slane %v8423_v50, 1  ;;  %v8435_v59 = vshll.u32 %v15862_v55, 16 }
 0x82c   : > { %v8426_v12 = vsel %vm1849_vm3, %v8421_v35, %v8425_v46  ;;  %v8437_v50 = vrot.slane %v8435_v59, 1  ;;  %v15879_v46 = vld [vmem:[#allocation3 + $0xa8] sm:$0xff]  }
 0x82e   : > { %v8438_v35 = vsel %vm1849_vm3, %v8433_v18, %v8437_v50  ;;  %v15890_v18 = vld [vmem:[#allocation3 + $0xb4] sm:$0xff]  }
 0x82f   : > { %8861 = vmatmul.mubr.bf16.gmra.mrb[212].mxu0 %v15808_v37  ;;  %v8466_v50 = vshll.u32 %v15890_v18, 16 }
 0x830   : > { %8868 = vmatprep.mubr.bf16.mxu0 %v8414_v17  ;;  %7913 = vmatmul.mubr.bf16.gmra.mrb[208].mxu1 %v15816_v24  ;;  %v7508_v17 = vsel %vm2058_vm6, %v7506_v48, %v7507_v21  ;;  %v8454_v21 = vshll.u32 %v15879_v46, 16 }
 0x831   : > { %11077 = vmatprep.mubr.bf16.mxu1 %v7505_v57  ;;  %v15875_v57 = vld [vmem:[#allocation3 + $0xa4] ss:$0 sps:$4 sm:$0x11]  }
 0x832   : > { %v8447_v48 = vshll.u32 %v15875_v57, 16  ;;  %v8456_v59 = vrot.slane %v8454_v21, 1  ;;  %v15904_v21 = vld [vmem:[#allocation3 + $0xc0] sm:$0xff]  }
 0x837   : > { %8869 = vmatmul.mubr.bf16.gmra.mrb[216].mxu0 %v15826_v47 }
 0x838   : > { %8876 = vmatprep.mubr.bf16.mxu0 %v8426_v12  ;;  %11078 = vmatmul.mubr.bf16.vlgmr.msra.gmra.mrb[116].mxu1 %v7508_v17  ;;  %v15886_v17 = vld [vmem:[#allocation3 + $0xb0] ss:$0 sps:$4 sm:$0x11]  }
 0x839   : > { %11110 = vmatpush3.bf16.msra.mxu1 %v15645_v41  ;;  %11081 = vmatprep.mubr.bf16.mxu1 %v15662_v13  ;;  %v12091_v41 = vld [vmem:[#allocation9 + $0x218] sm:$0xff]   ;;  %v8440_v13 = vshrl.u32 %v15867_v56, 16  ;;  %v8459_v53 = vshll.u32 %v15886_v17, 16 }
 0x83a   : > { %11111 = vmatprep.subr.bf16.mxu1 %v12085_v52 }
 0x83b   : > { %v8445_v12 = vor.u32 %v8444_v51, %v8440_v13  ;;  %v8461_v51 = vrot.slane %v8459_v53, 1  ;;  %v15898_v13 = vld [vmem:[#allocation3 + $0xbc] ss:$0 sps:$4 sm:$0x11]  }
 0x83d   : > { %11112 = vmatpush3.bf16.msra.mxu1 %v12085_v52  ;;  %v8449_v52 = vrot.slane %v8447_v48, 1  ;;  %v7527_v48 = vrot.slane %v15672_v42, 1  ;;  %v8471_v42 = vshll.u32 %v15898_v13, 16 }
 0x83e   : > { %11113 = vmatprep.subr.bf16.mxu1 %v12088_v31 }
 0x83f   : > { %8877 = vmatmul.mubr.bf16.gmra.mrb[220].mxu0 %v15841_v60  ;;  %v8450_v39 = vsel %vm1849_vm3, %v8445_v12, %v8449_v52  ;;  %v12101_v52 = vld [vmem:[#allocation9 + $0x238] sm:$0xff]  }
 0x840   : > { %8884 = vmatprep.mubr.bf16.mxu0 %v8438_v35  ;;  %11082 = vmatmul.mubr.bf16.gmra.mrb[120].mxu1 %v15667_v28  ;;  %v12097_v28 = vld [vmem:[#allocation9 + $0x228] sm:$0xff]   ;;  %v12098_v35 = vld [vmem:[#allocation9 + $0x230] sm:$0xff]  }
 0x841   : > { %11085 = vmatprep.mubr.bf16.mxu1 %v15681_v22  ;;  %11114 = vmatpush3.bf16.msra.mxu1 %v12088_v31  ;;  %v8452_v22 = vshrl.u32 %v15879_v46, 16 }
 0x842   : > { %11115 = vmatprep.subr.bf16.mxu1 %v12091_v41 }
 0x843   : > { %v8457_v31 = vor.u32 %v8456_v59, %v8452_v22 }
 0x845   : > { %11116 = vmatpush3.bf16.msra.mxu1 %v12091_v41  ;;  %v7524_v41 = vrot.slane %v15642_v0, 1  ;;  %v8462_v12 = vsel %vm1849_vm3, %v8457_v31, %v8461_v51 }
 0x846   : > { %11117 = vmatprep.subr.bf16.mxu1 %v12094_v40 }
 0x847   : > { %8885 = vmatmul.mubr.bf16.gmra.mrb[224].mxu0 %v15853_v58 }
 0x848   : > { %8892 = vmatprep.mubr.bf16.mxu0 %v8450_v39  ;;  %11086 = vmatmul.mubr.bf16.gmra.mrb[124].mxu1 %v15693_v49  ;;  %v7525_v49 = vrot.slane %v15657_v9, 1  ;;  %v8464_v39 = vshrl.u32 %v15890_v18, 16 }
 0x849   : > { %11089 = vmatprep.mubr.bf16.mxu1 %v15698_v29  ;;  %11118 = vmatpush3.bf16.msra.mxu1 %v12094_v40  ;;  %v8468_v29 = vrot.slane %v8466_v50, 1  ;;  %v7528_v40 = vrot.slane %v15695_v38, 1  ;;  %v7530_v50 = vrot.slane %v15704_v36, 1  ;;  %v7534_v36 = vrot.slane %v15734_v45, 1 }
 0x84a   : > { %11119 = vmatprep.subr.bf16.mxu1 %v12097_v28  ;;  %v7526_v0 = vsel %vm2058_vm6, %v7524_v41, %v7525_v49  ;;  %v8473_v41 = vrot.slane %v8471_v42, 1  ;;  %v15917_v49 = vld [vmem:[#allocation3 + $0xcc] sm:$0xff]   ;;  %v8476_v42 = vshrl.u32 %v15904_v21, 16 }
 0x84b   : > { %v7529_v22 = vsel %vm2058_vm6, %v7527_v48, %v7528_v40  ;;  %v8469_v53 = vor.u32 %v8468_v29, %v8464_v39  ;;  %v7533_v48 = vrot.slane %v15722_v33, 1  ;;  %v7531_v29 = vrot.slane %v15716_v19, 1 }
 0x84c   : > { %v8490_v33 = vshll.u32 %v15917_v49, 16 }
 0x84d   : > { %11120 = vmatpush3.bf16.msra.mxu1 %v12097_v28  ;;  %v8478_v28 = vshll.u32 %v15904_v21, 16  ;;  %v7532_v39 = vsel %vm2058_vm6, %v7530_v50, %v7531_v29 }
 0x84e   : > { %11121 = vmatprep.subr.bf16.mxu1 %v12098_v35 }
 0x84f   : > { %8893 = vmatmul.mubr.bf16.gmra.mrb[228].mxu0 %v15867_v56  ;;  %v8480_v40 = vrot.slane %v8478_v28, 1 }
 0x850   : > { %8900 = vmatprep.mubr.bf16.mxu0 %v8462_v12  ;;  %11090 = vmatmul.mubr.bf16.gmra.mrb[128].mxu1 %v7526_v0  ;;  %v15915_v12 = vld [vmem:[#allocation3 + $0xc8] ss:$0 sps:$4 sm:$0x11]  }
 0x851   : > { %11093 = vmatprep.mubr.bf16.mxu1 %v7529_v22  ;;  %11122 = vmatpush3.bf16.msra.mxu1 %v12098_v35  ;;  %16567 = vst [vmem:[#allocation25_spill] sm:$0xff] %v15915_v12  ;;  %v8474_v35 = vsel %vm1849_vm3, %v8469_v53, %v8473_v41  ;;  %v15929_v22 = vld [vmem:[#allocation3 + $0xd4] ss:$0 sps:$4 sm:$0x11]   ;;  %v7535_v53 = vsel %vm2058_vm6, %v7533_v48, %v7534_v36  ;;  %v8488_v41 = vshrl.u32 %v15917_v49, 16 }
 0x852   : > { %v10343_v59 = vpop.f32.mrb[124].mxu0  ;;  %11123 = vmatprep.subr.bf16.mxu1 %v12101_v52  ;;  %v8495_v29 = vshll.u32 %v15929_v22, 16 }
 0x853   : > { %v10344_v9 = vpop.f32.mrb[125].mxu0 }
 0x854   : > { %v15912_v31 = vadd.f32 %v10344_v9, %v10343_v59  ;;  %v10346_v38 = vpop.f32.mrb[126].mxu0  ;;  %v8483_v59 = vshll.u32 %v15915_v12, 16 }
 0x855   : > { %v10347_v51 = vpop.f32.mrb[127].mxu0  ;;  %11124 = vmatpush3.bf16.msra.mxu1 %v12101_v52  ;;  %v8481_v52 = vor.u32 %v8480_v40, %v8476_v42  ;;  %v7537_v40 = vrot.slane %v15756_v27, 1 }
 0x856   : > { %v15919_v0 = vadd.f32 %v10347_v51, %v10346_v38  ;;  %v7536_v38 = vrot.slane %v15742_v20, 1  ;;  %v8485_v51 = vrot.slane %v8483_v59, 1  ;;  %v7540_v20 = vrot.slane %v15774_v10, 1 }
 0x857   : > { %8901 = vmatmul.mubr.bf16.gmra.mrb[232].mxu0 %v15879_v46  ;;  %v8497_v59 = vrot.slane %v8495_v29, 1  ;;  %v7545_v10 = vrot.slane %v15798_v15, 1  ;;  %v7548_v15 = vrot.slane %v15816_v24, 1 }
 0x858   : > { %8908 = vmatprep.mubr.bf16.mxu0 %v8474_v35  ;;  %11094 = vmatmul.mubr.bf16.gmra.mrb[132].mxu1 %v7532_v39  ;;  %v8492_v35 = vrot.slane %v8490_v33, 1  ;;  %v7539_v39 = vrot.slane %v15762_v7, 1  ;;  %v8486_v48 = vsel %vm1849_vm3, %v8481_v52, %v8485_v51  ;;  %v7538_v36 = vsel %vm2058_vm6, %v7536_v38, %v7537_v40 }
 0x859   : > { %11097 = vmatprep.mubr.bf16.mxu1 %v7535_v53  ;;  %v7542_v52 = vrot.slane %v15780_v62, 1  ;;  %v7543_v38 = vrot.slane %v15792_v14, 1  ;;  %v7546_v51 = vrot.slane %v15810_v16, 1  ;;  %v8515_v14 = vrot.slane %v15652_v5, 1 }
 0x85a   : > { %v10349_v9 = vpop.f32.mrb[128].mxu0  ;;  %v8493_v42 = vor.u32 %v8492_v35, %v8488_v41  ;;  %v7549_v16 = vrot.slane %v15828_v4, 1  ;;  %v8518_v5 = vrot.slane %v15690_v63, 1  ;;  %v8521_v4 = vrot.slane %v15714_v11, 1 }
 0x85b   : > { %v10350_v19 = vpop.f32.mrb[129].mxu0  ;;  %v7544_v41 = vsel %vm2058_vm6, %v7542_v52, %v7543_v38  ;;  %v7547_v29 = vsel %vm2058_vm6, %v7545_v10, %v7546_v51  ;;  %v8522_v52 = vrot.slane %v15727_v61, 1  ;;  %v8525_v11 = vrot.slane %v15749_v23, 1 }
 0x85c   : > { %v15933_v28 = vadd.f32 %v10350_v19, %v10349_v9  ;;  %v10352_v45 = vpop.f32.mrb[130].mxu0  ;;  %v7541_v9 = vsel %vm2058_vm6, %v7539_v39, %v7540_v20  ;;  %v8498_v27 = vsel %vm1849_vm3, %v8493_v42, %v8497_v59  ;;  %v7550_v42 = vsel %vm2058_vm6, %v7548_v15, %v7549_v16 }
 0x85d   : > { %v10353_v50 = vpop.f32.mrb[131].mxu0  ;;  %v8523_v38 = vsel %vm2058_vm6, %v8521_v4, %v8522_v52  ;;  %v8528_v61 = vrot.slane %v15767_v25, 1  ;;  %v8533_v23 = vrot.slane %v15790_v8, 1  ;;  %v8534_v25 = vrot.slane %v15803_v43, 1 }
 0x85e   : > { %v15938_v12 = vadd.f32 %v10353_v50, %v10352_v45  ;;  %v8536_v52 = vrot.slane %v15808_v37, 1 }
 0x85f   : > { %8909 = vmatmul.mubr.bf16.gmra.mrb[236].mxu0 %v15890_v18 }
 0x860   : > { %8916 = vmatprep.mubr.bf16.mxu0 %v8486_v48  ;;  %11098 = vmatmul.mubr.bf16.gmra.mrb[136].mxu1 %v7538_v36  ;;  %v8516_v36 = vrot.slane %v15678_v1, 1  ;;  %v8519_v1 = vrot.slane %v15709_v26, 1  ;;  %v8527_v26 = vrot.slane %v15754_v54, 1  ;;  %v8531_v54 = vrot.slane %v15785_v32, 1 }
 0x861   : > { %11101 = vmatprep.mubr.bf16.mxu1 %v7541_v9 }
 0x862   : > { %v10355_v33 = vpop.f32.mrb[132].mxu0  ;;  %v8529_v15 = vsel %vm2058_vm6, %v8527_v26, %v8528_v61  ;;  %v16570_v61 = vld [vmem:[#allocation26_spill] sm:$0xff] }
 0x863   : > { %v10356_v53 = vpop.f32.mrb[133].mxu0 }
 0x864   : > { %v15947_v7 = vadd.f32 %v10356_v53, %v10355_v33  ;;  %v10358_v19 = vpop.f32.mrb[134].mxu0  ;;  %v8517_v33 = vsel %vm2058_vm6, %v8515_v14, %v8516_v36 }
 0x865   : > { %v10359_v45 = vpop.f32.mrb[135].mxu0 }
 0x866   : > { %v15951_v50 = vadd.f32 %v10359_v45, %v10358_v19 }
 0x867   : > { %8917 = vmatmul.mubr.bf16.gmra.mrb[240].mxu0 %v15904_v21 }
 0x868   : > { %8924 = vmatprep.mubr.bf16.mxu0 %v8498_v27  ;;  %11102 = vmatmul.mubr.bf16.gmra.mrb[140].mxu1 %v7544_v41  ;;  %v8520_v27 = vsel %vm2058_vm6, %v8518_v5, %v8519_v1 }
 0x869   : > { %11105 = vmatprep.mubr.bf16.mxu1 %v7547_v29  ;;  %v8524_v29 = vrot.slane %v15732_v34, 1 }
 0x86a   : > { %v10361_v35 = vpop.f32.mrb[136].mxu0 }
 0x86b   : > { %v10362_v62 = vpop.f32.mrb[137].mxu0 }
 0x86c   : > { %v15959_v39 = vadd.f32 %v10362_v62, %v10361_v35  ;;  %v10364_v48 = vpop.f32.mrb[138].mxu0 }
 0x86d   : > { %v10365_v40 = vpop.f32.mrb[139].mxu0 }
 0x86e   : > { %v15962_v20 = vadd.f32 %v10365_v40, %v10364_v48  ;;  %v8526_v48 = vsel %vm2058_vm6, %v8524_v29, %v8525_v11  ;;  %v8537_v29 = vrot.slane %v15821_v30, 1  ;;  %v8540_v11 = vrot.slane %v15837_v6, 1 }
 0x86f   : > { %8925 = vmatmul.mubr.bf16.gmra.mrb[244].mxu0 %v15917_v49 }
 0x870   : > { %11106 = vmatmul.mubr.bf16.gmra.mrb[144].mxu1 %v7550_v42  ;;  %v8530_v42 = vrot.slane %v15772_v3, 1  ;;  %v8535_v3 = vsel %vm2058_vm6, %v8533_v23, %v8534_v25  ;;  %v8542_v23 = vrot.slane %v15841_v60, 1 }
 0x871   : > { %11125 = vmatprep.mubr.bf16.mxu1 %v8517_v33 }
 0x872   : > { %v10367_v59 = vpop.f32.mrb[140].mxu0  ;;  %v8532_v33 = vsel %vm2058_vm6, %v8530_v42, %v8531_v54 }
 0x873   : > { %v10368_v9 = vpop.f32.mrb[141].mxu0 }
 0x874   : > { %v15970_v53 = vadd.f32 %v10368_v9, %v10367_v59  ;;  %v10370_v24 = vpop.f32.mrb[142].mxu0  ;;  %v9564_v9 = vld [vmem:[%s16568_s27] ss:$0 sm:$0xff]  ;;  %s12455_s27 = scalar_lea.vmem %s16362_s10, 4096 }
 0x875   : > { %v10371_v19 = vpop.f32.mrb[143].mxu0  ;;  %p12456_p11 = scmp.ne.s32.totalorder %s16362_s10, %s12455_s27 }
 0x876   : > { %v15973_v45 = vadd.f32 %v10371_v19, %v10370_v24  ;;  %v9669_v24 = vld [vmem:[%s16569_s30] ss:$0 sm:$0xff]  ;;  %s12461_s30 = scalar_lea.vmem %s12460_s26, 8192 }
 0x877   : > { %v16008_v43 = vadd.f32 %v9669_v24, %v9564_v9  ;;  %p12457_p1 = pnand %p12456_p11, %p16574_p0  ;;  %p12463_p9 = scmp.lt.s32.totalorder %s12461_s30, %s12455_s27 }
 0x878   : > { %11126 = vmatmul.mubr.bf16.vlgmr.msra.gmra.mrb[116].mxu1 %v8520_v27 }
 0x879   : > { %11129 = vmatprep.mubr.bf16.mxu1 %v8523_v38  ;;  %v8539_v38 = vrot.slane %v15826_v47, 1  ;;  %v11362_v9 = vadd.f32 %v16008_v43, %v15912_v31  ;;  %p12458_p3 = pneg %p12457_p1  ;;  %p12464_p12 = por %p12463_p9, %p12462_p7 }
 0x87a   : > { %v10373_v10 = vpop.f32.mrb[144].mxu0 }
 0x87b   : > { %v10374_v51 = vpop.f32.mrb[145].mxu0  ;;  %v8541_v47 = vsel %vm2058_vm6, %v8539_v38, %v8540_v11  ;;  %v11387_v11 = vadd.f32 %v16008_v43, %v15933_v28  ;;  %p12465_p2 = pnand %p12464_p12, %p12458_p3 }
 0x87c   : > { %v15980_v41 = vadd.f32 %v10374_v51, %v10373_v10  ;;  %v10376_v35 = vpop.f32.mrb[146].mxu0  ;;  %v11367_v51 = vadd.f32 %v16008_v43, %v15736_v44 }
 0x87d   : > { %v10377_v63 = vpop.f32.mrb[147].mxu0 }
 0x87e   : > { %v15983_v62 = vadd.f32 %v10377_v63, %v10376_v35 }
 0x880   : > { %11130 = vmatmul.mubr.bf16.gmra.mrb[120].mxu1 %v8526_v48  ;;  %v11377_v48 = vadd.f32 %v16008_v43, %v16570_v61 }
 0x881   : > { %11133 = vmatprep.mubr.bf16.mxu1 %v8529_v15  ;;  %v8538_v15 = vsel %vm2058_vm6, %v8536_v52, %v8537_v29 }
 0x882   : > { %v10379_v40 = vpop.f32.mrb[148].mxu0 }
 0x883   : > { %v10380_v14 = vpop.f32.mrb[149].mxu0 }
 0x884   : > { %v15990_v16 = vadd.f32 %v10380_v14, %v10379_v40  ;;  %v10382_v36 = vpop.f32.mrb[150].mxu0 }
 0x885   : > { %v10383_v34 = vpop.f32.mrb[151].mxu0 }
 0x886   : > { %v15993_v59 = vadd.f32 %v10383_v34, %v10382_v36 }
 0x888   : > { %11134 = vmatmul.mubr.bf16.gmra.mrb[124].mxu1 %v8532_v33  ;;  %v8545_v33 = vrot.slane %v15853_v58, 1 }
 0x889   : > { %11137 = vmatprep.mubr.bf16.mxu1 %v8535_v3  ;;  %v8543_v3 = vrot.slane %v15848_v2, 1 }
 0x88a   : > { %v10385_v19 = vpop.f32.mrb[152].mxu0 }
 0x88b   : > { %v10386_v5 = vpop.f32.mrb[153].mxu0  ;;  %v10473_v1 = vpop.f32.mrb[148].mxu1  ;;  %v8544_v52 = vsel %vm2058_vm6, %v8542_v23, %v8543_v3 }
 0x88c   : > { %v16006_v8 = vadd.f32 %v10386_v5, %v10385_v19  ;;  %v10388_v32 = vpop.f32.mrb[154].mxu0  ;;  %v10474_v10 = vpop.f32.mrb[149].mxu1 }
 0x88d   : > { %v10389_v4 = vpop.f32.mrb[155].mxu0  ;;  %v10475_v35 = vadd.f32 %v10474_v10, %v10473_v1  ;;  %v10476_v63 = vpop.f32.mrb[150].mxu1 }
 0x88e   : > { %v16011_v27 = vadd.f32 %v10389_v4, %v10388_v32  ;;  %v10477_v26 = vpop.f32.mrb[151].mxu1  ;;  %v8546_v32 = vrot.slane %v15862_v55, 1  ;;  %v11372_v4 = vadd.f32 %v16008_v43, %v15919_v0  ;;  %v8548_v0 = vrot.slane %v15867_v56, 1 }
 0x88f   : > { %v16020_v40 = vadd.f32 %v11367_v51, %v10475_v35  ;;  %v10478_v37 = vadd.f32 %v10477_v26, %v10476_v63  ;;  %v8551_v26 = vrot.slane %v15879_v46, 1 }
 0x890   : > { %11138 = vmatmul.mubr.bf16.gmra.mrb[128].mxu1 %v8538_v15  ;;  %v8547_v58 = vsel %vm2058_vm6, %v8545_v33, %v8546_v32  ;;  %v8555_v32 = vrot.slane %v15898_v13, 1  ;;  %v8560_v13 = vrot.slane %v15917_v49, 1  ;;  %v11417_v49 = vadd.f32 %v16008_v43, %v15962_v20 }
 0x891   : > { %v16024_v44 = vadd.f32 %v11377_v48, %v10478_v37  ;;  %11141 = vmatprep.mubr.bf16.mxu1 %v8541_v47  ;;  %v8549_v37 = vrot.slane %v15875_v57, 1  ;;  %v11397_v47 = vadd.f32 %v16008_v43, %v15938_v12  ;;  %v8554_v12 = vrot.slane %v15890_v18, 1 }
 0x892   : > { %v10391_v14 = vpop.f32.mrb[156].mxu0 }
 0x893   : > { %v10392_v36 = vpop.f32.mrb[157].mxu0  ;;  %v10479_v42 = vpop.f32.mrb[152].mxu1 }
 0x894   : > { %v16026_v30 = vadd.f32 %v10392_v36, %v10391_v14  ;;  %v10394_v34 = vpop.f32.mrb[158].mxu0  ;;  %v10480_v25 = vpop.f32.mrb[153].mxu1  ;;  %v8552_v14 = vrot.slane %v15886_v17, 1 }
 0x895   : > { %v10395_v6 = vpop.f32.mrb[159].mxu0  ;;  %v10481_v24 = vadd.f32 %v10480_v25, %v10479_v42  ;;  %v10482_v19 = vpop.f32.mrb[154].mxu1 }
 0x896   : > { %v16029_v54 = vadd.f32 %v10395_v6, %v10394_v34  ;;  %v10483_v5 = vpop.f32.mrb[155].mxu1  ;;  %v8550_v34 = vsel %vm2058_vm6, %v8548_v0, %v8549_v37  ;;  %v8553_v46 = vsel %vm2058_vm6, %v8551_v26, %v8552_v14 }
 0x897   : > { %v16038_v1 = vadd.f32 %v11362_v9, %v10481_v24  ;;  %v10484_v60 = vadd.f32 %v10483_v5, %v10482_v19  ;;  %v8557_v24 = vrot.slane %v15904_v21, 1  ;;  %v11382_v19 = vadd.f32 %v16008_v43, %v15947_v7 }
 0x898   : > { %11142 = vmatmul.mubr.bf16.gmra.mrb[132].mxu1 %v8544_v52 }
 0x899   : > { %v16042_v31 = vadd.f32 %v11372_v4, %v10484_v60  ;;  %11145 = vmatprep.mubr.bf16.mxu1 %v8547_v58  ;;  %v16571_v60 = vld [vmem:[#allocation25_spill] sm:$0xff] }
 0x89a   : > { %v10397_v10 = vpop.f32.mrb[160].mxu0  ;;  %v8558_v52 = vrot.slane %v16571_v60, 1 }
 0x89b   : > { %v10398_v38 = vpop.f32.mrb[161].mxu0  ;;  %v10485_v35 = vpop.f32.mrb[156].mxu1 }
 0x89c   : > { %v16044_v2 = vadd.f32 %v10398_v38, %v10397_v10  ;;  %v10400_v51 = vpop.f32.mrb[162].mxu0  ;;  %v10486_v29 = vpop.f32.mrb[157].mxu1  ;;  %v11392_v10 = vadd.f32 %v16008_v43, %v15951_v50  ;;  %v8556_v38 = vsel %vm2058_vm6, %v8554_v12, %v8555_v32  ;;  %v8559_v21 = vsel %vm2058_vm6, %v8557_v24, %v8558_v52 }
 0x89d   : > { %v10401_v55 = vpop.f32.mrb[163].mxu0  ;;  %v10487_v61 = vadd.f32 %v10486_v29, %v10485_v35  ;;  %v10488_v48 = vpop.f32.mrb[158].mxu1  ;;  %v8561_v35 = vrot.slane %v15929_v22, 1 }
 0x89e   : > { %v16047_v63 = vadd.f32 %v10401_v55, %v10400_v51  ;;  %v10489_v15 = vpop.f32.mrb[159].mxu1 }
 0x89f   : > { %v16056_v36 = vadd.f32 %v11387_v11, %v10487_v61  ;;  %v10490_v56 = vadd.f32 %v10489_v15, %v10488_v48  ;;  %v11407_v48 = vadd.f32 %v16008_v43, %v15959_v39  ;;  %v8562_v14 = vsel %vm2058_vm6, %v8560_v13, %v8561_v35 }
 0x8a0   : > { %11146 = vmatmul.mubr.bf16.gmra.mrb[136].mxu1 %v8550_v34 }
 0x8a1   : > { %v16060_v28 = vadd.f32 %v11397_v47, %v10490_v56  ;;  %11149 = vmatprep.mubr.bf16.mxu1 %v8553_v46 }
 0x8a2   : > { %v10403_v6 = vpop.f32.mrb[164].mxu0 }
 0x8a3   : > { %v10404_v42 = vpop.f32.mrb[165].mxu0  ;;  %v10491_v25 = vpop.f32.mrb[160].mxu1 }
 0x8a4   : > { %v16062_v57 = vadd.f32 %v10404_v42, %v10403_v6  ;;  %v10406_v23 = vpop.f32.mrb[166].mxu0  ;;  %v10492_v9 = vpop.f32.mrb[161].mxu1 }
 0x8a5   : > { %v10407_v17 = vpop.f32.mrb[167].mxu0  ;;  %v10493_v3 = vadd.f32 %v10492_v9, %v10491_v25  ;;  %v10494_v5 = vpop.f32.mrb[162].mxu1  ;;  %v11402_v9 = vadd.f32 %v16008_v43, %v15970_v53 }
 0x8a6   : > { %v16065_v33 = vadd.f32 %v10407_v17, %v10406_v23  ;;  %v10495_v4 = vpop.f32.mrb[163].mxu1 }
 0x8a7   : > { %v16074_v58 = vadd.f32 %v11382_v19, %v10493_v3  ;;  %v10496_v18 = vadd.f32 %v10495_v4, %v10494_v5  ;;  %v11412_v3 = vadd.f32 %v16008_v43, %v15973_v45 }
 0x8a8   : > { %11150 = vmatmul.mubr.bf16.gmra.mrb[140].mxu1 %v8556_v38 }
 0x8a9   : > { %v16078_v7 = vadd.f32 %v11392_v10, %v10496_v18  ;;  %11153 = vmatprep.mubr.bf16.mxu1 %v8559_v21 }
 0x8aa   : > { %v10409_v51 = vpop.f32.mrb[168].mxu0 }
 0x8ab   : > { %v10410_v55 = vpop.f32.mrb[169].mxu0  ;;  %v10497_v26 = vpop.f32.mrb[164].mxu1 }
 0x8ac   : > { %v16082_v0 = vadd.f32 %v10410_v55, %v10409_v51  ;;  %v10412_v50 = vpop.f32.mrb[170].mxu0  ;;  %v10498_v61 = vpop.f32.mrb[165].mxu1  ;;  %v11427_v55 = vadd.f32 %v16008_v43, %v15980_v41 }
 0x8ad   : > { %v10413_v29 = vpop.f32.mrb[171].mxu0  ;;  %v10499_v37 = vadd.f32 %v10498_v61, %v10497_v26  ;;  %v10500_v15 = vpop.f32.mrb[166].mxu1 }
 0x8ae   : > { %v16084_v11 = vadd.f32 %v10413_v29, %v10412_v50  ;;  %v10501_v47 = vpop.f32.mrb[167].mxu1  ;;  %v11437_v50 = vadd.f32 %v16008_v43, %v15983_v62 }
 0x8af   : > { %v16091_v22 = vadd.f32 %v11407_v48, %v10499_v37  ;;  %v10502_v56 = vadd.f32 %v10501_v47, %v10500_v15 }
 0x8b0   : > { %11154 = vmatmul.mubr.bf16.gmra.mrb[144].mxu1 %v8562_v14 }
 0x8b1   : > { %v16093_v6 = vadd.f32 %v11417_v49, %v10502_v56 }
 0x8b2   : > { %v10415_v34 = vpop.f32.mrb[172].mxu0 }
 0x8b3   : > { %v10416_v46 = vpop.f32.mrb[173].mxu0  ;;  %v10503_v17 = vpop.f32.mrb[168].mxu1 }
 0x8b4   : > { %v16095_v42 = vadd.f32 %v10416_v46, %v10415_v34  ;;  %v10418_v23 = vpop.f32.mrb[174].mxu0  ;;  %v10504_v12 = vpop.f32.mrb[169].mxu1  ;;  %v11422_v34 = vadd.f32 %v16008_v43, %v15990_v16  ;;  %v11447_v16 = vadd.f32 %v16008_v43, %v16006_v8 }
 0x8b5   : > { %v10419_v39 = vpop.f32.mrb[175].mxu0  ;;  %v10505_v20 = vadd.f32 %v10504_v12, %v10503_v17  ;;  %v10506_v24 = vpop.f32.mrb[170].mxu1 }
 0x8b6   : > { %v16097_v25 = vadd.f32 %v10419_v39, %v10418_v23  ;;  %v10507_v19 = vpop.f32.mrb[171].mxu1  ;;  %v11432_v39 = vadd.f32 %v16008_v43, %v15993_v59 }
 0x8b7   : > { %v16103_v5 = vadd.f32 %v11402_v9, %v10505_v20  ;;  %v10508_v32 = vadd.f32 %v10507_v19, %v10506_v24 }
 0x8b9   : > { %v16105_v60 = vadd.f32 %v11412_v3, %v10508_v32 }
 0x8ba   : > { %v10421_v4 = vpop.f32.mrb[176].mxu0 }
 0x8bb   : > { %v10422_v52 = vpop.f32.mrb[177].mxu0  ;;  %v10509_v51 = vpop.f32.mrb[172].mxu1 }
 0x8bc   : > { %v16107_v10 = vadd.f32 %v10422_v52, %v10421_v4  ;;  %v10424_v18 = vpop.f32.mrb[178].mxu0  ;;  %v10510_v53 = vpop.f32.mrb[173].mxu1 }
 0x8bd   : > { %v10425_v38 = vpop.f32.mrb[179].mxu0  ;;  %v10511_v13 = vadd.f32 %v10510_v53, %v10509_v51  ;;  %v10512_v45 = vpop.f32.mrb[174].mxu1 }
 0x8be   : > { %v16109_v21 = vadd.f32 %v10425_v38, %v10424_v18  ;;  %v10513_v35 = vpop.f32.mrb[175].mxu1 }
 0x8bf   : > { %v16115_v29 = vadd.f32 %v11427_v55, %v10511_v13  ;;  %v10514_v26 = vadd.f32 %v10513_v35, %v10512_v45  ;;  %v11457_v55 = vadd.f32 %v16008_v43, %v16011_v27  ;;  %v11442_v27 = vadd.f32 %v16008_v43, %v16026_v30 }
 0x8c1   : > { %v16117_v48 = vadd.f32 %v11437_v50, %v10514_v26 }
 0x8c2   : > { %v10427_v61 = vpop.f32.mrb[180].mxu0 }
 0x8c3   : > { %v10428_v37 = vpop.f32.mrb[181].mxu0  ;;  %v10515_v49 = vpop.f32.mrb[176].mxu1 }
 0x8c4   : > { %v16119_v15 = vadd.f32 %v10428_v37, %v10427_v61  ;;  %v10430_v14 = vpop.f32.mrb[182].mxu0  ;;  %v10516_v41 = vpop.f32.mrb[177].mxu1 }
 0x8c5   : > { %v10431_v47 = vpop.f32.mrb[183].mxu0  ;;  %v10517_v46 = vadd.f32 %v10516_v41, %v10515_v49  ;;  %v10518_v62 = vpop.f32.mrb[178].mxu1 }
 0x8c6   : > { %v16121_v56 = vadd.f32 %v10431_v47, %v10430_v14  ;;  %v10519_v23 = vpop.f32.mrb[179].mxu1 }
 0x8c7   : > { %v16127_v17 = vadd.f32 %v11422_v34, %v10517_v46  ;;  %v10520_v12 = vadd.f32 %v10519_v23, %v10518_v62  ;;  %v11452_v23 = vadd.f32 %v16008_v43, %v16029_v54 }
 0x8c9   : > { %v16129_v20 = vadd.f32 %v11432_v39, %v10520_v12 }
 0x8ca   : > { %v10609_v9 = vpop.f32.mrb[184].mxu0 }
 0x8cb   : > { %v10610_v24 = vpop.f32.mrb[185].mxu0  ;;  %v10521_v32 = vpop.f32.mrb[180].mxu1 }
 0x8cc   : > { %v10611_v19 = vadd.f32 %v10610_v24, %v10609_v9  ;;  %v10612_v3 = vpop.f32.mrb[186].mxu0  ;;  %v10522_v18 = vpop.f32.mrb[181].mxu1 }
 0x8cd   : > { %v10613_v4 = vpop.f32.mrb[187].mxu0  ;;  %v10523_v38 = vadd.f32 %v10522_v18, %v10521_v32  ;;  %v10524_v51 = vpop.f32.mrb[182].mxu1 }
 0x8ce   : > { %v10614_v52 = vadd.f32 %v10613_v4, %v10612_v3  ;;  %v10525_v53 = vpop.f32.mrb[183].mxu1  ;;  %v16134_v59 = vadd.f32 %v16020_v40, %v10611_v19 }
 0x8cf   : > { %v16138_v13 = vadd.f32 %v11447_v16, %v10523_v38  ;;  %v10526_v45 = vadd.f32 %v10525_v53, %v10524_v51  ;;  %v11477_v53 = vadd.f32 %v16008_v43, %v16047_v63 }
 0x8d0   : > { %v16141_v50 = vadd.f32 %v16024_v44, %v10614_v52 }
 0x8d1   : > { %v16143_v26 = vadd.f32 %v11457_v55, %v10526_v45 }
 0x8d2   : > { %v10615_v35 = vpop.f32.mrb[188].mxu0 }
 0x8d3   : > { %v10616_v61 = vpop.f32.mrb[189].mxu0  ;;  %v10527_v14 = vpop.f32.mrb[184].mxu1 }
 0x8d4   : > { %v10617_v8 = vadd.f32 %v10616_v61, %v10615_v35  ;;  %v10618_v37 = vpop.f32.mrb[190].mxu0  ;;  %v10528_v40 = vpop.f32.mrb[185].mxu1 }
 0x8d5   : > { %v10619_v47 = vpop.f32.mrb[191].mxu0  ;;  %v10529_v34 = vadd.f32 %v10528_v40, %v10527_v14  ;;  %v10530_v46 = vpop.f32.mrb[186].mxu1 }
 0x8d6   : > { %v10620_v49 = vadd.f32 %v10619_v47, %v10618_v37  ;;  %v16146_v41 = vadd.f32 %v16038_v1, %v10617_v8  ;;  %v10531_v62 = vpop.f32.mrb[187].mxu1 }
 0x8d7   : > { %v16155_v39 = vadd.f32 %v11442_v27, %v10529_v34  ;;  %v10532_v12 = vadd.f32 %v10531_v62, %v10530_v46  ;;  %v11472_v62 = vadd.f32 %v16008_v43, %v16065_v33 }
 0x8d8   : > { %v16151_v44 = vadd.f32 %v16042_v31, %v10620_v49  ;;  %v11467_v31 = vadd.f32 %v16008_v43, %v16044_v2 }
 0x8d9   : > { %v16157_v24 = vadd.f32 %v11452_v23, %v10532_v12 }
 0x8da   : > { %v10621_v9 = vpop.f32.mrb[192].mxu0 }
 0x8db   : > { %v10622_v1 = vpop.f32.mrb[193].mxu0  ;;  %v10533_v32 = vpop.f32.mrb[188].mxu1 }
 0x8dc   : > { %v10623_v19 = vadd.f32 %v10622_v1, %v10621_v9  ;;  %v10624_v3 = vpop.f32.mrb[194].mxu0  ;;  %v10534_v52 = vpop.f32.mrb[189].mxu1 }
 0x8dd   : > { %v10625_v30 = vpop.f32.mrb[195].mxu0  ;;  %v10535_v54 = vadd.f32 %v10534_v52, %v10533_v32  ;;  %v10536_v16 = vpop.f32.mrb[190].mxu1 }
 0x8de   : > { %v10626_v4 = vadd.f32 %v10625_v30, %v10624_v3  ;;  %v16160_v18 = vadd.f32 %v16056_v36, %v10623_v19  ;;  %v10537_v38 = vpop.f32.mrb[191].mxu1 }
 0x8df   : > { %v16169_v55 = vadd.f32 %v11467_v31, %v10535_v54  ;;  %v10538_v45 = vadd.f32 %v10537_v38, %v10536_v16  ;;  %v11497_v38 = vadd.f32 %v16008_v43, %v16084_v11 }
 0x8e0   : > { %v16165_v51 = vadd.f32 %v16060_v28, %v10626_v4  ;;  %v11462_v28 = vadd.f32 %v16008_v43, %v16062_v57 }
 0x8e1   : > { %v16171_v61 = vadd.f32 %v11477_v53, %v10538_v45 }
 0x8e2   : > { %v10627_v35 = vpop.f32.mrb[196].mxu0 }
 0x8e3   : > { %v10628_v36 = vpop.f32.mrb[197].mxu0  ;;  %v10539_v14 = vpop.f32.mrb[192].mxu1 }
 0x8e4   : > { %v10629_v8 = vadd.f32 %v10628_v36, %v10627_v35  ;;  %v10630_v37 = vpop.f32.mrb[198].mxu0  ;;  %v10540_v49 = vpop.f32.mrb[193].mxu1 }
 0x8e5   : > { %v10631_v2 = vpop.f32.mrb[199].mxu0  ;;  %v10541_v63 = vadd.f32 %v10540_v49, %v10539_v14  ;;  %v10542_v27 = vpop.f32.mrb[194].mxu1 }
 0x8e6   : > { %v10632_v47 = vadd.f32 %v10631_v2, %v10630_v37  ;;  %v16174_v40 = vadd.f32 %v16074_v58, %v10629_v8  ;;  %v10543_v34 = vpop.f32.mrb[195].mxu1 }
 0x8e7   : > { %v16183_v23 = vadd.f32 %v11462_v28, %v10541_v63  ;;  %v10544_v12 = vadd.f32 %v10543_v34, %v10542_v27  ;;  %v11492_v34 = vadd.f32 %v16008_v43, %v16097_v25 }
 0x8e8   : > { %v16179_v46 = vadd.f32 %v16078_v7, %v10632_v47  ;;  %v11487_v7 = vadd.f32 %v16008_v43, %v16082_v0 }
 0x8e9   : > { %v16185_v1 = vadd.f32 %v11472_v62, %v10544_v12 }
 0x8ea   : > { %v10633_v9 = vpop.f32.mrb[200].mxu0 }
 0x8eb   : > { %v10634_v58 = vpop.f32.mrb[201].mxu0  ;;  %v10545_v32 = vpop.f32.mrb[196].mxu1 }
 0x8ec   : > { %v10635_v19 = vadd.f32 %v10634_v58, %v10633_v9  ;;  %v10636_v3 = vpop.f32.mrb[202].mxu0  ;;  %v10546_v4 = vpop.f32.mrb[197].mxu1 }
 0x8ed   : > { %v10637_v57 = vpop.f32.mrb[203].mxu0  ;;  %v10547_v33 = vadd.f32 %v10546_v4, %v10545_v32  ;;  %v10548_v31 = vpop.f32.mrb[198].mxu1 }
 0x8ee   : > { %v10638_v30 = vadd.f32 %v10637_v57, %v10636_v3  ;;  %v16188_v52 = vadd.f32 %v16091_v22, %v10635_v19  ;;  %v10549_v54 = vpop.f32.mrb[199].mxu1 }
 0x8ef   : > { %v16197_v53 = vadd.f32 %v11487_v7, %v10547_v33  ;;  %v10550_v45 = vadd.f32 %v10549_v54, %v10548_v31  ;;  %v11517_v54 = vadd.f32 %v16008_v43, %v16109_v21 }
 0x8f0   : > { %v16193_v16 = vadd.f32 %v16093_v6, %v10638_v30  ;;  %v11482_v6 = vadd.f32 %v16008_v43, %v16095_v42 }
 0x8f1   : > { %v16199_v36 = vadd.f32 %v11497_v38, %v10550_v45 }
 0x8f2   : > { %v10639_v35 = vpop.f32.mrb[204].mxu0 }
 0x8f3   : > { %v10640_v22 = vpop.f32.mrb[205].mxu0  ;;  %v10551_v14 = vpop.f32.mrb[200].mxu1 }
 0x8f4   : > { %v10641_v8 = vadd.f32 %v10640_v22, %v10639_v35  ;;  %v10642_v37 = vpop.f32.mrb[206].mxu0  ;;  %v10552_v47 = vpop.f32.mrb[201].mxu1 }
 0x8f5   : > { %v10643_v0 = vpop.f32.mrb[207].mxu0  ;;  %v10553_v11 = vadd.f32 %v10552_v47, %v10551_v14  ;;  %v10554_v28 = vpop.f32.mrb[202].mxu1 }
 0x8f6   : > { %v10644_v2 = vadd.f32 %v10643_v0, %v10642_v37  ;;  %v16202_v49 = vadd.f32 %v16103_v5, %v10641_v8  ;;  %v10555_v63 = vpop.f32.mrb[203].mxu1 }
 0x8f7   : > { %v16211_v62 = vadd.f32 %v11482_v6, %v10553_v11  ;;  %v10556_v12 = vadd.f32 %v10555_v63, %v10554_v28  ;;  %v11512_v63 = vadd.f32 %v16008_v43, %v16121_v56 }
 0x8f8   : > { %v16207_v27 = vadd.f32 %v16105_v60, %v10644_v2  ;;  %v11507_v60 = vadd.f32 %v16008_v43, %v16107_v10 }
 0x8f9   : > { %v16213_v58 = vadd.f32 %v11492_v34, %v10556_v12 }
 0x8fa   : > { %v10645_v9 = vpop.f32.mrb[208].mxu0 }
 0x8fb   : > { %v10646_v5 = vpop.f32.mrb[209].mxu0  ;;  %v10557_v32 = vpop.f32.mrb[204].mxu1 }
 0x8fc   : > { %v10647_v19 = vadd.f32 %v10646_v5, %v10645_v9  ;;  %v10648_v3 = vpop.f32.mrb[210].mxu0  ;;  %v10558_v30 = vpop.f32.mrb[205].mxu1 }
 0x8fd   : > { %v10649_v42 = vpop.f32.mrb[211].mxu0  ;;  %v10559_v25 = vadd.f32 %v10558_v30, %v10557_v32  ;;  %v10560_v7 = vpop.f32.mrb[206].mxu1 }
 0x8fe   : > { %v10650_v57 = vadd.f32 %v10649_v42, %v10648_v3  ;;  %v16216_v4 = vadd.f32 %v16115_v29, %v10647_v19  ;;  %v10561_v33 = vpop.f32.mrb[207].mxu1 }
 0x8ff   : > { %v16225_v38 = vadd.f32 %v11507_v60, %v10559_v25  ;;  %v10562_v45 = vadd.f32 %v10561_v33, %v10560_v7 }
 0x900   : > { %v16221_v31 = vadd.f32 %v16117_v48, %v10650_v57  ;;  %v11502_v48 = vadd.f32 %v16008_v43, %v16119_v15 }
 0x901   : > { %v16227_v22 = vadd.f32 %v11517_v54, %v10562_v45 }
 0x902   : > { %v10651_v35 = vpop.f32.mrb[212].mxu0 }
 0x903   : > { %v10652_v29 = vpop.f32.mrb[213].mxu0  ;;  %v10563_v14 = vpop.f32.mrb[208].mxu1 }
 0x904   : > { %v10653_v8 = vadd.f32 %v10652_v29, %v10651_v35  ;;  %v10654_v37 = vpop.f32.mrb[214].mxu0  ;;  %v10564_v2 = vpop.f32.mrb[209].mxu1 }
 0x905   : > { %v10655_v10 = vpop.f32.mrb[215].mxu0  ;;  %v10565_v21 = vadd.f32 %v10564_v2, %v10563_v14  ;;  %v10566_v6 = vpop.f32.mrb[210].mxu1 }
 0x906   : > { %v10656_v0 = vadd.f32 %v10655_v10, %v10654_v37  ;;  %v16230_v47 = vadd.f32 %v16127_v17, %v10653_v8  ;;  %v10567_v11 = vpop.f32.mrb[211].mxu1 }
 0x907   : > { %v16239_v34 = vadd.f32 %v11502_v48, %v10565_v21  ;;  %v10568_v12 = vadd.f32 %v10567_v11, %v10566_v6 }
 0x908   : > { %v16235_v28 = vadd.f32 %v16129_v20, %v10656_v0 }
 0x909   : > { %v16241_v5 = vadd.f32 %v11512_v63, %v10568_v12 }
 0x90a   : > { %v10657_v9 = vpop.f32.mrb[216].mxu0 }
 0x90b   : > { %v10658_v17 = vpop.f32.mrb[217].mxu0 }
 0x90c   : > { %v10659_v19 = vadd.f32 %v10658_v17, %v10657_v9  ;;  %v10660_v3 = vpop.f32.mrb[218].mxu0 }
 0x90d   : > { %v10661_v32 = vpop.f32.mrb[219].mxu0 }
 0x90e   : > { %v10662_v15 = vadd.f32 %v10661_v32, %v10660_v3  ;;  %v16244_v42 = vadd.f32 %v16138_v13, %v10659_v19 }
 0x910   : > { %v16247_v20 = vadd.f32 %v16143_v26, %v10662_v15 }
 0x912   : > { %v10663_v57 = vpop.f32.mrb[220].mxu0 }
 0x913   : > { %v10664_v30 = vpop.f32.mrb[221].mxu0 }
 0x914   : > { %v10665_v43 = vadd.f32 %v10664_v30, %v10663_v57  ;;  %v10666_v56 = vpop.f32.mrb[222].mxu0 }
 0x915   : > { %v10667_v60 = vpop.f32.mrb[223].mxu0 }
 0x916   : > { %v10668_v25 = vadd.f32 %v10667_v60, %v10666_v56  ;;  %v16250_v7 = vadd.f32 %v16155_v39, %v10665_v43 }
 0x918   : > { %v16253_v33 = vadd.f32 %v16157_v24, %v10668_v25 }
 0x91a   : > { %v10669_v54 = vpop.f32.mrb[224].mxu0 }
 0x91b   : > { %v10670_v45 = vpop.f32.mrb[225].mxu0 }
 0x91c   : > { %v10671_v35 = vadd.f32 %v10670_v45, %v10669_v54  ;;  %v10672_v13 = vpop.f32.mrb[226].mxu0 }
 0x91d   : > { %v10673_v29 = vpop.f32.mrb[227].mxu0 }
 0x91e   : > { %v10674_v8 = vadd.f32 %v10673_v29, %v10672_v13  ;;  %v16256_v26 = vadd.f32 %v16169_v55, %v10671_v35 }
 0x920   : > { %v16259_v37 = vadd.f32 %v16171_v61, %v10674_v8 }
 0x922   : > { %v10675_v14 = vpop.f32.mrb[228].mxu0 }
 0x923   : > { %v10676_v10 = vpop.f32.mrb[229].mxu0 }
 0x924   : > { %v10677_v0 = vadd.f32 %v10676_v10, %v10675_v14  ;;  %v10678_v39 = vpop.f32.mrb[230].mxu0 }
 0x925   : > { %v10679_v2 = vpop.f32.mrb[231].mxu0 }
 0x926   : > { %v10680_v48 = vadd.f32 %v10679_v2, %v10678_v39  ;;  %v16262_v24 = vadd.f32 %v16183_v23, %v10677_v0 }
 0x928   : > { %v16265_v21 = vadd.f32 %v16185_v1, %v10680_v48 }
 0x92a   : > { %v10681_v6 = vpop.f32.mrb[232].mxu0 }
 0x92b   : > { %v10682_v11 = vpop.f32.mrb[233].mxu0 }
 0x92c   : > { %v10683_v63 = vadd.f32 %v10682_v11, %v10681_v6  ;;  %v10684_v55 = vpop.f32.mrb[234].mxu0 }
 0x92d   : > { %v10685_v12 = vpop.f32.mrb[235].mxu0 }
 0x92e   : > { %v10686_v9 = vadd.f32 %v10685_v12, %v10684_v55  ;;  %v16268_v61 = vadd.f32 %v16197_v53, %v10683_v63 }
 0x930   : > { %v16271_v17 = vadd.f32 %v16199_v36, %v10686_v9 }
 0x932   : > { %v10687_v19 = vpop.f32.mrb[236].mxu0 }
 0x933   : > { %v10688_v3 = vpop.f32.mrb[237].mxu0 }
 0x934   : > { %v10689_v32 = vadd.f32 %v10688_v3, %v10687_v19  ;;  %v10690_v23 = vpop.f32.mrb[238].mxu0 }
 0x935   : > { %v10691_v15 = vpop.f32.mrb[239].mxu0 }
 0x936   : > { %v10692_v57 = vadd.f32 %v10691_v15, %v10690_v23  ;;  %v16274_v1 = vadd.f32 %v16211_v62, %v10689_v32 }
 0x938   : > { %v16277_v30 = vadd.f32 %v16213_v58, %v10692_v57 }
 0x93a   : > { %v10693_v43 = vpop.f32.mrb[240].mxu0 }
 0x93b   : > { %v10694_v56 = vpop.f32.mrb[241].mxu0 }
 0x93c   : > { %v10695_v60 = vadd.f32 %v10694_v56, %v10693_v43  ;;  %v10696_v53 = vpop.f32.mrb[242].mxu0 }
 0x93d   : > { %v10697_v25 = vpop.f32.mrb[243].mxu0 }
 0x93e   : > { %v10698_v54 = vadd.f32 %v10697_v25, %v10696_v53  ;;  %v16280_v36 = vadd.f32 %v16225_v38, %v10695_v60 }
 0x940   : > { %v16283_v45 = vadd.f32 %v16227_v22, %v10698_v54 }
 0x942   : > { %v10699_v35 = vpop.f32.mrb[244].mxu0 }
 0x943   : > { %v10700_v13 = vpop.f32.mrb[245].mxu0 }
 0x944   : > { %v10701_v62 = vadd.f32 %v10700_v13, %v10699_v35  ;;  %v10702_v29 = vpop.f32.mrb[246].mxu0 }
 0x945   : > { %v10703_v8 = vpop.f32.mrb[247].mxu0 }
 0x946   : > { %v10704_v58 = vadd.f32 %v10703_v8, %v10702_v29  ;;  %v16286_v14 = vadd.f32 %v16239_v34, %v10701_v62 }
 0x948   : > { %v16289_v10 = vadd.f32 %v16241_v5, %v10704_v58 }
 0x94b   : > { %v11127_v0 = vpop.f32.mrb[116].mxu1 }
 0x94c   : > { %v11365_v39 = vadd.f32 %v16146_v41, %v11127_v0  ;;  %v8967_v38 = vpop.f32.mrb[117].mxu1 }
 0x94d   : > { %v11370_v2 = vadd.f32 %v16134_v59, %v8967_v38  ;;  %v11128_v22 = vpop.f32.mrb[118].mxu1 }
 0x94e   : > { %9128 = vst [vmem:[%s16295_s9 + $0x10] sm:$0xff] %v11365_v39  ;;  %v11375_v34 = vadd.f32 %v16151_v44, %v11128_v22  ;;  %v8970_v5 = vpop.f32.mrb[119].mxu1 }
 0x94f   : > { %9126 = vst [vmem:[%s16295_s9] sm:$0xff] %v11370_v2  ;;  %v11380_v41 = vadd.f32 %v16141_v50, %v8970_v5 }
 0x950   : > { %9129 = vst [vmem:[%s16295_s9 + $0x18] sm:$0xff] %v11375_v34 }
 0x951   : > { %9127 = vst [vmem:[%s16295_s9 + $0x8] sm:$0xff] %v11380_v41 }
 0x953   : > { %v11131_v59 = vpop.f32.mrb[120].mxu1 }
 0x954   : > { %v11385_v48 = vadd.f32 %v16174_v40, %v11131_v59  ;;  %v8983_v6 = vpop.f32.mrb[121].mxu1 }
 0x955   : > { %v11390_v11 = vadd.f32 %v16160_v18, %v8983_v6  ;;  %v11132_v63 = vpop.f32.mrb[122].mxu1 }
 0x956   : > { %9132 = vst [vmem:[%s16295_s9 + $0x30] sm:$0xff] %v11385_v48  ;;  %v11395_v44 = vadd.f32 %v16179_v46, %v11132_v63  ;;  %v8986_v55 = vpop.f32.mrb[123].mxu1 }
 0x957   : > { %9130 = vst [vmem:[%s16295_s9 + $0x20] sm:$0xff] %v11390_v11  ;;  %v11400_v50 = vadd.f32 %v16165_v51, %v8986_v55 }
 0x958   : > { %9133 = vst [vmem:[%s16295_s9 + $0x38] sm:$0xff] %v11395_v44 }
 0x959   : > { %9131 = vst [vmem:[%s16295_s9 + $0x28] sm:$0xff] %v11400_v50 }
 0x95b   : > { %v11135_v12 = vpop.f32.mrb[124].mxu1 }
 0x95c   : > { %v11405_v40 = vadd.f32 %v16202_v49, %v11135_v12  ;;  %v8999_v9 = vpop.f32.mrb[125].mxu1 }
 0x95d   : > { %v11410_v18 = vadd.f32 %v16188_v52, %v8999_v9  ;;  %v11136_v19 = vpop.f32.mrb[126].mxu1 }
 0x95e   : > { %9136 = vst [vmem:[%s16295_s9 + $0x50] sm:$0xff] %v11405_v40  ;;  %v11415_v46 = vadd.f32 %v16207_v27, %v11136_v19  ;;  %v9002_v3 = vpop.f32.mrb[127].mxu1 }
 0x95f   : > { %9134 = vst [vmem:[%s16295_s9 + $0x40] sm:$0xff] %v11410_v18  ;;  %v11420_v51 = vadd.f32 %v16193_v16, %v9002_v3 }
 0x960   : > { %9137 = vst [vmem:[%s16295_s9 + $0x58] sm:$0xff] %v11415_v46 }
 0x961   : > { %9135 = vst [vmem:[%s16295_s9 + $0x48] sm:$0xff] %v11420_v51 }
 0x963   : > { %v11139_v32 = vpop.f32.mrb[128].mxu1 }
 0x964   : > { %v11425_v49 = vadd.f32 %v16230_v47, %v11139_v32  ;;  %v9015_v23 = vpop.f32.mrb[129].mxu1 }
 0x965   : > { %v11430_v52 = vadd.f32 %v16216_v4, %v9015_v23  ;;  %v11140_v15 = vpop.f32.mrb[130].mxu1 }
 0x966   : > { %9140 = vst [vmem:[%s16295_s9 + $0x70] sm:$0xff] %v11425_v49  ;;  %v11435_v27 = vadd.f32 %v16235_v28, %v11140_v15  ;;  %v9018_v57 = vpop.f32.mrb[131].mxu1 }
 0x967   : > { %9138 = vst [vmem:[%s16295_s9 + $0x60] sm:$0xff] %v11430_v52  ;;  %v11440_v16 = vadd.f32 %v16221_v31, %v9018_v57 }
 0x968   : > { %9141 = vst [vmem:[%s16295_s9 + $0x78] sm:$0xff] %v11435_v27 }
 0x969   : > { %9139 = vst [vmem:[%s16295_s9 + $0x68] sm:$0xff] %v11440_v16 }
 0x96b   : > { %v11143_v43 = vpop.f32.mrb[132].mxu1 }
 0x96c   : > { %v11445_v47 = vadd.f32 %v16250_v7, %v11143_v43  ;;  %v9031_v56 = vpop.f32.mrb[133].mxu1 }
 0x96d   : > { %v11450_v4 = vadd.f32 %v16244_v42, %v9031_v56  ;;  %v11144_v60 = vpop.f32.mrb[134].mxu1 }
 0x96e   : > { %9144 = vst [vmem:[%s16295_s9 + $0x90] sm:$0xff] %v11445_v47  ;;  %v11455_v28 = vadd.f32 %v16253_v33, %v11144_v60  ;;  %v9034_v53 = vpop.f32.mrb[135].mxu1 }
 0x96f   : > { %9142 = vst [vmem:[%s16295_s9 + $0x80] sm:$0xff] %v11450_v4  ;;  %v11460_v31 = vadd.f32 %v16247_v20, %v9034_v53 }
 0x970   : > { %9145 = vst [vmem:[%s16295_s9 + $0x98] sm:$0xff] %v11455_v28 }
 0x971   : > { %9143 = vst [vmem:[%s16295_s9 + $0x88] sm:$0xff] %v11460_v31 }
 0x973   : > { %v11147_v25 = vpop.f32.mrb[136].mxu1 }
 0x974   : > { %v11465_v7 = vadd.f32 %v16262_v24, %v11147_v25  ;;  %v9047_v54 = vpop.f32.mrb[137].mxu1 }
 0x975   : > { %v11470_v42 = vadd.f32 %v16256_v26, %v9047_v54  ;;  %v11148_v35 = vpop.f32.mrb[138].mxu1 }
 0x976   : > { %9148 = vst [vmem:[%s16295_s9 + $0xb0] sm:$0xff] %v11465_v7  ;;  %v11475_v33 = vadd.f32 %v16265_v21, %v11148_v35  ;;  %v9050_v13 = vpop.f32.mrb[139].mxu1 }
 0x977   : > { %9146 = vst [vmem:[%s16295_s9 + $0xa0] sm:$0xff] %v11470_v42  ;;  %v11480_v20 = vadd.f32 %v16259_v37, %v9050_v13 }
 0x978   : > { %9149 = vst [vmem:[%s16295_s9 + $0xb8] sm:$0xff] %v11475_v33 }
 0x979   : > { %9147 = vst [vmem:[%s16295_s9 + $0xa8] sm:$0xff] %v11480_v20 }
 0x97b   : > { %v11151_v24 = vpop.f32.mrb[140].mxu1 }
 0x97c   : > { %v11485_v62 = vadd.f32 %v16274_v1, %v11151_v24  ;;  %v9063_v29 = vpop.f32.mrb[141].mxu1 }
 0x97d   : > { %v11490_v26 = vadd.f32 %v16268_v61, %v9063_v29  ;;  %v11152_v8 = vpop.f32.mrb[142].mxu1 }
 0x97e   : > { %9152 = vst [vmem:[%s16295_s9 + $0xd0] sm:$0xff] %v11485_v62  ;;  %v11495_v21 = vadd.f32 %v16277_v30, %v11152_v8  ;;  %v9066_v58 = vpop.f32.mrb[143].mxu1 }
 0x97f   : > { %9150 = vst [vmem:[%s16295_s9 + $0xc0] sm:$0xff] %v11490_v26  ;;  %v11500_v37 = vadd.f32 %v16271_v17, %v9066_v58 }
 0x980   : > { %9153 = vst [vmem:[%s16295_s9 + $0xd8] sm:$0xff] %v11495_v21 }
 0x981   : > { %9151 = vst [vmem:[%s16295_s9 + $0xc8] sm:$0xff] %v11500_v37 }
 0x983   : > { %v11155_v0 = vpop.f32.mrb[144].mxu1 }
 0x984   : > { %v11505_v61 = vadd.f32 %v16286_v14, %v11155_v0  ;;  %v9079_v1 = vpop.f32.mrb[145].mxu1 }
 0x985   : > { %v11510_v39 = vadd.f32 %v16280_v36, %v9079_v1  ;;  %v11156_v30 = vpop.f32.mrb[146].mxu1 }
 0x986   : > { %9156 = vst [vmem:[%s16295_s9 + $0xf0] sm:$0xff] %v11505_v61  ;;  %v11515_v38 = vadd.f32 %v16289_v10, %v11156_v30  ;;  %v9082_v2 = vpop.f32.mrb[147].mxu1 }
 0x987   : > { %9154 = vst [vmem:[%s16295_s9 + $0xe0] sm:$0xff] %v11510_v39  ;;  %v11520_v17 = vadd.f32 %v16283_v45, %v9082_v2 }
 0x988   : > { %9157 = vst [vmem:[%s16295_s9 + $0xf8] sm:$0xff] %v11515_v38 }
 0x989   : > { %9155 = vst [vmem:[%s16295_s9 + $0xe8] sm:$0xff] %v11520_v17 }
 0x98a   : > { %12468 = shalt.err (!%p12465_p2)
}
 0x98b   : > { %s12469_s9 = scalar_lea.hbm %s16360_s12, 4096  ;;  %s12473_s15 = scalar_lea.hbm %s16573_s16, 8192 }
 0x98c   : > { %p12470_p13 = scmp.ne.s32.totalorder %s16360_s12, %s12469_s9  ;;  %p12474_p4 = scmp.lt.u32.totalorder %s16360_s12, %s16573_s16 }
 0x98d   : > { %p12475_p5 = scmp.lt.u32.totalorder %s12473_s15, %s12469_s9  ;;  %p12477_p11 = scmp.lt.u32.totalorder %s12469_s9, %s16360_s12 }
 0x98e   : > { %p12471_p6 = pnand %p12470_p13, %p16574_p0 }
 0x98f   : > { %p12476_p8 = por %p12475_p5, %p12474_p4 }
 0x990   : > { %p12472_p10 = pneg %p12471_p6 }
 0x991   : > { %p12478_p1 = por %p12477_p11, %p12476_p8 }
 0x993   : > { %p12479_p3 = pnand %p12478_p1, %p12472_p10 }
 0x995   : > { %12482 = shalt.err (!%p12479_p3)
}
 0x996   : > { %s12539_s27 = smov 128   ;;  %s12540_s26 = smov 8  }
 0x997   : > { %11691 = dma.vmem_to_hbm [thread:$0]  (%p16574_p0), %s16362_s10, 4096, %s16360_s12, %s9159_s22, %s12539_s27, %s12539_s27, %s12540_s26  }
 0x998 PF: > { %s16575_s30 = sld [smem:[#allocation14_spill]]  ;;  %s16576_s23 = sld [smem:[#allocation15_spill]] }
 0x999   : > { %p16578_p9 = scmp.ge.s32.totalorder %s12525_s21, 2 }
 0x99e   : > { %s9187_s29 = sand.u32 1, %s16575_s30   ;;  %p16577_p7 = scmp.ne.s32.totalorder %s16576_s23, 0 }
 0x99f   : > { %s9188_s9 = scalar_lea.sflag [#allocation6], %s9187_s29 }
 0x9a0   : > { %p11705_p12 = pnand %p16578_p9, %p16577_p7 }
 0x9a2   : > { %12508 = dma.done.wait (!%p11705_p12), %s9188_s9, 4096  }
 0x9a3   : > { %12510 = vsyncadd (!%p11705_p12), %s9188_s9, 4294963200  ;;  %p29_p2 = scmp.ge.s32.totalorder %s12731_s14, 4   ;;  %s16579_s18 = smov %s12517_s19 }
 0x9a4   : > { %s16580_s19 = smov %s12521_s20  ;;  %s16581_s20 = smov %s12747_s17 }
 0x9a5   : > { %s16582_s21 = smov %s12731_s14  ;;  %31 = sbr.rel (!%p29_p2) target bundleno = 12 (0xc), region = 143 }
 0x9ac   :  { %9193 = vsyncpa [#allocation5], 1 }
 0x9ad   :  { %9195 = vsyncpa [#allocation5 + $0x1], 1 }
 0x9ae   :  { %9196 = vsyncpa [#allocation8], 1 }
 0x9af   :  { %9197 = vsyncpa [#allocation6], 1 }
 0x9b0   :  { %9199 = vsyncpa [#allocation6 + $0x1], 1 }

</bundles_post_ra>
